<compile_context>
chip_gen: v5e
topology: v5e:2x2
jax: 0.10.0
libtpu: 0.0.40
codegen_flags: <defaults>
</compile_context>

<pallas_src>
import functools

import jax
import jax.numpy as jnp
from jax import lax
from jax.experimental import pallas as pl
from jax.experimental.pallas import tpu as pltpu

NUM_CLASSES = 6
_NEG = -1e30      # pad-logit bias -> exp() underflows to exactly 0 in softmax


def _round_up(a, b):
    return ((a + b - 1) // b) * b


# -----------------------------------------------------------------------------
# Fused kernel: whole CNN_32 forward for a tile of `tb` images, fully batched.
# -----------------------------------------------------------------------------
def _cnn32_kernel(x_ref, b1w_ref, b1b_ref, b2w_ref, b2b_ref,
                  fc1w_ref, fc1b_ref, fc2w_ref, fc2b_ref, fc3w_ref, fc3b_ref,
                  o_ref, *, tb):
    f32 = jnp.float32

    # ---- stage 1: conv1(3->6, k5) + ReLU + 2x2 maxpool -----------------------
    # x_ref rows are laid out ((h mod 4)*8 + h div 4)*tb + image, so for every
    # (pooled-row parity, pool phase dh, kernel row kh) the LHS is ONE
    # contiguous, tb-aligned (7*tb, 96) slab covering all images of the tile.
    # Resulting rows are (pooled-row q, image) — already the layout stage 2 needs.
    def stage1(parity):
        acc = [None, None]
        for dh in (0, 1):
            for kh in range(5):
                r = 2 * parity + dh + kh              # input row h = 4*q + r
                m, b0 = r % 4, r // 4
                start = (m * 8 + b0) * tb
                slab = x_ref[start:start + 7 * tb, :]            # (7tb, 96) bf16
                c = jnp.dot(slab, b1w_ref[kh],
                            preferred_element_type=f32)          # (7tb, 168)
                acc[dh] = c if acc[dh] is None else acc[dh] + c
        v = jnp.maximum(acc[0], acc[1])               # max over pool-h phase
        v = jnp.maximum(v[:, :84], v[:, 84:])         # max over pool-w phase
        return jnp.maximum(v + b1b_ref[...], 0.0)     # (7tb, 84), rows = (q, t)

    p1 = (stage1(0), stage1(1))                       # even / odd pooled rows

    # ---- stage 2: conv2(6->16, k5) + ReLU + 2x2 maxpool ----------------------
    acc2 = [None, None]
    for dh in (0, 1):
        for kh in range(5):
            r = dh + kh                               # pool1 row h1 = 2*ph2 + r
            start = (r >> 1) * tb
            slab = p1[r & 1][start:start + 5 * tb, :]            # (5tb, 84)
            c = jnp.dot(slab, b2w_ref[kh], preferred_element_type=f32)
            acc2[dh] = c if acc2[dh] is None else acc2[dh] + c
    v2 = jnp.maximum(acc2[0], acc2[1])
    v2 = jnp.maximum(v2[:, :80], v2[:, 80:])
    p2 = jnp.maximum(v2 + b2b_ref[...], 0.0)          # (5tb, 80), rows = (ph2, t)

    # ---- FC head: fc1 -> relu -> fc2 -> relu -> fc3 -> softmax ---------------
    h = None
    for hr in range(5):                               # fc1 accumulated over h-rows
        c = jnp.dot(p2[hr * tb:(hr + 1) * tb, :], fc1w_ref[hr],
                    preferred_element_type=f32)       # (tb, 128)
        h = c if h is None else h + c
    h = jnp.maximum(h + fc1b_ref[...], 0.0)
    h = jnp.maximum(jnp.dot(h, fc2w_ref[...], preferred_element_type=f32)
                    + fc2b_ref[...], 0.0)
    logits = (jnp.dot(h, fc3w_ref[...], preferred_element_type=f32)
              + fc3b_ref[...])                        # pad lanes biased to -1e30
    logits = logits - jnp.max(logits, axis=-1, keepdims=True)
    e = jnp.exp(logits)
    denom = jnp.sum(e, axis=-1, keepdims=True)
    o_ref[...] = e * pl.reciprocal(denom, approx=True)   # one dense (tb,128) store


# -----------------------------------------------------------------------------
# One-time parameter repacking (hoisted out of the per-call path).
# -----------------------------------------------------------------------------
def _band_select(in_w, out_w, k):
    # sel[d, q, w, kk] = 1  iff  w == 2*q + d + kk   (conv stride 1, pool 2x2).
    wi = jnp.arange(in_w)[None, None, :, None]
    d = jnp.arange(2)[:, None, None, None]
    q = jnp.arange(out_w)[None, :, None, None]
    kk = jnp.arange(k)[None, None, None, :]
    return (wi == 2 * q + d + kk).astype(jnp.float32)


def prepare_params(params):
    """Repack CNN_32 params into kernel-friendly banded / padded tensors."""
    f32 = jnp.float32
    w1 = params["conv1_w"].astype(f32)           # (6, 3, 5, 5)  [o, c, kh, kw]
    w2 = params["conv2_w"].astype(f32)           # (16, 6, 5, 5)

    # Banded conv+pool weights: B[kh][(w_in, c_in), (dw, w_out, c_out)].
    t1 = _band_select(32, 14, 5)                                   # (2,14,32,5)
    b1w = jnp.einsum("dqwk,ochk->hwcdqo", t1, w1).reshape(5, 96, 168)
    t2 = _band_select(14, 5, 5)                                    # (2,5,14,5)
    b2w = jnp.einsum("dqwk,ochk->hwcdqo", t2, w2).reshape(5, 84, 160)

    b1b = jnp.tile(params["conv1_b"].astype(f32), 14).reshape(1, 84)
    b2b = jnp.tile(params["conv2_b"].astype(f32), 5).reshape(1, 80)

    # fc1: reorder rows from torch's NCHW flatten (c, h, w) to the kernel's
    # (h, (w, c)) layout, split per h-row, pad out-width 120 -> 128.
    fc1 = params["fc1_w"].astype(f32).reshape(16, 5, 5, 120)       # [c,h,w,f]
    fc1 = jnp.transpose(fc1, (1, 2, 0, 3)).reshape(5, 80, 120)     # [h,(w,c),f]
    fc1w = jnp.pad(fc1, ((0, 0), (0, 0), (0, 8)))                  # (5, 80, 128)
    fc1b = jnp.pad(params["fc1_b"].astype(f32), (0, 8)).reshape(1, 128)

    fc2w = jnp.zeros((128, 128), f32).at[:120, :84].set(
        params["fc2_w"].astype(f32))
    fc2b = jnp.pad(params["fc2_b"].astype(f32), (0, 44)).reshape(1, 128)

    fc3w = jnp.zeros((128, 128), f32).at[:84, :NUM_CLASSES].set(
        params["fc3_w"].astype(f32))
    fc3b = jnp.full((128,), _NEG, f32).at[:NUM_CLASSES].set(
        params["fc3_b"].astype(f32)).reshape(1, 128)

    # conv1 band weights feed the bf16 MXU path (input slab is bf16 too);
    # everything downstream stays f32 (v5e VPU/EUP have no bf16).
    return {"b1w": b1w.astype(jnp.bfloat16), "b1b": b1b, "b2w": b2w, "b2b": b2b,
            "fc1w": fc1w, "fc1b": fc1b, "fc2w": fc2w, "fc2b": fc2b,
            "fc3w": fc3w, "fc3b": fc3b}


# -----------------------------------------------------------------------------
# Forward pass: one fused pallas_call, grid over image tiles.
# -----------------------------------------------------------------------------
@jax.jit
def cnn32_forward(x_nchw, prep):
    n = x_nchw.shape[0]
    # Tile batch: up to 128 images per grid step; always a multiple of 16 so
    # every in-kernel slab offset (multiples of tb) is sublane-aligned even for
    # the bf16 input.  For large batches grid length is >= 2 (v7x: 2 TCs).
    tb = min(128, _round_up(n, 16))
    n_pad = _round_up(n, tb)
    n_tiles = n_pad // tb

    # Single fused host-side pass: cast to bf16 + NCHW -> (h mod 4, h div 4,
    # image)-major row layout; XLA fuses the transpose chain into one copy.
    x = x_nchw.astype(jnp.bfloat16)
    x = jnp.transpose(x, (0, 2, 3, 1)).reshape(n, 32, 96)          # (n, h, w*c)
    if n_pad > n:
        x = jnp.pad(x, ((0, n_pad - n), (0, 0), (0, 0)))
    x = x.reshape(n_tiles, tb, 8, 4, 96)                            # (T,t,q,m,wc)
    x = jnp.transpose(x, (0, 3, 2, 1, 4)).reshape(n_pad * 32, 96)   # (T,m,q,t,wc)

    c2 = lambda i: (0, 0)
    c3 = lambda i: (0, 0, 0)
    out = pl.pallas_call(
        functools.partial(_cnn32_kernel, tb=tb),
        out_shape=jax.ShapeDtypeStruct((n_pad, 128), jnp.float32),
        grid_spec=pltpu.PrefetchScalarGridSpec(
            num_scalar_prefetch=0,
            grid=(n_tiles,),
            in_specs=[
                pl.BlockSpec((32 * tb, 96), lambda i: (i, 0)),   # bf16 images
                pl.BlockSpec((5, 96, 168), c3),                  # conv1 banded (bf16)
                pl.BlockSpec((1, 84), c2),
                pl.BlockSpec((5, 84, 160), c3),                  # conv2 banded (f32)
                pl.BlockSpec((1, 80), c2),
                pl.BlockSpec((5, 80, 128), c3),                  # fc1 (per h-row)
                pl.BlockSpec((1, 128), c2),
                pl.BlockSpec((128, 128), c2),                    # fc2 padded
                pl.BlockSpec((1, 128), c2),
                pl.BlockSpec((128, 128), c2),                    # fc3 padded
                pl.BlockSpec((1, 128), c2),
            ],
            out_specs=pl.BlockSpec((tb, 128), lambda i: (i, 0)),
        ),
        compiler_params=pltpu.CompilerParams(
            dimension_semantics=("parallel",)),
    )(x, prep["b1w"], prep["b1b"], prep["b2w"], prep["b2b"],
      prep["fc1w"], prep["fc1b"], prep["fc2w"], prep["fc2b"],
      prep["fc3w"], prep["fc3b"])
    return out[:n, :NUM_CLASSES]


# -----------------------------------------------------------------------------
# Pure-JAX reference (correctness sanity check only)
# -----------------------------------------------------------------------------
def cnn32_reference(x_nchw, params):
    dn = ("NCHW", "OIHW", "NCHW")

    def conv(x, w, b):
        y = lax.conv_general_dilated(x, w, (1, 1), "VALID",
                                     dimension_numbers=dn)
        return jnp.maximum(y + b.reshape(1, -1, 1, 1), 0.0)

    def pool(x):
        return lax.reduce_window(x, -jnp.inf, lax.max,
                                 (1, 1, 2, 2), (1, 1, 2, 2), "VALID")

    x = x_nchw.astype(jnp.float32)
    x = pool(conv(x, params["conv1_w"], params["conv1_b"]))
    x = pool(conv(x, params["conv2_w"], params["conv2_b"]))
    x = x.reshape(x.shape[0], -1)
    x = jnp.maximum(x @ params["fc1_w"] + params["fc1_b"], 0.0)
    x = jnp.maximum(x @ params["fc2_w"] + params["fc2_b"], 0.0)
    x = x @ params["fc3_w"] + params["fc3_b"]
    return jax.nn.softmax(x, axis=1)


# -----------------------------------------------------------------------------
# Deterministic parameter initialization (shapes from CNN_32.__init__)
# -----------------------------------------------------------------------------
def init_params(key):
    ks = jax.random.split(key, 10)

    def u(k, shape, fan_in):
        bound = 1.0 / jnp.sqrt(fan_in)
        return jax.random.uniform(k, shape, jnp.float32, -bound, bound)

    return {
        "conv1_w": u(ks[0], (6, 3, 5, 5), 3 * 5 * 5),
        "conv1_b": u(ks[1], (6,), 3 * 5 * 5),
        "conv2_w": u(ks[2], (16, 6, 5, 5), 6 * 5 * 5),
        "conv2_b": u(ks[3], (16,), 6 * 5 * 5),
        # stored transposed relative to torch: (in_features, out_features)
        "fc1_w": u(ks[4], (400, 120), 400),
        "fc1_b": u(ks[5], (120,), 400),
        "fc2_w": u(ks[6], (120, 84), 120),
        "fc2_b": u(ks[7], (84,), 120),
        "fc3_w": u(ks[8], (84, NUM_CLASSES), 84),
        "fc3_b": u(ks[9], (NUM_CLASSES,), 84),
    }


if __name__ == "__main__":
    key = jax.random.PRNGKey(0)
    k_params, k_input = jax.random.split(key)

    params = init_params(k_params)
    prep = prepare_params(params)        # one-time weight repack (hoisted)

    # CNN_32 requires 32x32 RGB inputs (fc1 expects 16*5*5 flattened features).
    x = jax.random.normal(k_input, (2, 3, 32, 32), dtype=jnp.float32)

    out = cnn32_forward(x, prep)
    out = jax.block_until_ready(out)

    ref = cnn32_reference(x, params)
    assert out.shape == (2, NUM_CLASSES)
    assert bool(jnp.all(jnp.isfinite(out)))
    # Tolerance covers the bf16 image/conv1-weight rounding + approx reciprocal.
    assert bool(jnp.allclose(out, ref, atol=5e-3, rtol=2e-2)), "mismatch vs reference"
    assert bool(jnp.allclose(jnp.sum(out, axis=1), 1.0, atol=5e-3))

    print("KERNEL_OK")
</pallas_src>

<mosaic_0001>
module attributes {stable_mosaic.version = 11 : i64} {
  func.func @_cnn32_kernel(%arg0: i32, %arg1: memref<512x96xbf16, #tpu.memory_space<vmem>>, %arg2: memref<5x96x168xbf16, #tpu.memory_space<vmem>>, %arg3: memref<1x84xf32, #tpu.memory_space<vmem>>, %arg4: memref<5x84x160xf32, #tpu.memory_space<vmem>>, %arg5: memref<1x80xf32, #tpu.memory_space<vmem>>, %arg6: memref<5x80x128xf32, #tpu.memory_space<vmem>>, %arg7: memref<1x128xf32, #tpu.memory_space<vmem>>, %arg8: memref<128x128xf32, #tpu.memory_space<vmem>>, %arg9: memref<1x128xf32, #tpu.memory_space<vmem>>, %arg10: memref<128x128xf32, #tpu.memory_space<vmem>>, %arg11: memref<1x128xf32, #tpu.memory_space<vmem>>, %arg12: memref<16x128xf32, #tpu.memory_space<vmem>>) attributes {dimension_semantics = [#tpu.dimension_semantics<parallel>], iteration_bounds = array<i64: 1>, scalar_prefetch = 0 : i64, scratch_operands = 0 : i64, tpu.core_type = #tpu.core_type<tc>, window_params = [{transform_indices = @transform_0, window_bounds = array<i64: 512, 96>}, {pipeline_mode = #tpu.pipeline_mode<synchronous>, transform_indices = @transform_1, window_bounds = array<i64: 5, 96, 168>}, {pipeline_mode = #tpu.pipeline_mode<synchronous>, transform_indices = @transform_2, window_bounds = array<i64: 1, 84>}, {pipeline_mode = #tpu.pipeline_mode<synchronous>, transform_indices = @transform_3, window_bounds = array<i64: 5, 84, 160>}, {pipeline_mode = #tpu.pipeline_mode<synchronous>, transform_indices = @transform_4, window_bounds = array<i64: 1, 80>}, {pipeline_mode = #tpu.pipeline_mode<synchronous>, transform_indices = @transform_5, window_bounds = array<i64: 5, 80, 128>}, {pipeline_mode = #tpu.pipeline_mode<synchronous>, transform_indices = @transform_6, window_bounds = array<i64: 1, 128>}, {pipeline_mode = #tpu.pipeline_mode<synchronous>, transform_indices = @transform_7, window_bounds = array<i64: 128, 128>}, {pipeline_mode = #tpu.pipeline_mode<synchronous>, transform_indices = @transform_8, window_bounds = array<i64: 1, 128>}, {pipeline_mode = #tpu.pipeline_mode<synchronous>, transform_indices = @transform_9, window_bounds = array<i64: 128, 128>}, {pipeline_mode = #tpu.pipeline_mode<synchronous>, transform_indices = @transform_10, window_bounds = array<i64: 1, 128>}, {transform_indices = @transform_11, window_bounds = array<i64: 16, 128>}]} {
    %c0 = arith.constant 0 : index
    %c0_0 = arith.constant 0 : index
    %0 = vector.load %arg1[%c0, %c0_0] : memref<512x96xbf16, #tpu.memory_space<vmem>>, vector<112x96xbf16>
    %c0_1 = arith.constant 0 : index
    %c0_2 = arith.constant 0 : index
    %c0_3 = arith.constant 0 : index
    %1 = vector.load %arg2[%c0_1, %c0_2, %c0_3] : memref<5x96x168xbf16, #tpu.memory_space<vmem>>, vector<1x96x168xbf16>
    %2 = vector.shape_cast %1 : vector<1x96x168xbf16> to vector<96x168xbf16>
    %cst = arith.constant dense<0.000000e+00> : vector<112x168xf32>
    %3 = tpu.matmul %0, %2, %cst {dimension_numbers = #tpu.dot_dimension_numbers<[1], [0], [0], [1], [0, 0, 1, 1], [], []>} : vector<112x96xbf16>, vector<96x168xbf16>, vector<112x168xf32> -> vector<112x168xf32>
    %c128 = arith.constant 128 : index
    %c0_4 = arith.constant 0 : index
    %4 = vector.load %arg1[%c128, %c0_4] : memref<512x96xbf16, #tpu.memory_space<vmem>>, vector<112x96xbf16>
    %c1 = arith.constant 1 : index
    %c0_5 = arith.constant 0 : index
    %c0_6 = arith.constant 0 : index
    %5 = vector.load %arg2[%c1, %c0_5, %c0_6] : memref<5x96x168xbf16, #tpu.memory_space<vmem>>, vector<1x96x168xbf16>
    %6 = vector.shape_cast %5 : vector<1x96x168xbf16> to vector<96x168xbf16>
    %cst_7 = arith.constant dense<0.000000e+00> : vector<112x168xf32>
    %7 = tpu.matmul %4, %6, %cst_7 {dimension_numbers = #tpu.dot_dimension_numbers<[1], [0], [0], [1], [0, 0, 1, 1], [], []>} : vector<112x96xbf16>, vector<96x168xbf16>, vector<112x168xf32> -> vector<112x168xf32>
    %8 = arith.addf %3, %7 : vector<112x168xf32>
    %c256 = arith.constant 256 : index
    %c0_8 = arith.constant 0 : index
    %9 = vector.load %arg1[%c256, %c0_8] : memref<512x96xbf16, #tpu.memory_space<vmem>>, vector<112x96xbf16>
    %c2 = arith.constant 2 : index
    %c0_9 = arith.constant 0 : index
    %c0_10 = arith.constant 0 : index
    %10 = vector.load %arg2[%c2, %c0_9, %c0_10] : memref<5x96x168xbf16, #tpu.memory_space<vmem>>, vector<1x96x168xbf16>
    %11 = vector.shape_cast %10 : vector<1x96x168xbf16> to vector<96x168xbf16>
    %cst_11 = arith.constant dense<0.000000e+00> : vector<112x168xf32>
    %12 = tpu.matmul %9, %11, %cst_11 {dimension_numbers = #tpu.dot_dimension_numbers<[1], [0], [0], [1], [0, 0, 1, 1], [], []>} : vector<112x96xbf16>, vector<96x168xbf16>, vector<112x168xf32> -> vector<112x168xf32>
    %13 = arith.addf %8, %12 : vector<112x168xf32>
    %c384 = arith.constant 384 : index
    %c0_12 = arith.constant 0 : index
    %14 = vector.load %arg1[%c384, %c0_12] : memref<512x96xbf16, #tpu.memory_space<vmem>>, vector<112x96xbf16>
    %c3 = arith.constant 3 : index
    %c0_13 = arith.constant 0 : index
    %c0_14 = arith.constant 0 : index
    %15 = vector.load %arg2[%c3, %c0_13, %c0_14] : memref<5x96x168xbf16, #tpu.memory_space<vmem>>, vector<1x96x168xbf16>
    %16 = vector.shape_cast %15 : vector<1x96x168xbf16> to vector<96x168xbf16>
    %cst_15 = arith.constant dense<0.000000e+00> : vector<112x168xf32>
    %17 = tpu.matmul %14, %16, %cst_15 {dimension_numbers = #tpu.dot_dimension_numbers<[1], [0], [0], [1], [0, 0, 1, 1], [], []>} : vector<112x96xbf16>, vector<96x168xbf16>, vector<112x168xf32> -> vector<112x168xf32>
    %18 = arith.addf %13, %17 : vector<112x168xf32>
    %c16 = arith.constant 16 : index
    %c0_16 = arith.constant 0 : index
    %19 = vector.load %arg1[%c16, %c0_16] : memref<512x96xbf16, #tpu.memory_space<vmem>>, vector<112x96xbf16>
    %c4 = arith.constant 4 : index
    %c0_17 = arith.constant 0 : index
    %c0_18 = arith.constant 0 : index
    %20 = vector.load %arg2[%c4, %c0_17, %c0_18] : memref<5x96x168xbf16, #tpu.memory_space<vmem>>, vector<1x96x168xbf16>
    %21 = vector.shape_cast %20 : vector<1x96x168xbf16> to vector<96x168xbf16>
    %cst_19 = arith.constant dense<0.000000e+00> : vector<112x168xf32>
    %22 = tpu.matmul %19, %21, %cst_19 {dimension_numbers = #tpu.dot_dimension_numbers<[1], [0], [0], [1], [0, 0, 1, 1], [], []>} : vector<112x96xbf16>, vector<96x168xbf16>, vector<112x168xf32> -> vector<112x168xf32>
    %23 = arith.addf %18, %22 : vector<112x168xf32>
    %c128_20 = arith.constant 128 : index
    %c0_21 = arith.constant 0 : index
    %24 = vector.load %arg1[%c128_20, %c0_21] : memref<512x96xbf16, #tpu.memory_space<vmem>>, vector<112x96xbf16>
    %c0_22 = arith.constant 0 : index
    %c0_23 = arith.constant 0 : index
    %c0_24 = arith.constant 0 : index
    %25 = vector.load %arg2[%c0_22, %c0_23, %c0_24] : memref<5x96x168xbf16, #tpu.memory_space<vmem>>, vector<1x96x168xbf16>
    %26 = vector.shape_cast %25 : vector<1x96x168xbf16> to vector<96x168xbf16>
    %cst_25 = arith.constant dense<0.000000e+00> : vector<112x168xf32>
    %27 = tpu.matmul %24, %26, %cst_25 {dimension_numbers = #tpu.dot_dimension_numbers<[1], [0], [0], [1], [0, 0, 1, 1], [], []>} : vector<112x96xbf16>, vector<96x168xbf16>, vector<112x168xf32> -> vector<112x168xf32>
    %c256_26 = arith.constant 256 : index
    %c0_27 = arith.constant 0 : index
    %28 = vector.load %arg1[%c256_26, %c0_27] : memref<512x96xbf16, #tpu.memory_space<vmem>>, vector<112x96xbf16>
    %c1_28 = arith.constant 1 : index
    %c0_29 = arith.constant 0 : index
    %c0_30 = arith.constant 0 : index
    %29 = vector.load %arg2[%c1_28, %c0_29, %c0_30] : memref<5x96x168xbf16, #tpu.memory_space<vmem>>, vector<1x96x168xbf16>
    %30 = vector.shape_cast %29 : vector<1x96x168xbf16> to vector<96x168xbf16>
    %cst_31 = arith.constant dense<0.000000e+00> : vector<112x168xf32>
    %31 = tpu.matmul %28, %30, %cst_31 {dimension_numbers = #tpu.dot_dimension_numbers<[1], [0], [0], [1], [0, 0, 1, 1], [], []>} : vector<112x96xbf16>, vector<96x168xbf16>, vector<112x168xf32> -> vector<112x168xf32>
    %32 = arith.addf %27, %31 : vector<112x168xf32>
    %c384_32 = arith.constant 384 : index
    %c0_33 = arith.constant 0 : index
    %33 = vector.load %arg1[%c384_32, %c0_33] : memref<512x96xbf16, #tpu.memory_space<vmem>>, vector<112x96xbf16>
    %c2_34 = arith.constant 2 : index
    %c0_35 = arith.constant 0 : index
    %c0_36 = arith.constant 0 : index
    %34 = vector.load %arg2[%c2_34, %c0_35, %c0_36] : memref<5x96x168xbf16, #tpu.memory_space<vmem>>, vector<1x96x168xbf16>
    %35 = vector.shape_cast %34 : vector<1x96x168xbf16> to vector<96x168xbf16>
    %cst_37 = arith.constant dense<0.000000e+00> : vector<112x168xf32>
    %36 = tpu.matmul %33, %35, %cst_37 {dimension_numbers = #tpu.dot_dimension_numbers<[1], [0], [0], [1], [0, 0, 1, 1], [], []>} : vector<112x96xbf16>, vector<96x168xbf16>, vector<112x168xf32> -> vector<112x168xf32>
    %37 = arith.addf %32, %36 : vector<112x168xf32>
    %c16_38 = arith.constant 16 : index
    %c0_39 = arith.constant 0 : index
    %38 = vector.load %arg1[%c16_38, %c0_39] : memref<512x96xbf16, #tpu.memory_space<vmem>>, vector<112x96xbf16>
    %c3_40 = arith.constant 3 : index
    %c0_41 = arith.constant 0 : index
    %c0_42 = arith.constant 0 : index
    %39 = vector.load %arg2[%c3_40, %c0_41, %c0_42] : memref<5x96x168xbf16, #tpu.memory_space<vmem>>, vector<1x96x168xbf16>
    %40 = vector.shape_cast %39 : vector<1x96x168xbf16> to vector<96x168xbf16>
    %cst_43 = arith.constant dense<0.000000e+00> : vector<112x168xf32>
    %41 = tpu.matmul %38, %40, %cst_43 {dimension_numbers = #tpu.dot_dimension_numbers<[1], [0], [0], [1], [0, 0, 1, 1], [], []>} : vector<112x96xbf16>, vector<96x168xbf16>, vector<112x168xf32> -> vector<112x168xf32>
    %42 = arith.addf %37, %41 : vector<112x168xf32>
    %c144 = arith.constant 144 : index
    %c0_44 = arith.constant 0 : index
    %43 = vector.load %arg1[%c144, %c0_44] : memref<512x96xbf16, #tpu.memory_space<vmem>>, vector<112x96xbf16>
    %c4_45 = arith.constant 4 : index
    %c0_46 = arith.constant 0 : index
    %c0_47 = arith.constant 0 : index
    %44 = vector.load %arg2[%c4_45, %c0_46, %c0_47] : memref<5x96x168xbf16, #tpu.memory_space<vmem>>, vector<1x96x168xbf16>
    %45 = vector.shape_cast %44 : vector<1x96x168xbf16> to vector<96x168xbf16>
    %cst_48 = arith.constant dense<0.000000e+00> : vector<112x168xf32>
    %46 = tpu.matmul %43, %45, %cst_48 {dimension_numbers = #tpu.dot_dimension_numbers<[1], [0], [0], [1], [0, 0, 1, 1], [], []>} : vector<112x96xbf16>, vector<96x168xbf16>, vector<112x168xf32> -> vector<112x168xf32>
    %47 = arith.addf %42, %46 : vector<112x168xf32>
    %48 = arith.maximumf %23, %47 : vector<112x168xf32>
    %49 = vector.extract_strided_slice %48 {offsets = [0, 0], sizes = [112, 84], strides = [1, 1]} : vector<112x168xf32> to vector<112x84xf32>
    %50 = vector.extract_strided_slice %48 {offsets = [0, 84], sizes = [112, 84], strides = [1, 1]} : vector<112x168xf32> to vector<112x84xf32>
    %51 = arith.maximumf %49, %50 : vector<112x84xf32>
    %c0_49 = arith.constant 0 : index
    %c0_50 = arith.constant 0 : index
    %52 = vector.load %arg3[%c0_49, %c0_50] : memref<1x84xf32, #tpu.memory_space<vmem>>, vector<1x84xf32>
    %53 = vector.broadcast %52 : vector<1x84xf32> to vector<112x84xf32>
    %54 = arith.addf %51, %53 : vector<112x84xf32>
    %cst_51 = arith.constant 0.000000e+00 : f32
    %55 = vector.broadcast %cst_51 : f32 to vector<112x84xf32>
    %56 = arith.maximumf %54, %55 : vector<112x84xf32>
    %c256_52 = arith.constant 256 : index
    %c0_53 = arith.constant 0 : index
    %57 = vector.load %arg1[%c256_52, %c0_53] : memref<512x96xbf16, #tpu.memory_space<vmem>>, vector<112x96xbf16>
    %c0_54 = arith.constant 0 : index
    %c0_55 = arith.constant 0 : index
    %c0_56 = arith.constant 0 : index
    %58 = vector.load %arg2[%c0_54, %c0_55, %c0_56] : memref<5x96x168xbf16, #tpu.memory_space<vmem>>, vector<1x96x168xbf16>
    %59 = vector.shape_cast %58 : vector<1x96x168xbf16> to vector<96x168xbf16>
    %cst_57 = arith.constant dense<0.000000e+00> : vector<112x168xf32>
    %60 = tpu.matmul %57, %59, %cst_57 {dimension_numbers = #tpu.dot_dimension_numbers<[1], [0], [0], [1], [0, 0, 1, 1], [], []>} : vector<112x96xbf16>, vector<96x168xbf16>, vector<112x168xf32> -> vector<112x168xf32>
    %c384_58 = arith.constant 384 : index
    %c0_59 = arith.constant 0 : index
    %61 = vector.load %arg1[%c384_58, %c0_59] : memref<512x96xbf16, #tpu.memory_space<vmem>>, vector<112x96xbf16>
    %c1_60 = arith.constant 1 : index
    %c0_61 = arith.constant 0 : index
    %c0_62 = arith.constant 0 : index
    %62 = vector.load %arg2[%c1_60, %c0_61, %c0_62] : memref<5x96x168xbf16, #tpu.memory_space<vmem>>, vector<1x96x168xbf16>
    %63 = vector.shape_cast %62 : vector<1x96x168xbf16> to vector<96x168xbf16>
    %cst_63 = arith.constant dense<0.000000e+00> : vector<112x168xf32>
    %64 = tpu.matmul %61, %63, %cst_63 {dimension_numbers = #tpu.dot_dimension_numbers<[1], [0], [0], [1], [0, 0, 1, 1], [], []>} : vector<112x96xbf16>, vector<96x168xbf16>, vector<112x168xf32> -> vector<112x168xf32>
    %65 = arith.addf %60, %64 : vector<112x168xf32>
    %c16_64 = arith.constant 16 : index
    %c0_65 = arith.constant 0 : index
    %66 = vector.load %arg1[%c16_64, %c0_65] : memref<512x96xbf16, #tpu.memory_space<vmem>>, vector<112x96xbf16>
    %c2_66 = arith.constant 2 : index
    %c0_67 = arith.constant 0 : index
    %c0_68 = arith.constant 0 : index
    %67 = vector.load %arg2[%c2_66, %c0_67, %c0_68] : memref<5x96x168xbf16, #tpu.memory_space<vmem>>, vector<1x96x168xbf16>
    %68 = vector.shape_cast %67 : vector<1x96x168xbf16> to vector<96x168xbf16>
    %cst_69 = arith.constant dense<0.000000e+00> : vector<112x168xf32>
    %69 = tpu.matmul %66, %68, %cst_69 {dimension_numbers = #tpu.dot_dimension_numbers<[1], [0], [0], [1], [0, 0, 1, 1], [], []>} : vector<112x96xbf16>, vector<96x168xbf16>, vector<112x168xf32> -> vector<112x168xf32>
    %70 = arith.addf %65, %69 : vector<112x168xf32>
    %c144_70 = arith.constant 144 : index
    %c0_71 = arith.constant 0 : index
    %71 = vector.load %arg1[%c144_70, %c0_71] : memref<512x96xbf16, #tpu.memory_space<vmem>>, vector<112x96xbf16>
    %c3_72 = arith.constant 3 : index
    %c0_73 = arith.constant 0 : index
    %c0_74 = arith.constant 0 : index
    %72 = vector.load %arg2[%c3_72, %c0_73, %c0_74] : memref<5x96x168xbf16, #tpu.memory_space<vmem>>, vector<1x96x168xbf16>
    %73 = vector.shape_cast %72 : vector<1x96x168xbf16> to vector<96x168xbf16>
    %cst_75 = arith.constant dense<0.000000e+00> : vector<112x168xf32>
    %74 = tpu.matmul %71, %73, %cst_75 {dimension_numbers = #tpu.dot_dimension_numbers<[1], [0], [0], [1], [0, 0, 1, 1], [], []>} : vector<112x96xbf16>, vector<96x168xbf16>, vector<112x168xf32> -> vector<112x168xf32>
    %75 = arith.addf %70, %74 : vector<112x168xf32>
    %c272 = arith.constant 272 : index
    %c0_76 = arith.constant 0 : index
    %76 = vector.load %arg1[%c272, %c0_76] : memref<512x96xbf16, #tpu.memory_space<vmem>>, vector<112x96xbf16>
    %c4_77 = arith.constant 4 : index
    %c0_78 = arith.constant 0 : index
    %c0_79 = arith.constant 0 : index
    %77 = vector.load %arg2[%c4_77, %c0_78, %c0_79] : memref<5x96x168xbf16, #tpu.memory_space<vmem>>, vector<1x96x168xbf16>
    %78 = vector.shape_cast %77 : vector<1x96x168xbf16> to vector<96x168xbf16>
    %cst_80 = arith.constant dense<0.000000e+00> : vector<112x168xf32>
    %79 = tpu.matmul %76, %78, %cst_80 {dimension_numbers = #tpu.dot_dimension_numbers<[1], [0], [0], [1], [0, 0, 1, 1], [], []>} : vector<112x96xbf16>, vector<96x168xbf16>, vector<112x168xf32> -> vector<112x168xf32>
    %80 = arith.addf %75, %79 : vector<112x168xf32>
    %c384_81 = arith.constant 384 : index
    %c0_82 = arith.constant 0 : index
    %81 = vector.load %arg1[%c384_81, %c0_82] : memref<512x96xbf16, #tpu.memory_space<vmem>>, vector<112x96xbf16>
    %c0_83 = arith.constant 0 : index
    %c0_84 = arith.constant 0 : index
    %c0_85 = arith.constant 0 : index
    %82 = vector.load %arg2[%c0_83, %c0_84, %c0_85] : memref<5x96x168xbf16, #tpu.memory_space<vmem>>, vector<1x96x168xbf16>
    %83 = vector.shape_cast %82 : vector<1x96x168xbf16> to vector<96x168xbf16>
    %cst_86 = arith.constant dense<0.000000e+00> : vector<112x168xf32>
    %84 = tpu.matmul %81, %83, %cst_86 {dimension_numbers = #tpu.dot_dimension_numbers<[1], [0], [0], [1], [0, 0, 1, 1], [], []>} : vector<112x96xbf16>, vector<96x168xbf16>, vector<112x168xf32> -> vector<112x168xf32>
    %c16_87 = arith.constant 16 : index
    %c0_88 = arith.constant 0 : index
    %85 = vector.load %arg1[%c16_87, %c0_88] : memref<512x96xbf16, #tpu.memory_space<vmem>>, vector<112x96xbf16>
    %c1_89 = arith.constant 1 : index
    %c0_90 = arith.constant 0 : index
    %c0_91 = arith.constant 0 : index
    %86 = vector.load %arg2[%c1_89, %c0_90, %c0_91] : memref<5x96x168xbf16, #tpu.memory_space<vmem>>, vector<1x96x168xbf16>
    %87 = vector.shape_cast %86 : vector<1x96x168xbf16> to vector<96x168xbf16>
    %cst_92 = arith.constant dense<0.000000e+00> : vector<112x168xf32>
    %88 = tpu.matmul %85, %87, %cst_92 {dimension_numbers = #tpu.dot_dimension_numbers<[1], [0], [0], [1], [0, 0, 1, 1], [], []>} : vector<112x96xbf16>, vector<96x168xbf16>, vector<112x168xf32> -> vector<112x168xf32>
    %89 = arith.addf %84, %88 : vector<112x168xf32>
    %c144_93 = arith.constant 144 : index
    %c0_94 = arith.constant 0 : index
    %90 = vector.load %arg1[%c144_93, %c0_94] : memref<512x96xbf16, #tpu.memory_space<vmem>>, vector<112x96xbf16>
    %c2_95 = arith.constant 2 : index
    %c0_96 = arith.constant 0 : index
    %c0_97 = arith.constant 0 : index
    %91 = vector.load %arg2[%c2_95, %c0_96, %c0_97] : memref<5x96x168xbf16, #tpu.memory_space<vmem>>, vector<1x96x168xbf16>
    %92 = vector.shape_cast %91 : vector<1x96x168xbf16> to vector<96x168xbf16>
    %cst_98 = arith.constant dense<0.000000e+00> : vector<112x168xf32>
    %93 = tpu.matmul %90, %92, %cst_98 {dimension_numbers = #tpu.dot_dimension_numbers<[1], [0], [0], [1], [0, 0, 1, 1], [], []>} : vector<112x96xbf16>, vector<96x168xbf16>, vector<112x168xf32> -> vector<112x168xf32>
    %94 = arith.addf %89, %93 : vector<112x168xf32>
    %c272_99 = arith.constant 272 : index
    %c0_100 = arith.constant 0 : index
    %95 = vector.load %arg1[%c272_99, %c0_100] : memref<512x96xbf16, #tpu.memory_space<vmem>>, vector<112x96xbf16>
    %c3_101 = arith.constant 3 : index
    %c0_102 = arith.constant 0 : index
    %c0_103 = arith.constant 0 : index
    %96 = vector.load %arg2[%c3_101, %c0_102, %c0_103] : memref<5x96x168xbf16, #tpu.memory_space<vmem>>, vector<1x96x168xbf16>
    %97 = vector.shape_cast %96 : vector<1x96x168xbf16> to vector<96x168xbf16>
    %cst_104 = arith.constant dense<0.000000e+00> : vector<112x168xf32>
    %98 = tpu.matmul %95, %97, %cst_104 {dimension_numbers = #tpu.dot_dimension_numbers<[1], [0], [0], [1], [0, 0, 1, 1], [], []>} : vector<112x96xbf16>, vector<96x168xbf16>, vector<112x168xf32> -> vector<112x168xf32>
    %99 = arith.addf %94, %98 : vector<112x168xf32>
    %c400 = arith.constant 400 : index
    %c0_105 = arith.constant 0 : index
    %100 = vector.load %arg1[%c400, %c0_105] : memref<512x96xbf16, #tpu.memory_space<vmem>>, vector<112x96xbf16>
    %c4_106 = arith.constant 4 : index
    %c0_107 = arith.constant 0 : index
    %c0_108 = arith.constant 0 : index
    %101 = vector.load %arg2[%c4_106, %c0_107, %c0_108] : memref<5x96x168xbf16, #tpu.memory_space<vmem>>, vector<1x96x168xbf16>
    %102 = vector.shape_cast %101 : vector<1x96x168xbf16> to vector<96x168xbf16>
    %cst_109 = arith.constant dense<0.000000e+00> : vector<112x168xf32>
    %103 = tpu.matmul %100, %102, %cst_109 {dimension_numbers = #tpu.dot_dimension_numbers<[1], [0], [0], [1], [0, 0, 1, 1], [], []>} : vector<112x96xbf16>, vector<96x168xbf16>, vector<112x168xf32> -> vector<112x168xf32>
    %104 = arith.addf %99, %103 : vector<112x168xf32>
    %105 = arith.maximumf %80, %104 : vector<112x168xf32>
    %106 = vector.extract_strided_slice %105 {offsets = [0, 0], sizes = [112, 84], strides = [1, 1]} : vector<112x168xf32> to vector<112x84xf32>
    %107 = vector.extract_strided_slice %105 {offsets = [0, 84], sizes = [112, 84], strides = [1, 1]} : vector<112x168xf32> to vector<112x84xf32>
    %108 = arith.maximumf %106, %107 : vector<112x84xf32>
    %c0_110 = arith.constant 0 : index
    %c0_111 = arith.constant 0 : index
    %109 = vector.load %arg3[%c0_110, %c0_111] : memref<1x84xf32, #tpu.memory_space<vmem>>, vector<1x84xf32>
    %110 = vector.broadcast %109 : vector<1x84xf32> to vector<112x84xf32>
    %111 = arith.addf %108, %110 : vector<112x84xf32>
    %cst_112 = arith.constant 0.000000e+00 : f32
    %112 = vector.broadcast %cst_112 : f32 to vector<112x84xf32>
    %113 = arith.maximumf %111, %112 : vector<112x84xf32>
    %114 = vector.extract_strided_slice %56 {offsets = [0, 0], sizes = [80, 84], strides = [1, 1]} : vector<112x84xf32> to vector<80x84xf32>
    %c0_113 = arith.constant 0 : index
    %c0_114 = arith.constant 0 : index
    %c0_115 = arith.constant 0 : index
    %115 = vector.load %arg4[%c0_113, %c0_114, %c0_115] : memref<5x84x160xf32, #tpu.memory_space<vmem>>, vector<1x84x160xf32>
    %116 = vector.shape_cast %115 : vector<1x84x160xf32> to vector<84x160xf32>
    %cst_116 = arith.constant dense<0.000000e+00> : vector<80x160xf32>
    %117 = tpu.matmul %114, %116, %cst_116 {dimension_numbers = #tpu.dot_dimension_numbers<[1], [0], [0], [1], [0, 0, 1, 1], [], []>} : vector<80x84xf32>, vector<84x160xf32>, vector<80x160xf32> -> vector<80x160xf32>
    %118 = vector.extract_strided_slice %113 {offsets = [0, 0], sizes = [80, 84], strides = [1, 1]} : vector<112x84xf32> to vector<80x84xf32>
    %c1_117 = arith.constant 1 : index
    %c0_118 = arith.constant 0 : index
    %c0_119 = arith.constant 0 : index
    %119 = vector.load %arg4[%c1_117, %c0_118, %c0_119] : memref<5x84x160xf32, #tpu.memory_space<vmem>>, vector<1x84x160xf32>
    %120 = vector.shape_cast %119 : vector<1x84x160xf32> to vector<84x160xf32>
    %cst_120 = arith.constant dense<0.000000e+00> : vector<80x160xf32>
    %121 = tpu.matmul %118, %120, %cst_120 {dimension_numbers = #tpu.dot_dimension_numbers<[1], [0], [0], [1], [0, 0, 1, 1], [], []>} : vector<80x84xf32>, vector<84x160xf32>, vector<80x160xf32> -> vector<80x160xf32>
    %122 = arith.addf %117, %121 : vector<80x160xf32>
    %123 = vector.extract_strided_slice %56 {offsets = [16, 0], sizes = [80, 84], strides = [1, 1]} : vector<112x84xf32> to vector<80x84xf32>
    %c2_121 = arith.constant 2 : index
    %c0_122 = arith.constant 0 : index
    %c0_123 = arith.constant 0 : index
    %124 = vector.load %arg4[%c2_121, %c0_122, %c0_123] : memref<5x84x160xf32, #tpu.memory_space<vmem>>, vector<1x84x160xf32>
    %125 = vector.shape_cast %124 : vector<1x84x160xf32> to vector<84x160xf32>
    %cst_124 = arith.constant dense<0.000000e+00> : vector<80x160xf32>
    %126 = tpu.matmul %123, %125, %cst_124 {dimension_numbers = #tpu.dot_dimension_numbers<[1], [0], [0], [1], [0, 0, 1, 1], [], []>} : vector<80x84xf32>, vector<84x160xf32>, vector<80x160xf32> -> vector<80x160xf32>
    %127 = arith.addf %122, %126 : vector<80x160xf32>
    %128 = vector.extract_strided_slice %113 {offsets = [16, 0], sizes = [80, 84], strides = [1, 1]} : vector<112x84xf32> to vector<80x84xf32>
    %c3_125 = arith.constant 3 : index
    %c0_126 = arith.constant 0 : index
    %c0_127 = arith.constant 0 : index
    %129 = vector.load %arg4[%c3_125, %c0_126, %c0_127] : memref<5x84x160xf32, #tpu.memory_space<vmem>>, vector<1x84x160xf32>
    %130 = vector.shape_cast %129 : vector<1x84x160xf32> to vector<84x160xf32>
    %cst_128 = arith.constant dense<0.000000e+00> : vector<80x160xf32>
    %131 = tpu.matmul %128, %130, %cst_128 {dimension_numbers = #tpu.dot_dimension_numbers<[1], [0], [0], [1], [0, 0, 1, 1], [], []>} : vector<80x84xf32>, vector<84x160xf32>, vector<80x160xf32> -> vector<80x160xf32>
    %132 = arith.addf %127, %131 : vector<80x160xf32>
    %133 = vector.extract_strided_slice %56 {offsets = [32, 0], sizes = [80, 84], strides = [1, 1]} : vector<112x84xf32> to vector<80x84xf32>
    %c4_129 = arith.constant 4 : index
    %c0_130 = arith.constant 0 : index
    %c0_131 = arith.constant 0 : index
    %134 = vector.load %arg4[%c4_129, %c0_130, %c0_131] : memref<5x84x160xf32, #tpu.memory_space<vmem>>, vector<1x84x160xf32>
    %135 = vector.shape_cast %134 : vector<1x84x160xf32> to vector<84x160xf32>
    %cst_132 = arith.constant dense<0.000000e+00> : vector<80x160xf32>
    %136 = tpu.matmul %133, %135, %cst_132 {dimension_numbers = #tpu.dot_dimension_numbers<[1], [0], [0], [1], [0, 0, 1, 1], [], []>} : vector<80x84xf32>, vector<84x160xf32>, vector<80x160xf32> -> vector<80x160xf32>
    %137 = arith.addf %132, %136 : vector<80x160xf32>
    %138 = vector.extract_strided_slice %113 {offsets = [0, 0], sizes = [80, 84], strides = [1, 1]} : vector<112x84xf32> to vector<80x84xf32>
    %c0_133 = arith.constant 0 : index
    %c0_134 = arith.constant 0 : index
    %c0_135 = arith.constant 0 : index
    %139 = vector.load %arg4[%c0_133, %c0_134, %c0_135] : memref<5x84x160xf32, #tpu.memory_space<vmem>>, vector<1x84x160xf32>
    %140 = vector.shape_cast %139 : vector<1x84x160xf32> to vector<84x160xf32>
    %cst_136 = arith.constant dense<0.000000e+00> : vector<80x160xf32>
    %141 = tpu.matmul %138, %140, %cst_136 {dimension_numbers = #tpu.dot_dimension_numbers<[1], [0], [0], [1], [0, 0, 1, 1], [], []>} : vector<80x84xf32>, vector<84x160xf32>, vector<80x160xf32> -> vector<80x160xf32>
    %142 = vector.extract_strided_slice %56 {offsets = [16, 0], sizes = [80, 84], strides = [1, 1]} : vector<112x84xf32> to vector<80x84xf32>
    %c1_137 = arith.constant 1 : index
    %c0_138 = arith.constant 0 : index
    %c0_139 = arith.constant 0 : index
    %143 = vector.load %arg4[%c1_137, %c0_138, %c0_139] : memref<5x84x160xf32, #tpu.memory_space<vmem>>, vector<1x84x160xf32>
    %144 = vector.shape_cast %143 : vector<1x84x160xf32> to vector<84x160xf32>
    %cst_140 = arith.constant dense<0.000000e+00> : vector<80x160xf32>
    %145 = tpu.matmul %142, %144, %cst_140 {dimension_numbers = #tpu.dot_dimension_numbers<[1], [0], [0], [1], [0, 0, 1, 1], [], []>} : vector<80x84xf32>, vector<84x160xf32>, vector<80x160xf32> -> vector<80x160xf32>
    %146 = arith.addf %141, %145 : vector<80x160xf32>
    %147 = vector.extract_strided_slice %113 {offsets = [16, 0], sizes = [80, 84], strides = [1, 1]} : vector<112x84xf32> to vector<80x84xf32>
    %c2_141 = arith.constant 2 : index
    %c0_142 = arith.constant 0 : index
    %c0_143 = arith.constant 0 : index
    %148 = vector.load %arg4[%c2_141, %c0_142, %c0_143] : memref<5x84x160xf32, #tpu.memory_space<vmem>>, vector<1x84x160xf32>
    %149 = vector.shape_cast %148 : vector<1x84x160xf32> to vector<84x160xf32>
    %cst_144 = arith.constant dense<0.000000e+00> : vector<80x160xf32>
    %150 = tpu.matmul %147, %149, %cst_144 {dimension_numbers = #tpu.dot_dimension_numbers<[1], [0], [0], [1], [0, 0, 1, 1], [], []>} : vector<80x84xf32>, vector<84x160xf32>, vector<80x160xf32> -> vector<80x160xf32>
    %151 = arith.addf %146, %150 : vector<80x160xf32>
    %152 = vector.extract_strided_slice %56 {offsets = [32, 0], sizes = [80, 84], strides = [1, 1]} : vector<112x84xf32> to vector<80x84xf32>
    %c3_145 = arith.constant 3 : index
    %c0_146 = arith.constant 0 : index
    %c0_147 = arith.constant 0 : index
    %153 = vector.load %arg4[%c3_145, %c0_146, %c0_147] : memref<5x84x160xf32, #tpu.memory_space<vmem>>, vector<1x84x160xf32>
    %154 = vector.shape_cast %153 : vector<1x84x160xf32> to vector<84x160xf32>
    %cst_148 = arith.constant dense<0.000000e+00> : vector<80x160xf32>
    %155 = tpu.matmul %152, %154, %cst_148 {dimension_numbers = #tpu.dot_dimension_numbers<[1], [0], [0], [1], [0, 0, 1, 1], [], []>} : vector<80x84xf32>, vector<84x160xf32>, vector<80x160xf32> -> vector<80x160xf32>
    %156 = arith.addf %151, %155 : vector<80x160xf32>
    %157 = vector.extract_strided_slice %113 {offsets = [32, 0], sizes = [80, 84], strides = [1, 1]} : vector<112x84xf32> to vector<80x84xf32>
    %c4_149 = arith.constant 4 : index
    %c0_150 = arith.constant 0 : index
    %c0_151 = arith.constant 0 : index
    %158 = vector.load %arg4[%c4_149, %c0_150, %c0_151] : memref<5x84x160xf32, #tpu.memory_space<vmem>>, vector<1x84x160xf32>
    %159 = vector.shape_cast %158 : vector<1x84x160xf32> to vector<84x160xf32>
    %cst_152 = arith.constant dense<0.000000e+00> : vector<80x160xf32>
    %160 = tpu.matmul %157, %159, %cst_152 {dimension_numbers = #tpu.dot_dimension_numbers<[1], [0], [0], [1], [0, 0, 1, 1], [], []>} : vector<80x84xf32>, vector<84x160xf32>, vector<80x160xf32> -> vector<80x160xf32>
    %161 = arith.addf %156, %160 : vector<80x160xf32>
    %162 = arith.maximumf %137, %161 : vector<80x160xf32>
    %163 = vector.extract_strided_slice %162 {offsets = [0, 0], sizes = [80, 80], strides = [1, 1]} : vector<80x160xf32> to vector<80x80xf32>
    %164 = vector.extract_strided_slice %162 {offsets = [0, 80], sizes = [80, 80], strides = [1, 1]} : vector<80x160xf32> to vector<80x80xf32>
    %165 = arith.maximumf %163, %164 : vector<80x80xf32>
    %c0_153 = arith.constant 0 : index
    %c0_154 = arith.constant 0 : index
    %166 = vector.load %arg5[%c0_153, %c0_154] : memref<1x80xf32, #tpu.memory_space<vmem>>, vector<1x80xf32>
    %167 = vector.broadcast %166 : vector<1x80xf32> to vector<80x80xf32>
    %168 = arith.addf %165, %167 : vector<80x80xf32>
    %cst_155 = arith.constant 0.000000e+00 : f32
    %169 = vector.broadcast %cst_155 : f32 to vector<80x80xf32>
    %170 = arith.maximumf %168, %169 : vector<80x80xf32>
    %171 = vector.extract_strided_slice %170 {offsets = [0, 0], sizes = [16, 80], strides = [1, 1]} : vector<80x80xf32> to vector<16x80xf32>
    %c0_156 = arith.constant 0 : index
    %c0_157 = arith.constant 0 : index
    %c0_158 = arith.constant 0 : index
    %172 = vector.load %arg6[%c0_156, %c0_157, %c0_158] : memref<5x80x128xf32, #tpu.memory_space<vmem>>, vector<1x80x128xf32>
    %173 = vector.shape_cast %172 : vector<1x80x128xf32> to vector<80x128xf32>
    %cst_159 = arith.constant dense<0.000000e+00> : vector<16x128xf32>
    %174 = tpu.matmul %171, %173, %cst_159 {dimension_numbers = #tpu.dot_dimension_numbers<[1], [0], [0], [1], [0, 0, 1, 1], [], []>} : vector<16x80xf32>, vector<80x128xf32>, vector<16x128xf32> -> vector<16x128xf32>
    %175 = vector.extract_strided_slice %170 {offsets = [16, 0], sizes = [16, 80], strides = [1, 1]} : vector<80x80xf32> to vector<16x80xf32>
    %c1_160 = arith.constant 1 : index
    %c0_161 = arith.constant 0 : index
    %c0_162 = arith.constant 0 : index
    %176 = vector.load %arg6[%c1_160, %c0_161, %c0_162] : memref<5x80x128xf32, #tpu.memory_space<vmem>>, vector<1x80x128xf32>
    %177 = vector.shape_cast %176 : vector<1x80x128xf32> to vector<80x128xf32>
    %cst_163 = arith.constant dense<0.000000e+00> : vector<16x128xf32>
    %178 = tpu.matmul %175, %177, %cst_163 {dimension_numbers = #tpu.dot_dimension_numbers<[1], [0], [0], [1], [0, 0, 1, 1], [], []>} : vector<16x80xf32>, vector<80x128xf32>, vector<16x128xf32> -> vector<16x128xf32>
    %179 = arith.addf %174, %178 : vector<16x128xf32>
    %180 = vector.extract_strided_slice %170 {offsets = [32, 0], sizes = [16, 80], strides = [1, 1]} : vector<80x80xf32> to vector<16x80xf32>
    %c2_164 = arith.constant 2 : index
    %c0_165 = arith.constant 0 : index
    %c0_166 = arith.constant 0 : index
    %181 = vector.load %arg6[%c2_164, %c0_165, %c0_166] : memref<5x80x128xf32, #tpu.memory_space<vmem>>, vector<1x80x128xf32>
    %182 = vector.shape_cast %181 : vector<1x80x128xf32> to vector<80x128xf32>
    %cst_167 = arith.constant dense<0.000000e+00> : vector<16x128xf32>
    %183 = tpu.matmul %180, %182, %cst_167 {dimension_numbers = #tpu.dot_dimension_numbers<[1], [0], [0], [1], [0, 0, 1, 1], [], []>} : vector<16x80xf32>, vector<80x128xf32>, vector<16x128xf32> -> vector<16x128xf32>
    %184 = arith.addf %179, %183 : vector<16x128xf32>
    %185 = vector.extract_strided_slice %170 {offsets = [48, 0], sizes = [16, 80], strides = [1, 1]} : vector<80x80xf32> to vector<16x80xf32>
    %c3_168 = arith.constant 3 : index
    %c0_169 = arith.constant 0 : index
    %c0_170 = arith.constant 0 : index
    %186 = vector.load %arg6[%c3_168, %c0_169, %c0_170] : memref<5x80x128xf32, #tpu.memory_space<vmem>>, vector<1x80x128xf32>
    %187 = vector.shape_cast %186 : vector<1x80x128xf32> to vector<80x128xf32>
    %cst_171 = arith.constant dense<0.000000e+00> : vector<16x128xf32>
    %188 = tpu.matmul %185, %187, %cst_171 {dimension_numbers = #tpu.dot_dimension_numbers<[1], [0], [0], [1], [0, 0, 1, 1], [], []>} : vector<16x80xf32>, vector<80x128xf32>, vector<16x128xf32> -> vector<16x128xf32>
    %189 = arith.addf %184, %188 : vector<16x128xf32>
    %190 = vector.extract_strided_slice %170 {offsets = [64, 0], sizes = [16, 80], strides = [1, 1]} : vector<80x80xf32> to vector<16x80xf32>
    %c4_172 = arith.constant 4 : index
    %c0_173 = arith.constant 0 : index
    %c0_174 = arith.constant 0 : index
    %191 = vector.load %arg6[%c4_172, %c0_173, %c0_174] : memref<5x80x128xf32, #tpu.memory_space<vmem>>, vector<1x80x128xf32>
    %192 = vector.shape_cast %191 : vector<1x80x128xf32> to vector<80x128xf32>
    %cst_175 = arith.constant dense<0.000000e+00> : vector<16x128xf32>
    %193 = tpu.matmul %190, %192, %cst_175 {dimension_numbers = #tpu.dot_dimension_numbers<[1], [0], [0], [1], [0, 0, 1, 1], [], []>} : vector<16x80xf32>, vector<80x128xf32>, vector<16x128xf32> -> vector<16x128xf32>
    %194 = arith.addf %189, %193 : vector<16x128xf32>
    %c0_176 = arith.constant 0 : index
    %c0_177 = arith.constant 0 : index
    %195 = vector.load %arg7[%c0_176, %c0_177] : memref<1x128xf32, #tpu.memory_space<vmem>>, vector<1x128xf32>
    %196 = vector.broadcast %195 : vector<1x128xf32> to vector<16x128xf32>
    %197 = arith.addf %194, %196 : vector<16x128xf32>
    %cst_178 = arith.constant 0.000000e+00 : f32
    %198 = vector.broadcast %cst_178 : f32 to vector<16x128xf32>
    %199 = arith.maximumf %197, %198 : vector<16x128xf32>
    %c0_179 = arith.constant 0 : index
    %c0_180 = arith.constant 0 : index
    %200 = vector.load %arg8[%c0_179, %c0_180] : memref<128x128xf32, #tpu.memory_space<vmem>>, vector<128x128xf32>
    %cst_181 = arith.constant dense<0.000000e+00> : vector<16x128xf32>
    %201 = tpu.matmul %199, %200, %cst_181 {dimension_numbers = #tpu.dot_dimension_numbers<[1], [0], [0], [1], [0, 0, 1, 1], [], []>} : vector<16x128xf32>, vector<128x128xf32>, vector<16x128xf32> -> vector<16x128xf32>
    %c0_182 = arith.constant 0 : index
    %c0_183 = arith.constant 0 : index
    %202 = vector.load %arg9[%c0_182, %c0_183] : memref<1x128xf32, #tpu.memory_space<vmem>>, vector<1x128xf32>
    %203 = vector.broadcast %202 : vector<1x128xf32> to vector<16x128xf32>
    %204 = arith.addf %201, %203 : vector<16x128xf32>
    %cst_184 = arith.constant 0.000000e+00 : f32
    %205 = vector.broadcast %cst_184 : f32 to vector<16x128xf32>
    %206 = arith.maximumf %204, %205 : vector<16x128xf32>
    %c0_185 = arith.constant 0 : index
    %c0_186 = arith.constant 0 : index
    %207 = vector.load %arg10[%c0_185, %c0_186] : memref<128x128xf32, #tpu.memory_space<vmem>>, vector<128x128xf32>
    %cst_187 = arith.constant dense<0.000000e+00> : vector<16x128xf32>
    %208 = tpu.matmul %206, %207, %cst_187 {dimension_numbers = #tpu.dot_dimension_numbers<[1], [0], [0], [1], [0, 0, 1, 1], [], []>} : vector<16x128xf32>, vector<128x128xf32>, vector<16x128xf32> -> vector<16x128xf32>
    %c0_188 = arith.constant 0 : index
    %c0_189 = arith.constant 0 : index
    %209 = vector.load %arg11[%c0_188, %c0_189] : memref<1x128xf32, #tpu.memory_space<vmem>>, vector<1x128xf32>
    %210 = vector.broadcast %209 : vector<1x128xf32> to vector<16x128xf32>
    %211 = arith.addf %208, %210 : vector<16x128xf32>
    %cst_190 = arith.constant dense<0xFF800000> : vector<16xf32>
    %212 = vector.multi_reduction <maximumf>, %211, %cst_190 [1] : vector<16x128xf32> to vector<16xf32>
    %213 = vector.shape_cast %212 : vector<16xf32> to vector<16x1xf32>
    %214 = vector.broadcast %213 : vector<16x1xf32> to vector<16x128xf32>
    %215 = arith.subf %211, %214 : vector<16x128xf32>
    %216 = math.exp %215 : vector<16x128xf32>
    %cst_191 = arith.constant dense<0.000000e+00> : vector<16xf32>
    %217 = vector.multi_reduction <add>, %216, %cst_191 [1] : vector<16x128xf32> to vector<16xf32>
    %218 = vector.shape_cast %217 : vector<16xf32> to vector<16x1xf32>
    %219 = tpu.reciprocal %218 {approx = true} : vector<16x1xf32> -> vector<16x1xf32>
    %220 = vector.broadcast %219 : vector<16x1xf32> to vector<16x128xf32>
    %221 = arith.mulf %216, %220 : vector<16x128xf32>
    %c0_192 = arith.constant 0 : index
    %c0_193 = arith.constant 0 : index
    %222 = vector.load %arg12[%c0_192, %c0_193] : memref<16x128xf32, #tpu.memory_space<vmem>>, vector<16x128xf32>
    tpu.vector_store %arg12[%c0_192, %c0_193], %221 {strides = array<i32>} : memref<16x128xf32, #tpu.memory_space<vmem>>, vector<16x128xf32>,
    return
  }
  func.func @transform_0(%arg0: i32) -> (i32, i32) {
    %c0_i32 = arith.constant 0 : i32
    %c0_i32_0 = arith.constant 0 : i32
    return %arg0, %c0_i32 : i32, i32
  }
  func.func @transform_1(%arg0: i32) -> (i32, i32, i32) {
    %c0_i32 = arith.constant 0 : i32
    %c0_i32_0 = arith.constant 0 : i32
    %c0_i32_1 = arith.constant 0 : i32
    %c0_i32_2 = arith.constant 0 : i32
    return %c0_i32, %c0_i32_0, %c0_i32_1 : i32, i32, i32
  }
  func.func @transform_2(%arg0: i32) -> (i32, i32) {
    %c0_i32 = arith.constant 0 : i32
    %c0_i32_0 = arith.constant 0 : i32
    %c0_i32_1 = arith.constant 0 : i32
    return %c0_i32, %c0_i32_0 : i32, i32
  }
  func.func @transform_3(%arg0: i32) -> (i32, i32, i32) {
    %c0_i32 = arith.constant 0 : i32
    %c0_i32_0 = arith.constant 0 : i32
    %c0_i32_1 = arith.constant 0 : i32
    %c0_i32_2 = arith.constant 0 : i32
    return %c0_i32, %c0_i32_0, %c0_i32_1 : i32, i32, i32
  }
  func.func @transform_4(%arg0: i32) -> (i32, i32) {
    %c0_i32 = arith.constant 0 : i32
    %c0_i32_0 = arith.constant 0 : i32
    %c0_i32_1 = arith.constant 0 : i32
    return %c0_i32, %c0_i32_0 : i32, i32
  }
  func.func @transform_5(%arg0: i32) -> (i32, i32, i32) {
    %c0_i32 = arith.constant 0 : i32
    %c0_i32_0 = arith.constant 0 : i32
    %c0_i32_1 = arith.constant 0 : i32
    %c0_i32_2 = arith.constant 0 : i32
    return %c0_i32, %c0_i32_0, %c0_i32_1 : i32, i32, i32
  }
  func.func @transform_6(%arg0: i32) -> (i32, i32) {
    %c0_i32 = arith.constant 0 : i32
    %c0_i32_0 = arith.constant 0 : i32
    %c0_i32_1 = arith.constant 0 : i32
    return %c0_i32, %c0_i32_0 : i32, i32
  }
  func.func @transform_7(%arg0: i32) -> (i32, i32) {
    %c0_i32 = arith.constant 0 : i32
    %c0_i32_0 = arith.constant 0 : i32
    %c0_i32_1 = arith.constant 0 : i32
    return %c0_i32, %c0_i32_0 : i32, i32
  }
  func.func @transform_8(%arg0: i32) -> (i32, i32) {
    %c0_i32 = arith.constant 0 : i32
    %c0_i32_0 = arith.constant 0 : i32
    %c0_i32_1 = arith.constant 0 : i32
    return %c0_i32, %c0_i32_0 : i32, i32
  }
  func.func @transform_9(%arg0: i32) -> (i32, i32) {
    %c0_i32 = arith.constant 0 : i32
    %c0_i32_0 = arith.constant 0 : i32
    %c0_i32_1 = arith.constant 0 : i32
    return %c0_i32, %c0_i32_0 : i32, i32
  }
  func.func @transform_10(%arg0: i32) -> (i32, i32) {
    %c0_i32 = arith.constant 0 : i32
    %c0_i32_0 = arith.constant 0 : i32
    %c0_i32_1 = arith.constant 0 : i32
    return %c0_i32, %c0_i32_0 : i32, i32
  }
  func.func @transform_11(%arg0: i32) -> (i32, i32) {
    %c0_i32 = arith.constant 0 : i32
    %c0_i32_0 = arith.constant 0 : i32
    return %arg0, %c0_i32 : i32, i32
  }
}

</mosaic_0001>

<bundles_post_ra>
// kernel: cnn32_forward.1
= control target key start
LH: loop header
LB: loop body
LE: loop exit
PB: predicated region body
PF: predicated region fallthrough
CT: control target
= control target key end

     0   :  { %vm187_vm0 = vcmask 785408   ;;  %s6529_s23 = smov 44   ;;  %vm3505_vm1 = vcmask 1043456   ;;  %vm1984_vm2 = vcmask 359424   ;;  %vm3474_vm3 = vcmask 687104   ;;  %s11333_s1 = inlined_call_operand.vmem [shape: bf16[5,96,168], index: 1, kind: input, shape index: {}]   ;;  %s11334_s0 = inlined_call_operand.vmem [shape: bf16[512,96], index: 0, kind: input, shape index: {}]   ;;  %s11335_s2 = inlined_call_operand.vmem [shape: f32[1,84], index: 2, kind: input, shape index: {}]   ;;  %s11336_s3 = inlined_call_operand.vmem [shape: f32[5,84,160], index: 3, kind: input, shape index: {}]   ;;  %s11337_s4 = inlined_call_operand.vmem [shape: f32[1,80], index: 4, kind: input, shape index: {}]   ;;  %s11338_s5 = inlined_call_operand.vmem [shape: f32[5,80,128], index: 5, kind: input, shape index: {}]   ;;  %s11339_s7 = inlined_call_operand.vmem [shape: f32[128,128], index: 7, kind: input, shape index: {}]   ;;  %s11340_s6 = inlined_call_operand.vmem [shape: f32[1,128], index: 6, kind: input, shape index: {}]   ;;  %s11341_s8 = inlined_call_operand.vmem [shape: f32[1,128], index: 8, kind: input, shape index: {}]   ;;  %s11342_s9 = inlined_call_operand.vmem [shape: f32[128,128], index: 9, kind: input, shape index: {}]   ;;  %s11343_s10 = inlined_call_operand.vmem [shape: f32[1,128], index: 10, kind: input, shape index: {}]   ;;  %s11344_s11 = inlined_call_operand.vmem [shape: f32[16,128], index: 11, kind: output, shape index: {}]  }
   0x1   :  { %v5262_v0 = vld [vmem:[%s11333_s1 + $0xb0] sm:$0xf]  ;;  %v6367_v1 = vld [vmem:[%s11333_s1 + $0xb4] sm:$0xf0]  ;;  %v6366_v2 = vld [vmem:[%s11333_s1 + $0xb4] sm:$0xf] }
   0x2   :  { %v6600_v3 = vor.u32 %v6367_v1, %v5262_v0  ;;  %v5264_v4 = vld [vmem:[%s11333_s1 + $0xb8] sm:$0xf0]  ;;  %v5352_v5 = vld [vmem:[%s11333_s1 + $0x50] sm:$0xf]  ;;  %v6348_v6 = vld [vmem:[%s11333_s1 + $0x54] sm:$0xf0] }
   0x3   :  { %v6611_v7 = vor.u32 %v6366_v2, %v5264_v4  ;;  %v6613_v8 = vor.u32 %v6348_v6, %v5352_v5  ;;  %v6347_v9 = vld [vmem:[%s11333_s1 + $0x54] sm:$0xf]  ;;  %v5354_v10 = vld [vmem:[%s11333_s1 + $0x58] sm:$0xf0]  ;;  %v5254_v11 = vld [vmem:[%s11333_s1 + $0xa0] sm:$0xf] }
   0x4   :  { %11549 = vst [vmem:[#allocation2_spill] sm:$0xff] %v6600_v3  ;;  %211 = vmatpush.bf16.msra.mxu0 %v6600_v3  ;;  %v6625_v12 = vor.u32 %v6347_v9, %v5354_v10  ;;  %v6365_v13 = vld [vmem:[%s11333_s1 + $0xa4] sm:$0xf0]  ;;  %v6364_v14 = vld [vmem:[%s11333_s1 + $0xa4] sm:$0xf]  ;;  %vm4799_vm4 = vcmask 392192  }
   0x5   :  { %11550 = vst [vmem:[#allocation3_spill] sm:$0xff] %v6611_v7  ;;  %v5256_v15 = vld [vmem:[%s11333_s1 + $0xa8] sm:$0xf0]  ;;  %255 = vmatpush.bf16.msra.mxu1 %v6611_v7  ;;  %415 = vmatpush.bf16.msra.mxu2 %v6613_v8  ;;  %v6638_v16 = vor.u32 %v6365_v13, %v5254_v11  ;;  %v5344_v18 = vld [vmem:[%s11333_s1 + $0x40] sm:$0xf]  ;;  %vm4875_vm5 = vcmask 654336  }
   0x6   :  { %11551 = vst [vmem:[#allocation4_spill] sm:$0xff] %v6613_v8  ;;  %v6640_v17 = vor.u32 %v6364_v14, %v5256_v15  ;;  %v6346_v19 = vld [vmem:[%s11333_s1 + $0x44] sm:$0xf0]  ;;  %v6345_v20 = vld [vmem:[%s11333_s1 + $0x44] sm:$0xf]  ;;  %459 = vmatpush.bf16.msra.mxu3 %v6625_v12 }
   0x7   :  { %11552 = vst [vmem:[#allocation5_spill] sm:$0xff] %v6625_v12  ;;  %v6652_v21 = vor.u32 %v6346_v19, %v5344_v18  ;;  %v5346_v22 = vld [vmem:[%s11333_s1 + $0x48] sm:$0xf0]  ;;  %v5246_v23 = vld [vmem:[%s11333_s1 + $0x90] sm:$0xf]  ;;  %v6815_v15 = vld [vmem:[%s11334_s0 + $0x40] sm:$0xff] }
   0x8   :  { %11553 = vst [vmem:[#allocation6_spill] sm:$0xff] %v6638_v16  ;;  %v6363_v24 = vld [vmem:[%s11333_s1 + $0x94] sm:$0xf0]  ;;  %v6663_v25 = vor.u32 %v6345_v20, %v5346_v22  ;;  %v6362_v26 = vld [vmem:[%s11333_s1 + $0x94] sm:$0xf]  ;;  %212 = vmatpush.bf16.msra.mxu0 %v6638_v16 }
   0x9   :  { %11554 = vst [vmem:[#allocation7_spill] sm:$0xff] %v6640_v17  ;;  %v5248_v27 = vld [vmem:[%s11333_s1 + $0x98] sm:$0xf0]  ;;  %v5336_v28 = vld [vmem:[%s11333_s1 + $0x30] sm:$0xf]  ;;  %v6675_v29 = vor.u32 %v6363_v24, %v5246_v23  ;;  %256 = vmatpush.bf16.msra.mxu1 %v6640_v17  ;;  %416 = vmatpush.bf16.msra.mxu2 %v6652_v21 }
   0xa   :  { %11555 = vst [vmem:[#allocation8_spill] sm:$0xff] %v6652_v21  ;;  %v6344_v30 = vld [vmem:[%s11333_s1 + $0x34] sm:$0xf0]  ;;  %v6343_v31 = vld [vmem:[%s11333_s1 + $0x34] sm:$0xf]  ;;  %v6688_v33 = vor.u32 %v6362_v26, %v5248_v27  ;;  %460 = vmatpush.bf16.msra.mxu3 %v6663_v25 }
   0xb   :  { %11556 = vst [vmem:[#allocation9_spill] sm:$0xff] %v6663_v25  ;;  %v5338_v32 = vld [vmem:[%s11333_s1 + $0x38] sm:$0xf0]  ;;  %v6690_v34 = vor.u32 %v6344_v30, %v5336_v28  ;;  %v5238_v35 = vld [vmem:[%s11333_s1 + $0x80] sm:$0xf] }
   0xc   :  { %11557 = vst [vmem:[#allocation10_spill] sm:$0xff] %v6675_v29  ;;  %v6361_v36 = vld [vmem:[%s11333_s1 + $0x84] sm:$0xf0]  ;;  %v6360_v37 = vld [vmem:[%s11333_s1 + $0x84] sm:$0xf]  ;;  %v6702_v38 = vor.u32 %v6343_v31, %v5338_v32  ;;  %213 = vmatpush.bf16.msra.mxu0 %v6675_v29 }
   0xd   :  { %11558 = vst [vmem:[#allocation11_spill] sm:$0xff] %v6688_v33  ;;  %v5240_v39 = vld [vmem:[%s11333_s1 + $0x88] sm:$0xf0]  ;;  %v5328_v40 = vld [vmem:[%s11333_s1 + $0x20] sm:$0xf]  ;;  %v6720_v44 = vor.u32 %v6361_v36, %v5238_v35  ;;  %257 = vmatpush.bf16.msra.mxu1 %v6688_v33  ;;  %417 = vmatpush.bf16.msra.mxu2 %v6690_v34 }
   0xe   :  { %11559 = vst [vmem:[#allocation12_spill] sm:$0xff] %v6690_v34  ;;  %v6342_v41 = vld [vmem:[%s11333_s1 + $0x24] sm:$0xf0]  ;;  %v6341_v42 = vld [vmem:[%s11333_s1 + $0x24] sm:$0xf]  ;;  %v6724_v45 = vor.u32 %v6360_v37, %v5240_v39  ;;  %461 = vmatpush.bf16.msra.mxu3 %v6702_v38 }
   0xf   :  { %11560 = vst [vmem:[#allocation13_spill] sm:$0xff] %v6702_v38  ;;  %v5330_v43 = vld [vmem:[%s11333_s1 + $0x28] sm:$0xf0]  ;;  %v6726_v46 = vor.u32 %v6342_v41, %v5328_v40  ;;  %v5230_v47 = vld [vmem:[%s11333_s1 + $0x70] sm:$0xf]  ;;  %v6330_v30 = vld [vmem:[%s11334_s0] sm:$0xff] }
  0x10   :  { %11561 = vst [vmem:[#allocation14_spill] sm:$0xff] %v6720_v44  ;;  %v6359_v48 = vld [vmem:[%s11333_s1 + $0x74] sm:$0xf0]  ;;  %v6358_v49 = vld [vmem:[%s11333_s1 + $0x74] sm:$0xf]  ;;  %v6738_v50 = vor.u32 %v6341_v42, %v5330_v43  ;;  %214 = vmatpush.bf16.msra.mxu0 %v6720_v44 }
  0x11   :  { %11562 = vst [vmem:[#allocation15_spill] sm:$0xff] %v6724_v45  ;;  %v5232_v51 = vld [vmem:[%s11333_s1 + $0x78] sm:$0xf0]  ;;  %v5320_v52 = vld [vmem:[%s11333_s1 + $0x10] sm:$0xf]  ;;  %v6756_v56 = vor.u32 %v6359_v48, %v5230_v47  ;;  %258 = vmatpush.bf16.msra.mxu1 %v6724_v45  ;;  %418 = vmatpush.bf16.msra.mxu2 %v6726_v46 }
  0x12   :  { %11563 = vst [vmem:[#allocation16_spill] sm:$0xff] %v6726_v46  ;;  %v6340_v53 = vld [vmem:[%s11333_s1 + $0x14] sm:$0xf0]  ;;  %v6339_v54 = vld [vmem:[%s11333_s1 + $0x14] sm:$0xf]  ;;  %v6763_v58 = vor.u32 %v6358_v49, %v5232_v51  ;;  %462 = vmatpush.bf16.msra.mxu3 %v6738_v50 }
  0x13   :  { %11564 = vst [vmem:[#allocation17_spill] sm:$0xff] %v6738_v50  ;;  %v5322_v55 = vld [vmem:[%s11333_s1 + $0x18] sm:$0xf0]  ;;  %v5222_v57 = vld [vmem:[%s11333_s1 + $0x60] sm:$0xf]  ;;  %v6765_v59 = vor.u32 %v6340_v53, %v5320_v52 }
  0x14   :  { %11565 = vst [vmem:[#allocation18_spill] sm:$0xff] %v6756_v56  ;;  %v6357_v60 = vld [vmem:[%s11333_s1 + $0x64] sm:$0xf0]  ;;  %v6356_v61 = vld [vmem:[%s11333_s1 + $0x64] sm:$0xf]  ;;  %v6777_v63 = vor.u32 %v6339_v54, %v5322_v55  ;;  %215 = vmatpush.bf16.msra.mxu0 %v6756_v56 }
  0x15   :  { %11566 = vst [vmem:[#allocation19_spill] sm:$0xff] %v6763_v58  ;;  %v5224_v62 = vld [vmem:[%s11333_s1 + $0x68] sm:$0xf0]  ;;  %v5312_v0 = vld [vmem:[%s11333_s1] sm:$0xf]  ;;  %v6798_v9 = vor.u32 %v6357_v60, %v5222_v57  ;;  %259 = vmatpush.bf16.msra.mxu1 %v6763_v58  ;;  %419 = vmatpush.bf16.msra.mxu2 %v6765_v59 }
  0x16   :  { %11567 = vst [vmem:[#allocation20_spill] sm:$0xff] %v6765_v59  ;;  %v6338_v1 = vld [vmem:[%s11333_s1 + $0x4] sm:$0xf0]  ;;  %v6337_v2 = vld [vmem:[%s11333_s1 + $0x4] sm:$0xf]  ;;  %v6808_v13 = vor.u32 %v6356_v61, %v5224_v62  ;;  %463 = vmatpush.bf16.msra.mxu3 %v6777_v63 }
  0x17   :  { %11568 = vst [vmem:[#allocation21_spill] sm:$0xff] %v6777_v63  ;;  %v5314_v4 = vld [vmem:[%s11333_s1 + $0x8] sm:$0xf0]  ;;  %v5556_v5 = vld [vmem:[%s11333_s1 + $0x170] sm:$0xf]  ;;  %v6810_v14 = vor.u32 %v6338_v1, %v5312_v0 }
  0x18   :  { %v6405_v6 = vld [vmem:[%s11333_s1 + $0x174] sm:$0xf0]  ;;  %11569 = vst [vmem:[#allocation22_spill] sm:$0xff] %v6798_v9  ;;  %v6404_v10 = vld [vmem:[%s11333_s1 + $0x174] sm:$0xf]  ;;  %v6818_v18 = vor.u32 %v6337_v2, %v5314_v4  ;;  %216 = vmatpush.bf16.msra.mxu0 %v6798_v9  ;;  %v6923_v62 = vld [vmem:[%s11334_s0 + $0x48] sm:$0xff] }
  0x19   :  { %v5558_v11 = vld [vmem:[%s11333_s1 + $0x178] sm:$0xf0]  ;;  %11570 = vst [vmem:[#allocation23_spill] sm:$0xff] %v6808_v13  ;;  %v6820_v19 = vor.u32 %v6405_v6, %v5556_v5  ;;  %v5454_v20 = vld [vmem:[%s11333_s1 + $0x110] sm:$0xf]  ;;  %260 = vmatpush.bf16.msra.mxu1 %v6808_v13  ;;  %420 = vmatpush.bf16.msra.mxu2 %v6810_v14  ;;  %v6331_v0 = vld [vmem:[%s11334_s0 + $0x8] sm:$0xff] }
  0x1a   :  { %11571 = vst [vmem:[#allocation24_spill] sm:$0xff] %v6810_v14  ;;  %v6386_v22 = vld [vmem:[%s11333_s1 + $0x114] sm:$0xf0]  ;;  %v6385_v23 = vld [vmem:[%s11333_s1 + $0x114] sm:$0xf]  ;;  %v6831_v24 = vor.u32 %v6404_v10, %v5558_v11  ;;  %464 = vmatpush.bf16.msra.mxu3 %v6818_v18 }
  0x1b   :  { %11572 = vst [vmem:[#allocation25_spill] sm:$0xff] %v6815_v15  ;;  %v5456_v26 = vld [vmem:[%s11333_s1 + $0x118] sm:$0xf0]  ;;  %v5548_v27 = vld [vmem:[%s11333_s1 + $0x160] sm:$0xf]  ;;  %v6854_v35 = vor.u32 %v6386_v22, %v5454_v20  ;;  %5268 = vmatmul.msk.bf16.vlgmr.msra.gmra.mxu0 %vm187_vm0, %v6815_v15 }
  0x1c   :  { %11573 = vst [vmem:[#allocation26_spill] sm:$0xff] %v6818_v18  ;;  %v6403_v28 = vld [vmem:[%s11333_s1 + $0x164] sm:$0xf0]  ;;  %v6402_v31 = vld [vmem:[%s11333_s1 + $0x164] sm:$0xf]  ;;  %v6858_v36 = vor.u32 %v6385_v23, %v5456_v26  ;;  %5275 = vmatmul.msk.bf16.vlgmr.msra.gmra.mxu1 %vm187_vm0, %v6815_v15  ;;  %5358 = vmatmul.msk.bf16.vlgmr.msra.gmra.mxu2 %vm187_vm0, %v6330_v30  ;;  %v6964_v23 = vld [vmem:[%s11334_s0 + $0x50] sm:$0xff] }
  0x1d   :  { %11574 = vst [vmem:[#allocation27_spill] sm:$0xff] %v6820_v19  ;;  %v5550_v32 = vld [vmem:[%s11333_s1 + $0x168] sm:$0xf0]  ;;  %905 = vmatpush.bf16.msrb.mxu2 %v6820_v19  ;;  %v6860_v37 = vor.u32 %v6403_v28, %v5548_v27  ;;  %v5446_v39 = vld [vmem:[%s11333_s1 + $0x100] sm:$0xf]  ;;  %5365 = vmatmul.msk.bf16.vlgmr.msra.gmra.mxu3 %vm187_vm0, %v6330_v30  ;;  %v6332_v26 = vld [vmem:[%s11334_s0 + $0x10] sm:$0xff] }
  0x1e   :  { %11575 = vst [vmem:[#allocation28_spill] sm:$0xff] %v6831_v24  ;;  %v6384_v40 = vld [vmem:[%s11333_s1 + $0x104] sm:$0xf0]  ;;  %949 = vmatpush.bf16.msrb.mxu3 %v6831_v24  ;;  %v6871_v41 = vor.u32 %v6402_v31, %v5550_v32  ;;  %v6383_v42 = vld [vmem:[%s11333_s1 + $0x104] sm:$0xf]  ;;  %646 = vmatpush.bf16.msrb.mxu0 %v6854_v35 }
  0x1f   :  { %11576 = vst [vmem:[#allocation29_spill] sm:$0xff] %v6854_v35  ;;  %v5448_v43 = vld [vmem:[%s11333_s1 + $0x108] sm:$0xf0]  ;;  %v6884_v47 = vor.u32 %v6384_v40, %v5446_v39  ;;  %v5540_v48 = vld [vmem:[%s11333_s1 + $0x150] sm:$0xf]  ;;  %690 = vmatpush.bf16.msrb.mxu1 %v6858_v36 }
  0x20   :  { %11577 = vst [vmem:[#allocation30_spill] sm:$0xff] %v6858_v36  ;;  %v6401_v49 = vld [vmem:[%s11333_s1 + $0x154] sm:$0xf0]  ;;  %v5438_v51 = vld [vmem:[%s11333_s1 + $0xf0] sm:$0xf]  ;;  %v6897_v52 = vor.u32 %v6383_v42, %v5448_v43 }
  0x21   :  { %11578 = vst [vmem:[#allocation31_spill] sm:$0xff] %v6860_v37  ;;  %906 = vmatpush.bf16.msrb.mxu2 %v6860_v37  ;;  %v6899_v53 = vor.u32 %v6401_v49, %v5540_v48  ;;  %v6382_v54 = vld [vmem:[%s11333_s1 + $0xf4] sm:$0xf0]  ;;  %v6400_v55 = vld [vmem:[%s11333_s1 + $0x154] sm:$0xf] }
  0x22   :  { %11579 = vst [vmem:[#allocation32_spill] sm:$0xff] %v6871_v41  ;;  %v5542_v57 = vld [vmem:[%s11333_s1 + $0x158] sm:$0xf0]  ;;  %950 = vmatpush.bf16.msrb.mxu3 %v6871_v41  ;;  %647 = vmatpush.bf16.msrb.mxu0 %v6884_v47  ;;  %v6914_v61 = vor.u32 %v6382_v54, %v5438_v51  ;;  %v6381_v1 = vld [vmem:[%s11333_s1 + $0xf4] sm:$0xf] }
  0x23   :  { %11580 = vst [vmem:[#allocation33_spill] sm:$0xff] %v6884_v47  ;;  %v6911_v60 = vor.u32 %v6400_v55, %v5542_v57  ;;  %691 = vmatpush.bf16.msrb.mxu1 %v6897_v52  ;;  %v5440_v2 = vld [vmem:[%s11333_s1 + $0xf8] sm:$0xf0]  ;;  %v5532_v4 = vld [vmem:[%s11333_s1 + $0x140] sm:$0xf] }
  0x24   :  { %11581 = vst [vmem:[#allocation34_spill] sm:$0xff] %v6897_v52  ;;  %v6943_v5 = vor.u32 %v6381_v1, %v5440_v2  ;;  %v6399_v6 = vld [vmem:[%s11333_s1 + $0x144] sm:$0xf0]  ;;  %v5430_v10 = vld [vmem:[%s11333_s1 + $0xe0] sm:$0xf]  ;;  %v7014_v54 = vld [vmem:[%s11334_s0 + $0x58] sm:$0xff] }
  0x25   :  { %11582 = vst [vmem:[#allocation35_spill] sm:$0xff] %v6899_v53  ;;  %907 = vmatpush.bf16.msrb.mxu2 %v6899_v53  ;;  %v6380_v11 = vld [vmem:[%s11333_s1 + $0xe4] sm:$0xf0]  ;;  %v6954_v20 = vor.u32 %v6399_v6, %v5532_v4  ;;  %v6398_v27 = vld [vmem:[%s11333_s1 + $0x144] sm:$0xf]  ;;  %v6333_v55 = vld [vmem:[%s11334_s0 + $0x18] sm:$0xff] }
  0x26   :  { %11583 = vst [vmem:[#allocation36_spill] sm:$0xff] %v6911_v60  ;;  %951 = vmatpush.bf16.msrb.mxu3 %v6911_v60  ;;  %648 = vmatpush.bf16.msrb.mxu0 %v6914_v61  ;;  %v6956_v22 = vor.u32 %v6380_v11, %v5430_v10  ;;  %v5534_v28 = vld [vmem:[%s11333_s1 + $0x148] sm:$0xf0]  ;;  %v6379_v30 = vld [vmem:[%s11333_s1 + $0xe4] sm:$0xf] }
  0x27   :  { %11584 = vst [vmem:[#allocation37_spill] sm:$0xff] %v6914_v61  ;;  %692 = vmatpush.bf16.msrb.mxu1 %v6943_v5  ;;  %v6984_v31 = vor.u32 %v6398_v27, %v5534_v28  ;;  %v5432_v32 = vld [vmem:[%s11333_s1 + $0xe8] sm:$0xf0]  ;;  %v5524_v39 = vld [vmem:[%s11333_s1 + $0x130] sm:$0xf]  ;;  %v7057_v27 = vld [vmem:[%s11334_s0 + $0x60] sm:$0xff] }
  0x28   :  { %11585 = vst [vmem:[#allocation38_spill] sm:$0xff] %v6923_v62  ;;  %v6397_v40 = vld [vmem:[%s11333_s1 + $0x134] sm:$0xf0]  ;;  %v6995_v42 = vor.u32 %v6379_v30, %v5432_v32  ;;  %v5422_v48 = vld [vmem:[%s11333_s1 + $0xd0] sm:$0xf]  ;;  %v6334_v28 = vld [vmem:[%s11334_s0 + $0x20] sm:$0xff] }
  0x29   :  { %11586 = vst [vmem:[#allocation39_spill] sm:$0xff] %v6943_v5  ;;  %908 = vmatpush.bf16.msrb.mxu2 %v6954_v20  ;;  %v6997_v43 = vor.u32 %v6397_v40, %v5524_v39  ;;  %v6378_v49 = vld [vmem:[%s11333_s1 + $0xd4] sm:$0xf0]  ;;  %v6396_v57 = vld [vmem:[%s11333_s1 + $0x134] sm:$0xf] }
  0x2a   :  { %11587 = vst [vmem:[#allocation40_spill] sm:$0xff] %v6954_v20  ;;  %649 = vmatpush.bf16.msrb.mxu0 %v6956_v22  ;;  %952 = vmatpush.bf16.msrb.mxu3 %v6984_v31  ;;  %v7006_v51 = vor.u32 %v6378_v49, %v5422_v48  ;;  %v6377_v1 = vld [vmem:[%s11333_s1 + $0xd4] sm:$0xf]  ;;  %v5424_v4 = vld [vmem:[%s11333_s1 + $0xd8] sm:$0xf0] }
  0x2b   :  { %5269 = vmatmul.msk.bf16.gmra.mxu0 %vm187_vm0, %v6923_v62  ;;  %11588 = vst [vmem:[#allocation41_spill] sm:$0xff] %v6956_v22  ;;  %693 = vmatpush.bf16.msrb.mxu1 %v6995_v42  ;;  %v5516_v6 = vld [vmem:[%s11333_s1 + $0x120] sm:$0xf]  ;;  %v6395_v10 = vld [vmem:[%s11333_s1 + $0x124] sm:$0xf0]  ;;  %v7045_v11 = vor.u32 %v6377_v1, %v5424_v4 }
  0x2c   :  { %5276 = vmatmul.msk.bf16.gmra.mxu1 %vm187_vm0, %v6923_v62  ;;  %5359 = vmatmul.msk.bf16.gmra.mxu2 %vm187_vm0, %v6331_v0  ;;  %11589 = vst [vmem:[#allocation42_spill] sm:$0xff] %v6964_v23  ;;  %v5414_v30 = vld [vmem:[%s11333_s1 + $0xc0] sm:$0xf]  ;;  %v6376_v32 = vld [vmem:[%s11333_s1 + $0xc4] sm:$0xf0] }
  0x2d   :  { %5366 = vmatmul.msk.bf16.gmra.mxu3 %vm187_vm0, %v6331_v0  ;;  %11590 = vst [vmem:[#allocation43_spill] sm:$0xff] %v6984_v31  ;;  %909 = vmatpush.bf16.msrb.mxu2 %v6997_v43  ;;  %v5526_v0 = vld [vmem:[%s11333_s1 + $0x138] sm:$0xf0]  ;;  %v6394_v39 = vld [vmem:[%s11333_s1 + $0x124] sm:$0xf]  ;;  %v7078_v40 = vor.u32 %v6376_v32, %v5414_v30  ;;  %v7104_v1 = vld [vmem:[%s11334_s0 + $0x68] sm:$0xff] }
  0x2e   :  { %11591 = vst [vmem:[#allocation44_spill] sm:$0xff] %v6995_v42  ;;  %650 = vmatpush.bf16.msrb.mxu0 %v7006_v51  ;;  %v7034_v2 = vor.u32 %v6396_v57, %v5526_v0  ;;  %v5518_v48 = vld [vmem:[%s11333_s1 + $0x128] sm:$0xf0]  ;;  %v6375_v49 = vld [vmem:[%s11333_s1 + $0xc4] sm:$0xf] }
  0x2f   :  { %11592 = vst [vmem:[#allocation45_spill] sm:$0xff] %v6997_v43  ;;  %694 = vmatpush.bf16.msrb.mxu1 %v7045_v11  ;;  %v7090_v57 = vor.u32 %v6394_v39, %v5518_v48  ;;  %v6335_v4 = vld [vmem:[%s11334_s0 + $0x28] sm:$0xff]  ;;  %v5660_v32 = vld [vmem:[%s11333_s1 + $0x1d8] sm:$0xf0]  ;;  %v7140_v48 = vld [vmem:[%s11334_s0 + $0x70] sm:$0xff] }
  0x30   :  { %11593 = vst [vmem:[#allocation46_spill] sm:$0xff] %v7006_v51  ;;  %953 = vmatpush.bf16.msrb.mxu3 %v7034_v2  ;;  %v6415_v62 = vld [vmem:[%s11333_s1 + $0x194] sm:$0xf]  ;;  %v5620_v15 = vld [vmem:[%s11333_s1 + $0x188] sm:$0xf0] }
  0x31   :  { %11594 = vst [vmem:[#allocation47_spill] sm:$0xff] %v7014_v54 }
  0x32   :  { %11595 = vst [vmem:[#allocation48_spill] sm:$0xff] %v7034_v2  ;;  %651 = vmatpush.bf16.msrb.mxu0 %v7078_v40 }
  0x33   :  { %11596 = vst [vmem:[#allocation49_spill] sm:$0xff] %v7045_v11 }
  0x34   :  { %11598 = vst [vmem:[#allocation51_spill] sm:$0xff] %v7057_v27  ;;  %954 = vmatpush.bf16.msrb.mxu3 %v7090_v57 }
  0x35   :  { %11599 = vst [vmem:[#allocation52_spill] sm:$0xff] %v7078_v40 }
  0x36   :  { %11600 = vst [vmem:[#allocation53_spill] sm:$0xff] %v7090_v57 }
  0x37   :  { %11602 = vst [vmem:[#allocation55_spill] sm:$0xff] %v7104_v1 }
  0x38   :  { %1324 = vmatpush.bf16.msra.mxu3 %v6611_v7  ;;  %11603 = vst [vmem:[#allocation56_spill] sm:$0xff] %v7140_v48 }
  0x3b   :  { %5270 = vmatmul.msk.bf16.gmra.mxu0 %vm187_vm0, %v6964_v23 }
  0x3c   :  { %5277 = vmatmul.msk.bf16.gmra.mxu1 %vm187_vm0, %v6964_v23  ;;  %5360 = vmatmul.msk.bf16.gmra.mxu2 %vm187_vm0, %v6332_v26  ;;  %v6417_v23 = vld [vmem:[%s11333_s1 + $0x1a4] sm:$0xf] }
  0x3d   :  { %5367 = vmatmul.msk.bf16.gmra.mxu3 %vm187_vm0, %v6332_v26  ;;  %v7047_v26 = vor.u32 %v6395_v10, %v5516_v6  ;;  %v5658_v6 = vld [vmem:[%s11333_s1 + $0x1d0] sm:$0xf]  ;;  %v6424_v10 = vld [vmem:[%s11333_s1 + $0x1d4] sm:$0xf0] }
  0x3e   :  { %1325 = vmatpush.bf16.msra.mxu3 %v6640_v17  ;;  %v7125_v30 = vor.u32 %v6424_v10, %v5658_v6  ;;  %v7163_v10 = vld [vmem:[%s11334_s0 + $0x80] sm:$0xff] }
  0x3f   :  { %11597 = vst [vmem:[#allocation50_spill] sm:$0xff] %v7047_v26  ;;  %910 = vmatpush.bf16.msrb.mxu2 %v7047_v26 }
  0x40   :  { %1164 = vmatpush.bf16.msra.mxu0 %v7125_v30 }
  0x42   :  { %1326 = vmatpush.bf16.msra.mxu3 %v6688_v33 }
  0x43   :  { %1280 = vmatpush.bf16.msra.mxu2 %v6600_v3 }
  0x46   :  { %1327 = vmatpush.bf16.msra.mxu3 %v6724_v45 }
  0x47   :  { %1281 = vmatpush.bf16.msra.mxu2 %v6638_v16 }
  0x4a   :  { %1328 = vmatpush.bf16.msra.mxu3 %v6763_v58  ;;  %v7293_v58 = vld [vmem:[%s11334_s0 + $0xd8] sm:$0xff] }
  0x4b   :  { %5271 = vmatmul.msk.bf16.gmra.mxu0 %vm187_vm0, %v7014_v54  ;;  %1282 = vmatpush.bf16.msra.mxu2 %v6675_v29  ;;  %11613 = vst [vmem:[#allocation66_spill] sm:$0xff] %v7293_v58  ;;  %v7337_v29 = vld [vmem:[%s11334_s0 + $0xe0] sm:$0xff] }
  0x4c   :  { %5278 = vmatmul.msk.bf16.gmra.mxu1 %vm187_vm0, %v7014_v54  ;;  %5361 = vmatmul.msk.bf16.gmra.mxu2 %vm187_vm0, %v6333_v55  ;;  %11616 = vst [vmem:[#allocation69_spill] sm:$0xff] %v7337_v29 }
  0x4d   :  { %5368 = vmatmul.msk.bf16.gmra.mxu3 %vm187_vm0, %v6333_v55  ;;  %v5416_v55 = vld [vmem:[%s11333_s1 + $0xc8] sm:$0xf0] }
  0x4e   :  { %v7092_v0 = vor.u32 %v6375_v49, %v5416_v55  ;;  %1329 = vmatpush.bf16.msra.mxu3 %v6808_v13  ;;  %v6336_v49 = vld [vmem:[%s11334_s0 + $0x30] sm:$0xff]  ;;  %v5650_v55 = vld [vmem:[%s11333_s1 + $0x1c0] sm:$0xf]  ;;  %v5636_v13 = vld [vmem:[%s11333_s1 + $0x1a8] sm:$0xf0] }
  0x4f   :  { %1283 = vmatpush.bf16.msra.mxu2 %v6720_v44  ;;  %v5628_v44 = vld [vmem:[%s11333_s1 + $0x198] sm:$0xf0] }
  0x50   :  { %11601 = vst [vmem:[#allocation54_spill] sm:$0xff] %v7092_v0  ;;  %695 = vmatpush.bf16.msrb.mxu1 %v7092_v0  ;;  %v7324_v33 = vor.u32 %v6415_v62, %v5628_v44 }
  0x52   :  { %11615 = vst [vmem:[#allocation68_spill] sm:$0xff] %v7324_v33 }
  0x53   :  { %1284 = vmatpush.bf16.msra.mxu2 %v6756_v56 }
  0x57   :  { %1285 = vmatpush.bf16.msra.mxu2 %v6798_v9  ;;  %v7280_v9 = vor.u32 %v6417_v23, %v5636_v13  ;;  %v5626_v23 = vld [vmem:[%s11333_s1 + $0x190] sm:$0xf] }
  0x59   :  { %11612 = vst [vmem:[#allocation65_spill] sm:$0xff] %v7280_v9 }
  0x5b   :  { %5272 = vmatmul.msk.bf16.gmra.mxu0 %vm187_vm0, %v7057_v27 }
  0x5c   :  { %5279 = vmatmul.msk.bf16.gmra.mxu1 %vm187_vm0, %v7057_v27  ;;  %5362 = vmatmul.msk.bf16.gmra.mxu2 %vm187_vm0, %v6334_v28 }
  0x5d   :  { %5369 = vmatmul.msk.bf16.gmra.mxu3 %vm187_vm0, %v6334_v28  ;;  %v6423_v28 = vld [vmem:[%s11333_s1 + $0x1d4] sm:$0xf] }
  0x5e   :  { %v7131_v39 = vor.u32 %v6423_v28, %v5660_v32  ;;  %v7168_v28 = vld [vmem:[%s11334_s0 + $0xc0] sm:$0xff] }
  0x5f   :  { %11605 = vst [vmem:[#allocation58_spill] sm:$0xff] %v7168_v28  ;;  %v6421_v32 = vld [vmem:[%s11333_s1 + $0x1c4] sm:$0xf] }
  0x60   :  { %1208 = vmatpush.bf16.msra.mxu1 %v7131_v39 }
  0x6b   :  { %5273 = vmatmul.msk.bf16.gmra.mxu0 %vm187_vm0, %v7104_v1 }
  0x6c   :  { %5280 = vmatmul.msk.bf16.gmra.mxu1 %vm187_vm0, %v7104_v1  ;;  %5363 = vmatmul.msk.bf16.gmra.mxu2 %vm187_vm0, %v6335_v4 }
  0x6d   :  { %5370 = vmatmul.msk.bf16.gmra.mxu3 %vm187_vm0, %v6335_v4  ;;  %v6422_v4 = vld [vmem:[%s11333_s1 + $0x1c4] sm:$0xf0] }
  0x6e   :  { %v7157_v6 = vor.u32 %v6422_v4, %v5650_v55  ;;  %v5642_v4 = vld [vmem:[%s11333_s1 + $0x1b0] sm:$0xf] }
  0x70   :  { %11604 = vst [vmem:[#allocation57_spill] sm:$0xff] %v7157_v6  ;;  %1165 = vmatpush.bf16.msra.mxu0 %v7157_v6 }
  0x7b   :  { %5274 = vmatmul.msk.bf16.gmra.mxu0 %vm187_vm0, %v7140_v48 }
  0x7c   :  { %5281 = vmatmul.msk.bf16.gmra.mxu1 %vm187_vm0, %v7140_v48  ;;  %5364 = vmatmul.msk.bf16.gmra.mxu2 %vm187_vm0, %v6336_v49 }
  0x7d   :  { %5371 = vmatmul.msk.bf16.gmra.mxu3 %vm187_vm0, %v6336_v49  ;;  %v5652_v49 = vld [vmem:[%s11333_s1 + $0x1c8] sm:$0xf0] }
  0x7e   :  { %v7176_v55 = vor.u32 %v6421_v32, %v5652_v49  ;;  %v6420_v32 = vld [vmem:[%s11333_s1 + $0x1b4] sm:$0xf0] }
  0x7f   :  { %v7195_v49 = vor.u32 %v6420_v32, %v5642_v4  ;;  %v7210_v4 = vld [vmem:[%s11334_s0 + $0xc8] sm:$0xff] }
  0x80   :  { %11606 = vst [vmem:[#allocation59_spill] sm:$0xff] %v7176_v55  ;;  %1209 = vmatpush.bf16.msra.mxu1 %v7176_v55 }
  0x81   :  { %11607 = vst [vmem:[#allocation60_spill] sm:$0xff] %v7195_v49  ;;  %1166 = vmatpush.bf16.msra.mxu0 %v7195_v49 }
  0x82   :  { %11608 = vst [vmem:[#allocation61_spill] sm:$0xff] %v7210_v4 }
  0x8b   :  { %5460 = vmatmul.msk.bf16.vlgmr.msrb.gmra.mxu0 %vm187_vm0, %v7163_v10 }
  0x8c   :  { %5467 = vmatmul.msk.bf16.vlgmr.msrb.gmra.mxu1 %vm187_vm0, %v7163_v10  ;;  %5562 = vmatmul.msk.bf16.vlgmr.msrb.gmra.mxu2 %vm187_vm0, %v7168_v28 }
  0x8d   :  { %5569 = vmatmul.msk.bf16.vlgmr.msrb.gmra.mxu3 %vm187_vm0, %v7168_v28  ;;  %1456 = vmatpush.bf16.msrb.mxu2 %v6854_v35  ;;  %v6413_v28 = vld [vmem:[%s11333_s1 + $0x184] sm:$0xf] }
  0x8e   :  { %1500 = vmatpush.bf16.msrb.mxu3 %v6858_v36  ;;  %v7205_v36 = vld [vmem:[%s11334_s0 + $0x88] sm:$0xff] }
  0x91   :  { %1457 = vmatpush.bf16.msrb.mxu2 %v6884_v47 }
  0x92   :  { %1501 = vmatpush.bf16.msrb.mxu3 %v6897_v52 }
  0x95   :  { %1458 = vmatpush.bf16.msrb.mxu2 %v6914_v61 }
  0x96   :  { %1502 = vmatpush.bf16.msrb.mxu3 %v6943_v5  ;;  %v6419_v5 = vld [vmem:[%s11333_s1 + $0x1b4] sm:$0xf] }
  0x98   :  { %v218_v35 = vpop.f32.mrf.mxu0 }
  0x99   :  { %v262_v32 = vpop.f32.mrf.mxu1  ;;  %1459 = vmatpush.bf16.msrb.mxu2 %v6956_v22 }
  0x9a   :  { %1503 = vmatpush.bf16.msrb.mxu3 %v6995_v42  ;;  %v5644_v42 = vld [vmem:[%s11333_s1 + $0x1b8] sm:$0xf0] }
  0x9b   :  { %5461 = vmatmul.msk.bf16.gmra.mxu0 %vm187_vm0, %v7205_v36  ;;  %v7228_v22 = vor.u32 %v6419_v5, %v5644_v42  ;;  %v7242_v42 = vld [vmem:[%s11334_s0 + $0x90] sm:$0xff] }
  0x9c   :  { %5468 = vmatmul.msk.bf16.gmra.mxu1 %vm187_vm0, %v7205_v36  ;;  %5563 = vmatmul.msk.bf16.gmra.mxu2 %vm187_vm0, %v7210_v4 }
  0x9d   :  { %5570 = vmatmul.msk.bf16.gmra.mxu3 %vm187_vm0, %v7210_v4  ;;  %11609 = vst [vmem:[#allocation62_spill] sm:$0xff] %v7228_v22  ;;  %1460 = vmatpush.bf16.msrb.mxu2 %v7006_v51  ;;  %v6418_v51 = vld [vmem:[%s11333_s1 + $0x1a4] sm:$0xf0]  ;;  %v6416_v4 = vld [vmem:[%s11333_s1 + $0x194] sm:$0xf0] }
  0x9e   :  { %1504 = vmatpush.bf16.msrb.mxu3 %v7045_v11  ;;  %1210 = vmatpush.bf16.msra.mxu1 %v7228_v22 }
  0x9f   :  { %v422_v61 = vpop.f32.mrf.mxu2 }
  0xa0   :  { %v7232_v52 = vadd.f32 %v422_v61, %v218_v35  ;;  %v466_v47 = vpop.f32.mrf.mxu3  ;;  %v220_v48 = vpop.f32.mrf.mxu0 }
  0xa1   :  { %v7235_v1 = vadd.f32 %v466_v47, %v262_v32  ;;  %v264_v27 = vpop.f32.mrf.mxu1  ;;  %1461 = vmatpush.bf16.msrb.mxu2 %v7078_v40  ;;  %v7249_v47 = vld [vmem:[%s11334_s0 + $0xd0] sm:$0xff] }
  0xa2   :  { %1505 = vmatpush.bf16.msrb.mxu3 %v7092_v0  ;;  %11610 = vst [vmem:[#allocation63_spill] sm:$0xff] %v7249_v47  ;;  %v5634_v0 = vld [vmem:[%s11333_s1 + $0x1a0] sm:$0xf]  ;;  %1211 = vmatpush.bf16.msra.mxu1 %v7280_v9 }
  0xa6   :  { %1212 = vmatpush.bf16.msra.mxu1 %v7324_v33 }
  0xa7   :  { %v424_v5 = vpop.f32.mrf.mxu2 }
  0xa8   :  { %v7244_v11 = vadd.f32 %v424_v5, %v220_v48  ;;  %v468_v35 = vpop.f32.mrf.mxu3  ;;  %v223_v61 = vpop.f32.mrf.mxu0  ;;  %v7259_v48 = vor.u32 %v6418_v51, %v5634_v0 }
  0xa9   :  { %v7251_v32 = vadd.f32 %v468_v35, %v264_v27  ;;  %v267_v40 = vpop.f32.mrf.mxu1 }
  0xaa   :  { %11611 = vst [vmem:[#allocation64_spill] sm:$0xff] %v7259_v48  ;;  %1167 = vmatpush.bf16.msra.mxu0 %v7259_v48 }
  0xab   :  { %5462 = vmatmul.msk.bf16.gmra.mxu0 %vm187_vm0, %v7242_v42 }
  0xac   :  { %5469 = vmatmul.msk.bf16.gmra.mxu1 %vm187_vm0, %v7242_v42  ;;  %5564 = vmatmul.msk.bf16.gmra.mxu2 %vm187_vm0, %v7249_v47 }
  0xad   :  { %5571 = vmatmul.msk.bf16.gmra.mxu3 %vm187_vm0, %v7249_v47 }
  0xaf   :  { %v427_v27 = vpop.f32.mrf.mxu2 }
  0xb0   :  { %v7270_v5 = vadd.f32 %v427_v27, %v223_v61  ;;  %v471_v35 = vpop.f32.mrf.mxu3  ;;  %v225_v51 = vpop.f32.mrf.mxu0  ;;  %v7286_v61 = vld [vmem:[%s11334_s0 + $0x98] sm:$0xff] }
  0xb1   :  { %v7272_v0 = vadd.f32 %v471_v35, %v267_v40  ;;  %v269_v54 = vpop.f32.mrf.mxu1 }
  0xb7   :  { %v429_v47 = vpop.f32.mrf.mxu2 }
  0xb8   :  { %v7288_v40 = vadd.f32 %v429_v47, %v225_v51  ;;  %v473_v27 = vpop.f32.mrf.mxu3  ;;  %v228_v35 = vpop.f32.mrf.mxu0  ;;  %v7303_v47 = vor.u32 %v6416_v4, %v5626_v23 }
  0xb9   :  { %v7295_v56 = vadd.f32 %v473_v27, %v269_v54  ;;  %v272_v13 = vpop.f32.mrf.mxu1 }
  0xba   :  { %11614 = vst [vmem:[#allocation67_spill] sm:$0xff] %v7303_v47  ;;  %1168 = vmatpush.bf16.msra.mxu0 %v7303_v47 }
  0xbb   :  { %5463 = vmatmul.msk.bf16.gmra.mxu0 %vm187_vm0, %v7286_v61 }
  0xbc   :  { %5470 = vmatmul.msk.bf16.gmra.mxu1 %vm187_vm0, %v7286_v61  ;;  %5565 = vmatmul.msk.bf16.gmra.mxu2 %vm187_vm0, %v7293_v58 }
  0xbd   :  { %5572 = vmatmul.msk.bf16.gmra.mxu3 %vm187_vm0, %v7293_v58 }
  0xbf   :  { %v432_v54 = vpop.f32.mrf.mxu2 }
  0xc0   :  { %v7314_v51 = vadd.f32 %v432_v54, %v228_v35  ;;  %v476_v27 = vpop.f32.mrf.mxu3  ;;  %v230_v4 = vpop.f32.mrf.mxu0  ;;  %v7330_v35 = vld [vmem:[%s11334_s0 + $0xa0] sm:$0xff] }
  0xc1   :  { %v7316_v23 = vadd.f32 %v476_v27, %v272_v13  ;;  %v274_v45 = vpop.f32.mrf.mxu1 }
  0xc7   :  { %v434_v58 = vpop.f32.mrf.mxu2 }
  0xc8   :  { %v7332_v13 = vadd.f32 %v434_v58, %v230_v4  ;;  %v478_v54 = vpop.f32.mrf.mxu3  ;;  %v233_v27 = vpop.f32.mrf.mxu0  ;;  %v5618_v58 = vld [vmem:[%s11333_s1 + $0x180] sm:$0xf] }
  0xc9   :  { %v7339_v17 = vadd.f32 %v478_v54, %v274_v45  ;;  %v277_v44 = vpop.f32.mrf.mxu1  ;;  %v6414_v45 = vld [vmem:[%s11333_s1 + $0x184] sm:$0xf0] }
  0xca   :  { %v7355_v62 = vor.u32 %v6414_v45, %v5618_v58  ;;  %v7369_v58 = vor.u32 %v6413_v28, %v5620_v15  ;;  %v7384_v15 = vld [vmem:[%s11334_s0 + $0xe8] sm:$0xff] }
  0xcb   :  { %5464 = vmatmul.msk.bf16.gmra.mxu0 %vm187_vm0, %v7330_v35  ;;  %11619 = vst [vmem:[#allocation72_spill] sm:$0xff] %v7384_v15 }
  0xcc   :  { %5471 = vmatmul.msk.bf16.gmra.mxu1 %vm187_vm0, %v7330_v35  ;;  %5566 = vmatmul.msk.bf16.gmra.mxu2 %vm187_vm0, %v7337_v29  ;;  %11617 = vst [vmem:[#allocation70_spill] sm:$0xff] %v7355_v62 }
  0xcd   :  { %5573 = vmatmul.msk.bf16.gmra.mxu3 %vm187_vm0, %v7337_v29  ;;  %1169 = vmatpush.bf16.msra.mxu0 %v7355_v62  ;;  %11618 = vst [vmem:[#allocation71_spill] sm:$0xff] %v7369_v58 }
  0xce   :  { %1213 = vmatpush.bf16.msra.mxu1 %v7369_v58 }
  0xcf   :  { %v437_v4 = vpop.f32.mrf.mxu2 }
  0xd0   :  { %v7357_v54 = vadd.f32 %v437_v4, %v233_v27  ;;  %v481_v16 = vpop.f32.mrf.mxu3  ;;  %v235_v7 = vpop.f32.mrf.mxu0  ;;  %v7377_v27 = vld [vmem:[%s11334_s0 + $0xa8] sm:$0xff] }
  0xd1   :  { %v7360_v3 = vadd.f32 %v481_v16, %v277_v44  ;;  %v279_v29 = vpop.f32.mrf.mxu1  ;;  %1368 = vmatpush.bf16.msrb.mxu0 %v6613_v8 }
  0xd2   :  { %1412 = vmatpush.bf16.msrb.mxu1 %v6625_v12 }
  0xd5   :  { %1369 = vmatpush.bf16.msrb.mxu0 %v6652_v21 }
  0xd6   :  { %1413 = vmatpush.bf16.msrb.mxu1 %v6663_v25 }
  0xd7   :  { %v439_v16 = vpop.f32.mrf.mxu2 }
  0xd8   :  { %v7379_v44 = vadd.f32 %v439_v16, %v235_v7  ;;  %v483_v45 = vpop.f32.mrf.mxu3  ;;  %v238_v4 = vpop.f32.mrf.mxu0 }
  0xd9   :  { %v7386_v28 = vadd.f32 %v483_v45, %v279_v29  ;;  %v282_v12 = vpop.f32.mrf.mxu1  ;;  %1370 = vmatpush.bf16.msrb.mxu0 %v6690_v34 }
  0xda   :  { %1414 = vmatpush.bf16.msrb.mxu1 %v6702_v38  ;;  %v7438_v38 = vld [vmem:[%s11334_s0 + $0x8] sm:$0xff] }
  0xdb   :  { %5465 = vmatmul.msk.bf16.gmra.mxu0 %vm187_vm0, %v7377_v27 }
  0xdc   :  { %5472 = vmatmul.msk.bf16.gmra.mxu1 %vm187_vm0, %v7377_v27  ;;  %5567 = vmatmul.msk.bf16.gmra.mxu2 %vm187_vm0, %v7384_v15 }
  0xdd   :  { %5574 = vmatmul.msk.bf16.gmra.mxu3 %vm187_vm0, %v7384_v15  ;;  %1371 = vmatpush.bf16.msrb.mxu0 %v6726_v46  ;;  %v7411_v46 = vld [vmem:[%s11334_s0 + $0xb0] sm:$0xff] }
  0xde   :  { %1415 = vmatpush.bf16.msrb.mxu1 %v6738_v50  ;;  %11620 = vst [vmem:[#allocation73_spill] sm:$0xff] %v7411_v46 }
  0xdf   :  { %v442_v7 = vpop.f32.mrf.mxu2 }
  0xe0   :  { %v7400_v29 = vadd.f32 %v442_v7, %v238_v4  ;;  %v486_v16 = vpop.f32.mrf.mxu3  ;;  %v240_v45 = vpop.f32.mrf.mxu0 }
  0xe1   :  { %v7402_v34 = vadd.f32 %v486_v16, %v282_v12  ;;  %v284_v25 = vpop.f32.mrf.mxu1  ;;  %1372 = vmatpush.bf16.msrb.mxu0 %v6765_v59  ;;  %v7418_v16 = vld [vmem:[%s11334_s0 + $0xf0] sm:$0xff] }
  0xe2   :  { %1416 = vmatpush.bf16.msrb.mxu1 %v6777_v63  ;;  %11621 = vst [vmem:[#allocation74_spill] sm:$0xff] %v7418_v16 }
  0xe5   :  { %1373 = vmatpush.bf16.msrb.mxu0 %v6810_v14 }
  0xe6   :  { %1417 = vmatpush.bf16.msrb.mxu1 %v6818_v18 }
  0xe7   :  { %v444_v15 = vpop.f32.mrf.mxu2 }
  0xe8   :  { %v7413_v4 = vadd.f32 %v444_v15, %v240_v45  ;;  %v488_v7 = vpop.f32.mrf.mxu3  ;;  %v243_v12 = vpop.f32.mrf.mxu0 }
  0xe9   :  { %v7420_v59 = vadd.f32 %v488_v7, %v284_v25  ;;  %v287_v63 = vpop.f32.mrf.mxu1 }
  0xeb   :  { %11622 = vst [vmem:[#allocation75_spill] sm:$0xff] %v7420_v59  ;;  %5466 = vmatmul.msk.bf16.gmra.mxu0 %vm187_vm0, %v7411_v46 }
  0xec   :  { %5473 = vmatmul.msk.bf16.gmra.mxu1 %vm187_vm0, %v7411_v46  ;;  %5568 = vmatmul.msk.bf16.gmra.mxu2 %vm187_vm0, %v7418_v16 }
  0xed   :  { %5575 = vmatmul.msk.bf16.gmra.mxu3 %vm187_vm0, %v7418_v16 }
  0xef   :  { %v447_v15 = vpop.f32.mrf.mxu2 }
  0xf0   :  { %v7431_v45 = vadd.f32 %v447_v15, %v243_v12  ;;  %v491_v25 = vpop.f32.mrf.mxu3  ;;  %v245_v7 = vpop.f32.mrf.mxu0 }
  0xf1   :  { %v7433_v14 = vadd.f32 %v491_v25, %v287_v63  ;;  %v289_v18 = vpop.f32.mrf.mxu1 }
  0xf7   :  { %v449_v50 = vpop.f32.mrf.mxu2 }
  0xf8   :  { %v7440_v21 = vadd.f32 %v449_v50, %v245_v7  ;;  %v493_v8 = vpop.f32.mrf.mxu3  ;;  %v248_v46 = vpop.f32.mrf.mxu0 }
  0xf9   :  { %v7442_v59 = vadd.f32 %v493_v8, %v289_v18  ;;  %v292_v16 = vpop.f32.mrf.mxu1 }
  0xfb   :  { %5664 = vmatmul.msk.bf16.vlgmr.msra.gmra.mxu0 %vm187_vm0, %v7438_v38 }
  0xfc   :  { %5671 = vmatmul.msk.bf16.vlgmr.msra.gmra.mxu1 %vm187_vm0, %v7438_v38  ;;  %5678 = vmatmul.msk.bf16.vlgmr.msra.gmra.mxu2 %vm187_vm0, %v7163_v10 }
  0xfd   :  { %5685 = vmatmul.msk.bf16.vlgmr.msra.gmra.mxu3 %vm187_vm0, %v7163_v10  ;;  %1758 = vmatpush.bf16.msra.mxu2 %v7125_v30  ;;  %v7470_v10 = vld [vmem:[%s11334_s0 + $0x10] sm:$0xff] }
  0xfe   :  { %1572 = vmatpush.bf16.msra.mxu0 %v6820_v19  ;;  %1802 = vmatpush.bf16.msra.mxu3 %v7131_v39 }
  0xff   :  { %v452_v8 = vpop.f32.mrf.mxu2  ;;  %1616 = vmatpush.bf16.msra.mxu1 %v6831_v24 }
 0x100   :  { %v7456_v50 = vadd.f32 %v452_v8, %v248_v46  ;;  %v496_v63 = vpop.f32.mrf.mxu3  ;;  %v250_v18 = vpop.f32.mrf.mxu0 }
 0x101   :  { %v7458_v12 = vadd.f32 %v496_v63, %v292_v16  ;;  %v294_v15 = vpop.f32.mrf.mxu1  ;;  %1759 = vmatpush.bf16.msra.mxu2 %v7157_v6  ;;  %v11625_v6 = vld [vmem:[#allocation25_spill] sm:$0xff] }
 0x102   :  { %1573 = vmatpush.bf16.msra.mxu0 %v6860_v37  ;;  %1803 = vmatpush.bf16.msra.mxu3 %v7176_v55 }
 0x103   :  { %1617 = vmatpush.bf16.msra.mxu1 %v6871_v41 }
 0x105   :  { %1760 = vmatpush.bf16.msra.mxu2 %v7195_v49 }
 0x106   :  { %1574 = vmatpush.bf16.msra.mxu0 %v6899_v53  ;;  %1804 = vmatpush.bf16.msra.mxu3 %v7228_v22 }
 0x107   :  { %v454_v46 = vpop.f32.mrf.mxu2  ;;  %1618 = vmatpush.bf16.msra.mxu1 %v6911_v60 }
 0x108   :  { %v7473_v16 = vadd.f32 %v454_v46, %v250_v18  ;;  %v498_v25 = vpop.f32.mrf.mxu3  ;;  %v653_v7 = vpop.f32.mrf.mxu0 }
 0x109   :  { %v7475_v8 = vadd.f32 %v498_v25, %v294_v15  ;;  %v732_v63 = vadd.f32 %v653_v7, %v7232_v52  ;;  %v697_v49 = vpop.f32.mrf.mxu1  ;;  %1761 = vmatpush.bf16.msra.mxu2 %v7259_v48 }
 0x10a   :  { %v733_v22 = vadd.f32 %v697_v49, %v7235_v1  ;;  %1575 = vmatpush.bf16.msra.mxu0 %v6954_v20  ;;  %1805 = vmatpush.bf16.msra.mxu3 %v7280_v9 }
 0x10b   :  { %5665 = vmatmul.msk.bf16.gmra.mxu0 %vm187_vm0, %v7470_v10  ;;  %1619 = vmatpush.bf16.msra.mxu1 %v6984_v31 }
 0x10c   :  { %5672 = vmatmul.msk.bf16.gmra.mxu1 %vm187_vm0, %v7470_v10  ;;  %5679 = vmatmul.msk.bf16.gmra.mxu2 %vm187_vm0, %v7205_v36 }
 0x10d   :  { %5686 = vmatmul.msk.bf16.gmra.mxu3 %vm187_vm0, %v7205_v36  ;;  %1762 = vmatpush.bf16.msra.mxu2 %v7303_v47 }
 0x10e   :  { %1576 = vmatpush.bf16.msra.mxu0 %v6997_v43  ;;  %1806 = vmatpush.bf16.msra.mxu3 %v7324_v33 }
 0x10f   :  { %v912_v52 = vpop.f32.mrf.mxu2  ;;  %1620 = vmatpush.bf16.msra.mxu1 %v7034_v2 }
 0x110   :  { %v7495_v1 = vadd.f32 %v912_v52, %v732_v63  ;;  %v956_v49 = vpop.f32.mrf.mxu3  ;;  %v655_v18 = vpop.f32.mrf.mxu0  ;;  %v7508_v63 = vld [vmem:[%s11334_s0 + $0x18] sm:$0xff] }
 0x111   :  { %v7497_v15 = vadd.f32 %v956_v49, %v733_v22  ;;  %v734_v46 = vadd.f32 %v655_v18, %v7244_v11  ;;  %v699_v25 = vpop.f32.mrf.mxu1  ;;  %1763 = vmatpush.bf16.msra.mxu2 %v7355_v62  ;;  %v7533_v62 = vld [vmem:[%s11334_s0 + $0x20] sm:$0xff] }
 0x112   :  { %v735_v36 = vadd.f32 %v699_v25, %v7251_v32  ;;  %1577 = vmatpush.bf16.msra.mxu0 %v7047_v26  ;;  %1807 = vmatpush.bf16.msra.mxu3 %v7369_v58 }
 0x113   :  { %1621 = vmatpush.bf16.msra.mxu1 %v7090_v57 }
 0x117   :  { %v914_v7 = vpop.f32.mrf.mxu2 }
 0x118   :  { %v7510_v22 = vadd.f32 %v914_v7, %v734_v46  ;;  %v958_v11 = vpop.f32.mrf.mxu3  ;;  %v658_v52 = vpop.f32.mrf.mxu0 }
 0x119   :  { %v7512_v49 = vadd.f32 %v958_v11, %v735_v36  ;;  %v736_v32 = vadd.f32 %v658_v52, %v7270_v5  ;;  %v702_v18 = vpop.f32.mrf.mxu1 }
 0x11a   :  { %v737_v25 = vadd.f32 %v702_v18, %v7272_v0 }
 0x11b   :  { %5666 = vmatmul.msk.bf16.gmra.mxu0 %vm187_vm0, %v7508_v63 }
 0x11c   :  { %5673 = vmatmul.msk.bf16.gmra.mxu1 %vm187_vm0, %v7508_v63  ;;  %5680 = vmatmul.msk.bf16.gmra.mxu2 %vm187_vm0, %v7242_v42 }
 0x11d   :  { %5687 = vmatmul.msk.bf16.gmra.mxu3 %vm187_vm0, %v7242_v42 }
 0x11f   :  { %v917_v46 = vpop.f32.mrf.mxu2 }
 0x120   :  { %v7524_v36 = vadd.f32 %v917_v46, %v736_v32  ;;  %v961_v7 = vpop.f32.mrf.mxu3  ;;  %v660_v5 = vpop.f32.mrf.mxu0 }
 0x121   :  { %v7526_v11 = vadd.f32 %v961_v7, %v737_v25  ;;  %v738_v0 = vadd.f32 %v660_v5, %v7288_v40  ;;  %v704_v52 = vpop.f32.mrf.mxu1 }
 0x122   :  { %v739_v18 = vadd.f32 %v704_v52, %v7295_v56 }
 0x127   :  { %v919_v58 = vpop.f32.mrf.mxu2 }
 0x128   :  { %v7535_v33 = vadd.f32 %v919_v58, %v738_v0  ;;  %v963_v42 = vpop.f32.mrf.mxu3  ;;  %v663_v32 = vpop.f32.mrf.mxu0 }
 0x129   :  { %v7537_v46 = vadd.f32 %v963_v42, %v739_v18  ;;  %v740_v25 = vadd.f32 %v663_v32, %v7314_v51  ;;  %v707_v7 = vpop.f32.mrf.mxu1  ;;  %v7558_v32 = vld [vmem:[%s11334_s0 + $0x28] sm:$0xff] }
 0x12a   :  { %v741_v40 = vadd.f32 %v707_v7, %v7316_v23 }
 0x12b   :  { %5667 = vmatmul.msk.bf16.gmra.mxu0 %vm187_vm0, %v7533_v62 }
 0x12c   :  { %5674 = vmatmul.msk.bf16.gmra.mxu1 %vm187_vm0, %v7533_v62  ;;  %5681 = vmatmul.msk.bf16.gmra.mxu2 %vm187_vm0, %v7286_v61 }
 0x12d   :  { %5688 = vmatmul.msk.bf16.gmra.mxu3 %vm187_vm0, %v7286_v61 }
 0x12f   :  { %v922_v56 = vpop.f32.mrf.mxu2 }
 0x130   :  { %v7549_v58 = vadd.f32 %v922_v56, %v740_v25  ;;  %v966_v5 = vpop.f32.mrf.mxu3  ;;  %v665_v51 = vpop.f32.mrf.mxu0 }
 0x131   :  { %v7551_v0 = vadd.f32 %v966_v5, %v741_v40  ;;  %v742_v23 = vadd.f32 %v665_v51, %v7332_v13  ;;  %v709_v52 = vpop.f32.mrf.mxu1 }
 0x132   :  { %v743_v18 = vadd.f32 %v709_v52, %v7339_v17 }
 0x137   :  { %v924_v42 = vpop.f32.mrf.mxu2 }
 0x138   :  { %v7560_v7 = vadd.f32 %v924_v42, %v742_v23  ;;  %v968_v61 = vpop.f32.mrf.mxu3  ;;  %v668_v25 = vpop.f32.mrf.mxu0 }
 0x139   :  { %v7562_v56 = vadd.f32 %v968_v61, %v743_v18  ;;  %v744_v40 = vadd.f32 %v668_v25, %v7357_v54  ;;  %v712_v5 = vpop.f32.mrf.mxu1  ;;  %v7583_v25 = vld [vmem:[%s11334_s0 + $0x30] sm:$0xff] }
 0x13a   :  { %v745_v13 = vadd.f32 %v712_v5, %v7360_v3 }
 0x13b   :  { %5668 = vmatmul.msk.bf16.gmra.mxu0 %vm187_vm0, %v7558_v32 }
 0x13c   :  { %5675 = vmatmul.msk.bf16.gmra.mxu1 %vm187_vm0, %v7558_v32  ;;  %5682 = vmatmul.msk.bf16.gmra.mxu2 %vm187_vm0, %v7330_v35 }
 0x13d   :  { %5689 = vmatmul.msk.bf16.gmra.mxu3 %vm187_vm0, %v7330_v35 }
 0x13f   :  { %v927_v17 = vpop.f32.mrf.mxu2 }
 0x140   :  { %v7574_v51 = vadd.f32 %v927_v17, %v744_v40  ;;  %v971_v23 = vpop.f32.mrf.mxu3  ;;  %v670_v54 = vpop.f32.mrf.mxu0 }
 0x141   :  { %v7576_v52 = vadd.f32 %v971_v23, %v745_v13  ;;  %v746_v3 = vadd.f32 %v670_v54, %v7379_v44  ;;  %v714_v18 = vpop.f32.mrf.mxu1 }
 0x142   :  { %v747_v42 = vadd.f32 %v714_v18, %v7386_v28 }
 0x147   :  { %v929_v61 = vpop.f32.mrf.mxu2 }
 0x148   :  { %v7585_v5 = vadd.f32 %v929_v61, %v746_v3  ;;  %v973_v35 = vpop.f32.mrf.mxu3  ;;  %v673_v40 = vpop.f32.mrf.mxu0  ;;  %v11623_v61 = vld [vmem:[#allocation75_spill] sm:$0xff] }
 0x149   :  { %v7587_v17 = vadd.f32 %v973_v35, %v747_v42  ;;  %v748_v13 = vadd.f32 %v673_v40, %v7400_v29  ;;  %v717_v23 = vpop.f32.mrf.mxu1 }
 0x14a   :  { %v749_v44 = vadd.f32 %v717_v23, %v7402_v34  ;;  %v7608_v23 = vld [vmem:[%s11334_s0 + $0x38] sm:$0xff] }
 0x14b   :  { %5669 = vmatmul.msk.bf16.gmra.mxu0 %vm187_vm0, %v7583_v25 }
 0x14c   :  { %5676 = vmatmul.msk.bf16.gmra.mxu1 %vm187_vm0, %v7583_v25  ;;  %5683 = vmatmul.msk.bf16.gmra.mxu2 %vm187_vm0, %v7377_v27 }
 0x14d   :  { %5690 = vmatmul.msk.bf16.gmra.mxu3 %vm187_vm0, %v7377_v27 }
 0x14f   :  { %v932_v28 = vpop.f32.mrf.mxu2 }
 0x150   :  { %v7599_v54 = vadd.f32 %v932_v28, %v748_v13  ;;  %v976_v3 = vpop.f32.mrf.mxu3  ;;  %v675_v29 = vpop.f32.mrf.mxu0 }
 0x151   :  { %v7601_v18 = vadd.f32 %v976_v3, %v749_v44  ;;  %v750_v34 = vadd.f32 %v675_v29, %v7413_v4  ;;  %v719_v42 = vpop.f32.mrf.mxu1  ;;  %v11624_v29 = vld [vmem:[#allocation73_spill] sm:$0xff] }
 0x152   :  { %v751_v35 = vadd.f32 %v719_v42, %v11623_v61 }
 0x157   :  { %v934_v40 = vpop.f32.mrf.mxu2 }
 0x158   :  { %v7610_v47 = vadd.f32 %v934_v40, %v750_v34  ;;  %v978_v27 = vpop.f32.mrf.mxu3  ;;  %v678_v13 = vpop.f32.mrf.mxu0 }
 0x159   :  { %v7612_v28 = vadd.f32 %v978_v27, %v751_v35  ;;  %v752_v44 = vadd.f32 %v678_v13, %v7431_v45  ;;  %v722_v3 = vpop.f32.mrf.mxu1 }
 0x15a   :  { %v753_v4 = vadd.f32 %v722_v3, %v7433_v14 }
 0x15b   :  { %5670 = vmatmul.msk.bf16.gmra.mxu0 %vm187_vm0, %v7608_v23 }
 0x15c   :  { %5677 = vmatmul.msk.bf16.gmra.mxu1 %vm187_vm0, %v7608_v23  ;;  %5684 = vmatmul.msk.bf16.gmra.mxu2 %vm187_vm0, %v11624_v29 }
 0x15d   :  { %5691 = vmatmul.msk.bf16.gmra.mxu3 %vm187_vm0, %v11624_v29 }
 0x15f   :  { %v937_v34 = vpop.f32.mrf.mxu2 }
 0x160   :  { %v7624_v42 = vadd.f32 %v937_v34, %v752_v44  ;;  %v981_v61 = vpop.f32.mrf.mxu3  ;;  %v680_v45 = vpop.f32.mrf.mxu0 }
 0x161   :  { %v7626_v35 = vadd.f32 %v981_v61, %v753_v4  ;;  %v754_v14 = vadd.f32 %v680_v45, %v7440_v21  ;;  %v724_v40 = vpop.f32.mrf.mxu1  ;;  %v11626_v21 = vld [vmem:[#allocation58_spill] sm:$0xff] }
 0x162   :  { %v755_v27 = vadd.f32 %v724_v40, %v7442_v59  ;;  %v11627_v59 = vld [vmem:[#allocation4_spill] sm:$0xff] }
 0x167   :  { %v939_v13 = vpop.f32.mrf.mxu2 }
 0x168   :  { %v7630_v3 = vadd.f32 %v939_v13, %v754_v14  ;;  %v983_v9 = vpop.f32.mrf.mxu3  ;;  %v683_v48 = vpop.f32.mrf.mxu0 }
 0x169   :  { %v7632_v55 = vadd.f32 %v983_v9, %v755_v27  ;;  %v756_v29 = vadd.f32 %v683_v48, %v7456_v50  ;;  %v727_v44 = vpop.f32.mrf.mxu1  ;;  %v11628_v9 = vld [vmem:[#allocation2_spill] sm:$0xff]  ;;  %v11629_v48 = vld [vmem:[#allocation5_spill] sm:$0xff]  ;;  %v11631_v27 = vld [vmem:[#allocation8_spill] sm:$0xff] }
 0x16a   :  { %v757_v34 = vadd.f32 %v727_v44, %v7458_v12  ;;  %v11630_v12 = vld [vmem:[#allocation3_spill] sm:$0xff]  ;;  %v11632_v44 = vld [vmem:[#allocation6_spill] sm:$0xff] }
 0x16b   :  { %5692 = vmatmul.msk.bf16.vlgmr.msrb.gmra.mxu0 %vm187_vm0, %v11625_v6 }
 0x16c   :  { %5699 = vmatmul.msk.bf16.vlgmr.msrb.gmra.mxu1 %vm187_vm0, %v11625_v6  ;;  %5706 = vmatmul.msk.bf16.vlgmr.msrb.gmra.mxu2 %vm187_vm0, %v11626_v21 }
 0x16d   :  { %5713 = vmatmul.msk.bf16.vlgmr.msrb.gmra.mxu3 %vm187_vm0, %v11626_v21  ;;  %2149 = vmatpush.bf16.msrb.mxu2 %v11627_v59  ;;  %v11633_v21 = vld [vmem:[#allocation9_spill] sm:$0xff]  ;;  %v11635_v59 = vld [vmem:[#allocation12_spill] sm:$0xff] }
 0x16e   :  { %2061 = vmatpush.bf16.msrb.mxu0 %v11628_v9  ;;  %2193 = vmatpush.bf16.msrb.mxu3 %v11629_v48  ;;  %v11634_v48 = vld [vmem:[#allocation7_spill] sm:$0xff] }
 0x16f   :  { %v942_v50 = vpop.f32.mrf.mxu2  ;;  %2105 = vmatpush.bf16.msrb.mxu1 %v11630_v12 }
 0x170   :  { %v7648_v4 = vadd.f32 %v942_v50, %v756_v29  ;;  %v986_v61 = vpop.f32.mrf.mxu3  ;;  %v685_v45 = vpop.f32.mrf.mxu0  ;;  %v11636_v29 = vld [vmem:[#allocation10_spill] sm:$0xff]  ;;  %v11637_v50 = vld [vmem:[#allocation13_spill] sm:$0xff] }
 0x171   :  { %v7650_v6 = vadd.f32 %v986_v61, %v757_v34  ;;  %v758_v14 = vadd.f32 %v685_v45, %v7473_v16  ;;  %v729_v40 = vpop.f32.mrf.mxu1  ;;  %2150 = vmatpush.bf16.msrb.mxu2 %v11631_v27  ;;  %v11638_v61 = vld [vmem:[#allocation11_spill] sm:$0xff] }
 0x172   :  { %v759_v13 = vadd.f32 %v729_v40, %v7475_v8  ;;  %2062 = vmatpush.bf16.msrb.mxu0 %v11632_v44  ;;  %2194 = vmatpush.bf16.msrb.mxu3 %v11633_v21 }
 0x173   :  { %2106 = vmatpush.bf16.msrb.mxu1 %v11634_v48  ;;  %v11640_v48 = vld [vmem:[#allocation16_spill] sm:$0xff] }
 0x175   :  { %2151 = vmatpush.bf16.msrb.mxu2 %v11635_v59 }
 0x176   :  { %2063 = vmatpush.bf16.msrb.mxu0 %v11636_v29  ;;  %2195 = vmatpush.bf16.msrb.mxu3 %v11637_v50  ;;  %v11642_v29 = vld [vmem:[#allocation14_spill] sm:$0xff]  ;;  %v11643_v50 = vld [vmem:[#allocation17_spill] sm:$0xff] }
 0x177   :  { %v944_v34 = vpop.f32.mrf.mxu2  ;;  %2107 = vmatpush.bf16.msrb.mxu1 %v11638_v61  ;;  %v11644_v61 = vld [vmem:[#allocation38_spill] sm:$0xff] }
 0x178   :  { %v7662_v16 = vadd.f32 %v944_v34, %v758_v14  ;;  %v988_v45 = vpop.f32.mrf.mxu3  ;;  %v1171_v27 = vpop.f32.mrf.mxu0  ;;  %v11645_v14 = vld [vmem:[#allocation15_spill] sm:$0xff] }
 0x179   :  { %v7664_v8 = vadd.f32 %v988_v45, %v759_v13  ;;  %v7667_v40 = vadd.f32 %v1171_v27, %v7495_v1  ;;  %v1215_v21 = vpop.f32.mrf.mxu1  ;;  %2152 = vmatpush.bf16.msrb.mxu2 %v11640_v48  ;;  %v11646_v1 = vld [vmem:[#allocation61_spill] sm:$0xff]  ;;  %v11648_v27 = vld [vmem:[#allocation18_spill] sm:$0xff]  ;;  %v11650_v34 = vld [vmem:[#allocation19_spill] sm:$0xff] }
 0x17a   :  { %v7671_v59 = vadd.f32 %v1215_v21, %v7497_v15  ;;  %2064 = vmatpush.bf16.msrb.mxu0 %v11642_v29  ;;  %2196 = vmatpush.bf16.msrb.mxu3 %v11643_v50  ;;  %v11647_v15 = vld [vmem:[#allocation20_spill] sm:$0xff]  ;;  %v11649_v13 = vld [vmem:[#allocation21_spill] sm:$0xff] }
 0x17b   :  { %11639 = vst [vmem:[#allocation75_spill] sm:$0xff] %v7667_v40  ;;  %5693 = vmatmul.msk.bf16.gmra.mxu0 %vm187_vm0, %v11644_v61  ;;  %2108 = vmatpush.bf16.msrb.mxu1 %v11645_v14  ;;  %v11655_v40 = vld [vmem:[#allocation26_spill] sm:$0xff] }
 0x17c   :  { %11641 = vst [vmem:[#allocation73_spill] sm:$0xff] %v7671_v59  ;;  %5700 = vmatmul.msk.bf16.gmra.mxu1 %vm187_vm0, %v11644_v61  ;;  %5707 = vmatmul.msk.bf16.gmra.mxu2 %vm187_vm0, %v11646_v1  ;;  %v11652_v59 = vld [vmem:[#allocation24_spill] sm:$0xff] }
 0x17d   :  { %5714 = vmatmul.msk.bf16.gmra.mxu3 %vm187_vm0, %v11646_v1  ;;  %2153 = vmatpush.bf16.msrb.mxu2 %v11647_v15  ;;  %v11654_v15 = vld [vmem:[#allocation22_spill] sm:$0xff] }
 0x17e   :  { %2065 = vmatpush.bf16.msrb.mxu0 %v11648_v27  ;;  %2197 = vmatpush.bf16.msrb.mxu3 %v11649_v13  ;;  %v11656_v13 = vld [vmem:[#allocation23_spill] sm:$0xff] }
 0x17f   :  { %v7687_v21 = vpop.f32.mrf.mxu2  ;;  %2109 = vmatpush.bf16.msrb.mxu1 %v11650_v34 }
 0x180   :  { %v7690_v45 = vpop.f32.mrf.mxu3  ;;  %v1173_v50 = vpop.f32.mrf.mxu0 }
 0x181   :  { %v7693_v61 = vadd.f32 %v1173_v50, %v7510_v22  ;;  %v1217_v48 = vpop.f32.mrf.mxu1  ;;  %2154 = vmatpush.bf16.msrb.mxu2 %v11652_v59 }
 0x182   :  { %v7697_v1 = vadd.f32 %v1217_v48, %v7512_v49  ;;  %2066 = vmatpush.bf16.msrb.mxu0 %v11654_v15  ;;  %2198 = vmatpush.bf16.msrb.mxu3 %v11655_v40  ;;  %v11659_v49 = vld [vmem:[#allocation42_spill] sm:$0xff]  ;;  %v11660_v48 = vld [vmem:[#allocation63_spill] sm:$0xff] }
 0x183   :  { %11651 = vst [vmem:[#allocation25_spill] sm:$0xff] %v7693_v61  ;;  %2110 = vmatpush.bf16.msrb.mxu1 %v11656_v13  ;;  %v11665_v15 = vld [vmem:[#allocation47_spill] sm:$0xff] }
 0x184   :  { %11653 = vst [vmem:[#allocation58_spill] sm:$0xff] %v7697_v1 }
 0x187   :  { %v7702_v27 = vpop.f32.mrf.mxu2 }
 0x188   :  { %v7704_v34 = vpop.f32.mrf.mxu3  ;;  %v1176_v14 = vpop.f32.mrf.mxu0 }
 0x189   :  { %v7707_v22 = vadd.f32 %v1176_v14, %v7524_v36  ;;  %v1220_v50 = vpop.f32.mrf.mxu1 }
 0x18a   :  { %v7710_v59 = vadd.f32 %v1220_v50, %v7526_v11 }
 0x18b   :  { %11657 = vst [vmem:[#allocation2_spill] sm:$0xff] %v7707_v22  ;;  %5694 = vmatmul.msk.bf16.gmra.mxu0 %vm187_vm0, %v11659_v49 }
 0x18c   :  { %11658 = vst [vmem:[#allocation3_spill] sm:$0xff] %v7710_v59  ;;  %5701 = vmatmul.msk.bf16.gmra.mxu1 %vm187_vm0, %v11659_v49  ;;  %5708 = vmatmul.msk.bf16.gmra.mxu2 %vm187_vm0, %v11660_v48 }
 0x18d   :  { %5715 = vmatmul.msk.bf16.gmra.mxu3 %vm187_vm0, %v11660_v48 }
 0x18f   :  { %v7720_v40 = vpop.f32.mrf.mxu2 }
 0x190   :  { %v7722_v36 = vpop.f32.mrf.mxu3  ;;  %v1178_v14 = vpop.f32.mrf.mxu0 }
 0x191   :  { %v7725_v11 = vadd.f32 %v1178_v14, %v7535_v33  ;;  %v1222_v50 = vpop.f32.mrf.mxu1  ;;  %v11666_v33 = vld [vmem:[#allocation66_spill] sm:$0xff] }
 0x192   :  { %v7728_v59 = vadd.f32 %v1222_v50, %v7537_v46 }
 0x193   :  { %11661 = vst [vmem:[#allocation6_spill] sm:$0xff] %v7725_v11  ;;  %v11671_v11 = vld [vmem:[#allocation51_spill] sm:$0xff] }
 0x194   :  { %11662 = vst [vmem:[#allocation14_spill] sm:$0xff] %v7728_v59 }
 0x197   :  { %v7730_v22 = vpop.f32.mrf.mxu2 }
 0x198   :  { %v7732_v49 = vpop.f32.mrf.mxu3  ;;  %v1181_v1 = vpop.f32.mrf.mxu0 }
 0x199   :  { %v7735_v61 = vadd.f32 %v1181_v1, %v7549_v58  ;;  %v1225_v48 = vpop.f32.mrf.mxu1 }
 0x19a   :  { %v7738_v13 = vadd.f32 %v1225_v48, %v7551_v0 }
 0x19b   :  { %11663 = vst [vmem:[#allocation38_spill] sm:$0xff] %v7735_v61  ;;  %5695 = vmatmul.msk.bf16.gmra.mxu0 %vm187_vm0, %v11665_v15 }
 0x19c   :  { %11664 = vst [vmem:[#allocation61_spill] sm:$0xff] %v7738_v13  ;;  %5702 = vmatmul.msk.bf16.gmra.mxu1 %vm187_vm0, %v11665_v15  ;;  %5709 = vmatmul.msk.bf16.gmra.mxu2 %vm187_vm0, %v11666_v33 }
 0x19d   :  { %5716 = vmatmul.msk.bf16.gmra.mxu3 %vm187_vm0, %v11666_v33 }
 0x19f   :  { %v7748_v46 = vpop.f32.mrf.mxu2 }
 0x1a0   :  { %v7750_v58 = vpop.f32.mrf.mxu3  ;;  %v1183_v1 = vpop.f32.mrf.mxu0 }
 0x1a1   :  { %v7753_v0 = vadd.f32 %v1183_v1, %v7560_v7  ;;  %v1227_v14 = vpop.f32.mrf.mxu1  ;;  %v11672_v7 = vld [vmem:[#allocation69_spill] sm:$0xff] }
 0x1a2   :  { %v7756_v50 = vadd.f32 %v1227_v14, %v7562_v56 }
 0x1a3   :  { %11667 = vst [vmem:[#allocation42_spill] sm:$0xff] %v7753_v0  ;;  %v11677_v0 = vld [vmem:[#allocation55_spill] sm:$0xff] }
 0x1a4   :  { %11668 = vst [vmem:[#allocation63_spill] sm:$0xff] %v7756_v50 }
 0x1a7   :  { %v7758_v48 = vpop.f32.mrf.mxu2 }
 0x1a8   :  { %v7760_v15 = vpop.f32.mrf.mxu3  ;;  %v1186_v13 = vpop.f32.mrf.mxu0 }
 0x1a9   :  { %v7763_v61 = vadd.f32 %v1186_v13, %v7574_v51  ;;  %v1230_v33 = vpop.f32.mrf.mxu1 }
 0x1aa   :  { %v7766_v59 = vadd.f32 %v1230_v33, %v7576_v52 }
 0x1ab   :  { %11669 = vst [vmem:[#allocation47_spill] sm:$0xff] %v7763_v61  ;;  %5696 = vmatmul.msk.bf16.gmra.mxu0 %vm187_vm0, %v11671_v11 }
 0x1ac   :  { %11670 = vst [vmem:[#allocation66_spill] sm:$0xff] %v7766_v59  ;;  %5703 = vmatmul.msk.bf16.gmra.mxu1 %vm187_vm0, %v11671_v11  ;;  %5710 = vmatmul.msk.bf16.gmra.mxu2 %vm187_vm0, %v11672_v7 }
 0x1ad   :  { %5717 = vmatmul.msk.bf16.gmra.mxu3 %vm187_vm0, %v11672_v7 }
 0x1af   :  { %v7776_v56 = vpop.f32.mrf.mxu2 }
 0x1b0   :  { %v7778_v51 = vpop.f32.mrf.mxu3  ;;  %v1188_v13 = vpop.f32.mrf.mxu0 }
 0x1b1   :  { %v7781_v52 = vadd.f32 %v1188_v13, %v7585_v5  ;;  %v1232_v1 = vpop.f32.mrf.mxu1  ;;  %v11678_v5 = vld [vmem:[#allocation72_spill] sm:$0xff] }
 0x1b2   :  { %v7784_v14 = vadd.f32 %v1232_v1, %v7587_v17 }
 0x1b3   :  { %11673 = vst [vmem:[#allocation51_spill] sm:$0xff] %v7781_v52  ;;  %v11682_v52 = vld [vmem:[#allocation56_spill] sm:$0xff] }
 0x1b4   :  { %11674 = vst [vmem:[#allocation69_spill] sm:$0xff] %v7784_v14 }
 0x1b7   :  { %v7786_v33 = vpop.f32.mrf.mxu2 }
 0x1b8   :  { %v7788_v11 = vpop.f32.mrf.mxu3  ;;  %v1191_v59 = vpop.f32.mrf.mxu0 }
 0x1b9   :  { %v7791_v61 = vadd.f32 %v1191_v59, %v7599_v54  ;;  %v1235_v7 = vpop.f32.mrf.mxu1 }
 0x1ba   :  { %v7794_v50 = vadd.f32 %v1235_v7, %v7601_v18 }
 0x1bb   :  { %11675 = vst [vmem:[#allocation76_spill] sm:$0xff] %v7791_v61  ;;  %5697 = vmatmul.msk.bf16.gmra.mxu0 %vm187_vm0, %v11677_v0 }
 0x1bc   :  { %11676 = vst [vmem:[#allocation77_spill] sm:$0xff] %v7794_v50  ;;  %5704 = vmatmul.msk.bf16.gmra.mxu1 %vm187_vm0, %v11677_v0  ;;  %5711 = vmatmul.msk.bf16.gmra.mxu2 %vm187_vm0, %v11678_v5 }
 0x1bd   :  { %5718 = vmatmul.msk.bf16.gmra.mxu3 %vm187_vm0, %v11678_v5 }
 0x1bf   :  { %v7804_v17 = vpop.f32.mrf.mxu2 }
 0x1c0   :  { %v7806_v54 = vpop.f32.mrf.mxu3  ;;  %v1193_v59 = vpop.f32.mrf.mxu0 }
 0x1c1   :  { %v7809_v18 = vadd.f32 %v1193_v59, %v7610_v47  ;;  %v1237_v13 = vpop.f32.mrf.mxu1  ;;  %v11683_v47 = vld [vmem:[#allocation74_spill] sm:$0xff] }
 0x1c2   :  { %v7812_v1 = vadd.f32 %v1237_v13, %v7612_v28 }
 0x1c4   :  { %11679 = vst [vmem:[#allocation55_spill] sm:$0xff] %v7812_v1 }
 0x1c7   :  { %v7814_v7 = vpop.f32.mrf.mxu2 }
 0x1c8   :  { %v7816_v0 = vpop.f32.mrf.mxu3  ;;  %v1196_v50 = vpop.f32.mrf.mxu0 }
 0x1c9   :  { %v7819_v61 = vadd.f32 %v1196_v50, %v7624_v42  ;;  %v1240_v5 = vpop.f32.mrf.mxu1 }
 0x1ca   :  { %v7822_v14 = vadd.f32 %v1240_v5, %v7626_v35 }
 0x1cb   :  { %11680 = vst [vmem:[#allocation72_spill] sm:$0xff] %v7819_v61  ;;  %5698 = vmatmul.msk.bf16.gmra.mxu0 %vm187_vm0, %v11682_v52 }
 0x1cc   :  { %11681 = vst [vmem:[#allocation78_spill] sm:$0xff] %v7822_v14  ;;  %5705 = vmatmul.msk.bf16.gmra.mxu1 %vm187_vm0, %v11682_v52  ;;  %5712 = vmatmul.msk.bf16.gmra.mxu2 %vm187_vm0, %v11683_v47 }
 0x1cd   :  { %5719 = vmatmul.msk.bf16.gmra.mxu3 %vm187_vm0, %v11683_v47  ;;  %v7849_v47 = vld [vmem:[%s11334_s0 + $0x48] sm:$0xff] }
 0x1cf   :  { %v7832_v28 = vpop.f32.mrf.mxu2 }
 0x1d0   :  { %v7834_v42 = vpop.f32.mrf.mxu3  ;;  %v1198_v50 = vpop.f32.mrf.mxu0 }
 0x1d1   :  { %v7837_v35 = vadd.f32 %v1198_v50, %v7630_v3  ;;  %v1242_v59 = vpop.f32.mrf.mxu1 }
 0x1d2   :  { %v7840_v13 = vadd.f32 %v1242_v59, %v7632_v55  ;;  %v11686_v55 = vld [vmem:[#allocation29_spill] sm:$0xff] }
 0x1d4   :  { %11684 = vst [vmem:[#allocation56_spill] sm:$0xff] %v7840_v13 }
 0x1d7   :  { %v7842_v5 = vpop.f32.mrf.mxu2 }
 0x1d8   :  { %v7844_v52 = vpop.f32.mrf.mxu3  ;;  %v1201_v14 = vpop.f32.mrf.mxu0 }
 0x1d9   :  { %v7852_v61 = vadd.f32 %v1201_v14, %v7648_v4  ;;  %v1245_v1 = vpop.f32.mrf.mxu1 }
 0x1da   :  { %v7855_v3 = vadd.f32 %v1245_v1, %v7650_v6  ;;  %v11687_v6 = vld [vmem:[#allocation30_spill] sm:$0xff] }
 0x1db   :  { %5720 = vmatmul.msk.bf16.vlgmr.msra.gmra.mxu0 %vm187_vm0, %v7438_v38 }
 0x1dc   :  { %11685 = vst [vmem:[#allocation74_spill] sm:$0xff] %v7855_v3  ;;  %5727 = vmatmul.msk.bf16.vlgmr.msra.gmra.mxu1 %vm187_vm0, %v7438_v38  ;;  %5762 = vmatmul.msk.bf16.vlgmr.msra.gmra.mxu2 %vm187_vm0, %v7849_v47  ;;  %v11692_v3 = vld [vmem:[#allocation37_spill] sm:$0xff] }
 0x1dd   :  { %5769 = vmatmul.msk.bf16.vlgmr.msra.gmra.mxu3 %vm187_vm0, %v7849_v47  ;;  %2353 = vmatpush.bf16.msra.mxu2 %v6820_v19  ;;  %v11690_v19 = vld [vmem:[#allocation33_spill] sm:$0xff] }
 0x1de   :  { %2237 = vmatpush.bf16.msra.mxu0 %v11686_v55  ;;  %2397 = vmatpush.bf16.msra.mxu3 %v6831_v24  ;;  %v11691_v24 = vld [vmem:[#allocation34_spill] sm:$0xff] }
 0x1df   :  { %v7868_v4 = vpop.f32.mrf.mxu2  ;;  %2281 = vmatpush.bf16.msra.mxu1 %v11687_v6 }
 0x1e0   :  { %v7871_v14 = vpop.f32.mrf.mxu3  ;;  %v1203_v1 = vpop.f32.mrf.mxu0 }
 0x1e1   :  { %v7874_v38 = vadd.f32 %v1203_v1, %v7662_v16  ;;  %v1247_v50 = vpop.f32.mrf.mxu1  ;;  %2354 = vmatpush.bf16.msra.mxu2 %v6860_v37  ;;  %v11693_v1 = vld [vmem:[#allocation39_spill] sm:$0xff] }
 0x1e2   :  { %v7878_v59 = vadd.f32 %v1247_v50, %v7664_v8  ;;  %2238 = vmatpush.bf16.msra.mxu0 %v11690_v19  ;;  %2398 = vmatpush.bf16.msra.mxu3 %v6871_v41  ;;  %v7894_v50 = vld [vmem:[%s11334_s0 + $0x50] sm:$0xff] }
 0x1e3   :  { %11688 = vst [vmem:[#allocation29_spill] sm:$0xff] %v7874_v38  ;;  %2282 = vmatpush.bf16.msra.mxu1 %v11691_v24  ;;  %v11698_v38 = vld [vmem:[#allocation49_spill] sm:$0xff] }
 0x1e4   :  { %11689 = vst [vmem:[#allocation30_spill] sm:$0xff] %v7878_v59  ;;  %v11697_v59 = vld [vmem:[#allocation46_spill] sm:$0xff] }
 0x1e5   :  { %2355 = vmatpush.bf16.msra.mxu2 %v6899_v53  ;;  %11694 = vst [vmem:[#allocation33_spill] sm:$0xff] %v7894_v50  ;;  %v11695_v53 = vld [vmem:[#allocation41_spill] sm:$0xff] }
 0x1e6   :  { %2239 = vmatpush.bf16.msra.mxu0 %v11692_v3  ;;  %2399 = vmatpush.bf16.msra.mxu3 %v6911_v60  ;;  %v11696_v60 = vld [vmem:[#allocation44_spill] sm:$0xff] }
 0x1e7   :  { %v7886_v16 = vpop.f32.mrf.mxu2  ;;  %2283 = vmatpush.bf16.msra.mxu1 %v11693_v1 }
 0x1e8   :  { %v7889_v37 = vpop.f32.mrf.mxu3  ;;  %v1375_v8 = vpop.f32.mrf.mxu0 }
 0x1e9   :  { %v1419_v41 = vpop.f32.mrf.mxu1  ;;  %2356 = vmatpush.bf16.msra.mxu2 %v6954_v20  ;;  %v1376_v20 = vadd.f32 %v1375_v8, %v7687_v21  ;;  %v11700_v21 = vld [vmem:[#allocation54_spill] sm:$0xff] }
 0x1ea   :  { %2240 = vmatpush.bf16.msra.mxu0 %v11695_v53  ;;  %2400 = vmatpush.bf16.msra.mxu3 %v6984_v31  ;;  %v1420_v31 = vadd.f32 %v1419_v41, %v7690_v45 }
 0x1eb   :  { %5721 = vmatmul.msk.bf16.gmra.mxu0 %vm187_vm0, %v7470_v10  ;;  %2284 = vmatpush.bf16.msra.mxu1 %v11696_v60 }
 0x1ec   :  { %5728 = vmatmul.msk.bf16.gmra.mxu1 %vm187_vm0, %v7470_v10  ;;  %5763 = vmatmul.msk.bf16.gmra.mxu2 %vm187_vm0, %v7894_v50 }
 0x1ed   :  { %5770 = vmatmul.msk.bf16.gmra.mxu3 %vm187_vm0, %v7894_v50  ;;  %2357 = vmatpush.bf16.msra.mxu2 %v6997_v43  ;;  %v11699_v43 = vld [vmem:[#allocation52_spill] sm:$0xff] }
 0x1ee   :  { %2241 = vmatpush.bf16.msra.mxu0 %v11697_v59  ;;  %2401 = vmatpush.bf16.msra.mxu3 %v7034_v2 }
 0x1ef   :  { %v1463_v60 = vpop.f32.mrf.mxu2  ;;  %2285 = vmatpush.bf16.msra.mxu1 %v11698_v38 }
 0x1f0   :  { %v7914_v10 = vadd.f32 %v1463_v60, %v1376_v20  ;;  %v1507_v53 = vpop.f32.mrf.mxu3  ;;  %v1377_v1 = vpop.f32.mrf.mxu0 }
 0x1f1   :  { %v7916_v3 = vadd.f32 %v1507_v53, %v1420_v31  ;;  %v1421_v50 = vpop.f32.mrf.mxu1  ;;  %2358 = vmatpush.bf16.msra.mxu2 %v7047_v26  ;;  %v1378_v41 = vadd.f32 %v1377_v1, %v7702_v27  ;;  %v7929_v53 = vld [vmem:[%s11334_s0 + $0x58] sm:$0xff] }
 0x1f2   :  { %2242 = vmatpush.bf16.msra.mxu0 %v11699_v43  ;;  %2402 = vmatpush.bf16.msra.mxu3 %v7090_v57  ;;  %v1422_v45 = vadd.f32 %v1421_v50, %v7704_v34  ;;  %11701 = vst [vmem:[#allocation34_spill] sm:$0xff] %v7929_v53 }
 0x1f3   :  { %2286 = vmatpush.bf16.msra.mxu1 %v11700_v21 }
 0x1f7   :  { %v1465_v8 = vpop.f32.mrf.mxu2 }
 0x1f8   :  { %v7924_v60 = vadd.f32 %v1465_v8, %v1378_v41  ;;  %v1509_v20 = vpop.f32.mrf.mxu3  ;;  %v1380_v2 = vpop.f32.mrf.mxu0 }
 0x1f9   :  { %v7931_v31 = vadd.f32 %v1509_v20, %v1422_v45  ;;  %v1424_v26 = vpop.f32.mrf.mxu1  ;;  %v1381_v27 = vadd.f32 %v1380_v2, %v7720_v40  ;;  %v7954_v2 = vld [vmem:[%s11334_s0 + $0x60] sm:$0xff] }
 0x1fa   :  { %v1425_v34 = vadd.f32 %v1424_v26, %v7722_v36 }
 0x1fb   :  { %5722 = vmatmul.msk.bf16.gmra.mxu0 %vm187_vm0, %v7508_v63 }
 0x1fc   :  { %5729 = vmatmul.msk.bf16.gmra.mxu1 %vm187_vm0, %v7508_v63  ;;  %5764 = vmatmul.msk.bf16.gmra.mxu2 %vm187_vm0, %v7929_v53 }
 0x1fd   :  { %5771 = vmatmul.msk.bf16.gmra.mxu3 %vm187_vm0, %v7929_v53 }
 0x1ff   :  { %v1468_v1 = vpop.f32.mrf.mxu2 }
 0x200   :  { %v7943_v50 = vadd.f32 %v1468_v1, %v1381_v27  ;;  %v1512_v41 = vpop.f32.mrf.mxu3  ;;  %v1382_v45 = vpop.f32.mrf.mxu0 }
 0x201   :  { %v7945_v8 = vadd.f32 %v1512_v41, %v1425_v34  ;;  %v1426_v20 = vpop.f32.mrf.mxu1  ;;  %v1383_v63 = vadd.f32 %v1382_v45, %v7730_v22 }
 0x202   :  { %v1427_v57 = vadd.f32 %v1426_v20, %v7732_v49 }
 0x207   :  { %v1470_v21 = vpop.f32.mrf.mxu2 }
 0x208   :  { %v7949_v43 = vadd.f32 %v1470_v21, %v1383_v63  ;;  %v1514_v53 = vpop.f32.mrf.mxu3  ;;  %v1385_v38 = vpop.f32.mrf.mxu0 }
 0x209   :  { %v7956_v26 = vadd.f32 %v1514_v53, %v1427_v57  ;;  %v1429_v40 = vpop.f32.mrf.mxu1  ;;  %v1386_v22 = vadd.f32 %v1385_v38, %v7748_v46  ;;  %v7979_v46 = vld [vmem:[%s11334_s0 + $0x68] sm:$0xff] }
 0x20a   :  { %v1430_v36 = vadd.f32 %v1429_v40, %v7750_v58 }
 0x20b   :  { %5723 = vmatmul.msk.bf16.gmra.mxu0 %vm187_vm0, %v7533_v62 }
 0x20c   :  { %5730 = vmatmul.msk.bf16.gmra.mxu1 %vm187_vm0, %v7533_v62  ;;  %5765 = vmatmul.msk.bf16.gmra.mxu2 %vm187_vm0, %v7954_v2 }
 0x20d   :  { %5772 = vmatmul.msk.bf16.gmra.mxu3 %vm187_vm0, %v7954_v2 }
 0x20f   :  { %v1473_v49 = vpop.f32.mrf.mxu2 }
 0x210   :  { %v7968_v57 = vadd.f32 %v1473_v49, %v1386_v22  ;;  %v1517_v21 = vpop.f32.mrf.mxu3  ;;  %v1387_v53 = vpop.f32.mrf.mxu0 }
 0x211   :  { %v7970_v27 = vadd.f32 %v1517_v21, %v1430_v36  ;;  %v1431_v34 = vpop.f32.mrf.mxu1  ;;  %v1388_v62 = vadd.f32 %v1387_v53, %v7758_v48 }
 0x212   :  { %v1432_v1 = vadd.f32 %v1431_v34, %v7760_v15 }
 0x217   :  { %v1475_v41 = vpop.f32.mrf.mxu2 }
 0x218   :  { %v7974_v45 = vadd.f32 %v1475_v41, %v1388_v62  ;;  %v1519_v20 = vpop.f32.mrf.mxu3  ;;  %v1390_v63 = vpop.f32.mrf.mxu0 }
 0x219   :  { %v7981_v58 = vadd.f32 %v1519_v20, %v1432_v1  ;;  %v1434_v38 = vpop.f32.mrf.mxu1  ;;  %v1391_v48 = vadd.f32 %v1390_v63, %v7776_v56  ;;  %v8004_v56 = vld [vmem:[%s11334_s0 + $0x70] sm:$0xff] }
 0x21a   :  { %v1435_v15 = vadd.f32 %v1434_v38, %v7778_v51 }
 0x21b   :  { %5724 = vmatmul.msk.bf16.gmra.mxu0 %vm187_vm0, %v7558_v32 }
 0x21c   :  { %5731 = vmatmul.msk.bf16.gmra.mxu1 %vm187_vm0, %v7558_v32  ;;  %5766 = vmatmul.msk.bf16.gmra.mxu2 %vm187_vm0, %v7979_v46 }
 0x21d   :  { %5773 = vmatmul.msk.bf16.gmra.mxu3 %vm187_vm0, %v7979_v46 }
 0x21f   :  { %v1478_v40 = vpop.f32.mrf.mxu2 }
 0x220   :  { %v7993_v22 = vadd.f32 %v1478_v40, %v1391_v48  ;;  %v1522_v36 = vpop.f32.mrf.mxu3  ;;  %v1392_v49 = vpop.f32.mrf.mxu0 }
 0x221   :  { %v7995_v21 = vadd.f32 %v1522_v36, %v1435_v15  ;;  %v1436_v53 = vpop.f32.mrf.mxu1  ;;  %v1393_v32 = vadd.f32 %v1392_v49, %v7786_v33 }
 0x222   :  { %v1437_v34 = vadd.f32 %v1436_v53, %v7788_v11 }
 0x227   :  { %v1480_v62 = vpop.f32.mrf.mxu2 }
 0x228   :  { %v7999_v1 = vadd.f32 %v1480_v62, %v1393_v32  ;;  %v1524_v41 = vpop.f32.mrf.mxu3  ;;  %v1395_v20 = vpop.f32.mrf.mxu0 }
 0x229   :  { %v8006_v51 = vadd.f32 %v1524_v41, %v1437_v34  ;;  %v1439_v63 = vpop.f32.mrf.mxu1  ;;  %v1396_v33 = vadd.f32 %v1395_v20, %v7804_v17  ;;  %v8029_v17 = vld [vmem:[%s11334_s0 + $0x78] sm:$0xff] }
 0x22a   :  { %v1440_v11 = vadd.f32 %v1439_v63, %v7806_v54 }
 0x22b   :  { %5725 = vmatmul.msk.bf16.gmra.mxu0 %vm187_vm0, %v7583_v25 }
 0x22c   :  { %5732 = vmatmul.msk.bf16.gmra.mxu1 %vm187_vm0, %v7583_v25  ;;  %5767 = vmatmul.msk.bf16.gmra.mxu2 %vm187_vm0, %v8004_v56 }
 0x22d   :  { %5774 = vmatmul.msk.bf16.gmra.mxu3 %vm187_vm0, %v8004_v56 }
 0x22f   :  { %v1483_v38 = vpop.f32.mrf.mxu2 }
 0x230   :  { %v8018_v48 = vadd.f32 %v1483_v38, %v1396_v33  ;;  %v1527_v15 = vpop.f32.mrf.mxu3  ;;  %v1397_v40 = vpop.f32.mrf.mxu0 }
 0x231   :  { %v8020_v36 = vadd.f32 %v1527_v15, %v1440_v11  ;;  %v1441_v49 = vpop.f32.mrf.mxu1  ;;  %v1398_v25 = vadd.f32 %v1397_v40, %v7814_v7 }
 0x232   :  { %v1442_v53 = vadd.f32 %v1441_v49, %v7816_v0 }
 0x237   :  { %v1485_v32 = vpop.f32.mrf.mxu2 }
 0x238   :  { %v8024_v34 = vadd.f32 %v1485_v32, %v1398_v25  ;;  %v1529_v62 = vpop.f32.mrf.mxu3  ;;  %v1400_v41 = vpop.f32.mrf.mxu0 }
 0x239   :  { %v8031_v54 = vadd.f32 %v1529_v62, %v1442_v53  ;;  %v1444_v20 = vpop.f32.mrf.mxu1  ;;  %v1401_v7 = vadd.f32 %v1400_v41, %v7832_v28  ;;  %v6477_v41 = vld [vmem:[%s11334_s0 + $0xc0] sm:$0xff] }
 0x23a   :  { %v1445_v0 = vadd.f32 %v1444_v20, %v7834_v42 }
 0x23b   :  { %5726 = vmatmul.msk.bf16.gmra.mxu0 %vm187_vm0, %v7608_v23 }
 0x23c   :  { %5733 = vmatmul.msk.bf16.gmra.mxu1 %vm187_vm0, %v7608_v23  ;;  %5768 = vmatmul.msk.bf16.gmra.mxu2 %vm187_vm0, %v8029_v17 }
 0x23d   :  { %5775 = vmatmul.msk.bf16.gmra.mxu3 %vm187_vm0, %v8029_v17 }
 0x23f   :  { %v1488_v63 = vpop.f32.mrf.mxu2 }
 0x240   :  { %v8043_v33 = vadd.f32 %v1488_v63, %v1401_v7  ;;  %v1532_v11 = vpop.f32.mrf.mxu3  ;;  %v1402_v38 = vpop.f32.mrf.mxu0 }
 0x241   :  { %v8045_v15 = vadd.f32 %v1532_v11, %v1445_v0  ;;  %v1446_v40 = vpop.f32.mrf.mxu1  ;;  %v1403_v23 = vadd.f32 %v1402_v38, %v7842_v5  ;;  %v6478_v5 = vld [vmem:[%s11334_s0 + $0x80] sm:$0xff] }
 0x242   :  { %v1447_v49 = vadd.f32 %v1446_v40, %v7844_v52 }
 0x247   :  { %v1490_v25 = vpop.f32.mrf.mxu2 }
 0x248   :  { %v8049_v53 = vadd.f32 %v1490_v25, %v1403_v23  ;;  %v1534_v32 = vpop.f32.mrf.mxu3  ;;  %v1405_v62 = vpop.f32.mrf.mxu0  ;;  %v11704_v23 = vld [vmem:[#allocation59_spill] sm:$0xff] }
 0x249   :  { %v8051_v28 = vadd.f32 %v1534_v32, %v1447_v49  ;;  %v1449_v42 = vpop.f32.mrf.mxu1  ;;  %v1406_v52 = vadd.f32 %v1405_v62, %v7868_v4  ;;  %v11703_v4 = vld [vmem:[#allocation7_spill] sm:$0xff]  ;;  %v11706_v49 = vld [vmem:[#allocation60_spill] sm:$0xff] }
 0x24a   :  { %v1450_v20 = vadd.f32 %v1449_v42, %v7871_v14  ;;  %v11707_v25 = vld [vmem:[#allocation11_spill] sm:$0xff]  ;;  %v11708_v42 = vld [vmem:[#allocation62_spill] sm:$0xff] }
 0x24b   :  { %5776 = vmatmul.msk.bf16.vlgmr.msrb.gmra.mxu0 %vm187_vm0, %v6477_v41 }
 0x24c   :  { %5783 = vmatmul.msk.bf16.vlgmr.msrb.gmra.mxu1 %vm187_vm0, %v6477_v41  ;;  %5790 = vmatmul.msk.bf16.vlgmr.msrb.gmra.mxu2 %vm187_vm0, %v6478_v5 }
 0x24d   :  { %5797 = vmatmul.msk.bf16.vlgmr.msrb.gmra.mxu3 %vm187_vm0, %v6478_v5  ;;  %2655 = vmatpush.bf16.msrb.mxu2 %v11628_v9  ;;  %v11702_v9 = vld [vmem:[#allocation57_spill] sm:$0xff] }
 0x24e   :  { %2539 = vmatpush.bf16.msrb.mxu0 %v7125_v30  ;;  %2699 = vmatpush.bf16.msrb.mxu3 %v11630_v12  ;;  %v11705_v12 = vld [vmem:[#allocation10_spill] sm:$0xff] }
 0x24f   :  { %v1493_v7 = vpop.f32.mrf.mxu2  ;;  %2583 = vmatpush.bf16.msrb.mxu1 %v7131_v39 }
 0x250   :  { %v8069_v0 = vadd.f32 %v1493_v7, %v1406_v52  ;;  %v1537_v63 = vpop.f32.mrf.mxu3  ;;  %v1407_v11 = vpop.f32.mrf.mxu0  ;;  %v11709_v7 = vld [vmem:[#allocation64_spill] sm:$0xff] }
 0x251   :  { %v8071_v38 = vadd.f32 %v1537_v63, %v1450_v20  ;;  %v1451_v40 = vpop.f32.mrf.mxu1  ;;  %2656 = vmatpush.bf16.msrb.mxu2 %v11632_v44  ;;  %v1408_v14 = vadd.f32 %v1407_v11, %v7886_v16  ;;  %v11710_v16 = vld [vmem:[#allocation15_spill] sm:$0xff]  ;;  %v11712_v63 = vld [vmem:[#allocation65_spill] sm:$0xff]  ;;  %v11713_v11 = vld [vmem:[#allocation18_spill] sm:$0xff] }
 0x252   :  { %2540 = vmatpush.bf16.msrb.mxu0 %v11702_v9  ;;  %2700 = vmatpush.bf16.msrb.mxu3 %v11703_v4  ;;  %v1452_v32 = vadd.f32 %v1451_v40, %v7889_v37  ;;  %v8093_v37 = vld [vmem:[%s11334_s0 + $0xc8] sm:$0xff] }
 0x253   :  { %2584 = vmatpush.bf16.msrb.mxu1 %v11704_v23  ;;  %11711 = vst [vmem:[#allocation46_spill] sm:$0xff] %v8093_v37  ;;  %v11714_v4 = vld [vmem:[#allocation67_spill] sm:$0xff] }
 0x255   :  { %2657 = vmatpush.bf16.msrb.mxu2 %v11705_v12  ;;  %v11715_v12 = vld [vmem:[#allocation19_spill] sm:$0xff] }
 0x256   :  { %2541 = vmatpush.bf16.msrb.mxu0 %v11706_v49  ;;  %2701 = vmatpush.bf16.msrb.mxu3 %v11707_v25 }
 0x257   :  { %v1495_v62 = vpop.f32.mrf.mxu2  ;;  %2585 = vmatpush.bf16.msrb.mxu1 %v11708_v42 }
 0x258   :  { %v8083_v44 = vadd.f32 %v1495_v62, %v1408_v14  ;;  %v1539_v41 = vpop.f32.mrf.mxu3  ;;  %v1579_v5 = vpop.f32.mrf.mxu0 }
 0x259   :  { %v8085_v52 = vadd.f32 %v1539_v41, %v1452_v32  ;;  %v1623_v20 = vpop.f32.mrf.mxu1  ;;  %2658 = vmatpush.bf16.msrb.mxu2 %v11642_v29  ;;  %v6480_v29 = vld [vmem:[%s11334_s0 + $0x88] sm:$0xff]  ;;  %v1658_v40 = vadd.f32 %v1579_v5, %v7914_v10  ;;  %v11716_v32 = vld [vmem:[#allocation68_spill] sm:$0xff]  ;;  %v11719_v10 = vld [vmem:[#allocation70_spill] sm:$0xff] }
 0x25a   :  { %2542 = vmatpush.bf16.msrb.mxu0 %v11709_v7  ;;  %2702 = vmatpush.bf16.msrb.mxu3 %v11710_v16  ;;  %v1659_v14 = vadd.f32 %v1623_v20, %v7916_v3  ;;  %v11717_v7 = vld [vmem:[#allocation22_spill] sm:$0xff]  ;;  %v11720_v5 = vld [vmem:[#allocation23_spill] sm:$0xff] }
 0x25b   :  { %5777 = vmatmul.msk.bf16.gmra.mxu0 %vm187_vm0, %v8093_v37  ;;  %2586 = vmatpush.bf16.msrb.mxu1 %v11712_v63  ;;  %v11722_v3 = vld [vmem:[#allocation71_spill] sm:$0xff] }
 0x25c   :  { %5784 = vmatmul.msk.bf16.gmra.mxu1 %vm187_vm0, %v8093_v37  ;;  %5791 = vmatmul.msk.bf16.gmra.mxu2 %vm187_vm0, %v6480_v29 }
 0x25d   :  { %5798 = vmatmul.msk.bf16.gmra.mxu3 %vm187_vm0, %v6480_v29  ;;  %2659 = vmatpush.bf16.msrb.mxu2 %v11713_v11  ;;  %v11718_v29 = vld [vmem:[#allocation75_spill] sm:$0xff] }
 0x25e   :  { %2543 = vmatpush.bf16.msrb.mxu0 %v11714_v4  ;;  %2703 = vmatpush.bf16.msrb.mxu3 %v11715_v12  ;;  %v11721_v12 = vld [vmem:[#allocation73_spill] sm:$0xff] }
 0x25f   :  { %v1765_v25 = vpop.f32.mrf.mxu2  ;;  %2587 = vmatpush.bf16.msrb.mxu1 %v11716_v32 }
 0x260   :  { %v1844_v62 = vadd.f32 %v1765_v25, %v1658_v40  ;;  %v1809_v41 = vpop.f32.mrf.mxu3  ;;  %v1581_v16 = vpop.f32.mrf.mxu0 }
 0x261   :  { %v1845_v37 = vadd.f32 %v1809_v41, %v1659_v14  ;;  %v1625_v63 = vpop.f32.mrf.mxu1  ;;  %2660 = vmatpush.bf16.msrb.mxu2 %v11717_v7  ;;  %v1660_v20 = vadd.f32 %v1581_v16, %v7924_v60  ;;  %v6482_v60 = vld [vmem:[%s11334_s0 + $0x90] sm:$0xff] }
 0x262   :  { %v8113_v11 = vmax.f32 %v11718_v29, %v1844_v62  ;;  %2544 = vmatpush.bf16.msrb.mxu0 %v11719_v10  ;;  %2704 = vmatpush.bf16.msrb.mxu3 %v11720_v5  ;;  %v1661_v40 = vadd.f32 %v1625_v63, %v7931_v31  ;;  %v11723_v10 = vld [vmem:[#allocation25_spill] sm:$0xff] }
 0x263   :  { %v1873_v4 = vmax.f32 %v11721_v12, %v1845_v37  ;;  %2588 = vmatpush.bf16.msrb.mxu1 %v11722_v3  ;;  %v11725_v37 = vld [vmem:[#allocation58_spill] sm:$0xff]  ;;  %v8130_v3 = vld [vmem:[%s11334_s0 + $0xd0] sm:$0xff] }
 0x264   :  { %1928 = vrot.lane.b32.xlu0 %v8113_v11, %s6529_s23 }
 0x267   :  { %v1767_v7 = vpop.f32.mrf.mxu2 }
 0x268   :  { %v1846_v14 = vadd.f32 %v1767_v7, %v1660_v20  ;;  %v1811_v25 = vpop.f32.mrf.mxu3  ;;  %v1584_v62 = vpop.f32.mrf.mxu0 }
 0x269   :  { %v1847_v41 = vadd.f32 %v1811_v25, %v1661_v40  ;;  %v1628_v29 = vpop.f32.mrf.mxu1  ;;  %v1662_v31 = vadd.f32 %v1584_v62, %v7943_v50  ;;  %v11726_v25 = vld [vmem:[#allocation2_spill] sm:$0xff] }
 0x26a   :  { %v8124_v5 = vmax.f32 %v11723_v10, %v1846_v14  ;;  %v1663_v63 = vadd.f32 %v1628_v29, %v7945_v8 }
 0x26b   :  { %v1875_v12 = vmax.f32 %v11725_v37, %v1847_v41  ;;  %5778 = vmatmul.msk.bf16.gmra.mxu0 %vm187_vm0, %v8130_v3  ;;  %v11727_v37 = vld [vmem:[#allocation3_spill] sm:$0xff] }
 0x26c   :  { %11724 = vst [vmem:[#allocation57_spill] sm:$0xff] %v8124_v5  ;;  %5785 = vmatmul.msk.bf16.gmra.mxu1 %vm187_vm0, %v8130_v3  ;;  %5792 = vmatmul.msk.bf16.gmra.mxu2 %vm187_vm0, %v6482_v60 }
 0x26d   :  { %5799 = vmatmul.msk.bf16.gmra.mxu3 %vm187_vm0, %v6482_v60  ;;  %1932 = vrot.lane.b32.xlu2 %v8124_v5, %s6529_s23 }
 0x26e   :  { %1930 = vrot.lane.b32.xlu0 %v1873_v4, %s6529_s23 }
 0x26f   :  { %v1770_v16 = vpop.f32.mrf.mxu2 }
 0x270   :  { %v1848_v10 = vadd.f32 %v1770_v16, %v1662_v31  ;;  %v1814_v20 = vpop.f32.mrf.mxu3  ;;  %v1586_v40 = vpop.f32.mrf.mxu0  ;;  %v11728_v16 = vld [vmem:[#allocation6_spill] sm:$0xff] }
 0x271   :  { %v1849_v7 = vadd.f32 %v1814_v20, %v1663_v63  ;;  %v1630_v14 = vpop.f32.mrf.mxu1  ;;  %v1664_v5 = vadd.f32 %v1586_v40, %v7949_v43  ;;  %v11729_v43 = vld [vmem:[#allocation14_spill] sm:$0xff] }
 0x272   :  { %v8147_v41 = vmax.f32 %v11726_v25, %v1848_v10  ;;  %v1665_v50 = vadd.f32 %v1630_v14, %v7956_v26  ;;  %v8160_v10 = vld [vmem:[%s11334_s0 + $0xd8] sm:$0xff] }
 0x273   :  { %v1877_v60 = vmax.f32 %v11727_v37, %v1849_v7  ;;  %v6484_v26 = vld [vmem:[%s11334_s0 + $0x98] sm:$0xff] }
 0x275   :  { %1934 = vrot.lane.b32.xlu2 %v1875_v12, %s6529_s23 }
 0x276   :  { %1938 = vrot.lane.b32.xlu0 %v1877_v60, %s6529_s23 }
 0x277   :  { %v1772_v8 = vpop.f32.mrf.mxu2 }
 0x278   :  { %v1850_v4 = vadd.f32 %v1772_v8, %v1664_v5  ;;  %v1816_v62 = vpop.f32.mrf.mxu3  ;;  %v1589_v29 = vpop.f32.mrf.mxu0  ;;  %v11730_v8 = vld [vmem:[#allocation38_spill] sm:$0xff] }
 0x279   :  { %v1851_v31 = vadd.f32 %v1816_v62, %v1665_v50  ;;  %v1633_v63 = vpop.f32.mrf.mxu1  ;;  %v1666_v5 = vadd.f32 %v1589_v29, %v7968_v57  ;;  %v11731_v62 = vld [vmem:[#allocation61_spill] sm:$0xff] }
 0x27a   :  { %v8155_v20 = vmax.f32 %v11728_v16, %v1850_v4  ;;  %v1667_v40 = vadd.f32 %v1633_v63, %v7970_v27 }
 0x27b   :  { %5779 = vmatmul.msk.bf16.gmra.mxu0 %vm187_vm0, %v8160_v10  ;;  %v1879_v12 = vmax.f32 %v11729_v43, %v1851_v31 }
 0x27c   :  { %5786 = vmatmul.msk.bf16.gmra.mxu1 %vm187_vm0, %v8160_v10  ;;  %5793 = vmatmul.msk.bf16.gmra.mxu2 %vm187_vm0, %v6484_v26 }
 0x27d   :  { %5800 = vmatmul.msk.bf16.gmra.mxu3 %vm187_vm0, %v6484_v26  ;;  %1942 = vrot.lane.b32.xlu1 %v1879_v12, %s6529_s23 }
 0x27e   :  { %1936 = vrot.lane.b32.xlu2 %v8147_v41, %s6529_s23  ;;  %1940 = vrot.lane.b32.xlu0 %v8155_v20, %s6529_s23 }
 0x27f   :  { %v1775_v7 = vpop.f32.mrf.mxu2 }
 0x280   :  { %v1852_v14 = vadd.f32 %v1775_v7, %v1666_v5  ;;  %v1819_v25 = vpop.f32.mrf.mxu3  ;;  %v1591_v37 = vpop.f32.mrf.mxu0 }
 0x281   :  { %v1853_v60 = vadd.f32 %v1819_v25, %v1667_v40  ;;  %v1635_v50 = vpop.f32.mrf.mxu1  ;;  %v1668_v57 = vadd.f32 %v1591_v37, %v7974_v45  ;;  %v11732_v40 = vld [vmem:[#allocation42_spill] sm:$0xff]  ;;  %v11733_v25 = vld [vmem:[#allocation63_spill] sm:$0xff] }
 0x282   :  { %v8180_v4 = vmax.f32 %v11730_v8, %v1852_v14  ;;  %v1669_v27 = vadd.f32 %v1635_v50, %v7981_v58  ;;  %v8197_v45 = vld [vmem:[%s11334_s0 + $0xe0] sm:$0xff] }
 0x283   :  { %v1881_v31 = vmax.f32 %v11731_v62, %v1853_v60  ;;  %v6486_v58 = vld [vmem:[%s11334_s0 + $0xa0] sm:$0xff] }
 0x285   :  { %1944 = vrot.lane.b32.xlu1 %v8180_v4, %s6529_s23 }
 0x286   :  { %1946 = vrot.lane.b32.xlu2 %v1881_v31, %s6529_s23 }
 0x287   :  { %v1777_v29 = vpop.f32.mrf.mxu2 }
 0x288   :  { %v1854_v63 = vadd.f32 %v1777_v29, %v1668_v57  ;;  %v1821_v16 = vpop.f32.mrf.mxu3  ;;  %v1594_v43 = vpop.f32.mrf.mxu0  ;;  %v11735_v57 = vld [vmem:[#allocation47_spill] sm:$0xff] }
 0x289   :  { %v1855_v12 = vadd.f32 %v1821_v16, %v1669_v27  ;;  %v1670_v26 = vadd.f32 %v1594_v43, %v7993_v22  ;;  %v1638_v5 = vpop.f32.mrf.mxu1 }
 0x28a   :  { %v8190_v7 = vmax.f32 %v11732_v40, %v1854_v63  ;;  %v1671_v14 = vadd.f32 %v1638_v5, %v7995_v21 }
 0x28b   :  { %v1883_v60 = vmax.f32 %v11733_v25, %v1855_v12  ;;  %5780 = vmatmul.msk.bf16.gmra.mxu0 %vm187_vm0, %v8197_v45 }
 0x28c   :  { %5787 = vmatmul.msk.bf16.gmra.mxu1 %vm187_vm0, %v8197_v45  ;;  %5794 = vmatmul.msk.bf16.gmra.mxu2 %vm187_vm0, %v6486_v58 }
 0x28d   :  { %5801 = vmatmul.msk.bf16.gmra.mxu3 %vm187_vm0, %v6486_v58  ;;  %1950 = vrot.lane.b32.xlu0 %v1883_v60, %s6529_s23  ;;  %v11738_v60 = vld [vmem:[#allocation51_spill] sm:$0xff] }
 0x28e   :  { %1948 = vrot.lane.b32.xlu2 %v8190_v7, %s6529_s23 }
 0x28f   :  { %v1780_v22 = vpop.f32.mrf.mxu2 }
 0x290   :  { %v1856_v21 = vadd.f32 %v1780_v22, %v1670_v26  ;;  %v1824_v37 = vpop.f32.mrf.mxu3  ;;  %v1596_v50 = vpop.f32.mrf.mxu0 }
 0x291   :  { %v8211_v8 = vadd.f32 %v1824_v37, %v1671_v14  ;;  %v1672_v62 = vadd.f32 %v1596_v50, %v7999_v1  ;;  %v1640_v31 = vpop.f32.mrf.mxu1 }
 0x292   :  { %v8215_v27 = vmax.f32 %v11735_v57, %v1856_v21  ;;  %v1673_v29 = vadd.f32 %v1640_v31, %v8006_v51  ;;  %v8232_v21 = vld [vmem:[%s11334_s0 + $0xe8] sm:$0xff] }
 0x293   :  { %11734 = vst [vmem:[#allocation7_spill] sm:$0xff] %v8211_v8 }
 0x297   :  { %v1782_v43 = vpop.f32.mrf.mxu2 }
 0x298   :  { %v1858_v12 = vadd.f32 %v1782_v43, %v1672_v62  ;;  %v1826_v5 = vpop.f32.mrf.mxu3  ;;  %v1599_v40 = vpop.f32.mrf.mxu0  ;;  %v11742_v43 = vld [vmem:[#allocation76_spill] sm:$0xff] }
 0x299   :  { %v8220_v26 = vadd.f32 %v1826_v5, %v1673_v29  ;;  %v1674_v14 = vadd.f32 %v1599_v40, %v8018_v48  ;;  %v1643_v25 = vpop.f32.mrf.mxu1  ;;  %v6488_v48 = vld [vmem:[%s11334_s0 + $0xa8] sm:$0xff] }
 0x29a   :  { %v8224_v1 = vmax.f32 %v11738_v60, %v1858_v12  ;;  %v1675_v58 = vadd.f32 %v1643_v25, %v8020_v36 }
 0x29b   :  { %11737 = vst [vmem:[#allocation59_spill] sm:$0xff] %v8220_v26  ;;  %5781 = vmatmul.msk.bf16.gmra.mxu0 %vm187_vm0, %v8232_v21  ;;  %v11784_v26 = vld [vmem:[#allocation31_spill] sm:$0xff] }
 0x29c   :  { %11739 = vst [vmem:[#allocation10_spill] sm:$0xff] %v8224_v1  ;;  %5788 = vmatmul.msk.bf16.gmra.mxu1 %vm187_vm0, %v8232_v21  ;;  %5795 = vmatmul.msk.bf16.gmra.mxu2 %vm187_vm0, %v6488_v48 }
 0x29d   :  { %5802 = vmatmul.msk.bf16.gmra.mxu3 %vm187_vm0, %v6488_v48 }
 0x29f   :  { %v1785_v36 = vpop.f32.mrf.mxu2 }
 0x2a0   :  { %v1860_v37 = vadd.f32 %v1785_v36, %v1674_v14  ;;  %v1829_v50 = vpop.f32.mrf.mxu3  ;;  %v1601_v62 = vpop.f32.mrf.mxu0 }
 0x2a1   :  { %v8243_v31 = vadd.f32 %v1829_v50, %v1675_v58  ;;  %v1676_v57 = vadd.f32 %v1601_v62, %v8024_v34  ;;  %v1645_v29 = vpop.f32.mrf.mxu1  ;;  %v8264_v62 = vld [vmem:[%s11334_s0 + $0xf0] sm:$0xff] }
 0x2a2   :  { %v8247_v12 = vmax.f32 %v11742_v43, %v1860_v37  ;;  %v1677_v5 = vadd.f32 %v1645_v29, %v8031_v54 }
 0x2a3   :  { %11741 = vst [vmem:[#allocation60_spill] sm:$0xff] %v8243_v31 }
 0x2a4   :  { %11743 = vst [vmem:[#allocation11_spill] sm:$0xff] %v8247_v12 }
 0x2a7   :  { %v1787_v60 = vpop.f32.mrf.mxu2 }
 0x2a8   :  { %v1862_v51 = vadd.f32 %v1787_v60, %v1676_v57  ;;  %v1831_v48 = vpop.f32.mrf.mxu3  ;;  %v1604_v16 = vpop.f32.mrf.mxu0 }
 0x2a9   :  { %v8252_v14 = vadd.f32 %v1831_v48, %v1677_v5  ;;  %v1678_v58 = vadd.f32 %v1604_v16, %v8043_v33  ;;  %v1648_v36 = vpop.f32.mrf.mxu1  ;;  %v11749_v5 = vld [vmem:[#allocation72_spill] sm:$0xff] }
 0x2aa   :  { %v8256_v34 = vmax.f32 %v7809_v18, %v1862_v51  ;;  %v1679_v37 = vadd.f32 %v1648_v36, %v8045_v15  ;;  %v6490_v18 = vld [vmem:[%s11334_s0 + $0xb0] sm:$0xff] }
 0x2ab   :  { %11745 = vst [vmem:[#allocation62_spill] sm:$0xff] %v8252_v14  ;;  %5782 = vmatmul.msk.bf16.gmra.mxu0 %vm187_vm0, %v8264_v62 }
 0x2ac   :  { %11746 = vst [vmem:[#allocation15_spill] sm:$0xff] %v8256_v34  ;;  %5789 = vmatmul.msk.bf16.gmra.mxu1 %vm187_vm0, %v8264_v62  ;;  %5796 = vmatmul.msk.bf16.gmra.mxu2 %vm187_vm0, %v6490_v18 }
 0x2ad   :  { %5803 = vmatmul.msk.bf16.gmra.mxu3 %vm187_vm0, %v6490_v18 }
 0x2af   :  { %v1790_v33 = vpop.f32.mrf.mxu2 }
 0x2b0   :  { %v1864_v15 = vadd.f32 %v1790_v33, %v1678_v58  ;;  %v1834_v16 = vpop.f32.mrf.mxu3  ;;  %v1606_v51 = vpop.f32.mrf.mxu0 }
 0x2b1   :  { %v8275_v57 = vadd.f32 %v1834_v16, %v1679_v37  ;;  %v1680_v29 = vadd.f32 %v1606_v51, %v8049_v53  ;;  %v1650_v43 = vpop.f32.mrf.mxu1  ;;  %v8296_v16 = vld [vmem:[%s11334_s0 + $0x8] sm:$0xff] }
 0x2b2   :  { %v8279_v60 = vmax.f32 %v11749_v5, %v1864_v15  ;;  %v1681_v48 = vadd.f32 %v1650_v43, %v8051_v28  ;;  %v11758_v5 = vld [vmem:[#allocation8_spill] sm:$0xff] }
 0x2b3   :  { %11748 = vst [vmem:[#allocation18_spill] sm:$0xff] %v8275_v57 }
 0x2b4   :  { %11750 = vst [vmem:[#allocation19_spill] sm:$0xff] %v8279_v60 }
 0x2b7   :  { %v1792_v25 = vpop.f32.mrf.mxu2 }
 0x2b8   :  { %v1866_v14 = vadd.f32 %v1792_v25, %v1680_v29  ;;  %v1836_v18 = vpop.f32.mrf.mxu3  ;;  %v1609_v50 = vpop.f32.mrf.mxu0 }
 0x2b9   :  { %v8284_v58 = vadd.f32 %v1836_v18, %v1681_v48  ;;  %v1682_v37 = vadd.f32 %v1609_v50, %v8069_v0  ;;  %v1653_v33 = vpop.f32.mrf.mxu1  ;;  %v11760_v18 = vld [vmem:[#allocation9_spill] sm:$0xff] }
 0x2ba   :  { %v8288_v53 = vmax.f32 %v7837_v35, %v1866_v14  ;;  %v1683_v15 = vadd.f32 %v1653_v33, %v8071_v38  ;;  %v11754_v35 = vld [vmem:[#allocation4_spill] sm:$0xff]  ;;  %v11755_v38 = vld [vmem:[#allocation5_spill] sm:$0xff]  ;;  %v11763_v33 = vld [vmem:[#allocation39_spill] sm:$0xff] }
 0x2bb   :  { %11752 = vst [vmem:[#allocation68_spill] sm:$0xff] %v8284_v58  ;;  %5804 = vmatmul.msk.bf16.vlgmr.msra.gmra.mxu0 %vm187_vm0, %v8296_v16 }
 0x2bc   :  { %11753 = vst [vmem:[#allocation22_spill] sm:$0xff] %v8288_v53  ;;  %5811 = vmatmul.msk.bf16.vlgmr.msra.gmra.mxu1 %vm187_vm0, %v8296_v16  ;;  %5818 = vmatmul.msk.bf16.vlgmr.msra.gmra.mxu2 %vm187_vm0, %v7849_v47 }
 0x2bd   :  { %5825 = vmatmul.msk.bf16.vlgmr.msra.gmra.mxu3 %vm187_vm0, %v7849_v47  ;;  %2831 = vmatpush.bf16.msra.mxu2 %v11686_v55 }
 0x2be   :  { %2743 = vmatpush.bf16.msra.mxu0 %v11754_v35  ;;  %2875 = vmatpush.bf16.msra.mxu3 %v11687_v6 }
 0x2bf   :  { %v1795_v0 = vpop.f32.mrf.mxu2  ;;  %2787 = vmatpush.bf16.msra.mxu1 %v11755_v38  ;;  %v11766_v38 = vld [vmem:[#allocation41_spill] sm:$0xff] }
 0x2c0   :  { %v1868_v25 = vadd.f32 %v1795_v0, %v1682_v37  ;;  %v1839_v14 = vpop.f32.mrf.mxu3  ;;  %v1611_v50 = vpop.f32.mrf.mxu0  ;;  %v11761_v37 = vld [vmem:[#allocation37_spill] sm:$0xff] }
 0x2c1   :  { %v8310_v51 = vadd.f32 %v1839_v14, %v1683_v15  ;;  %v1684_v29 = vadd.f32 %v1611_v50, %v8083_v44  ;;  %v1655_v43 = vpop.f32.mrf.mxu1  ;;  %2832 = vmatpush.bf16.msra.mxu2 %v11690_v19  ;;  %v11762_v44 = vld [vmem:[#allocation12_spill] sm:$0xff] }
 0x2c2   :  { %v8315_v47 = vmax.f32 %v7852_v61, %v1868_v25  ;;  %v1685_v55 = vadd.f32 %v1655_v43, %v8085_v52  ;;  %2744 = vmatpush.bf16.msra.mxu0 %v11758_v5  ;;  %2876 = vmatpush.bf16.msra.mxu3 %v11691_v24  ;;  %v11764_v61 = vld [vmem:[#allocation13_spill] sm:$0xff]  ;;  %v11769_v50 = vld [vmem:[#allocation16_spill] sm:$0xff] }
 0x2c3   :  { %11756 = vst [vmem:[#allocation75_spill] sm:$0xff] %v8310_v51  ;;  %2788 = vmatpush.bf16.msra.mxu1 %v11760_v18  ;;  %v11767_v25 = vld [vmem:[#allocation29_spill] sm:$0xff]  ;;  %v11770_v43 = vld [vmem:[#allocation44_spill] sm:$0xff] }
 0x2c4   :  { %11757 = vst [vmem:[#allocation23_spill] sm:$0xff] %v8315_v47 }
 0x2c5   :  { %2833 = vmatpush.bf16.msra.mxu2 %v11761_v37  ;;  %v11773_v37 = vld [vmem:[#allocation33_spill] sm:$0xff] }
 0x2c6   :  { %2745 = vmatpush.bf16.msra.mxu0 %v11762_v44  ;;  %2877 = vmatpush.bf16.msra.mxu3 %v11763_v33  ;;  %v11774_v44 = vld [vmem:[#allocation20_spill] sm:$0xff]  ;;  %v11775_v33 = vld [vmem:[#allocation49_spill] sm:$0xff] }
 0x2c7   :  { %v1797_v19 = vpop.f32.mrf.mxu2  ;;  %2789 = vmatpush.bf16.msra.mxu1 %v11764_v61  ;;  %v11776_v61 = vld [vmem:[#allocation21_spill] sm:$0xff] }
 0x2c8   :  { %v1870_v15 = vadd.f32 %v1797_v19, %v1684_v29  ;;  %v1841_v52 = vpop.f32.mrf.mxu3  ;;  %v2068_v35 = vpop.f32.mrf.mxu0  ;;  %v8340_v29 = vld [vmem:[%s11334_s0 + $0x10] sm:$0xff] }
 0x2c9   :  { %v8327_v0 = vadd.f32 %v1841_v52, %v1685_v55  ;;  %v2112_v24 = vpop.f32.mrf.mxu1  ;;  %2834 = vmatpush.bf16.msra.mxu2 %v11766_v38  ;;  %v11772_v55 = vld [vmem:[#allocation17_spill] sm:$0xff] }
 0x2ca   :  { %v8331_v14 = vmax.f32 %v11767_v25, %v1870_v15  ;;  %2746 = vmatpush.bf16.msra.mxu0 %v11769_v50  ;;  %2878 = vmatpush.bf16.msra.mxu3 %v11770_v43  ;;  %v11777_v43 = vld [vmem:[#allocation52_spill] sm:$0xff] }
 0x2cb   :  { %11765 = vst [vmem:[#allocation73_spill] sm:$0xff] %v8327_v0  ;;  %5805 = vmatmul.msk.bf16.gmra.mxu0 %vm187_vm0, %v8340_v29  ;;  %2790 = vmatpush.bf16.msra.mxu1 %v11772_v55  ;;  %v11778_v55 = vld [vmem:[#allocation24_spill] sm:$0xff] }
 0x2cc   :  { %11768 = vst [vmem:[#allocation25_spill] sm:$0xff] %v8331_v14  ;;  %5812 = vmatmul.msk.bf16.gmra.mxu1 %vm187_vm0, %v8340_v29  ;;  %5819 = vmatmul.msk.bf16.gmra.mxu2 %vm187_vm0, %v11773_v37 }
 0x2cd   :  { %5826 = vmatmul.msk.bf16.gmra.mxu3 %vm187_vm0, %v11773_v37  ;;  %2835 = vmatpush.bf16.msra.mxu2 %v11697_v59  ;;  %v11779_v37 = vld [vmem:[#allocation54_spill] sm:$0xff] }
 0x2ce   :  { %2747 = vmatpush.bf16.msra.mxu0 %v11774_v44  ;;  %2879 = vmatpush.bf16.msra.mxu3 %v11775_v33  ;;  %v11780_v59 = vld [vmem:[#allocation26_spill] sm:$0xff] }
 0x2cf   :  { %v2156_v19 = vpop.f32.mrf.mxu2  ;;  %2791 = vmatpush.bf16.msra.mxu1 %v11776_v61 }
 0x2d0   :  { %v8355_v15 = vadd.f32 %v2156_v19, %v2068_v35  ;;  %v2200_v52 = vpop.f32.mrf.mxu3  ;;  %v2070_v38 = vpop.f32.mrf.mxu0 }
 0x2d1   :  { %v8357_v25 = vadd.f32 %v2200_v52, %v2112_v24  ;;  %v2114_v50 = vpop.f32.mrf.mxu1  ;;  %2836 = vmatpush.bf16.msra.mxu2 %v11777_v43  ;;  %v8370_v24 = vld [vmem:[%s11334_s0 + $0x18] sm:$0xff]  ;;  %v11781_v52 = vld [vmem:[#allocation34_spill] sm:$0xff] }
 0x2d2   :  { %2748 = vmatpush.bf16.msra.mxu0 %v11778_v55  ;;  %2880 = vmatpush.bf16.msra.mxu3 %v11779_v37 }
 0x2d3   :  { %2792 = vmatpush.bf16.msra.mxu1 %v11780_v59 }
 0x2d7   :  { %v2158_v44 = vpop.f32.mrf.mxu2 }
 0x2d8   :  { %v8363_v33 = vadd.f32 %v2158_v44, %v2070_v38  ;;  %v2202_v48 = vpop.f32.mrf.mxu3  ;;  %v2073_v35 = vpop.f32.mrf.mxu0 }
 0x2d9   :  { %v8365_v61 = vadd.f32 %v2202_v48, %v2114_v50  ;;  %v2117_v19 = vpop.f32.mrf.mxu1 }
 0x2db   :  { %5806 = vmatmul.msk.bf16.gmra.mxu0 %vm187_vm0, %v8370_v24 }
 0x2dc   :  { %5813 = vmatmul.msk.bf16.gmra.mxu1 %vm187_vm0, %v8370_v24  ;;  %5820 = vmatmul.msk.bf16.gmra.mxu2 %vm187_vm0, %v11781_v52 }
 0x2dd   :  { %5827 = vmatmul.msk.bf16.gmra.mxu3 %vm187_vm0, %v11781_v52  ;;  %v8391_v52 = vld [vmem:[%s11334_s0 + $0x20] sm:$0xff] }
 0x2df   :  { %v2161_v48 = vpop.f32.mrf.mxu2 }
 0x2e0   :  { %v8380_v38 = vadd.f32 %v2161_v48, %v2073_v35  ;;  %v2205_v50 = vpop.f32.mrf.mxu3  ;;  %v2075_v43 = vpop.f32.mrf.mxu0 }
 0x2e1   :  { %v8382_v55 = vadd.f32 %v2205_v50, %v2117_v19  ;;  %v2119_v37 = vpop.f32.mrf.mxu1 }
 0x2e7   :  { %v2163_v59 = vpop.f32.mrf.mxu2 }
 0x2e8   :  { %v8384_v44 = vadd.f32 %v2163_v59, %v2075_v43  ;;  %v2207_v18 = vpop.f32.mrf.mxu3  ;;  %v2078_v28 = vpop.f32.mrf.mxu0 }
 0x2e9   :  { %v8386_v54 = vadd.f32 %v2207_v18, %v2119_v37  ;;  %v2122_v51 = vpop.f32.mrf.mxu1 }
 0x2eb   :  { %5807 = vmatmul.msk.bf16.gmra.mxu0 %vm187_vm0, %v8391_v52 }
 0x2ec   :  { %5814 = vmatmul.msk.bf16.gmra.mxu1 %vm187_vm0, %v8391_v52  ;;  %5821 = vmatmul.msk.bf16.gmra.mxu2 %vm187_vm0, %v7954_v2 }
 0x2ed   :  { %5828 = vmatmul.msk.bf16.gmra.mxu3 %vm187_vm0, %v7954_v2  ;;  %v8412_v2 = vld [vmem:[%s11334_s0 + $0x28] sm:$0xff] }
 0x2ef   :  { %v2166_v18 = vpop.f32.mrf.mxu2 }
 0x2f0   :  { %v8401_v35 = vadd.f32 %v2166_v18, %v2078_v28  ;;  %v2210_v19 = vpop.f32.mrf.mxu3  ;;  %v2080_v48 = vpop.f32.mrf.mxu0 }
 0x2f1   :  { %v8403_v50 = vadd.f32 %v2210_v19, %v2122_v51  ;;  %v2124_v43 = vpop.f32.mrf.mxu1 }
 0x2f7   :  { %v2168_v37 = vpop.f32.mrf.mxu2 }
 0x2f8   :  { %v8405_v59 = vadd.f32 %v2168_v37, %v2080_v48  ;;  %v2212_v6 = vpop.f32.mrf.mxu3  ;;  %v2083_v0 = vpop.f32.mrf.mxu0 }
 0x2f9   :  { %v8407_v5 = vadd.f32 %v2212_v6, %v2124_v43  ;;  %v2127_v14 = vpop.f32.mrf.mxu1 }
 0x2fb   :  { %5808 = vmatmul.msk.bf16.gmra.mxu0 %vm187_vm0, %v8412_v2 }
 0x2fc   :  { %5815 = vmatmul.msk.bf16.gmra.mxu1 %vm187_vm0, %v8412_v2  ;;  %5822 = vmatmul.msk.bf16.gmra.mxu2 %vm187_vm0, %v7979_v46 }
 0x2fd   :  { %5829 = vmatmul.msk.bf16.gmra.mxu3 %vm187_vm0, %v7979_v46  ;;  %v8433_v46 = vld [vmem:[%s11334_s0 + $0x30] sm:$0xff] }
 0x2ff   :  { %v2171_v28 = vpop.f32.mrf.mxu2 }
 0x300   :  { %v8422_v51 = vadd.f32 %v2171_v28, %v2083_v0  ;;  %v2215_v6 = vpop.f32.mrf.mxu3  ;;  %v2085_v18 = vpop.f32.mrf.mxu0 }
 0x301   :  { %v8424_v19 = vadd.f32 %v2215_v6, %v2127_v14  ;;  %v2129_v48 = vpop.f32.mrf.mxu1 }
 0x307   :  { %v2173_v43 = vpop.f32.mrf.mxu2 }
 0x308   :  { %v8426_v37 = vadd.f32 %v2173_v43, %v2085_v18  ;;  %v2217_v53 = vpop.f32.mrf.mxu3  ;;  %v2088_v47 = vpop.f32.mrf.mxu0 }
 0x309   :  { %v8428_v58 = vadd.f32 %v2217_v53, %v2129_v48  ;;  %v2132_v13 = vpop.f32.mrf.mxu1 }
 0x30b   :  { %5809 = vmatmul.msk.bf16.gmra.mxu0 %vm187_vm0, %v8433_v46 }
 0x30c   :  { %5816 = vmatmul.msk.bf16.gmra.mxu1 %vm187_vm0, %v8433_v46  ;;  %5823 = vmatmul.msk.bf16.gmra.mxu2 %vm187_vm0, %v8004_v56 }
 0x30d   :  { %5830 = vmatmul.msk.bf16.gmra.mxu3 %vm187_vm0, %v8004_v56  ;;  %v8454_v56 = vld [vmem:[%s11334_s0 + $0x38] sm:$0xff] }
 0x30f   :  { %v2176_v53 = vpop.f32.mrf.mxu2 }
 0x310   :  { %v8443_v0 = vadd.f32 %v2176_v53, %v2088_v47  ;;  %v2220_v14 = vpop.f32.mrf.mxu3  ;;  %v2090_v28 = vpop.f32.mrf.mxu0 }
 0x311   :  { %v8445_v6 = vadd.f32 %v2220_v14, %v2132_v13  ;;  %v2134_v18 = vpop.f32.mrf.mxu1 }
 0x317   :  { %v2178_v48 = vpop.f32.mrf.mxu2 }
 0x318   :  { %v8447_v43 = vadd.f32 %v2178_v48, %v2090_v28  ;;  %v2222_v57 = vpop.f32.mrf.mxu3  ;;  %v2093_v36 = vpop.f32.mrf.mxu0  ;;  %v8471_v48 = vld [vmem:[%s11334_s0 + $0x88] sm:$0xff] }
 0x319   :  { %v8449_v60 = vadd.f32 %v2222_v57, %v2134_v18  ;;  %v2137_v34 = vpop.f32.mrf.mxu1 }
 0x31b   :  { %5810 = vmatmul.msk.bf16.gmra.mxu0 %vm187_vm0, %v8454_v56 }
 0x31c   :  { %5817 = vmatmul.msk.bf16.gmra.mxu1 %vm187_vm0, %v8454_v56  ;;  %5824 = vmatmul.msk.bf16.gmra.mxu2 %vm187_vm0, %v8029_v17 }
 0x31d   :  { %5831 = vmatmul.msk.bf16.gmra.mxu3 %vm187_vm0, %v8029_v17 }
 0x31f   :  { %v2181_v13 = vpop.f32.mrf.mxu2 }
 0x320   :  { %v8464_v57 = vadd.f32 %v2181_v13, %v2093_v36  ;;  %v2225_v47 = vpop.f32.mrf.mxu3  ;;  %v2095_v53 = vpop.f32.mrf.mxu0  ;;  %v11783_v36 = vld [vmem:[#allocation28_spill] sm:$0xff] }
 0x321   :  { %v8466_v14 = vadd.f32 %v2225_v47, %v2137_v34  ;;  %v2139_v28 = vpop.f32.mrf.mxu1  ;;  %v11782_v34 = vld [vmem:[#allocation27_spill] sm:$0xff] }
 0x327   :  { %v2183_v18 = vpop.f32.mrf.mxu2 }
 0x328   :  { %v8473_v12 = vadd.f32 %v2183_v18, %v2095_v53  ;;  %v2227_v1 = vpop.f32.mrf.mxu3  ;;  %v2098_v31 = vpop.f32.mrf.mxu0 }
 0x329   :  { %v8475_v40 = vadd.f32 %v2227_v1, %v2139_v28  ;;  %v2142_v17 = vpop.f32.mrf.mxu1 }
 0x32b   :  { %5860 = vmatmul.msk.bf16.vlgmr.msrb.gmra.mxu0 %vm187_vm0, %v8471_v48 }
 0x32c   :  { %5867 = vmatmul.msk.bf16.vlgmr.msrb.gmra.mxu1 %vm187_vm0, %v8471_v48  ;;  %5874 = vmatmul.msk.bf16.vlgmr.msrb.gmra.mxu2 %vm187_vm0, %v8296_v16 }
 0x32d   :  { %5881 = vmatmul.msk.bf16.vlgmr.msrb.gmra.mxu3 %vm187_vm0, %v8296_v16  ;;  %3133 = vmatpush.bf16.msrb.mxu2 %v7125_v30  ;;  %v11785_v30 = vld [vmem:[#allocation32_spill] sm:$0xff] }
 0x32e   :  { %2947 = vmatpush.bf16.msrb.mxu0 %v11782_v34  ;;  %3177 = vmatpush.bf16.msrb.mxu3 %v7131_v39  ;;  %v11786_v39 = vld [vmem:[#allocation35_spill] sm:$0xff]  ;;  %v11787_v16 = vld [vmem:[#allocation36_spill] sm:$0xff] }
 0x32f   :  { %v2186_v1 = vpop.f32.mrf.mxu2  ;;  %2991 = vmatpush.bf16.msrb.mxu1 %v11783_v36  ;;  %v11788_v34 = vld [vmem:[#allocation64_spill] sm:$0xff] }
 0x330   :  { %v8489_v13 = vadd.f32 %v2186_v1, %v2098_v31  ;;  %v2230_v47 = vpop.f32.mrf.mxu3  ;;  %v2100_v53 = vpop.f32.mrf.mxu0 }
 0x331   :  { %3134 = vmatpush.bf16.msrb.mxu2 %v11702_v9  ;;  %v8492_v28 = vadd.f32 %v2230_v47, %v2142_v17  ;;  %v2144_v18 = vpop.f32.mrf.mxu1  ;;  %v8503_v9 = vld [vmem:[%s11334_s0 + $0x90] sm:$0xff]  ;;  %v11790_v47 = vld [vmem:[#allocation65_spill] sm:$0xff] }
 0x332   :  { %2948 = vmatpush.bf16.msrb.mxu0 %v11784_v26  ;;  %3178 = vmatpush.bf16.msrb.mxu3 %v11704_v23 }
 0x333   :  { %2992 = vmatpush.bf16.msrb.mxu1 %v11785_v30 }
 0x335   :  { %3135 = vmatpush.bf16.msrb.mxu2 %v11706_v49 }
 0x336   :  { %2949 = vmatpush.bf16.msrb.mxu0 %v11786_v39  ;;  %3179 = vmatpush.bf16.msrb.mxu3 %v11708_v42  ;;  %v11789_v42 = vld [vmem:[#allocation40_spill] sm:$0xff] }
 0x337   :  { %v2188_v31 = vpop.f32.mrf.mxu2  ;;  %2993 = vmatpush.bf16.msrb.mxu1 %v11787_v16  ;;  %v11794_v39 = vld [vmem:[#allocation48_spill] sm:$0xff] }
 0x338   :  { %v8506_v17 = vadd.f32 %v2188_v31, %v2100_v53  ;;  %v2232_v26 = vpop.f32.mrf.mxu3  ;;  %v2244_v23 = vpop.f32.mrf.mxu0  ;;  %v11791_v53 = vld [vmem:[#allocation43_spill] sm:$0xff] }
 0x339   :  { %3136 = vmatpush.bf16.msrb.mxu2 %v11788_v34  ;;  %v8509_v1 = vadd.f32 %v2232_v26, %v2144_v18  ;;  %v2323_v49 = vadd.f32 %v2244_v23, %v8355_v15  ;;  %v2288_v36 = vpop.f32.mrf.mxu1  ;;  %v11792_v15 = vld [vmem:[#allocation67_spill] sm:$0xff]  ;;  %v11793_v18 = vld [vmem:[#allocation45_spill] sm:$0xff]  ;;  %v11795_v23 = vld [vmem:[#allocation70_spill] sm:$0xff] }
 0x33a   :  { %2950 = vmatpush.bf16.msrb.mxu0 %v11789_v42  ;;  %3180 = vmatpush.bf16.msrb.mxu3 %v11790_v47  ;;  %v2324_v30 = vadd.f32 %v2288_v36, %v8357_v25  ;;  %v11796_v42 = vld [vmem:[#allocation50_spill] sm:$0xff]  ;;  %v11797_v47 = vld [vmem:[#allocation71_spill] sm:$0xff] }
 0x33b   :  { %5861 = vmatmul.msk.bf16.gmra.mxu0 %vm187_vm0, %v8503_v9  ;;  %2994 = vmatpush.bf16.msrb.mxu1 %v11791_v53  ;;  %v11798_v53 = vld [vmem:[#allocation53_spill] sm:$0xff] }
 0x33c   :  { %5868 = vmatmul.msk.bf16.gmra.mxu1 %vm187_vm0, %v8503_v9  ;;  %5875 = vmatmul.msk.bf16.gmra.mxu2 %vm187_vm0, %v8340_v29 }
 0x33d   :  { %5882 = vmatmul.msk.bf16.gmra.mxu3 %vm187_vm0, %v8340_v29  ;;  %3137 = vmatpush.bf16.msrb.mxu2 %v11792_v15 }
 0x33e   :  { %2951 = vmatpush.bf16.msrb.mxu0 %v11793_v18  ;;  %3181 = vmatpush.bf16.msrb.mxu3 %v11716_v32 }
 0x33f   :  { %v2360_v25 = vpop.f32.mrf.mxu2  ;;  %2995 = vmatpush.bf16.msrb.mxu1 %v11794_v39 }
 0x340   :  { %v8528_v31 = vadd.f32 %v2360_v25, %v2323_v49  ;;  %v2404_v16 = vpop.f32.mrf.mxu3  ;;  %v2246_v26 = vpop.f32.mrf.mxu0  ;;  %v8541_v49 = vld [vmem:[%s11334_s0 + $0x98] sm:$0xff] }
 0x341   :  { %3138 = vmatpush.bf16.msrb.mxu2 %v11795_v23  ;;  %v8531_v34 = vadd.f32 %v2404_v16, %v2324_v30  ;;  %v2325_v36 = vadd.f32 %v2246_v26, %v8363_v33  ;;  %v2290_v29 = vpop.f32.mrf.mxu1 }
 0x342   :  { %2952 = vmatpush.bf16.msrb.mxu0 %v11796_v42  ;;  %3182 = vmatpush.bf16.msrb.mxu3 %v11797_v47  ;;  %v2326_v32 = vadd.f32 %v2290_v29, %v8365_v61 }
 0x343   :  { %2996 = vmatpush.bf16.msrb.mxu1 %v11798_v53  ;;  %v8566_v53 = vld [vmem:[%s11334_s0 + $0xa0] sm:$0xff] }
 0x347   :  { %v2362_v15 = vpop.f32.mrf.mxu2 }
 0x348   :  { %v8543_v18 = vadd.f32 %v2362_v15, %v2325_v36  ;;  %v2406_v30 = vpop.f32.mrf.mxu3  ;;  %v2249_v25 = vpop.f32.mrf.mxu0 }
 0x349   :  { %v8545_v33 = vadd.f32 %v2406_v30, %v2326_v32  ;;  %v2327_v39 = vadd.f32 %v2249_v25, %v8380_v38  ;;  %v2293_v16 = vpop.f32.mrf.mxu1 }
 0x34a   :  { %v2328_v26 = vadd.f32 %v2293_v16, %v8382_v55 }
 0x34b   :  { %5862 = vmatmul.msk.bf16.gmra.mxu0 %vm187_vm0, %v8541_v49 }
 0x34c   :  { %5869 = vmatmul.msk.bf16.gmra.mxu1 %vm187_vm0, %v8541_v49  ;;  %5876 = vmatmul.msk.bf16.gmra.mxu2 %vm187_vm0, %v8370_v24 }
 0x34d   :  { %5883 = vmatmul.msk.bf16.gmra.mxu3 %vm187_vm0, %v8370_v24 }
 0x34f   :  { %v2365_v61 = vpop.f32.mrf.mxu2 }
 0x350   :  { %v8557_v23 = vadd.f32 %v2365_v61, %v2327_v39  ;;  %v2409_v36 = vpop.f32.mrf.mxu3  ;;  %v2251_v38 = vpop.f32.mrf.mxu0 }
 0x351   :  { %v8559_v29 = vadd.f32 %v2409_v36, %v2328_v26  ;;  %v2329_v55 = vadd.f32 %v2251_v38, %v8384_v44  ;;  %v2295_v42 = vpop.f32.mrf.mxu1 }
 0x352   :  { %v2330_v47 = vadd.f32 %v2295_v42, %v8386_v54 }
 0x357   :  { %v2367_v32 = vpop.f32.mrf.mxu2 }
 0x358   :  { %v8568_v15 = vadd.f32 %v2367_v32, %v2329_v55  ;;  %v2411_v24 = vpop.f32.mrf.mxu3  ;;  %v2254_v30 = vpop.f32.mrf.mxu0 }
 0x359   :  { %v8570_v25 = vadd.f32 %v2411_v24, %v2330_v47  ;;  %v2331_v39 = vadd.f32 %v2254_v30, %v8401_v35  ;;  %v2298_v16 = vpop.f32.mrf.mxu1  ;;  %v8591_v47 = vld [vmem:[%s11334_s0 + $0xa8] sm:$0xff] }
 0x35a   :  { %v2332_v44 = vadd.f32 %v2298_v16, %v8403_v50 }
 0x35b   :  { %5863 = vmatmul.msk.bf16.gmra.mxu0 %vm187_vm0, %v8566_v53 }
 0x35c   :  { %5870 = vmatmul.msk.bf16.gmra.mxu1 %vm187_vm0, %v8566_v53  ;;  %5877 = vmatmul.msk.bf16.gmra.mxu2 %vm187_vm0, %v8391_v52 }
 0x35d   :  { %5884 = vmatmul.msk.bf16.gmra.mxu3 %vm187_vm0, %v8391_v52 }
 0x35f   :  { %v2370_v54 = vpop.f32.mrf.mxu2 }
 0x360   :  { %v8582_v26 = vadd.f32 %v2370_v54, %v2331_v39  ;;  %v2414_v61 = vpop.f32.mrf.mxu3  ;;  %v2256_v35 = vpop.f32.mrf.mxu0 }
 0x361   :  { %v8584_v36 = vadd.f32 %v2414_v61, %v2332_v44  ;;  %v2333_v50 = vadd.f32 %v2256_v35, %v8405_v59  ;;  %v2300_v38 = vpop.f32.mrf.mxu1 }
 0x362   :  { %v2334_v55 = vadd.f32 %v2300_v38, %v8407_v5 }
 0x367   :  { %v2372_v42 = vpop.f32.mrf.mxu2 }
 0x368   :  { %v8593_v32 = vadd.f32 %v2372_v42, %v2333_v50  ;;  %v2416_v52 = vpop.f32.mrf.mxu3  ;;  %v2259_v24 = vpop.f32.mrf.mxu0 }
 0x369   :  { %v8595_v30 = vadd.f32 %v2416_v52, %v2334_v55  ;;  %v2335_v39 = vadd.f32 %v2259_v24, %v8422_v51  ;;  %v2303_v16 = vpop.f32.mrf.mxu1  ;;  %v8616_v55 = vld [vmem:[%s11334_s0 + $0xb0] sm:$0xff] }
 0x36a   :  { %v2336_v59 = vadd.f32 %v2303_v16, %v8424_v19 }
 0x36b   :  { %5864 = vmatmul.msk.bf16.gmra.mxu0 %vm187_vm0, %v8591_v47 }
 0x36c   :  { %5871 = vmatmul.msk.bf16.gmra.mxu1 %vm187_vm0, %v8591_v47  ;;  %5878 = vmatmul.msk.bf16.gmra.mxu2 %vm187_vm0, %v8412_v2 }
 0x36d   :  { %5885 = vmatmul.msk.bf16.gmra.mxu3 %vm187_vm0, %v8412_v2 }
 0x36f   :  { %v2375_v5 = vpop.f32.mrf.mxu2 }
 0x370   :  { %v8607_v44 = vadd.f32 %v2375_v5, %v2335_v39  ;;  %v2419_v54 = vpop.f32.mrf.mxu3  ;;  %v2261_v51 = vpop.f32.mrf.mxu0 }
 0x371   :  { %v8609_v61 = vadd.f32 %v2419_v54, %v2336_v59  ;;  %v2337_v19 = vadd.f32 %v2261_v51, %v8426_v37  ;;  %v2305_v35 = vpop.f32.mrf.mxu1 }
 0x372   :  { %v2338_v50 = vadd.f32 %v2305_v35, %v8428_v58 }
 0x377   :  { %v2377_v38 = vpop.f32.mrf.mxu2 }
 0x378   :  { %v8618_v42 = vadd.f32 %v2377_v38, %v2337_v19  ;;  %v2421_v2 = vpop.f32.mrf.mxu3  ;;  %v2264_v52 = vpop.f32.mrf.mxu0 }
 0x379   :  { %v8620_v24 = vadd.f32 %v2421_v2, %v2338_v50  ;;  %v2339_v39 = vadd.f32 %v2264_v52, %v8443_v0  ;;  %v2308_v16 = vpop.f32.mrf.mxu1  ;;  %v8641_v50 = vld [vmem:[%s11334_s0 + $0xb8] sm:$0xff] }
 0x37a   :  { %v2340_v37 = vadd.f32 %v2308_v16, %v8445_v6 }
 0x37b   :  { %5865 = vmatmul.msk.bf16.gmra.mxu0 %vm187_vm0, %v8616_v55 }
 0x37c   :  { %5872 = vmatmul.msk.bf16.gmra.mxu1 %vm187_vm0, %v8616_v55  ;;  %5879 = vmatmul.msk.bf16.gmra.mxu2 %vm187_vm0, %v8433_v46 }
 0x37d   :  { %5886 = vmatmul.msk.bf16.gmra.mxu3 %vm187_vm0, %v8433_v46 }
 0x37f   :  { %v2380_v58 = vpop.f32.mrf.mxu2 }
 0x380   :  { %v8632_v59 = vadd.f32 %v2380_v58, %v2339_v39  ;;  %v2424_v5 = vpop.f32.mrf.mxu3  ;;  %v2266_v0 = vpop.f32.mrf.mxu0 }
 0x381   :  { %v8634_v54 = vadd.f32 %v2424_v5, %v2340_v37  ;;  %v2341_v6 = vadd.f32 %v2266_v0, %v8447_v43  ;;  %v2310_v51 = vpop.f32.mrf.mxu1 }
 0x382   :  { %v2342_v19 = vadd.f32 %v2310_v51, %v8449_v60 }
 0x387   :  { %v2382_v35 = vpop.f32.mrf.mxu2 }
 0x388   :  { %v8643_v38 = vadd.f32 %v2382_v35, %v2341_v6  ;;  %v2426_v46 = vpop.f32.mrf.mxu3  ;;  %v2269_v2 = vpop.f32.mrf.mxu0 }
 0x389   :  { %v8645_v52 = vadd.f32 %v2426_v46, %v2342_v19  ;;  %v2343_v39 = vadd.f32 %v2269_v2, %v8464_v57  ;;  %v2313_v16 = vpop.f32.mrf.mxu1 }
 0x38a   :  { %v2344_v43 = vadd.f32 %v2313_v16, %v8466_v14 }
 0x38b   :  { %5866 = vmatmul.msk.bf16.gmra.mxu0 %vm187_vm0, %v8641_v50 }
 0x38c   :  { %5873 = vmatmul.msk.bf16.gmra.mxu1 %vm187_vm0, %v8641_v50  ;;  %5880 = vmatmul.msk.bf16.gmra.mxu2 %vm187_vm0, %v8454_v56 }
 0x38d   :  { %5887 = vmatmul.msk.bf16.gmra.mxu3 %vm187_vm0, %v8454_v56 }
 0x38f   :  { %v2385_v60 = vpop.f32.mrf.mxu2 }
 0x390   :  { %v8657_v37 = vadd.f32 %v2385_v60, %v2343_v39  ;;  %v2429_v58 = vpop.f32.mrf.mxu3  ;;  %v2271_v57 = vpop.f32.mrf.mxu0 }
 0x391   :  { %v8659_v5 = vadd.f32 %v2429_v58, %v2344_v43  ;;  %v2345_v14 = vadd.f32 %v2271_v57, %v8473_v12  ;;  %v2315_v0 = vpop.f32.mrf.mxu1  ;;  %v6498_v43 = vld [vmem:[%s11334_s0 + $0xc0] sm:$0xff]  ;;  %v6499_v12 = vld [vmem:[%s11334_s0 + $0x48] sm:$0xff] }
 0x392   :  { %v2346_v6 = vadd.f32 %v2315_v0, %v8475_v40 }
 0x397   :  { %v2387_v51 = vpop.f32.mrf.mxu2 }
 0x398   :  { %v8663_v19 = vadd.f32 %v2387_v51, %v2345_v14  ;;  %v2431_v35 = vpop.f32.mrf.mxu3  ;;  %v2274_v46 = vpop.f32.mrf.mxu0 }
 0x399   :  { %v8665_v2 = vadd.f32 %v2431_v35, %v2346_v6  ;;  %v2347_v56 = vadd.f32 %v2274_v46, %v8489_v13  ;;  %v2318_v39 = vpop.f32.mrf.mxu1 }
 0x39a   :  { %v2348_v16 = vadd.f32 %v2318_v39, %v8492_v28 }
 0x39b   :  { %5888 = vmatmul.msk.bf16.vlgmr.msra.gmra.mxu0 %vm187_vm0, %v6498_v43 }
 0x39c   :  { %5895 = vmatmul.msk.bf16.vlgmr.msra.gmra.mxu1 %vm187_vm0, %v6498_v43  ;;  %5902 = vmatmul.msk.bf16.vlgmr.msra.gmra.mxu2 %vm187_vm0, %v6499_v12 }
 0x39d   :  { %5909 = vmatmul.msk.bf16.vlgmr.msra.gmra.mxu3 %vm187_vm0, %v6499_v12 }
 0x39f   :  { %v2390_v40 = vpop.f32.mrf.mxu2 }
 0x3a0   :  { %v8679_v13 = vadd.f32 %v2390_v40, %v2347_v56  ;;  %v2434_v28 = vpop.f32.mrf.mxu3  ;;  %v2276_v60 = vpop.f32.mrf.mxu0 }
 0x3a1   :  { %v8681_v58 = vadd.f32 %v2434_v28, %v2348_v16  ;;  %v2349_v57 = vadd.f32 %v2276_v60, %v8506_v17  ;;  %v2320_v14 = vpop.f32.mrf.mxu1  ;;  %v11799_v16 = vld [vmem:[#allocation46_spill] sm:$0xff]  ;;  %v6500_v17 = vld [vmem:[%s11334_s0 + $0x50] sm:$0xff] }
 0x3a2   :  { %v2350_v0 = vadd.f32 %v2320_v14, %v8509_v1 }
 0x3a7   :  { %v2392_v6 = vpop.f32.mrf.mxu2 }
 0x3a8   :  { %v8685_v51 = vadd.f32 %v2392_v6, %v2349_v57  ;;  %v2436_v35 = vpop.f32.mrf.mxu3  ;;  %v2546_v46 = vpop.f32.mrf.mxu0 }
 0x3a9   :  { %v8687_v39 = vadd.f32 %v2436_v35, %v2350_v0  ;;  %v8690_v43 = vadd.f32 %v2546_v46, %v8528_v31  ;;  %v2590_v56 = vpop.f32.mrf.mxu1 }
 0x3aa   :  { %v8693_v12 = vadd.f32 %v2590_v56, %v8531_v34 }
 0x3ab   :  { %5889 = vmatmul.msk.bf16.gmra.mxu0 %vm187_vm0, %v11799_v16 }
 0x3ac   :  { %5896 = vmatmul.msk.bf16.gmra.mxu1 %vm187_vm0, %v11799_v16  ;;  %5903 = vmatmul.msk.bf16.gmra.mxu2 %vm187_vm0, %v6500_v17 }
 0x3ad   :  { %5910 = vmatmul.msk.bf16.gmra.mxu3 %vm187_vm0, %v6500_v17 }
 0x3af   :  { %v8704_v1 = vpop.f32.mrf.mxu2 }
 0x3b0   :  { %v8706_v31 = vpop.f32.mrf.mxu3  ;;  %v2548_v34 = vpop.f32.mrf.mxu0 }
 0x3b1   :  { %v8709_v40 = vadd.f32 %v2548_v34, %v8543_v18  ;;  %v2592_v28 = vpop.f32.mrf.mxu1  ;;  %v6501_v18 = vld [vmem:[%s11334_s0 + $0x58] sm:$0xff] }
 0x3b2   :  { %v8712_v60 = vadd.f32 %v2592_v28, %v8545_v33 }
 0x3b7   :  { %v8714_v57 = vpop.f32.mrf.mxu2 }
 0x3b8   :  { %v8716_v14 = vpop.f32.mrf.mxu3  ;;  %v2551_v0 = vpop.f32.mrf.mxu0 }
 0x3b9   :  { %v8719_v6 = vadd.f32 %v2551_v0, %v8557_v23  ;;  %v2595_v35 = vpop.f32.mrf.mxu1 }
 0x3ba   :  { %v8722_v46 = vadd.f32 %v2595_v35, %v8559_v29 }
 0x3bb   :  { %5890 = vmatmul.msk.bf16.gmra.mxu0 %vm187_vm0, %v8130_v3 }
 0x3bc   :  { %5897 = vmatmul.msk.bf16.gmra.mxu1 %vm187_vm0, %v8130_v3  ;;  %5904 = vmatmul.msk.bf16.gmra.mxu2 %vm187_vm0, %v6501_v18 }
 0x3bd   :  { %5911 = vmatmul.msk.bf16.gmra.mxu3 %vm187_vm0, %v6501_v18 }
 0x3bf   :  { %v8733_v33 = vpop.f32.mrf.mxu2 }
 0x3c0   :  { %v8735_v23 = vpop.f32.mrf.mxu3  ;;  %v2553_v29 = vpop.f32.mrf.mxu0 }
 0x3c1   :  { %v8738_v56 = vadd.f32 %v2553_v29, %v8568_v15  ;;  %v2597_v16 = vpop.f32.mrf.mxu1  ;;  %v6502_v15 = vld [vmem:[%s11334_s0 + $0x60] sm:$0xff] }
 0x3c2   :  { %v8741_v17 = vadd.f32 %v2597_v16, %v8570_v25 }
 0x3c7   :  { %v8743_v3 = vpop.f32.mrf.mxu2 }
 0x3c8   :  { %v8745_v34 = vpop.f32.mrf.mxu3  ;;  %v2556_v28 = vpop.f32.mrf.mxu0 }
 0x3c9   :  { %v8748_v0 = vadd.f32 %v2556_v28, %v8582_v26  ;;  %v2600_v35 = vpop.f32.mrf.mxu1 }
 0x3ca   :  { %v8751_v18 = vadd.f32 %v2600_v35, %v8584_v36 }
 0x3cb   :  { %5891 = vmatmul.msk.bf16.gmra.mxu0 %vm187_vm0, %v8160_v10 }
 0x3cc   :  { %5898 = vmatmul.msk.bf16.gmra.mxu1 %vm187_vm0, %v8160_v10  ;;  %5905 = vmatmul.msk.bf16.gmra.mxu2 %vm187_vm0, %v6502_v15 }
 0x3cd   :  { %5912 = vmatmul.msk.bf16.gmra.mxu3 %vm187_vm0, %v6502_v15 }
 0x3cf   :  { %v8762_v25 = vpop.f32.mrf.mxu2 }
 0x3d0   :  { %v8764_v26 = vpop.f32.mrf.mxu3  ;;  %v2558_v36 = vpop.f32.mrf.mxu0 }
 0x3d1   :  { %v8767_v29 = vadd.f32 %v2558_v36, %v8593_v32  ;;  %v2602_v16 = vpop.f32.mrf.mxu1  ;;  %v6503_v32 = vld [vmem:[%s11334_s0 + $0x68] sm:$0xff] }
 0x3d2   :  { %v8770_v28 = vadd.f32 %v2602_v16, %v8595_v30 }
 0x3d4   :  { %11800 = vst [vmem:[#allocation58_spill] sm:$0xff] %v8770_v28 }
 0x3d7   :  { %v8772_v10 = vpop.f32.mrf.mxu2 }
 0x3d8   :  { %v8774_v35 = vpop.f32.mrf.mxu3  ;;  %v2561_v22 = vpop.f32.mrf.mxu0 }
 0x3d9   :  { %v8777_v8 = vadd.f32 %v2561_v22, %v8607_v44  ;;  %v2605_v15 = vpop.f32.mrf.mxu1 }
 0x3da   :  { %v8780_v63 = vadd.f32 %v2605_v15, %v8609_v61 }
 0x3db   :  { %11801 = vst [vmem:[#allocation2_spill] sm:$0xff] %v8777_v8  ;;  %5892 = vmatmul.msk.bf16.gmra.mxu0 %vm187_vm0, %v8197_v45 }
 0x3dc   :  { %11802 = vst [vmem:[#allocation3_spill] sm:$0xff] %v8780_v63  ;;  %5899 = vmatmul.msk.bf16.gmra.mxu1 %vm187_vm0, %v8197_v45  ;;  %5906 = vmatmul.msk.bf16.gmra.mxu2 %vm187_vm0, %v6503_v32 }
 0x3dd   :  { %5913 = vmatmul.msk.bf16.gmra.mxu3 %vm187_vm0, %v6503_v32 }
 0x3df   :  { %v8791_v22 = vpop.f32.mrf.mxu2 }
 0x3e0   :  { %v8793_v30 = vpop.f32.mrf.mxu3  ;;  %v2563_v44 = vpop.f32.mrf.mxu0 }
 0x3e1   :  { %v8796_v61 = vadd.f32 %v2563_v44, %v8618_v42  ;;  %v2607_v36 = vpop.f32.mrf.mxu1  ;;  %v6504_v42 = vld [vmem:[%s11334_s0 + $0x70] sm:$0xff] }
 0x3e2   :  { %v8799_v16 = vadd.f32 %v2607_v36, %v8620_v24 }
 0x3e3   :  { %11803 = vst [vmem:[#allocation6_spill] sm:$0xff] %v8796_v61 }
 0x3e4   :  { %11804 = vst [vmem:[#allocation14_spill] sm:$0xff] %v8799_v16 }
 0x3e7   :  { %v8801_v45 = vpop.f32.mrf.mxu2 }
 0x3e8   :  { %v8803_v15 = vpop.f32.mrf.mxu3  ;;  %v2566_v63 = vpop.f32.mrf.mxu0 }
 0x3e9   :  { %v8806_v8 = vadd.f32 %v2566_v63, %v8632_v59  ;;  %v2610_v32 = vpop.f32.mrf.mxu1 }
 0x3ea   :  { %v8809_v28 = vadd.f32 %v2610_v32, %v8634_v54 }
 0x3eb   :  { %11805 = vst [vmem:[#allocation38_spill] sm:$0xff] %v8806_v8  ;;  %5893 = vmatmul.msk.bf16.gmra.mxu0 %vm187_vm0, %v8232_v21 }
 0x3ec   :  { %11806 = vst [vmem:[#allocation61_spill] sm:$0xff] %v8809_v28  ;;  %5900 = vmatmul.msk.bf16.gmra.mxu1 %vm187_vm0, %v8232_v21  ;;  %5907 = vmatmul.msk.bf16.gmra.mxu2 %vm187_vm0, %v6504_v42 }
 0x3ed   :  { %5914 = vmatmul.msk.bf16.gmra.mxu3 %vm187_vm0, %v6504_v42 }
 0x3ef   :  { %v8820_v63 = vpop.f32.mrf.mxu2 }
 0x3f0   :  { %11807 = vst [vmem:[#allocation42_spill] sm:$0xff] %v8820_v63  ;;  %v8822_v24 = vpop.f32.mrf.mxu3  ;;  %v2568_v59 = vpop.f32.mrf.mxu0 }
 0x3f1   :  { %11808 = vst [vmem:[#allocation63_spill] sm:$0xff] %v8822_v24  ;;  %v8825_v54 = vadd.f32 %v2568_v59, %v8643_v38  ;;  %v2612_v44 = vpop.f32.mrf.mxu1  ;;  %v6505_v38 = vld [vmem:[%s11334_s0 + $0x78] sm:$0xff]  ;;  %v1933_v24 = vpop.permute.xlu2 %1932 }
 0x3f2   :  { %v8828_v36 = vadd.f32 %v2612_v44, %v8645_v52 }
 0x3f3   :  { %11809 = vst [vmem:[#allocation47_spill] sm:$0xff] %v8825_v54  ;;  %v3429_v54 = vld [vmem:[%s11336_s3] sm:$0xff] }
 0x3f4   :  { %11810 = vst [vmem:[#allocation51_spill] sm:$0xff] %v8828_v36 }
 0x3f7   :  { %v8830_v21 = vpop.f32.mrf.mxu2 }
 0x3f8   :  { %11811 = vst [vmem:[#allocation76_spill] sm:$0xff] %v8830_v21  ;;  %v8832_v32 = vpop.f32.mrf.mxu3  ;;  %v2571_v28 = vpop.f32.mrf.mxu0 }
 0x3f9   :  { %11812 = vst [vmem:[#allocation72_spill] sm:$0xff] %v8832_v32  ;;  %v8835_v8 = vadd.f32 %v2571_v28, %v8657_v37  ;;  %v2615_v42 = vpop.f32.mrf.mxu1  ;;  %v1929_v21 = vpop.permute.xlu0 %1928 }
 0x3fa   :  { %v8838_v16 = vadd.f32 %v2615_v42, %v8659_v5  ;;  %v6439_v42 = vld [vmem:[%s11334_s0 + $0xc8] sm:$0xff] }
 0x3fb   :  { %11813 = vst [vmem:[#allocation4_spill] sm:$0xff] %v8835_v8  ;;  %5894 = vmatmul.msk.bf16.gmra.mxu0 %vm187_vm0, %v8264_v62 }
 0x3fc   :  { %11814 = vst [vmem:[#allocation5_spill] sm:$0xff] %v8838_v16  ;;  %5901 = vmatmul.msk.bf16.gmra.mxu1 %vm187_vm0, %v8264_v62  ;;  %5908 = vmatmul.msk.bf16.gmra.mxu2 %vm187_vm0, %v6505_v38 }
 0x3fd   :  { %5915 = vmatmul.msk.bf16.gmra.mxu3 %vm187_vm0, %v6505_v38 }
 0x3ff   :  { %v8849_v52 = vpop.f32.mrf.mxu2 }
 0x400   :  { %11815 = vst [vmem:[#allocation8_spill] sm:$0xff] %v8849_v52  ;;  %v8851_v37 = vpop.f32.mrf.mxu3  ;;  %v2573_v5 = vpop.f32.mrf.mxu0 }
 0x401   :  { %11816 = vst [vmem:[#allocation9_spill] sm:$0xff] %v8851_v37  ;;  %v8854_v28 = vadd.f32 %v2573_v5, %v8663_v19  ;;  %v2617_v59 = vpop.f32.mrf.mxu1 }
 0x402   :  { %v8857_v44 = vadd.f32 %v2617_v59, %v8665_v2 }
 0x403   :  { %11817 = vst [vmem:[#allocation37_spill] sm:$0xff] %v8854_v28 }
 0x404   :  { %11818 = vst [vmem:[#allocation12_spill] sm:$0xff] %v8857_v44 }
 0x407   :  { %v8859_v62 = vpop.f32.mrf.mxu2 }
 0x408   :  { %11819 = vst [vmem:[#allocation39_spill] sm:$0xff] %v8859_v62  ;;  %v8864_v8 = vpop.f32.mrf.mxu3  ;;  %v2576_v38 = vpop.f32.mrf.mxu0  ;;  %v3436_v62 = vld [vmem:[%s11336_s3 + $0x38] sm:$0xff] }
 0x409   :  { %11820 = vst [vmem:[#allocation13_spill] sm:$0xff] %v8864_v8  ;;  %v8867_v16 = vadd.f32 %v2576_v38, %v8679_v13  ;;  %v2620_v52 = vpop.f32.mrf.mxu1  ;;  %v3435_v8 = vld [vmem:[%s11336_s3 + $0x30] sm:$0xff] }
 0x40a   :  { %v8870_v19 = vadd.f32 %v2620_v52, %v8681_v58 }
 0x40b   :  { %11821 = vst [vmem:[#allocation41_spill] sm:$0xff] %v8867_v16  ;;  %5916 = vmatmul.msk.bf16.vlgmr.msrb.gmra.mxu0 %vm187_vm0, %v8471_v48 }
 0x40c   :  { %11822 = vst [vmem:[#allocation29_spill] sm:$0xff] %v8870_v19  ;;  %5923 = vmatmul.msk.bf16.vlgmr.msrb.gmra.mxu1 %vm187_vm0, %v8471_v48  ;;  %5958 = vmatmul.msk.bf16.vlgmr.msrb.gmra.mxu2 %vm187_vm0, %v6439_v42  ;;  %v6440_v48 = vld [vmem:[%s11334_s0 + $0xd0] sm:$0xff] }
 0x40d   :  { %5965 = vmatmul.msk.bf16.vlgmr.msrb.gmra.mxu3 %vm187_vm0, %v6439_v42 }
 0x40f   :  { %v8878_v2 = vpop.f32.mrf.mxu2 }
 0x410   :  { %11823 = vst [vmem:[#allocation16_spill] sm:$0xff] %v8878_v2  ;;  %v8880_v5 = vpop.f32.mrf.mxu3  ;;  %v2578_v13 = vpop.f32.mrf.mxu0 }
 0x411   :  { %11824 = vst [vmem:[#allocation44_spill] sm:$0xff] %v8880_v5  ;;  %v8883_v59 = vadd.f32 %v2578_v13, %v8685_v51  ;;  %v2622_v58 = vpop.f32.mrf.mxu1 }
 0x412   :  { %v8886_v52 = vadd.f32 %v2622_v58, %v8687_v39 }
 0x413   :  { %11825 = vst [vmem:[#allocation17_spill] sm:$0xff] %v8883_v59 }
 0x414   :  { %11826 = vst [vmem:[#allocation33_spill] sm:$0xff] %v8886_v52 }
 0x417   :  { %v8888_v38 = vpop.f32.mrf.mxu2 }
 0x418   :  { %11827 = vst [vmem:[#allocation20_spill] sm:$0xff] %v8888_v38  ;;  %v8893_v16 = vpop.f32.mrf.mxu3  ;;  %v2750_v42 = vpop.f32.mrf.mxu0 }
 0x419   :  { %11828 = vst [vmem:[#allocation49_spill] sm:$0xff] %v8893_v16  ;;  %v2794_v19 = vpop.f32.mrf.mxu1  ;;  %v2751_v51 = vadd.f32 %v2750_v42, %v8704_v1  ;;  %v6441_v1 = vld [vmem:[%s11334_s0 + $0xd8] sm:$0xff] }
 0x41a   :  { %v2795_v13 = vadd.f32 %v2794_v19, %v8706_v31 }
 0x41b   :  { %5917 = vmatmul.msk.bf16.gmra.mxu0 %vm187_vm0, %v8503_v9 }
 0x41c   :  { %5924 = vmatmul.msk.bf16.gmra.mxu1 %vm187_vm0, %v8503_v9  ;;  %5959 = vmatmul.msk.bf16.gmra.mxu2 %vm187_vm0, %v6440_v48 }
 0x41d   :  { %5966 = vmatmul.msk.bf16.gmra.mxu3 %vm187_vm0, %v6440_v48 }
 0x41f   :  { %v2838_v39 = vpop.f32.mrf.mxu2 }
 0x420   :  { %v8903_v58 = vadd.f32 %v2838_v39, %v2751_v51  ;;  %v2882_v52 = vpop.f32.mrf.mxu3  ;;  %v2752_v16 = vpop.f32.mrf.mxu0 }
 0x421   :  { %v8905_v59 = vadd.f32 %v2882_v52, %v2795_v13  ;;  %v2796_v2 = vpop.f32.mrf.mxu1  ;;  %v2753_v38 = vadd.f32 %v2752_v16, %v8714_v57 }
 0x422   :  { %v2797_v9 = vadd.f32 %v2796_v2, %v8716_v14 }
 0x427   :  { %v2840_v5 = vpop.f32.mrf.mxu2 }
 0x428   :  { %v8909_v44 = vadd.f32 %v2840_v5, %v2753_v38  ;;  %v2884_v48 = vpop.f32.mrf.mxu3  ;;  %v2755_v31 = vpop.f32.mrf.mxu0 }
 0x429   :  { %v8914_v19 = vadd.f32 %v2884_v48, %v2797_v9  ;;  %v2799_v42 = vpop.f32.mrf.mxu1  ;;  %v2756_v57 = vadd.f32 %v2755_v31, %v8733_v33  ;;  %v6442_v33 = vld [vmem:[%s11334_s0 + $0xe0] sm:$0xff] }
 0x42a   :  { %v2800_v16 = vadd.f32 %v2799_v42, %v8735_v23 }
 0x42b   :  { %5918 = vmatmul.msk.bf16.gmra.mxu0 %vm187_vm0, %v8541_v49 }
 0x42c   :  { %5925 = vmatmul.msk.bf16.gmra.mxu1 %vm187_vm0, %v8541_v49  ;;  %5960 = vmatmul.msk.bf16.gmra.mxu2 %vm187_vm0, %v6441_v1 }
 0x42d   :  { %5967 = vmatmul.msk.bf16.gmra.mxu3 %vm187_vm0, %v6441_v1 }
 0x42f   :  { %v2843_v14 = vpop.f32.mrf.mxu2 }
 0x430   :  { %v8924_v2 = vadd.f32 %v2843_v14, %v2756_v57  ;;  %v2887_v5 = vpop.f32.mrf.mxu3  ;;  %v2757_v52 = vpop.f32.mrf.mxu0 }
 0x431   :  { %v8926_v38 = vadd.f32 %v2887_v5, %v2800_v16  ;;  %v2801_v51 = vpop.f32.mrf.mxu1  ;;  %v2758_v39 = vadd.f32 %v2757_v52, %v8743_v3  ;;  %v6443_v16 = vld [vmem:[%s11334_s0 + $0xe8] sm:$0xff] }
 0x432   :  { %v2802_v49 = vadd.f32 %v2801_v51, %v8745_v34  ;;  %v3450_v5 = vld [vmem:[%s11336_s3 + $0xa8] sm:$0xf] }
 0x433   :  { %6027 = vmatpush.msk.msra.mxu3 %vm3505_vm1, %v3450_v5 }
 0x437   :  { %v2845_v13 = vpop.f32.mrf.mxu2 }
 0x438   :  { %v8930_v9 = vadd.f32 %v2845_v13, %v2758_v39  ;;  %v2889_v1 = vpop.f32.mrf.mxu3  ;;  %v8935_v23 = vpop.f32.mrf.mxu0  ;;  %v3447_v13 = vld [vmem:[%s11336_s3 + $0x90] sm:$0xff] }
 0x439   :  { %v8937_v48 = vadd.f32 %v2889_v1, %v2802_v49  ;;  %v8939_v31 = vpop.f32.mrf.mxu1  ;;  %v3448_v49 = vld [vmem:[%s11336_s3 + $0x98] sm:$0xff]  ;;  %v3446_v1 = vld [vmem:[%s11336_s3 + $0x88] sm:$0xff] }
 0x43a   :  { %3695 = vmatpush.msra.mxu3 %v3448_v49  ;;  %v3442_v49 = vld [vmem:[%s11336_s3 + $0x68] sm:$0xff] }
 0x43b   :  { %5919 = vmatmul.msk.bf16.gmra.mxu0 %vm187_vm0, %v8566_v53 }
 0x43c   :  { %5926 = vmatmul.msk.bf16.gmra.mxu1 %vm187_vm0, %v8566_v53  ;;  %5961 = vmatmul.msk.bf16.gmra.mxu2 %vm187_vm0, %v6442_v33  ;;  %v3449_v53 = vld [vmem:[%s11336_s3 + $0xa0] sm:$0xf] }
 0x43d   :  { %5968 = vmatmul.msk.bf16.gmra.mxu3 %vm187_vm0, %v6442_v33  ;;  %6016 = vmatpush.msk.msra.mxu2 %vm3505_vm1, %v3449_v53  ;;  %v3445_v33 = vld [vmem:[%s11336_s3 + $0x80] sm:$0xff]  ;;  %v3443_v53 = vld [vmem:[%s11336_s3 + $0x70] sm:$0xff] }
 0x43e   :  { %3696 = vmatpush.msra.mxu3 %v3446_v1  ;;  %v3439_v1 = vld [vmem:[%s11336_s3 + $0x50] sm:$0xff] }
 0x43f   :  { %v8947_v3 = vpop.f32.mrf.mxu2  ;;  %3648 = vmatpush.msra.mxu2 %v3447_v13 }
 0x440   :  { %v8949_v34 = vpop.f32.mrf.mxu3  ;;  %v8951_v42 = vpop.f32.mrf.mxu0 }
 0x441   :  { %v8953_v57 = vpop.f32.mrf.mxu1  ;;  %3649 = vmatpush.msra.mxu2 %v3445_v33 }
 0x443   :  { %3650 = vmatpush.msra.mxu2 %v3443_v53  ;;  %v3440_v53 = vld [vmem:[%s11336_s3 + $0x58] sm:$0xff] }
 0x447   :  { %v8955_v14 = vpop.f32.mrf.mxu2 }
 0x448   :  { %v8966_v52 = vpop.f32.mrf.mxu3  ;;  %v8968_v51 = vpop.f32.mrf.mxu0 }
 0x449   :  { %v8972_v39 = vpop.f32.mrf.mxu1 }
 0x44b   :  { %5920 = vmatmul.msk.bf16.gmra.mxu0 %vm187_vm0, %v8591_v47 }
 0x44c   :  { %5927 = vmatmul.msk.bf16.gmra.mxu1 %vm187_vm0, %v8591_v47  ;;  %5962 = vmatmul.msk.bf16.gmra.mxu2 %vm187_vm0, %v6443_v16  ;;  %v3444_v47 = vld [vmem:[%s11336_s3 + $0x78] sm:$0xff] }
 0x44d   :  { %5969 = vmatmul.msk.bf16.gmra.mxu3 %vm187_vm0, %v6443_v16  ;;  %v3441_v16 = vld [vmem:[%s11336_s3 + $0x60] sm:$0xff] }
 0x44e   :  { %3651 = vmatpush.msra.mxu2 %v3441_v16  ;;  %3697 = vmatpush.msra.mxu3 %v3444_v47  ;;  %v3437_v16 = vld [vmem:[%s11336_s3 + $0x40] sm:$0xff]  ;;  %v3438_v47 = vld [vmem:[%s11336_s3 + $0x48] sm:$0xff] }
 0x44f   :  { %v8995_v5 = vpop.f32.mrf.mxu2 }
 0x450   :  { %v9003_v13 = vpop.f32.mrf.mxu3  ;;  %v9005_v33 = vpop.f32.mrf.mxu0  ;;  %3652 = vmatpush.msra.mxu2 %v3439_v1  ;;  %3698 = vmatpush.msra.mxu3 %v3442_v49  ;;  %v6444_v49 = vld [vmem:[%s11334_s0 + $0xf0] sm:$0xff] }
 0x451   :  { %v9010_v28 = vpop.f32.mrf.mxu1 }
 0x452   :  { %3653 = vmatpush.msra.mxu2 %v3437_v16  ;;  %3699 = vmatpush.msra.mxu3 %v3440_v53  ;;  %v3433_v16 = vld [vmem:[%s11336_s3 + $0x20] sm:$0xff] }
 0x454   :  { %3654 = vmatpush.msra.mxu2 %v3435_v8  ;;  %3700 = vmatpush.msra.mxu3 %v3438_v47  ;;  %v3431_v8 = vld [vmem:[%s11336_s3 + $0x10] sm:$0xff]  ;;  %v3434_v47 = vld [vmem:[%s11336_s3 + $0x28] sm:$0xff] }
 0x456   :  { %3655 = vmatpush.msra.mxu2 %v3433_v16  ;;  %3701 = vmatpush.msra.mxu3 %v3436_v62  ;;  %v3432_v62 = vld [vmem:[%s11336_s3 + $0x18] sm:$0xff] }
 0x457   :  { %v9027_v1 = vpop.f32.mrf.mxu2 }
 0x458   :  { %v9038_v36 = vpop.f32.mrf.mxu3  ;;  %v9040_v37 = vpop.f32.mrf.mxu0  ;;  %3656 = vmatpush.msra.mxu2 %v3431_v8  ;;  %3702 = vmatpush.msra.mxu3 %v3434_v47  ;;  %v3430_v8 = vld [vmem:[%s11336_s3 + $0x8] sm:$0xff] }
 0x459   :  { %11829 = vst [vmem:[#allocation21_spill] sm:$0xff] %v9040_v37  ;;  %v9042_v53 = vpop.f32.mrf.mxu1 }
 0x45a   :  { %11830 = vst [vmem:[#allocation52_spill] sm:$0xff] %v9042_v53  ;;  %3657 = vmatpush.msra.mxu2 %v3429_v54  ;;  %3703 = vmatpush.msra.mxu3 %v3432_v62  ;;  %v6445_v54 = vld [vmem:[%s11334_s0 + $0xf8] sm:$0xff] }
 0x45b   :  { %5921 = vmatmul.msk.bf16.gmra.mxu0 %vm187_vm0, %v8616_v55 }
 0x45c   :  { %5928 = vmatmul.msk.bf16.gmra.mxu1 %vm187_vm0, %v8616_v55  ;;  %5963 = vmatmul.msk.bf16.gmra.mxu2 %vm187_vm0, %v6444_v49 }
 0x45d   :  { %5970 = vmatmul.msk.bf16.gmra.mxu3 %vm187_vm0, %v6444_v49 }
 0x45e   :  { %3704 = vmatpush.msra.mxu3 %v3430_v8 }
 0x45f   :  { %v9062_v16 = vpop.f32.mrf.mxu2 }
 0x460   :  { %11831 = vst [vmem:[#allocation24_spill] sm:$0xff] %v9062_v16  ;;  %v9067_v32 = vpop.f32.mrf.mxu3  ;;  %v9069_v55 = vpop.f32.mrf.mxu0 }
 0x461   :  { %11832 = vst [vmem:[#allocation54_spill] sm:$0xff] %v9067_v32  ;;  %v9071_v53 = vpop.f32.mrf.mxu1  ;;  %v1935_v32 = vpop.permute.xlu2 %1934 }
 0x462   :  { %11833 = vst [vmem:[#allocation26_spill] sm:$0xff] %v9069_v55  ;;  %v1931_v55 = vpop.permute.xlu0 %1930 }
 0x463   :  { %11834 = vst [vmem:[#allocation34_spill] sm:$0xff] %v9071_v53  ;;  %v1985_v8 = vsel %vm1984_vm2, %v1929_v21, %v1931_v55  ;;  %v1986_v21 = vsel %vm1984_vm2, %v1933_v24, %v1935_v32 }
 0x467   :  { %v9073_v49 = vpop.f32.mrf.mxu2 }
 0x468   :  { %11835 = vst [vmem:[#allocation27_spill] sm:$0xff] %v9073_v49  ;;  %v9078_v47 = vpop.f32.mrf.mxu3  ;;  %v9080_v16 = vpop.f32.mrf.mxu0 }
 0x469   :  { %11836 = vst [vmem:[#allocation28_spill] sm:$0xff] %v9078_v47  ;;  %v9082_v62 = vpop.f32.mrf.mxu1  ;;  %v1937_v24 = vpop.permute.xlu2 %1936 }
 0x46a   :  { %11837 = vst [vmem:[#allocation31_spill] sm:$0xff] %v9080_v16 }
 0x46b   :  { %11838 = vst [vmem:[#allocation32_spill] sm:$0xff] %v9082_v62  ;;  %5922 = vmatmul.msk.bf16.gmra.mxu0 %vm187_vm0, %v8641_v50  ;;  %v2013_v62 = vmax.f32 %v8113_v11, %v1985_v8  ;;  %v11846_v11 = vld [vmem:[#allocation57_spill] sm:$0xff] }
 0x46c   :  { %5929 = vmatmul.msk.bf16.gmra.mxu1 %vm187_vm0, %v8641_v50  ;;  %5964 = vmatmul.msk.bf16.gmra.mxu2 %vm187_vm0, %v6445_v54  ;;  %v9103_v50 = vld [vmem:[%s11335_s2] ss:$0 sm:$0xff]  ;;  %v2014_v8 = vmax.f32 %v11846_v11, %v1986_v21 }
 0x46d   :  { %5971 = vmatmul.msk.bf16.gmra.mxu3 %vm187_vm0, %v6445_v54  ;;  %v2031_v54 = vadd.f32 %v9103_v50, %v2013_v62 }
 0x46e   :  { %v2032_v62 = vadd.f32 %v9103_v50, %v2014_v8 }
 0x46f   :  { %v9091_v47 = vpop.f32.mrf.mxu2 }
 0x470   :  { %11839 = vst [vmem:[#allocation35_spill] sm:$0xff] %v9091_v47  ;;  %v9093_v16 = vpop.f32.mrf.mxu3  ;;  %v9095_v49 = vpop.f32.mrf.mxu0  ;;  %v2046_v21 = vmax.f32 %v2032_v62, 0.0 }
 0x471   :  { %11840 = vst [vmem:[#allocation36_spill] sm:$0xff] %v9093_v16  ;;  %v9098_v53 = vpop.f32.mrf.mxu1 }
 0x472   :  { %11841 = vst [vmem:[#allocation64_spill] sm:$0xff] %v9095_v49  ;;  %v1939_v49 = vpop.permute.xlu0 %1938 }
 0x473   :  { %11842 = vst [vmem:[#allocation40_spill] sm:$0xff] %v9098_v53  ;;  %v2045_v53 = vmax.f32 %v2031_v54, 0.0  ;;  %v1987_v32 = vsel %vm1984_vm2, %v1937_v24, %v1939_v49 }
 0x474   :  { %v2015_v54 = vmax.f32 %v8147_v41, %v1987_v32 }
 0x477   :  { %v9107_v55 = vpop.f32.mrf.mxu2 }
 0x478   :  { %11843 = vst [vmem:[#allocation65_spill] sm:$0xff] %v9107_v55  ;;  %v9109_v47 = vpop.f32.mrf.mxu3  ;;  %v9111_v16 = vpop.f32.mrf.mxu0 }
 0x479   :  { %11844 = vst [vmem:[#allocation43_spill] sm:$0xff] %v9109_v47  ;;  %v9114_v61 = vpop.f32.mrf.mxu1 }
 0x47a   :  { %11845 = vst [vmem:[#allocation67_spill] sm:$0xff] %v9111_v16  ;;  %v1941_v37 = vpop.permute.xlu0 %1940 }
 0x47b   :  { %11847 = vst [vmem:[#allocation45_spill] sm:$0xff] %v9114_v61  ;;  %v1943_v61 = vpop.permute.xlu1 %1942 }
 0x47c   :  { %6017 = vmatmul.msk.f32.vlgmr.msra.gmra.mxu2 %vm3474_vm3, %v2045_v53  ;;  %v1988_v49 = vsel %vm1984_vm2, %v1941_v37, %v1943_v61  ;;  %v9150_v61 = vld [vmem:[%s11336_s3 + $0x158] sm:$0xf]  ;;  %v1947_v37 = vpop.permute.xlu2 %1946 }
 0x47d   :  { %6028 = vmatmul.msk.f32.vlgmr.msra.gmra.mxu3 %vm3474_vm3, %v2045_v53  ;;  %v2033_v53 = vadd.f32 %v9103_v50, %v2015_v54  ;;  %v2016_v41 = vmax.f32 %v8155_v20, %v1988_v49  ;;  %6005 = vmatpush.msk.msra.mxu1 %vm3505_vm1, %v9150_v61 }
 0x47f   :  { %v9120_v55 = vpop.f32.mrf.mxu2  ;;  %v9137_v62 = vmax.f32 %v2033_v53, 0.0  ;;  %v2034_v20 = vadd.f32 %v9103_v50, %v2016_v41 }
 0x480   :  { %11848 = vst [vmem:[#allocation48_spill] sm:$0xff] %v9120_v55  ;;  %v9122_v47 = vpop.f32.mrf.mxu3  ;;  %v9124_v16 = vpop.f32.mrf.mxu0 }
 0x481   :  { %11849 = vst [vmem:[#allocation70_spill] sm:$0xff] %v9122_v47  ;;  %v9127_v11 = vpop.f32.mrf.mxu1  ;;  %v9162_v63 = vmax.f32 %v2034_v20, 0.0 }
 0x482   :  { %11850 = vst [vmem:[#allocation50_spill] sm:$0xff] %v9124_v16 }
 0x483   :  { %11851 = vst [vmem:[#allocation71_spill] sm:$0xff] %v9127_v11  ;;  %v1945_v54 = vpop.permute.xlu1 %1944 }
 0x484   :  { %6018 = vmatmul.msk.f32.gmra.mxu2 %vm3474_vm3, %v2046_v21  ;;  %11854 = vst [vmem:[#allocation57_spill] sm:$0xff] %v9137_v62 }
 0x485   :  { %6029 = vmatmul.msk.f32.gmra.mxu3 %vm3474_vm3, %v2046_v21  ;;  %v9145_v21 = vld [vmem:[%s11336_s3 + $0x150] sm:$0xf] }
 0x486   :  { %11855 = vst [vmem:[#allocation79_spill] sm:$0xff] %v9145_v21  ;;  %5994 = vmatpush.msk.msra.mxu0 %vm3505_vm1, %v9145_v21 }
 0x487   :  { %v9133_v8 = vpop.f32.mrf.mxu2 }
 0x488   :  { %11852 = vst [vmem:[#allocation53_spill] sm:$0xff] %v9133_v8  ;;  %v9135_v24 = vpop.f32.mrf.mxu3  ;;  %v2954_v55 = vpop.f32.mrf.mxu0 }
 0x489   :  { %11853 = vst [vmem:[#allocation46_spill] sm:$0xff] %v9135_v24  ;;  %v2998_v32 = vpop.f32.mrf.mxu1  ;;  %v3033_v53 = vadd.f32 %v2954_v55, %v8903_v58  ;;  %v1989_v24 = vsel %vm1984_vm2, %v1945_v54, %v1947_v37 }
 0x48a   :  { %v3034_v11 = vadd.f32 %v2998_v32, %v8905_v59  ;;  %v2017_v58 = vmax.f32 %v8180_v4, %v1989_v24  ;;  %v1951_v59 = vpop.permute.xlu0 %1950  ;;  %v9184_v4 = vld [vmem:[%s11336_s3 + $0x148] sm:$0xff] }
 0x48b   :  { %3565 = vmatpush.msra.mxu1 %v9184_v4 }
 0x48c   :  { %6019 = vmatmul.msk.f32.gmra.mxu2 %vm3474_vm3, %v9137_v62 }
 0x48d   :  { %6030 = vmatmul.msk.f32.gmra.mxu3 %vm3474_vm3, %v9137_v62 }
 0x48f   :  { %v3140_v49 = vpop.f32.mrf.mxu2 }
 0x490   :  { %v3219_v8 = vadd.f32 %v3140_v49, %v3033_v53  ;;  %v3184_v47 = vpop.f32.mrf.mxu3  ;;  %v2956_v16 = vpop.f32.mrf.mxu0 }
 0x491   :  { %v3220_v21 = vadd.f32 %v3184_v47, %v3034_v11  ;;  %v3000_v41 = vpop.f32.mrf.mxu1  ;;  %v3035_v32 = vadd.f32 %v2956_v16, %v8909_v44  ;;  %v2035_v47 = vadd.f32 %v9103_v50, %v2017_v58 }
 0x492   :  { %v9165_v62 = vmax.f32 %v8690_v43, %v3219_v8  ;;  %v9179_v43 = vld [vmem:[%s11336_s3 + $0x140] sm:$0xff]  ;;  %v3036_v16 = vadd.f32 %v3000_v41, %v8914_v19 }
 0x493   :  { %v3248_v55 = vmax.f32 %v8693_v12, %v3220_v21  ;;  %v1949_v12 = vpop.permute.xlu2 %1948  ;;  %3518 = vmatpush.msra.mxu0 %v9179_v43  ;;  %v9194_v53 = vmax.f32 %v2035_v47, 0.0 }
 0x494   :  { %3303 = vrot.lane.b32.xlu1 %v9165_v62, %s6529_s23  ;;  %6020 = vmatmul.msk.f32.gmra.mxu2 %vm3474_vm3, %v9162_v63  ;;  %v1990_v44 = vsel %vm1984_vm2, %v1949_v12, %v1951_v59 }
 0x495   :  { %6031 = vmatmul.msk.f32.gmra.mxu3 %vm3474_vm3, %v9162_v63  ;;  %v2018_v49 = vmax.f32 %v8190_v7, %v1990_v44 }
 0x497   :  { %v3142_v11 = vpop.f32.mrf.mxu2  ;;  %v2036_v19 = vadd.f32 %v9103_v50, %v2018_v49 }
 0x498   :  { %v3221_v8 = vadd.f32 %v3142_v11, %v3035_v32  ;;  %v3186_v24 = vpop.f32.mrf.mxu3  ;;  %v2959_v21 = vpop.f32.mrf.mxu0 }
 0x499   :  { %v3222_v54 = vadd.f32 %v3186_v24, %v3036_v16  ;;  %v3003_v20 = vpop.f32.mrf.mxu1  ;;  %v9211_v11 = vmax.f32 %v2036_v19, 0.0 }
 0x49a   :  { %v9192_v37 = vmax.f32 %v8709_v40, %v3221_v8  ;;  %v3037_v40 = vadd.f32 %v2959_v21, %v8924_v2  ;;  %v3038_v7 = vadd.f32 %v3003_v20, %v8926_v38  ;;  %v9220_v2 = vld [vmem:[%s11336_s3 + $0x130] sm:$0xff] }
 0x49b   :  { %v3250_v58 = vmax.f32 %v8712_v60, %v3222_v54  ;;  %11856 = vst [vmem:[#allocation80_spill] sm:$0xff] %v9211_v11  ;;  %3519 = vmatpush.msra.mxu0 %v9220_v2  ;;  %v2761_v54 = vadd.f32 %v8935_v23, %v8762_v25 }
 0x49c   :  { %3305 = vrot.lane.b32.xlu1 %v3248_v55, %s6529_s23  ;;  %3307 = vrot.lane.b32.xlu0 %v9192_v37, %s6529_s23 }
 0x49d   :  { %6021 = vmatmul.msk.f32.gmra.mxu2 %vm3474_vm3, %v9194_v53  ;;  %6032 = vmatmul.msk.f32.gmra.mxu3 %vm3474_vm3, %v9194_v53 }
 0x49f   :  { %v3145_v41 = vpop.f32.mrf.mxu2 }
 0x4a0   :  { %v3223_v59 = vadd.f32 %v3145_v41, %v3037_v40  ;;  %v3189_v60 = vpop.f32.mrf.mxu3  ;;  %v2961_v32 = vpop.f32.mrf.mxu0  ;;  %v2925_v40 = vadd.f32 %v8947_v3, %v2761_v54 }
 0x4a1   :  { %v3224_v12 = vadd.f32 %v3189_v60, %v3038_v7  ;;  %v3005_v47 = vpop.f32.mrf.mxu1  ;;  %v2763_v7 = vadd.f32 %v8951_v42, %v8772_v10  ;;  %v9279_v10 = vld [vmem:[%s11336_s3 + $0x110] sm:$0xff]  ;;  %v11860_v42 = vld [vmem:[#allocation69_spill] sm:$0xff] }
 0x4a2   :  { %v9209_v55 = vmax.f32 %v8719_v6, %v3223_v59  ;;  %v9225_v6 = vld [vmem:[%s11336_s3 + $0x138] sm:$0xff]  ;;  %v3040_v16 = vadd.f32 %v3005_v47, %v8937_v48  ;;  %v9250_v48 = vld [vmem:[%s11336_s3 + $0x120] sm:$0xff] }
 0x4a3   :  { %v3252_v44 = vmax.f32 %v8722_v46, %v3224_v12  ;;  %v3039_v46 = vadd.f32 %v2961_v32, %v8930_v9  ;;  %3566 = vmatpush.msra.mxu1 %v9225_v6  ;;  %3520 = vmatpush.msra.mxu0 %v9250_v48  ;;  %v2927_v12 = vadd.f32 %v8955_v14, %v2763_v7 }
 0x4a4   :  { %3309 = vrot.lane.b32.xlu1 %v3250_v58, %s6529_s23  ;;  %1952 = vrot.lane.b32.xlu0 %v8215_v27, %s6529_s23  ;;  %v2805_v58 = vadd.f32 %v8939_v31, %v8764_v26  ;;  %v2768_v7 = vadd.f32 %v9005_v33, %v8801_v45 }
 0x4a5   :  { %6022 = vmatmul.msk.f32.gmra.mxu2 %vm3474_vm3, %v9211_v11  ;;  %6033 = vmatmul.msk.f32.gmra.mxu3 %vm3474_vm3, %v9211_v11 }
 0x4a6   :  { %3313 = vrot.lane.b32.xlu2 %v3252_v44, %s6529_s23  ;;  %v2926_v25 = vadd.f32 %v8949_v34, %v2805_v58  ;;  %v2807_v34 = vadd.f32 %v8953_v57, %v8774_v35  ;;  %v11857_v44 = vld [vmem:[#allocation66_spill] sm:$0xff]  ;;  %3521 = vmatpush.msra.mxu0 %v9279_v10  ;;  %v11861_v57 = vld [vmem:[#allocation59_spill] sm:$0xff] }
 0x4a7   :  { %v3147_v38 = vpop.f32.mrf.mxu2  ;;  %v11862_v14 = vmax.f32 %v11860_v42, %v11861_v57 }
 0x4a8   :  { %v3225_v8 = vadd.f32 %v3147_v38, %v3039_v46  ;;  %v3191_v24 = vpop.f32.mrf.mxu3  ;;  %v2964_v21 = vpop.f32.mrf.mxu0  ;;  %v11858_v46 = vld [vmem:[#allocation7_spill] sm:$0xff] }
 0x4a9   :  { %v3226_v49 = vadd.f32 %v3191_v24, %v3040_v16  ;;  %v3008_v9 = vpop.f32.mrf.mxu1  ;;  %v11859_v38 = vmax.f32 %v11857_v44, %v11858_v46  ;;  %v2931_v44 = vadd.f32 %v9027_v1, %v2768_v7  ;;  %v11868_v46 = vld [vmem:[#allocation3_spill] sm:$0xff]  ;;  %v11870_v1 = vld [vmem:[#allocation21_spill] sm:$0xff]  ;;  %v11879_v7 = vld [vmem:[#allocation76_spill] sm:$0xff] }
 0x4aa   :  { %v9239_v20 = vmax.f32 %v8738_v56, %v3225_v8  ;;  %v9255_v56 = vld [vmem:[%s11336_s3 + $0x128] sm:$0xff]  ;;  %v3042_v23 = vadd.f32 %v3008_v9, %v2926_v25  ;;  %v11863_v25 = vld [vmem:[#allocation58_spill] sm:$0xff] }
 0x4ab   :  { %v3254_v19 = vmax.f32 %v8741_v17, %v3226_v49  ;;  %3567 = vmatpush.msra.mxu1 %v9255_v56  ;;  %v3041_v17 = vadd.f32 %v2964_v21, %v2925_v40  ;;  %v2766_v49 = vadd.f32 %v8968_v51, %v8791_v22  ;;  %v2810_v40 = vadd.f32 %v8972_v39, %v8793_v30  ;;  %v11864_v22 = vld [vmem:[#allocation77_spill] sm:$0xff]  ;;  %v9314_v30 = vld [vmem:[%s11336_s3 + $0x100] sm:$0xff]  ;;  %v9319_v39 = vld [vmem:[%s11336_s3 + $0x108] sm:$0xff] }
 0x4ac   :  { %3311 = vrot.lane.b32.xlu1 %v9209_v55, %s6529_s23  ;;  %3522 = vmatpush.msra.mxu0 %v9314_v30 }
 0x4ad   :  { %3317 = vrot.lane.b32.xlu0 %v3254_v19, %s6529_s23  ;;  %v2929_v19 = vadd.f32 %v8995_v5, %v2766_v49 }
 0x4ae   :  { %3315 = vrot.lane.b32.xlu2 %v9239_v20, %s6529_s23 }
 0x4af   :  { %v3150_v26 = vpop.f32.mrf.mxu2 }
 0x4b0   :  { %v3227_v31 = vadd.f32 %v3150_v26, %v3041_v17  ;;  %v3194_v3 = vpop.f32.mrf.mxu3  ;;  %v2966_v41 = vpop.f32.mrf.mxu0  ;;  %v2930_v26 = vadd.f32 %v9003_v13, %v2810_v40  ;;  %v11875_v40 = vld [vmem:[#allocation14_spill] sm:$0xff] }
 0x4b1   :  { %v3228_v60 = vadd.f32 %v3194_v3, %v3042_v23  ;;  %v3010_v32 = vpop.f32.mrf.mxu1  ;;  %v3043_v35 = vadd.f32 %v2966_v41, %v2927_v12 }
 0x4b2   :  { %v9266_v59 = vmax.f32 %v8748_v0, %v3227_v31  ;;  %v9284_v0 = vld [vmem:[%s11336_s3 + $0x118] sm:$0xff] }
 0x4b3   :  { %v3256_v47 = vmax.f32 %v8751_v18, %v3228_v60  ;;  %3568 = vmatpush.msra.mxu1 %v9284_v0  ;;  %v2928_v18 = vadd.f32 %v8966_v52, %v2807_v34  ;;  %v11867_v60 = vld [vmem:[#allocation2_spill] sm:$0xff] }
 0x4b4   :  { %1954 = vrot.lane.b32.xlu1 %v11859_v38, %s6529_s23 }
 0x4b5   :  { %3319 = vrot.lane.b32.xlu0 %v9266_v59, %s6529_s23  ;;  %v3044_v8 = vadd.f32 %v3010_v32, %v2928_v18  ;;  %3569 = vmatpush.msra.mxu1 %v9319_v39 }
 0x4b6   :  { %1958 = vrot.lane.b32.xlu2 %v11862_v14, %s6529_s23 }
 0x4b7   :  { %v3152_v16 = vpop.f32.mrf.mxu2 }
 0x4b8   :  { %v3229_v24 = vadd.f32 %v3152_v16, %v3043_v35  ;;  %v3196_v21 = vpop.f32.mrf.mxu3  ;;  %v2969_v54 = vpop.f32.mrf.mxu0  ;;  %v11871_v16 = vld [vmem:[#allocation6_spill] sm:$0xff] }
 0x4b9   :  { %v3230_v52 = vadd.f32 %v3196_v21, %v3044_v8  ;;  %v3013_v58 = vpop.f32.mrf.mxu1  ;;  %v3045_v23 = vadd.f32 %v2969_v54, %v2929_v19  ;;  %v11873_v54 = vld [vmem:[#allocation52_spill] sm:$0xff] }
 0x4ba   :  { %v9298_v9 = vmax.f32 %v8767_v29, %v3229_v24  ;;  %v11865_v29 = vld [vmem:[#allocation60_spill] sm:$0xff]  ;;  %v3046_v13 = vadd.f32 %v3013_v58, %v2930_v26  ;;  %v9357_v26 = vld [vmem:[%s11336_s3 + $0xf8] sm:$0xff] }
 0x4bb   :  { %v3258_v17 = vmax.f32 %v11863_v25, %v3230_v52  ;;  %v11866_v51 = vmax.f32 %v11864_v22, %v11865_v29  ;;  %v11874_v52 = vld [vmem:[#allocation24_spill] sm:$0xff]  ;;  %v11876_v25 = vld [vmem:[#allocation10_spill] sm:$0xff]  ;;  %3570 = vmatpush.msra.mxu1 %v9357_v26 }
 0x4bc   :  { %3321 = vrot.lane.b32.xlu1 %v3256_v47, %s6529_s23  ;;  %v2812_v47 = vadd.f32 %v9010_v28, %v8803_v15  ;;  %v11869_v28 = vld [vmem:[#allocation42_spill] sm:$0xff] }
 0x4bd   :  { %1962 = vrot.lane.b32.xlu0 %v11866_v51, %s6529_s23  ;;  %v2771_v14 = vadd.f32 %v11870_v1, %v11869_v28  ;;  %v11878_v51 = vld [vmem:[#allocation11_spill] sm:$0xff]  ;;  %v11886_v1 = vld [vmem:[#allocation28_spill] sm:$0xff] }
 0x4be   :  { %3325 = vrot.lane.b32.xlu2 %v3258_v17, %s6529_s23  ;;  %v2932_v18 = vadd.f32 %v9038_v36, %v2812_v47  ;;  %v11872_v36 = vld [vmem:[#allocation63_spill] sm:$0xff]  ;;  %v9352_v17 = vld [vmem:[%s11336_s3 + $0xf0] sm:$0xff] }
 0x4bf   :  { %v3155_v5 = vpop.f32.mrf.mxu2  ;;  %v2815_v49 = vadd.f32 %v11873_v54, %v11872_v36  ;;  %v2933_v58 = vadd.f32 %v11874_v52, %v2771_v14  ;;  %3523 = vmatpush.msra.mxu0 %v9352_v17  ;;  %v9384_v28 = vld [vmem:[%s11336_s3 + $0xe8] sm:$0xff] }
 0x4c0   :  { %v3231_v31 = vadd.f32 %v3155_v5, %v3045_v23  ;;  %v3199_v3 = vpop.f32.mrf.mxu3  ;;  %v2971_v41 = vpop.f32.mrf.mxu0  ;;  %v11877_v23 = vld [vmem:[#allocation54_spill] sm:$0xff]  ;;  %3571 = vmatpush.msra.mxu1 %v9384_v28 }
 0x4c1   :  { %v3232_v34 = vadd.f32 %v3199_v3, %v3046_v13  ;;  %v3015_v12 = vpop.f32.mrf.mxu1  ;;  %v3047_v35 = vadd.f32 %v2971_v41, %v2931_v44  ;;  %v2934_v22 = vadd.f32 %v11877_v23, %v2815_v49 }
 0x4c2   :  { %v9326_v32 = vmax.f32 %v11867_v60, %v3231_v31  ;;  %v3048_v33 = vadd.f32 %v3015_v12, %v2932_v18  ;;  %v11880_v60 = vld [vmem:[#allocation26_spill] sm:$0xff] }
 0x4c3   :  { %v3260_v38 = vmax.f32 %v11868_v46, %v3232_v34  ;;  %v2773_v34 = vadd.f32 %v11880_v60, %v11879_v7  ;;  %v11881_v12 = vld [vmem:[#allocation38_spill] sm:$0xff]  ;;  %v11892_v7 = vld [vmem:[#allocation36_spill] sm:$0xff] }
 0x4c4   :  { %3323 = vrot.lane.b32.xlu1 %v9298_v9, %s6529_s23  ;;  %v11883_v18 = vld [vmem:[#allocation34_spill] sm:$0xff] }
 0x4c5   :  { %3329 = vrot.lane.b32.xlu0 %v3260_v38, %s6529_s23  ;;  %v11882_v38 = vld [vmem:[#allocation72_spill] sm:$0xff] }
 0x4c6   :  { %3327 = vrot.lane.b32.xlu2 %v9326_v32, %s6529_s23 }
 0x4c7   :  { %v3157_v45 = vpop.f32.mrf.mxu2 }
 0x4c8   :  { %v3233_v42 = vadd.f32 %v3157_v45, %v3047_v35  ;;  %v3201_v57 = vpop.f32.mrf.mxu3  ;;  %v2974_v15 = vpop.f32.mrf.mxu0  ;;  %v2817_v35 = vadd.f32 %v11883_v18, %v11882_v38  ;;  %v11884_v45 = vld [vmem:[#allocation27_spill] sm:$0xff] }
 0x4c9   :  { %v3234_v24 = vadd.f32 %v3201_v57, %v3048_v33  ;;  %v3018_v21 = vpop.f32.mrf.mxu1  ;;  %v3049_v29 = vadd.f32 %v2974_v15, %v2933_v58  ;;  %v2935_v33 = vadd.f32 %v11884_v45, %v2773_v34  ;;  %v9379_v15 = vld [vmem:[%s11336_s3 + $0xe0] sm:$0xff]  ;;  %v11888_v58 = vld [vmem:[#allocation47_spill] sm:$0xff] }
 0x4ca   :  { %v9341_v8 = vmax.f32 %v11871_v16, %v3233_v42  ;;  %v3050_v13 = vadd.f32 %v3018_v21, %v2934_v22  ;;  %v11885_v42 = vld [vmem:[#allocation61_spill] sm:$0xff]  ;;  %3524 = vmatpush.msra.mxu0 %v9379_v15  ;;  %v2936_v14 = vadd.f32 %v11886_v1, %v2817_v35  ;;  %v11895_v35 = vld [vmem:[#allocation35_spill] sm:$0xff] }
 0x4cb   :  { %v3262_v19 = vmax.f32 %v11875_v40, %v3234_v24  ;;  %v11887_v24 = vld [vmem:[#allocation15_spill] sm:$0xff]  ;;  %v11889_v22 = vld [vmem:[#allocation9_spill] sm:$0xff] }
 0x4cc   :  { %1956 = vrot.lane.b32.xlu1 %v11876_v25, %s6529_s23 }
 0x4cd   :  { %3331 = vrot.lane.b32.xlu0 %v9341_v8, %s6529_s23 }
 0x4ce   :  { %1960 = vrot.lane.b32.xlu2 %v11878_v51, %s6529_s23 }
 0x4cf   :  { %v3160_v5 = vpop.f32.mrf.mxu2 }
 0x4d0   :  { %v3235_v31 = vadd.f32 %v3160_v5, %v3049_v29  ;;  %v3204_v3 = vpop.f32.mrf.mxu3  ;;  %v2976_v41 = vpop.f32.mrf.mxu0  ;;  %v11890_v29 = vld [vmem:[#allocation32_spill] sm:$0xff] }
 0x4d1   :  { %v3236_v44 = vadd.f32 %v3204_v3, %v3050_v13  ;;  %v3020_v46 = vpop.f32.mrf.mxu1  ;;  %v3051_v16 = vadd.f32 %v2976_v41, %v2935_v33  ;;  %v2820_v5 = vadd.f32 %v11890_v29, %v11889_v22  ;;  %v11891_v13 = vld [vmem:[#allocation51_spill] sm:$0xff]  ;;  %v9403_v3 = vld [vmem:[%s11336_s3 + $0xd0] sm:$0xff]  ;;  %v9408_v41 = vld [vmem:[%s11336_s3 + $0xd8] sm:$0xff] }
 0x4d2   :  { %v9369_v47 = vmax.f32 %v11881_v12, %v3235_v31  ;;  %v3052_v36 = vadd.f32 %v3020_v46, %v2936_v14  ;;  %3525 = vmatpush.msra.mxu0 %v9403_v3  ;;  %3572 = vmatpush.msra.mxu1 %v9408_v41  ;;  %v11893_v12 = vld [vmem:[#allocation8_spill] sm:$0xff]  ;;  %v11896_v33 = vld [vmem:[#allocation39_spill] sm:$0xff] }
 0x4d3   :  { %v3264_v57 = vmax.f32 %v11885_v42, %v3236_v44  ;;  %v2938_v60 = vadd.f32 %v11892_v7, %v2820_v5  ;;  %v11894_v44 = vld [vmem:[#allocation31_spill] sm:$0xff]  ;;  %v11897_v42 = vld [vmem:[#allocation64_spill] sm:$0xff]  ;;  %v11903_v5 = vld [vmem:[#allocation62_spill] sm:$0xff] }
 0x4d4   :  { %3333 = vrot.lane.b32.xlu1 %v3262_v19, %s6529_s23  ;;  %v2776_v46 = vadd.f32 %v11894_v44, %v11893_v12  ;;  %v11902_v29 = vld [vmem:[#allocation55_spill] sm:$0xff] }
 0x4d5   :  { %1964 = vrot.lane.b32.xlu0 %v11887_v24, %s6529_s23  ;;  %v11906_v44 = vld [vmem:[#allocation19_spill] sm:$0xff] }
 0x4d6   :  { %3337 = vrot.lane.b32.xlu2 %v3264_v57, %s6529_s23  ;;  %v2937_v45 = vadd.f32 %v11895_v35, %v2776_v46  ;;  %v2778_v57 = vadd.f32 %v11897_v42, %v11896_v33  ;;  %v9441_v46 = vld [vmem:[%s11336_s3 + $0xc8] sm:$0xff]  ;;  %v11909_v42 = vld [vmem:[#allocation37_spill] sm:$0xff] }
 0x4d7   :  { %v3162_v21 = vpop.f32.mrf.mxu2  ;;  %3573 = vmatpush.msra.mxu1 %v9441_v46 }
 0x4d8   :  { %v3237_v54 = vadd.f32 %v3162_v21, %v3051_v16  ;;  %v3206_v49 = vpop.f32.mrf.mxu3  ;;  %v2979_v52 = vpop.f32.mrf.mxu0  ;;  %v11898_v16 = vld [vmem:[#allocation13_spill] sm:$0xff]  ;;  %v11899_v21 = vld [vmem:[#allocation40_spill] sm:$0xff] }
 0x4d9   :  { %v3238_v19 = vadd.f32 %v3206_v49, %v3052_v36  ;;  %v3023_v23 = vpop.f32.mrf.mxu1  ;;  %v2822_v36 = vadd.f32 %v11899_v21, %v11898_v16 }
 0x4da   :  { %v9393_v40 = vmax.f32 %v11888_v58, %v3237_v54  ;;  %v3054_v38 = vadd.f32 %v3023_v23, %v2938_v60  ;;  %v11900_v54 = vld [vmem:[#allocation65_spill] sm:$0xff]  ;;  %v3053_v58 = vadd.f32 %v2979_v52, %v2937_v45  ;;  %v11904_v23 = vmax.f32 %v11902_v29, %v11903_v5  ;;  %v9436_v52 = vld [vmem:[%s11336_s3 + $0xc0] sm:$0xff]  ;;  %v11907_v45 = vld [vmem:[#allocation4_spill] sm:$0xff] }
 0x4db   :  { %v3266_v31 = vmax.f32 %v11891_v13, %v3238_v19  ;;  %v2939_v49 = vadd.f32 %v11900_v54, %v2778_v57  ;;  %v11901_v19 = vld [vmem:[#allocation5_spill] sm:$0xff]  ;;  %3526 = vmatpush.msra.mxu0 %v9436_v52  ;;  %v11912_v54 = vld [vmem:[#allocation78_spill] sm:$0xff]  ;;  %v11915_v29 = vld [vmem:[#allocation56_spill] sm:$0xff] }
 0x4dc   :  { %3335 = vrot.lane.b32.xlu1 %v9369_v47, %s6529_s23  ;;  %v11916_v5 = vld [vmem:[#allocation68_spill] sm:$0xff] }
 0x4dd   :  { %3341 = vrot.lane.b32.xlu0 %v3266_v31, %s6529_s23  ;;  %v11905_v31 = vld [vmem:[#allocation43_spill] sm:$0xff] }
 0x4de   :  { %3339 = vrot.lane.b32.xlu2 %v9393_v40, %s6529_s23  ;;  %v2940_v7 = vadd.f32 %v11905_v31, %v2822_v36  ;;  %v9482_v31 = vld [vmem:[%s11336_s3 + $0x2b0] sm:$0xf] }
 0x4df   :  { %v3165_v34 = vpop.f32.mrf.mxu2  ;;  %11919 = vst [vmem:[#allocation69_spill] sm:$0xff] %v9482_v31  ;;  %6104 = vmatpush.msk.msrb.mxu2 %vm3505_vm1, %v9482_v31 }
 0x4e0   :  { %v3209_v18 = vpop.f32.mrf.mxu3  ;;  %v2981_v14 = vpop.f32.mrf.mxu0  ;;  %v3239_v60 = vadd.f32 %v3165_v34, %v3053_v58 }
 0x4e1   :  { %v3240_v1 = vadd.f32 %v3209_v18, %v3054_v38  ;;  %v3025_v13 = vpop.f32.mrf.mxu1  ;;  %v3055_v12 = vadd.f32 %v2981_v14, %v2939_v49  ;;  %v11911_v14 = vld [vmem:[#allocation12_spill] sm:$0xff]  ;;  %v11913_v49 = vld [vmem:[#allocation18_spill] sm:$0xff] }
 0x4e2   :  { %v3056_v34 = vadd.f32 %v3025_v13, %v2940_v7  ;;  %v9446_v33 = vmax.f32 %v11907_v45, %v3239_v60  ;;  %v11914_v58 = vmax.f32 %v11912_v54, %v11913_v49  ;;  %v11918_v13 = vld [vmem:[#allocation23_spill] sm:$0xff]  ;;  %v9487_v7 = vld [vmem:[%s11336_s3 + $0x2b8] sm:$0xf]  ;;  %v11921_v60 = vld [vmem:[#allocation44_spill] sm:$0xff] }
 0x4e3   :  { %v3268_v22 = vmax.f32 %v11901_v19, %v3240_v1  ;;  %v9464_v19 = vld [vmem:[%s11336_s3 + $0xb0] sm:$0xff]  ;;  %11920 = vst [vmem:[#allocation59_spill] sm:$0xff] %v9487_v7  ;;  %6115 = vmatpush.msk.msrb.mxu3 %vm3505_vm1, %v9487_v7  ;;  %v11927_v49 = vld [vmem:[#allocation22_spill] sm:$0xff]  ;;  %v11935_v7 = vld [vmem:[#allocation67_spill] sm:$0xff] }
 0x4e4   :  { %1966 = vrot.lane.b32.xlu1 %v11904_v23, %s6529_s23  ;;  %11908 = vst [vmem:[#allocation66_spill] sm:$0xff] %v9446_v33  ;;  %3527 = vmatpush.msra.mxu0 %v9464_v19  ;;  %v11917_v23 = vmax.f32 %v11915_v29, %v11916_v5  ;;  %v9509_v29 = vld [vmem:[%s11336_s3 + $0x208] sm:$0xf]  ;;  %v9514_v5 = vld [vmem:[%s11336_s3 + $0x2a0] sm:$0xff] }
 0x4e5   :  { %1968 = vrot.lane.b32.xlu0 %v11906_v44, %s6529_s23  ;;  %11928 = vst [vmem:[#allocation58_spill] sm:$0xff] %v9514_v5  ;;  %3926 = vmatpush.msrb.mxu2 %v9514_v5 }
 0x4e6   :  { %3345 = vrot.lane.b32.xlu2 %v3268_v22, %s6529_s23  ;;  %v9469_v22 = vld [vmem:[%s11336_s3 + $0xb8] sm:$0xff] }
 0x4e7   :  { %v3167_v38 = vpop.f32.mrf.mxu2  ;;  %3574 = vmatpush.msra.mxu1 %v9469_v22 }
 0x4e8   :  { %v3241_v18 = vadd.f32 %v3167_v38, %v3055_v12  ;;  %v3211_v35 = vpop.f32.mrf.mxu3  ;;  %v2984_v21 = vpop.f32.mrf.mxu0  ;;  %v11922_v12 = vld [vmem:[#allocation45_spill] sm:$0xff] }
 0x4e9   :  { %v3242_v1 = vadd.f32 %v3211_v35, %v3056_v34  ;;  %v2825_v38 = vadd.f32 %v11922_v12, %v11921_v60  ;;  %v11923_v34 = vld [vmem:[#allocation20_spill] sm:$0xff]  ;;  %v3028_v45 = vpop.f32.mrf.mxu1  ;;  %6071 = vmatpush.msk.msrb.mxu1 %vm3505_vm1, %v9509_v29  ;;  %v9523_v12 = vld [vmem:[%s11336_s3 + $0x2a8] sm:$0xff] }
 0x4ea   :  { %v9449_v57 = vmax.f32 %v11909_v42, %v3241_v18  ;;  %v11924_v18 = vld [vmem:[#allocation50_spill] sm:$0xff]  ;;  %11929 = vst [vmem:[#allocation77_spill] sm:$0xff] %v9523_v12  ;;  %3973 = vmatpush.msrb.mxu3 %v9523_v12 }
 0x4eb   :  { %v3270_v16 = vmax.f32 %v11911_v14, %v3242_v1  ;;  %v2783_v35 = vadd.f32 %v11924_v18, %v11923_v34  ;;  %v11925_v1 = vld [vmem:[#allocation70_spill] sm:$0xff]  ;;  %v11930_v18 = vld [vmem:[#allocation25_spill] sm:$0xff] }
 0x4ec   :  { %11910 = vst [vmem:[#allocation7_spill] sm:$0xff] %v9449_v57  ;;  %3343 = vrot.lane.b32.xlu1 %v9446_v33, %s6529_s23  ;;  %v2942_v14 = vadd.f32 %v11925_v1, %v2825_v38  ;;  %v11932_v1 = vld [vmem:[#allocation73_spill] sm:$0xff]  ;;  %v11936_v33 = vld [vmem:[#allocation48_spill] sm:$0xff] }
 0x4ed   :  { %3349 = vrot.lane.b32.xlu0 %v3270_v16, %s6529_s23  ;;  %v11926_v16 = vld [vmem:[#allocation53_spill] sm:$0xff] }
 0x4ee   :  { %3347 = vrot.lane.b32.xlu2 %v9449_v57, %s6529_s23  ;;  %v2943_v54 = vadd.f32 %v11926_v16, %v2783_v35  ;;  %v3058_v38 = vadd.f32 %v3028_v45, %v2942_v14  ;;  %v11931_v35 = vld [vmem:[#allocation30_spill] sm:$0xff]  ;;  %v11937_v14 = vld [vmem:[#allocation29_spill] sm:$0xff] }
 0x4ef   :  { %v3170_v36 = vpop.f32.mrf.mxu2  ;;  %v11933_v16 = vmax.f32 %v11931_v35, %v11932_v1  ;;  %v11940_v35 = vld [vmem:[#allocation74_spill] sm:$0xff]  ;;  %v11941_v1 = vld [vmem:[#allocation75_spill] sm:$0xff] }
 0x4f0   :  { %v2986_v42 = vpop.f32.mrf.mxu0 }
 0x4f1   :  { %v3059_v34 = vadd.f32 %v2986_v42, %v2943_v54 }
 0x4f4   :  { %1970 = vrot.lane.b32.xlu1 %v11914_v58, %s6529_s23  ;;  %v9504_v58 = vld [vmem:[%s11336_s3 + $0x200] sm:$0xf] }
 0x4f5   :  { %1976 = vrot.lane.b32.xlu0 %v11918_v13, %s6529_s23  ;;  %6060 = vmatpush.msk.msrb.mxu0 %vm3505_vm1, %v9504_v58  ;;  %v11934_v13 = vld [vmem:[#allocation16_spill] sm:$0xff] }
 0x4f6   :  { %1974 = vrot.lane.b32.xlu2 %v11917_v23, %s6529_s23  ;;  %v3214_v23 = vpop.f32.mrf.mxu3  ;;  %v2781_v31 = vadd.f32 %v11935_v7, %v11934_v13  ;;  %v11946_v7 = vld [vmem:[#allocation71_spill] sm:$0xff] }
 0x4f7   :  { %v3172_v60 = vpop.f32.mrf.mxu2  ;;  %v3244_v57 = vadd.f32 %v3214_v23, %v3058_v38  ;;  %v3030_v23 = vpop.f32.mrf.mxu1 }
 0x4f8   :  { %v2941_v45 = vadd.f32 %v11936_v33, %v2781_v31  ;;  %v9550_v33 = vld [vmem:[%s11336_s3 + $0x1f0] sm:$0xff]  ;;  %v11945_v31 = vld [vmem:[#allocation49_spill] sm:$0xff] }
 0x4f9   :  { %v3272_v54 = vmax.f32 %v11937_v14, %v3244_v57  ;;  %v9555_v57 = vld [vmem:[%s11336_s3 + $0x1f8] sm:$0xff]  ;;  %3777 = vmatpush.msrb.mxu0 %v9550_v33 }
 0x4fa   :  { %v3057_v42 = vadd.f32 %v2984_v21, %v2941_v45  ;;  %3824 = vmatpush.msrb.mxu1 %v9555_v57  ;;  %v9562_v21 = vld [vmem:[%s11336_s3 + $0x290] sm:$0xff] }
 0x4fb   :  { %11943 = vst [vmem:[#allocation2_spill] sm:$0xff] %v9562_v21  ;;  %3927 = vmatpush.msrb.mxu2 %v9562_v21 }
 0x4fc   :  { %1972 = vrot.lane.b32.xlu1 %v11927_v49, %s6529_s23  ;;  %v3245_v49 = vadd.f32 %v3172_v60, %v3059_v34  ;;  %v3243_v5 = vadd.f32 %v3170_v36, %v3057_v42  ;;  %v9567_v36 = vld [vmem:[%s11336_s3 + $0x298] sm:$0xff]  ;;  %v11947_v60 = vld [vmem:[#allocation46_spill] sm:$0xff] }
 0x4fd   :  { %1982 = vrot.lane.b32.xlu0 %v11933_v16, %s6529_s23  ;;  %v11942_v16 = vmax.f32 %v11940_v35, %v11941_v1  ;;  %11944 = vst [vmem:[#allocation3_spill] sm:$0xff] %v9567_v36  ;;  %3974 = vmatpush.msrb.mxu3 %v9567_v36  ;;  %v11948_v34 = vld [vmem:[#allocation41_spill] sm:$0xff]  ;;  %v9587_v35 = vld [vmem:[%s11336_s3 + $0x1e8] sm:$0xff] }
 0x4fe   :  { %1980 = vrot.lane.b32.xlu2 %v11930_v18, %s6529_s23  ;;  %v11938_v18 = vld [vmem:[#allocation17_spill] sm:$0xff]  ;;  %v3216_v42 = vpop.f32.mrf.mxu3  ;;  %3825 = vmatpush.msrb.mxu1 %v9587_v35  ;;  %v9599_v1 = vld [vmem:[%s11336_s3 + $0x288] sm:$0xff] }
 0x4ff   :  { %v9538_v44 = vmax.f32 %v11938_v18, %v3245_v49  ;;  %v2827_v49 = vadd.f32 %v11946_v7, %v11945_v31  ;;  %v9575_v18 = vmax.f32 %v11948_v34, %v3243_v5  ;;  %v9592_v5 = vld [vmem:[%s11336_s3 + $0x280] sm:$0xff]  ;;  %11951 = vst [vmem:[#allocation6_spill] sm:$0xff] %v9599_v1  ;;  %3975 = vmatpush.msrb.mxu3 %v9599_v1  ;;  %v9683_v1 = vld [vmem:[%s11336_s3 + $0x1b0] sm:$0xff] }
 0x500   :  { %v3314_v45 = vpop.permute.xlu2 %3313  ;;  %11950 = vst [vmem:[#allocation21_spill] sm:$0xff] %v9592_v5  ;;  %3928 = vmatpush.msrb.mxu2 %v9592_v5 }
 0x501   :  { %11939 = vst [vmem:[#allocation60_spill] sm:$0xff] %v9538_v44  ;;  %v2944_v38 = vadd.f32 %v11947_v60, %v2827_v49  ;;  %v11952_v60 = vld [vmem:[#allocation33_spill] sm:$0xff] }
 0x502   :  { %11949 = vst [vmem:[#allocation42_spill] sm:$0xff] %v9575_v18 }
 0x503   :  { %v3060_v14 = vadd.f32 %v3030_v23, %v2944_v38 }
 0x504   :  { %1978 = vrot.lane.b32.xlu1 %v11942_v16, %s6529_s23 }
 0x505   :  { %3355 = vrot.lane.b32.xlu0 %v9538_v44, %s6529_s23  ;;  %v3246_v16 = vadd.f32 %v3216_v42, %v3060_v14 }
 0x506   :  { %3353 = vrot.lane.b32.xlu2 %v3272_v54, %s6529_s23  ;;  %v3304_v13 = vpop.permute.xlu1 %3303  ;;  %v9582_v54 = vld [vmem:[%s11336_s3 + $0x1e0] sm:$0xff] }
 0x507   :  { %3778 = vmatpush.msrb.mxu0 %v9582_v54  ;;  %v3274_v38 = vmax.f32 %v11952_v60, %v3246_v16  ;;  %v9627_v16 = vld [vmem:[%s11336_s3 + $0x270] sm:$0xff] }
 0x508   :  { %v3316_v44 = vpop.permute.xlu2 %3315  ;;  %11954 = vst [vmem:[#allocation52_spill] sm:$0xff] %v9627_v16  ;;  %3929 = vmatpush.msrb.mxu2 %v9627_v16 }
 0x50c   :  { %3351 = vrot.lane.b32.xlu1 %v9575_v18, %s6529_s23 }
 0x50e   :  { %v3306_v31 = vpop.permute.xlu1 %3305  ;;  %v3308_v7 = vpop.permute.xlu0 %3307 }
 0x50f   :  { %v3359_v49 = vsel %vm1984_vm2, %v3304_v13, %v3306_v31  ;;  %v9622_v13 = vld [vmem:[%s11336_s3 + $0x1d8] sm:$0xff] }
 0x510   :  { %v3387_v23 = vmax.f32 %v9165_v62, %v3359_v49  ;;  %v9617_v62 = vld [vmem:[%s11336_s3 + $0x1d0] sm:$0xff]  ;;  %3826 = vmatpush.msrb.mxu1 %v9622_v13  ;;  %v9635_v49 = vld [vmem:[%s11336_s3 + $0x278] sm:$0xff] }
 0x511   :  { %3779 = vmatpush.msrb.mxu0 %v9617_v62  ;;  %11955 = vst [vmem:[#allocation24_spill] sm:$0xff] %v9635_v49  ;;  %3976 = vmatpush.msrb.mxu3 %v9635_v49 }
 0x512   :  { %v3401_v34 = vadd.f32 %v9103_v50, %v3387_v23 }
 0x514   :  { %v9607_v18 = vmax.f32 %v3401_v34, 0.0  ;;  %3357 = vrot.lane.b32.xlu1 %v3274_v38, %s6529_s23 }
 0x516   :  { %11953 = vst [vmem:[#allocation63_spill] sm:$0xff] %v9607_v18  ;;  %5995 = vmatmul.msk.f32.vlgmr.msra.gmra.mxu0 %vm3474_vm3, %v9607_v18  ;;  %6006 = vmatmul.msk.f32.vlgmr.msra.gmra.mxu1 %vm3474_vm3, %v9607_v18  ;;  %v3310_v42 = vpop.permute.xlu1 %3309  ;;  %v1953_v14 = vpop.permute.xlu0 %1952 }
 0x517   :  { %v3360_v31 = vsel %vm1984_vm2, %v3308_v7, %v3310_v42  ;;  %v9643_v7 = vpop.permute.xlu2 %1958  ;;  %v9657_v42 = vld [vmem:[%s11336_s3 + $0x1c8] sm:$0xff] }
 0x518   :  { %v3388_v23 = vmax.f32 %v9192_v37, %v3360_v31  ;;  %v9652_v37 = vld [vmem:[%s11336_s3 + $0x1c0] sm:$0xff]  ;;  %3827 = vmatpush.msrb.mxu1 %v9657_v42 }
 0x519   :  { %v9662_v31 = vld [vmem:[%s11336_s3 + $0x260] sm:$0xff]  ;;  %3780 = vmatpush.msrb.mxu0 %v9652_v37 }
 0x51a   :  { %v3402_v60 = vadd.f32 %v9103_v50, %v3388_v23  ;;  %11957 = vst [vmem:[#allocation10_spill] sm:$0xff] %v9662_v31  ;;  %3930 = vmatpush.msrb.mxu2 %v9662_v31 }
 0x51b   :  { %3781 = vmatpush.msrb.mxu0 %v9683_v1 }
 0x51c   :  { %v9641_v38 = vmax.f32 %v3402_v60, 0.0  ;;  %v9670_v60 = vld [vmem:[%s11336_s3 + $0x268] sm:$0xff] }
 0x51d   :  { %11958 = vst [vmem:[#allocation54_spill] sm:$0xff] %v9670_v60  ;;  %3977 = vmatpush.msrb.mxu3 %v9670_v60 }
 0x51e   :  { %11956 = vst [vmem:[#allocation14_spill] sm:$0xff] %v9641_v38  ;;  %v3312_v34 = vpop.permute.xlu1 %3311  ;;  %5996 = vmatmul.msk.f32.gmra.mxu0 %vm3474_vm3, %v9641_v38  ;;  %6007 = vmatmul.msk.f32.gmra.mxu1 %vm3474_vm3, %v9641_v38 }
 0x51f   :  { %v3361_v23 = vsel %vm1984_vm2, %v3312_v34, %v3314_v45  ;;  %v3318_v18 = vpop.permute.xlu0 %3317 }
 0x520   :  { %v3389_v38 = vmax.f32 %v9209_v55, %v3361_v23  ;;  %v3362_v49 = vsel %vm1984_vm2, %v3316_v44, %v3318_v18  ;;  %v9688_v55 = vld [vmem:[%s11336_s3 + $0x1b8] sm:$0xff]  ;;  %v9693_v44 = vld [vmem:[%s11336_s3 + $0x250] sm:$0xff]  ;;  %v9705_v18 = vld [vmem:[%s11336_s3 + $0x1a0] sm:$0xff] }
 0x521   :  { %v3390_v16 = vmax.f32 %v9239_v20, %v3362_v49  ;;  %11959 = vst [vmem:[#allocation11_spill] sm:$0xff] %v9693_v44  ;;  %3828 = vmatpush.msrb.mxu1 %v9688_v55  ;;  %v9700_v20 = vld [vmem:[%s11336_s3 + $0x258] sm:$0xff]  ;;  %v9710_v49 = vld [vmem:[%s11336_s3 + $0x1a8] sm:$0xff]  ;;  %3931 = vmatpush.msrb.mxu2 %v9693_v44 }
 0x522   :  { %v3403_v45 = vadd.f32 %v9103_v50, %v3389_v38  ;;  %11960 = vst [vmem:[#allocation76_spill] sm:$0xff] %v9700_v20  ;;  %3978 = vmatpush.msrb.mxu3 %v9700_v20  ;;  %3782 = vmatpush.msrb.mxu0 %v9705_v18 }
 0x523   :  { %v3404_v60 = vadd.f32 %v9103_v50, %v3390_v16  ;;  %3829 = vmatpush.msrb.mxu1 %v9710_v49  ;;  %v9743_v16 = vld [vmem:[%s11336_s3 + $0x190] sm:$0xff] }
 0x524   :  { %v9677_v34 = vmax.f32 %v3403_v45, 0.0  ;;  %v3326_v45 = vpop.permute.xlu2 %3325  ;;  %3783 = vmatpush.msrb.mxu0 %v9743_v16 }
 0x525   :  { %v9724_v21 = vmax.f32 %v3404_v60, 0.0 }
 0x526   :  { %v1955_v38 = vpop.permute.xlu1 %1954  ;;  %5997 = vmatmul.msk.f32.gmra.mxu0 %vm3474_vm3, %v9677_v34  ;;  %6008 = vmatmul.msk.f32.gmra.mxu1 %vm3474_vm3, %v9677_v34 }
 0x527   :  { %v1991_v23 = vsel %vm1984_vm2, %v1953_v14, %v1955_v38  ;;  %v3320_v5 = vpop.permute.xlu0 %3319  ;;  %v9731_v14 = vld [vmem:[%s11336_s3 + $0x240] sm:$0xff] }
 0x528   :  { %v2019_v31 = vmax.f32 %v8215_v27, %v1991_v23  ;;  %11962 = vst [vmem:[#allocation38_spill] sm:$0xff] %v9731_v14  ;;  %v9736_v27 = vld [vmem:[%s11336_s3 + $0x248] sm:$0xff]  ;;  %3932 = vmatpush.msrb.mxu2 %v9731_v14 }
 0x529   :  { %11963 = vst [vmem:[#allocation72_spill] sm:$0xff] %v9736_v27  ;;  %3979 = vmatpush.msrb.mxu3 %v9736_v27 }
 0x52a   :  { %v2037_v36 = vadd.f32 %v9103_v50, %v2019_v31 }
 0x52c   :  { %v9726_v12 = vmax.f32 %v2037_v36, 0.0  ;;  %v9748_v36 = vld [vmem:[%s11336_s3 + $0x198] sm:$0xff]  ;;  %v3328_v27 = vpop.permute.xlu2 %3327 }
 0x52d   :  { %11964 = vst [vmem:[#allocation34_spill] sm:$0xff] %v9748_v36  ;;  %3830 = vmatpush.msrb.mxu1 %v9748_v36  ;;  %v9803_v36 = vld [vmem:[%s11336_s3 + $0x220] sm:$0xff] }
 0x52e   :  { %11961 = vst [vmem:[#allocation26_spill] sm:$0xff] %v9726_v12  ;;  %v3322_v31 = vpop.permute.xlu1 %3321  ;;  %5998 = vmatmul.msk.f32.gmra.mxu0 %vm3474_vm3, %v9724_v21  ;;  %6009 = vmatmul.msk.f32.gmra.mxu1 %vm3474_vm3, %v9724_v21 }
 0x52f   :  { %v3363_v60 = vsel %vm1984_vm2, %v3320_v5, %v3322_v31  ;;  %6023 = vmatmul.msk.f32.gmra.mxu2 %vm3474_vm3, %v9726_v12  ;;  %6034 = vmatmul.msk.f32.gmra.mxu3 %vm3474_vm3, %v9726_v12  ;;  %v1963_v23 = vpop.permute.xlu0 %1962  ;;  %v9777_v5 = vld [vmem:[%s11336_s3 + $0x238] sm:$0xff]  ;;  %11970 = vst [vmem:[#allocation9_spill] sm:$0xff] %v9803_v36 }
 0x530   :  { %v3391_v38 = vmax.f32 %v9266_v59, %v3363_v60  ;;  %v9772_v59 = vld [vmem:[%s11336_s3 + $0x230] sm:$0xff]  ;;  %11966 = vst [vmem:[#allocation61_spill] sm:$0xff] %v9777_v5  ;;  %3980 = vmatpush.msrb.mxu3 %v9777_v5  ;;  %v9790_v60 = vld [vmem:[%s11336_s3 + $0x188] sm:$0xff] }
 0x531   :  { %11965 = vst [vmem:[#allocation27_spill] sm:$0xff] %v9772_v59  ;;  %3933 = vmatpush.msrb.mxu2 %v9772_v59  ;;  %3831 = vmatpush.msrb.mxu1 %v9790_v60 }
 0x532   :  { %v3405_v14 = vadd.f32 %v9103_v50, %v3391_v38  ;;  %11968 = vst [vmem:[#allocation15_spill] sm:$0xff] %v9790_v60 }
 0x533   :  { %3934 = vmatpush.msrb.mxu2 %v9803_v36 }
 0x534   :  { %v9763_v20 = vmax.f32 %v3405_v14, 0.0  ;;  %v9782_v14 = vld [vmem:[%s11336_s3 + $0x180] sm:$0xff] }
 0x535   :  { %11967 = vst [vmem:[#allocation28_spill] sm:$0xff] %v9782_v14  ;;  %3784 = vmatpush.msrb.mxu0 %v9782_v14 }
 0x536   :  { %v3324_v44 = vpop.permute.xlu1 %3323  ;;  %5999 = vmatmul.msk.f32.gmra.mxu0 %vm3474_vm3, %v9763_v20  ;;  %6010 = vmatmul.msk.f32.gmra.mxu1 %vm3474_vm3, %v9763_v20 }
 0x537   :  { %v3364_v31 = vsel %vm1984_vm2, %v3324_v44, %v3326_v45  ;;  %v3330_v12 = vpop.permute.xlu0 %3329  ;;  %v1961_v45 = vpop.permute.xlu2 %1960 }
 0x538   :  { %v3392_v38 = vmax.f32 %v9298_v9, %v3364_v31  ;;  %v3365_v11 = vsel %vm1984_vm2, %v3328_v27, %v3330_v12  ;;  %v9808_v9 = vld [vmem:[%s11336_s3 + $0x228] sm:$0xff]  ;;  %v9813_v12 = vld [vmem:[%s11336_s3 + $0x170] sm:$0xff] }
 0x539   :  { %v3393_v5 = vmax.f32 %v9326_v32, %v3365_v11  ;;  %11971 = vst [vmem:[#allocation32_spill] sm:$0xff] %v9808_v9  ;;  %3981 = vmatpush.msrb.mxu3 %v9808_v9  ;;  %v9820_v11 = vld [vmem:[%s11336_s3 + $0x178] sm:$0xff]  ;;  %3785 = vmatpush.msrb.mxu0 %v9813_v12  ;;  %v1993_v9 = vsel %vm1984_vm2, %v1961_v45, %v1963_v23 }
 0x53a   :  { %v3406_v44 = vadd.f32 %v9103_v50, %v3392_v38  ;;  %3832 = vmatpush.msrb.mxu1 %v9820_v11 }
 0x53b   :  { %v3407_v31 = vadd.f32 %v9103_v50, %v3393_v5  ;;  %v9866_v5 = vld [vmem:[%s11336_s3 + $0x168] sm:$0xff] }
 0x53c   :  { %v9797_v59 = vmax.f32 %v3406_v44, 0.0  ;;  %3833 = vmatpush.msrb.mxu1 %v9866_v5 }
 0x53d   :  { %v9834_v60 = vmax.f32 %v3407_v31, 0.0 }
 0x53e   :  { %11969 = vst [vmem:[#allocation47_spill] sm:$0xff] %v9797_v59  ;;  %v1957_v32 = vpop.permute.xlu1 %1956  ;;  %6000 = vmatmul.msk.f32.gmra.mxu0 %vm3474_vm3, %v9797_v59  ;;  %6011 = vmatmul.msk.f32.gmra.mxu1 %vm3474_vm3, %v9797_v59  ;;  %v2021_v59 = vmax.f32 %v11878_v51, %v1993_v9  ;;  %v9856_v51 = vld [vmem:[%s11336_s3 + $0x160] sm:$0xff] }
 0x53f   :  { %v1992_v27 = vsel %vm1984_vm2, %v1957_v32, %v9643_v7  ;;  %v3332_v44 = vpop.permute.xlu0 %3331  ;;  %v3338_v7 = vpop.permute.xlu2 %3337  ;;  %3786 = vmatpush.msrb.mxu0 %v9856_v51 }
 0x540   :  { %v2020_v38 = vmax.f32 %v11876_v25, %v1992_v27  ;;  %v9846_v25 = vld [vmem:[%s11336_s3 + $0x210] sm:$0xff]  ;;  %v2039_v27 = vadd.f32 %v9103_v50, %v2021_v59  ;;  %v9889_v59 = vld [vmem:[%s11336_s3 + $0x368] sm:$0xf] }
 0x541   :  { %3935 = vmatpush.msrb.mxu2 %v9846_v25  ;;  %6159 = vmatpush.msk.msra.mxu1 %vm3505_vm1, %v9889_v59 }
 0x542   :  { %v2038_v36 = vadd.f32 %v9103_v50, %v2020_v38  ;;  %v11972_v38 = vld [vmem:[#allocation79_spill] sm:$0xff] }
 0x543   :  { %6170 = vmatpush.msk.msra.mxu2 %vm3505_vm1, %v11972_v38 }
 0x544   :  { %v9836_v14 = vmax.f32 %v2038_v36, 0.0  ;;  %v9851_v36 = vld [vmem:[%s11336_s3 + $0x218] sm:$0xff] }
 0x545   :  { %3982 = vmatpush.msrb.mxu3 %v9851_v36  ;;  %4189 = vmatpush.msra.mxu2 %v9179_v43 }
 0x546   :  { %v3334_v32 = vpop.permute.xlu1 %3333  ;;  %6001 = vmatmul.msk.f32.gmra.mxu0 %vm3474_vm3, %v9834_v60  ;;  %6012 = vmatmul.msk.f32.gmra.mxu1 %vm3474_vm3, %v9834_v60 }
 0x547   :  { %v3366_v23 = vsel %vm1984_vm2, %v3332_v44, %v3334_v32  ;;  %6024 = vmatmul.msk.f32.gmra.mxu2 %vm3474_vm3, %v9836_v14  ;;  %6035 = vmatmul.msk.f32.gmra.mxu3 %vm3474_vm3, %v9836_v14  ;;  %v1965_v9 = vpop.permute.xlu0 %1964  ;;  %v9884_v44 = vld [vmem:[%s11336_s3 + $0x360] sm:$0xf]  ;;  %v3340_v43 = vpop.permute.xlu2 %3339 }
 0x548   :  { %v3394_v45 = vmax.f32 %v9341_v8, %v3366_v23  ;;  %6181 = vmatpush.msk.msra.mxu3 %vm3505_vm1, %v9150_v61  ;;  %6148 = vmatpush.msk.msra.mxu0 %vm3505_vm1, %v9884_v44 }
 0x549   :  { %4190 = vmatpush.msra.mxu2 %v9220_v2 }
 0x54a   :  { %v3408_v31 = vadd.f32 %v9103_v50, %v3394_v45  ;;  %4236 = vmatpush.msra.mxu3 %v9184_v4  ;;  %v9893_v50 = vmax.f32 %v2039_v27, 0.0 }
 0x54b   :  { %4191 = vmatpush.msra.mxu2 %v9250_v48  ;;  %v9937_v48 = vld [vmem:[%s11336_s3 + $0x358] sm:$0xff] }
 0x54c   :  { %v9879_v8 = vmax.f32 %v3408_v31, 0.0  ;;  %4237 = vmatpush.msra.mxu3 %v9225_v6  ;;  %v9932_v6 = vld [vmem:[%s11336_s3 + $0x350] sm:$0xff]  ;;  %4122 = vmatpush.msra.mxu1 %v9937_v48 }
 0x54d   :  { %4192 = vmatpush.msra.mxu2 %v9279_v10  ;;  %4075 = vmatpush.msra.mxu0 %v9932_v6 }
 0x54e   :  { %v3336_v61 = vpop.permute.xlu1 %3335  ;;  %6002 = vmatmul.msk.f32.gmra.mxu0 %vm3474_vm3, %v9879_v8  ;;  %6013 = vmatmul.msk.f32.gmra.mxu1 %vm3474_vm3, %v9879_v8 }
 0x54f   :  { %v3367_v32 = vsel %vm1984_vm2, %v3336_v61, %v3338_v7  ;;  %6025 = vmatmul.msk.f32.gmra.mxu2 %vm3474_vm3, %v9893_v50  ;;  %6036 = vmatmul.msk.f32.gmra.mxu3 %vm3474_vm3, %v9893_v50  ;;  %v3342_v23 = vpop.permute.xlu0 %3341  ;;  %v9915_v7 = vld [vmem:[%s11335_s2] ss:$0 sm:$0xff] }
 0x550   :  { %v3395_v4 = vmax.f32 %v9369_v47, %v3367_v32  ;;  %v3368_v45 = vsel %vm1984_vm2, %v3340_v43, %v3342_v23  ;;  %4238 = vmatpush.msra.mxu3 %v9255_v56  ;;  %4193 = vmatpush.msra.mxu2 %v9314_v30  ;;  %v9956_v61 = vld [vmem:[%s11336_s3 + $0x340] sm:$0xff]  ;;  %v9961_v30 = vld [vmem:[%s11336_s3 + $0x348] sm:$0xff] }
 0x551   :  { %v3396_v47 = vmax.f32 %v9393_v40, %v3368_v45  ;;  %4076 = vmatpush.msra.mxu0 %v9956_v61  ;;  %4123 = vmatpush.msra.mxu1 %v9961_v30  ;;  %v6507_v23 = vld [vmem:[%s11336_s3 + $0xa0] sm:$0xf]  ;;  %v6508_v45 = vld [vmem:[%s11336_s3 + $0xa8] sm:$0xf] }
 0x552   :  { %v3409_v27 = vadd.f32 %v9915_v7, %v3395_v4  ;;  %4239 = vmatpush.msra.mxu3 %v9284_v0  ;;  %4194 = vmatpush.msra.mxu2 %v9352_v17  ;;  %v9987_v17 = vld [vmem:[%s11336_s3 + $0x338] sm:$0xff] }
 0x553   :  { %v3410_v10 = vadd.f32 %v9915_v7, %v3396_v47  ;;  %4124 = vmatpush.msra.mxu1 %v9987_v17 }
 0x554   :  { %v9920_v31 = vmax.f32 %v3409_v27, 0.0  ;;  %4240 = vmatpush.msra.mxu3 %v9319_v39  ;;  %4195 = vmatpush.msra.mxu2 %v9379_v15  ;;  %v9982_v39 = vld [vmem:[%s11336_s3 + $0x330] sm:$0xff]  ;;  %v10010_v15 = vld [vmem:[%s11336_s3 + $0x320] sm:$0xff] }
 0x555   :  { %v9949_v38 = vmax.f32 %v3410_v10, 0.0  ;;  %4077 = vmatpush.msra.mxu0 %v9982_v39 }
 0x556   :  { %v1967_v2 = vpop.permute.xlu1 %1966  ;;  %6003 = vmatmul.msk.f32.gmra.mxu0 %vm3474_vm3, %v9920_v31  ;;  %6014 = vmatmul.msk.f32.gmra.mxu1 %vm3474_vm3, %v9920_v31 }
 0x557   :  { %v1994_v56 = vsel %vm1984_vm2, %v1965_v9, %v1967_v2  ;;  %4241 = vmatpush.msra.mxu3 %v9357_v26  ;;  %4196 = vmatpush.msra.mxu2 %v9403_v3  ;;  %v11973_v26 = vld [vmem:[#allocation57_spill] sm:$0xff]  ;;  %v6509_v2 = vld [vmem:[%s11336_s3 + $0x90] sm:$0xff] }
 0x558   :  { %v2022_v0 = vmax.f32 %v11887_v24, %v1994_v56  ;;  %4078 = vmatpush.msra.mxu0 %v10010_v15  ;;  %v10032_v24 = vld [vmem:[%s11336_s3 + $0x310] sm:$0xff]  ;;  %v10037_v3 = vld [vmem:[%s11336_s3 + $0x318] sm:$0xff] }
 0x559   :  { %4242 = vmatpush.msra.mxu3 %v9384_v28  ;;  %4197 = vmatpush.msra.mxu2 %v9436_v52  ;;  %v10015_v28 = vld [vmem:[%s11336_s3 + $0x328] sm:$0xff]  ;;  %v6510_v56 = vld [vmem:[%s11336_s3 + $0x98] sm:$0xff] }
 0x55a   :  { %v2040_v40 = vadd.f32 %v9915_v7, %v2022_v0  ;;  %4125 = vmatpush.msra.mxu1 %v10015_v28  ;;  %4079 = vmatpush.msra.mxu0 %v10032_v24  ;;  %v10063_v52 = vld [vmem:[%s11336_s3 + $0x308] sm:$0xff] }
 0x55b   :  { %4243 = vmatpush.msra.mxu3 %v9408_v41  ;;  %4198 = vmatpush.msra.mxu2 %v9464_v19  ;;  %v10058_v41 = vld [vmem:[%s11336_s3 + $0x300] sm:$0xff]  ;;  %v10074_v19 = vld [vmem:[%s11336_s3 + $0x2f0] sm:$0xff] }
 0x55c   :  { %v9951_v9 = vmax.f32 %v2040_v40, 0.0  ;;  %4126 = vmatpush.msra.mxu1 %v10037_v3  ;;  %4080 = vmatpush.msra.mxu0 %v10058_v41  ;;  %v11980_v40 = vld [vmem:[#allocation19_spill] sm:$0xff] }
 0x55d   :  { %4244 = vmatpush.msra.mxu3 %v9441_v46  ;;  %v11974_v46 = vld [vmem:[#allocation34_spill] sm:$0xff] }
 0x55e   :  { %6004 = vmatmul.msk.f32.gmra.mxu0 %vm3474_vm3, %v9949_v38  ;;  %6015 = vmatmul.msk.f32.gmra.mxu1 %vm3474_vm3, %v9949_v38 }
 0x55f   :  { %6026 = vmatmul.msk.f32.gmra.mxu2 %vm3474_vm3, %v9951_v9  ;;  %6037 = vmatmul.msk.f32.gmra.mxu3 %vm3474_vm3, %v9951_v9 }
 0x560   :  { %4245 = vmatpush.msra.mxu3 %v9469_v22  ;;  %4127 = vmatpush.msra.mxu1 %v10063_v52  ;;  %v10079_v22 = vld [vmem:[%s11336_s3 + $0x2f8] sm:$0xff] }
 0x561   :  { %4081 = vmatpush.msra.mxu0 %v10074_v19 }
 0x562   :  { %4128 = vmatpush.msra.mxu1 %v10079_v22 }
 0x566   :  { %6061 = vmatmul.msk.f32.vlgmr.msrb.gmra.mxu0 %vm3474_vm3, %v11973_v26  ;;  %6072 = vmatmul.msk.f32.vlgmr.msrb.gmra.mxu1 %vm3474_vm3, %v11973_v26 }
 0x567   :  { %6105 = vmatmul.msk.f32.vlgmr.msrb.gmra.mxu2 %vm3474_vm3, %v9677_v34  ;;  %6116 = vmatmul.msk.f32.vlgmr.msrb.gmra.mxu3 %vm3474_vm3, %v9677_v34 }
 0x568   :  { %6214 = vmatpush.msk.msrb.mxu2 %vm3505_vm1, %v9504_v58  ;;  %6225 = vmatpush.msk.msrb.mxu3 %vm3505_vm1, %v9509_v29  ;;  %v11975_v58 = vld [vmem:[#allocation80_spill] sm:$0xff]  ;;  %v11976_v29 = vld [vmem:[#allocation47_spill] sm:$0xff] }
 0x56a   :  { %4377 = vmatpush.msrb.mxu2 %v9550_v33  ;;  %4424 = vmatpush.msrb.mxu3 %v9555_v57  ;;  %v11977_v33 = vld [vmem:[#allocation28_spill] sm:$0xff]  ;;  %v11978_v57 = vld [vmem:[#allocation15_spill] sm:$0xff] }
 0x56c   :  { %4378 = vmatpush.msrb.mxu2 %v9582_v54  ;;  %4425 = vmatpush.msrb.mxu3 %v9587_v35  ;;  %v10098_v54 = vld [vmem:[%s11336_s3 + $0x2e0] sm:$0xff]  ;;  %v10103_v35 = vld [vmem:[%s11336_s3 + $0x2e8] sm:$0xff] }
 0x56d   :  { %4082 = vmatpush.msra.mxu0 %v10098_v54  ;;  %4129 = vmatpush.msra.mxu1 %v10103_v35 }
 0x56e   :  { %6062 = vmatmul.msk.f32.gmra.mxu0 %vm3474_vm3, %v9162_v63  ;;  %6073 = vmatmul.msk.f32.gmra.mxu1 %vm3474_vm3, %v9162_v63 }
 0x56f   :  { %6106 = vmatmul.msk.f32.gmra.mxu2 %vm3474_vm3, %v9724_v21  ;;  %6117 = vmatmul.msk.f32.gmra.mxu3 %vm3474_vm3, %v9724_v21 }
 0x570   :  { %4379 = vmatpush.msrb.mxu2 %v9617_v62  ;;  %4426 = vmatpush.msrb.mxu3 %v9622_v13  ;;  %v3344_v62 = vpop.permute.xlu1 %3343  ;;  %v3346_v13 = vpop.permute.xlu2 %3345 }
 0x571   :  { %v3369_v47 = vsel %vm1984_vm2, %v3344_v62, %v3346_v13  ;;  %v11981_v62 = vld [vmem:[#allocation66_spill] sm:$0xff] }
 0x572   :  { %4380 = vmatpush.msrb.mxu2 %v9652_v37  ;;  %4427 = vmatpush.msrb.mxu3 %v9657_v42  ;;  %v10120_v37 = vld [vmem:[%s11336_s3 + $0x2d0] sm:$0xff]  ;;  %v10125_v42 = vld [vmem:[%s11336_s3 + $0x2d8] sm:$0xff]  ;;  %v3397_v13 = vmax.f32 %v11981_v62, %v3369_v47  ;;  %v6516_v62 = vld [vmem:[%s11336_s3 + $0x68] sm:$0xff] }
 0x573   :  { %4083 = vmatpush.msra.mxu0 %v10120_v37  ;;  %4130 = vmatpush.msra.mxu1 %v10125_v42  ;;  %v6514_v47 = vld [vmem:[%s11336_s3 + $0x78] sm:$0xff] }
 0x574   :  { %4381 = vmatpush.msrb.mxu2 %v9683_v1  ;;  %4428 = vmatpush.msrb.mxu3 %v9688_v55  ;;  %v11979_v1 = vld [vmem:[#allocation26_spill] sm:$0xff]  ;;  %v10129_v55 = vpop.f32.mrf.mxu2 }
 0x576   :  { %6063 = vmatmul.msk.f32.gmra.mxu0 %vm3474_vm3, %v9194_v53  ;;  %6074 = vmatmul.msk.f32.gmra.mxu1 %vm3474_vm3, %v9194_v53 }
 0x577   :  { %6107 = vmatmul.msk.f32.gmra.mxu2 %vm3474_vm3, %v9763_v20  ;;  %6118 = vmatmul.msk.f32.gmra.mxu3 %vm3474_vm3, %v9763_v20 }
 0x578   :  { %4382 = vmatpush.msrb.mxu2 %v9705_v18  ;;  %4429 = vmatpush.msrb.mxu3 %v9710_v49  ;;  %v10131_v18 = vpop.f32.mrf.mxu3  ;;  %v3348_v32 = vpop.permute.xlu2 %3347 }
 0x57a   :  { %4383 = vmatpush.msrb.mxu2 %v9743_v16  ;;  %4430 = vmatpush.msrb.mxu3 %v11974_v46 }
 0x57c   :  { %4384 = vmatpush.msrb.mxu2 %v11977_v33  ;;  %4431 = vmatpush.msrb.mxu3 %v11978_v57  ;;  %v10165_v43 = vpop.f32.mrf.mxu2  ;;  %v6511_v33 = vld [vmem:[%s11336_s3 + $0x80] sm:$0xff]  ;;  %v6512_v57 = vld [vmem:[%s11336_s3 + $0x88] sm:$0xff] }
 0x57e   :  { %6064 = vmatmul.msk.f32.gmra.mxu0 %vm3474_vm3, %v11975_v58  ;;  %6075 = vmatmul.msk.f32.gmra.mxu1 %vm3474_vm3, %v11975_v58 }
 0x57f   :  { %6108 = vmatmul.msk.f32.gmra.mxu2 %vm3474_vm3, %v11976_v29  ;;  %6119 = vmatmul.msk.f32.gmra.mxu3 %vm3474_vm3, %v11976_v29 }
 0x580   :  { %4385 = vmatpush.msrb.mxu2 %v9813_v12  ;;  %4432 = vmatpush.msrb.mxu3 %v9820_v11  ;;  %v1971_v12 = vpop.permute.xlu1 %1970  ;;  %v10148_v11 = vld [vmem:[%s11336_s3 + $0x2c0] sm:$0xff]  ;;  %v10167_v4 = vpop.f32.mrf.mxu3 }
 0x581   :  { %4084 = vmatpush.msra.mxu0 %v10148_v11 }
 0x582   :  { %4386 = vmatpush.msrb.mxu2 %v9856_v51  ;;  %4433 = vmatpush.msrb.mxu3 %v9866_v5  ;;  %v10153_v51 = vld [vmem:[%s11336_s3 + $0x2c8] sm:$0xff]  ;;  %v1969_v5 = vpop.permute.xlu0 %1968 }
 0x583   :  { %4131 = vmatpush.msra.mxu1 %v10153_v51  ;;  %6192 = vmatpush.msk.msrb.mxu0 %vm3505_vm1, %v6507_v23  ;;  %v1995_v27 = vsel %vm1984_vm2, %v1969_v5, %v1971_v12  ;;  %v1975_v23 = vpop.permute.xlu2 %1974 }
 0x584   :  { %v2023_v46 = vmax.f32 %v11980_v40, %v1995_v27  ;;  %v6513_v27 = vld [vmem:[%s11336_s3 + $0x70] sm:$0xff]  ;;  %v10214_v40 = vpop.f32.mrf.mxu2 }
 0x585   :  { %6203 = vmatpush.msk.msrb.mxu1 %vm3505_vm1, %v6508_v45  ;;  %4283 = vmatpush.msrb.mxu0 %v6509_v2  ;;  %v3411_v2 = vadd.f32 %v9915_v7, %v3397_v13 }
 0x586   :  { %6065 = vmatmul.msk.f32.gmra.mxu0 %vm3474_vm3, %v11979_v1  ;;  %6076 = vmatmul.msk.f32.gmra.mxu1 %vm3474_vm3, %v11979_v1  ;;  %v2041_v45 = vadd.f32 %v9915_v7, %v2023_v46 }
 0x587   :  { %6109 = vmatmul.msk.f32.gmra.mxu2 %vm3474_vm3, %v9834_v60  ;;  %6120 = vmatmul.msk.f32.gmra.mxu3 %vm3474_vm3, %v9834_v60 }
 0x588   :  { %4330 = vmatpush.msrb.mxu1 %v6510_v56  ;;  %4284 = vmatpush.msrb.mxu0 %v6511_v33  ;;  %v1973_v12 = vpop.permute.xlu1 %1972  ;;  %v10216_v33 = vpop.f32.mrf.mxu3 }
 0x589   :  { %v1996_v56 = vsel %vm1984_vm2, %v1973_v12, %v1975_v23  ;;  %11982 = vst [vmem:[#allocation51_spill] sm:$0xff] %v10216_v33  ;;  %v10229_v12 = vmax.f32 %v2041_v45, 0.0  ;;  %v11983_v23 = vld [vmem:[#allocation22_spill] sm:$0xff] }
 0x58a   :  { %4331 = vmatpush.msrb.mxu1 %v6512_v57  ;;  %v3350_v5 = vpop.permute.xlu0 %3349  ;;  %4285 = vmatpush.msrb.mxu0 %v6513_v27  ;;  %v6515_v57 = vld [vmem:[%s11336_s3 + $0x60] sm:$0xff] }
 0x58b   :  { %v3370_v46 = vsel %vm1984_vm2, %v3348_v32, %v3350_v5  ;;  %v6517_v32 = vld [vmem:[%s11336_s3 + $0x50] sm:$0xff]  ;;  %v6518_v5 = vld [vmem:[%s11336_s3 + $0x58] sm:$0xff] }
 0x58c   :  { %4332 = vmatpush.msrb.mxu1 %v6514_v47  ;;  %4286 = vmatpush.msrb.mxu0 %v6515_v57  ;;  %v2024_v47 = vmax.f32 %v11983_v23, %v1996_v56  ;;  %v10238_v57 = vmax.f32 %v3411_v2, 0.0  ;;  %v6519_v2 = vld [vmem:[%s11336_s3 + $0x40] sm:$0xff]  ;;  %v6520_v56 = vld [vmem:[%s11336_s3 + $0x48] sm:$0xff]  ;;  %v6521_v23 = vld [vmem:[%s11336_s3 + $0x30] sm:$0xff] }
 0x58e   :  { %6066 = vmatmul.msk.f32.gmra.mxu0 %vm3474_vm3, %v9836_v14  ;;  %6077 = vmatmul.msk.f32.gmra.mxu1 %vm3474_vm3, %v9836_v14  ;;  %v2042_v45 = vadd.f32 %v9915_v7, %v2024_v47  ;;  %v6522_v47 = vld [vmem:[%s11336_s3 + $0x38] sm:$0xff] }
 0x58f   :  { %6110 = vmatmul.msk.f32.gmra.mxu2 %vm3474_vm3, %v9879_v8  ;;  %6121 = vmatmul.msk.f32.gmra.mxu3 %vm3474_vm3, %v9879_v8 }
 0x590   :  { %4333 = vmatpush.msrb.mxu1 %v6516_v62  ;;  %4287 = vmatpush.msrb.mxu0 %v6517_v32  ;;  %v11984_v62 = vld [vmem:[#allocation7_spill] sm:$0xff] }
 0x591   :  { %v3398_v33 = vmax.f32 %v11984_v62, %v3370_v46  ;;  %v10267_v62 = vpop.f32.mrf.mxu2 }
 0x592   :  { %4334 = vmatpush.msrb.mxu1 %v6518_v5  ;;  %4288 = vmatpush.msrb.mxu0 %v6519_v2  ;;  %11987 = vst [vmem:[#allocation31_spill] sm:$0xff] %v10267_v62  ;;  %v10269_v2 = vpop.f32.mrf.mxu3 }
 0x593   :  { %v10141_v49 = vpop.f32.mrf.mxu0  ;;  %v10143_v16 = vpop.f32.mrf.mxu1  ;;  %v3412_v46 = vadd.f32 %v9915_v7, %v3398_v33  ;;  %11988 = vst [vmem:[#allocation35_spill] sm:$0xff] %v10269_v2  ;;  %v6523_v33 = vld [vmem:[%s11336_s3 + $0x20] sm:$0xff] }
 0x594   :  { %4335 = vmatpush.msrb.mxu1 %v6520_v56  ;;  %4289 = vmatpush.msrb.mxu0 %v6521_v23  ;;  %v10271_v56 = vmax.f32 %v2042_v45, 0.0  ;;  %v6524_v23 = vld [vmem:[%s11336_s3 + $0x28] sm:$0xff]  ;;  %v6525_v45 = vld [vmem:[%s11336_s3 + $0x10] sm:$0xff] }
 0x596   :  { %6067 = vmatmul.msk.f32.gmra.mxu0 %vm3474_vm3, %v9893_v50  ;;  %6078 = vmatmul.msk.f32.gmra.mxu1 %vm3474_vm3, %v9893_v50 }
 0x597   :  { %6111 = vmatmul.msk.f32.gmra.mxu2 %vm3474_vm3, %v9920_v31  ;;  %6122 = vmatmul.msk.f32.gmra.mxu3 %vm3474_vm3, %v9920_v31 }
 0x598   :  { %4336 = vmatpush.msrb.mxu1 %v6522_v47  ;;  %4290 = vmatpush.msrb.mxu0 %v6523_v33  ;;  %v10279_v47 = vmax.f32 %v3412_v46, 0.0  ;;  %v6526_v46 = vld [vmem:[%s11336_s3 + $0x18] sm:$0xff]  ;;  %v6527_v33 = vld [vmem:[%s11336_s3] sm:$0xff] }
 0x59a   :  { %4337 = vmatpush.msrb.mxu1 %v6524_v23  ;;  %4291 = vmatpush.msrb.mxu0 %v6525_v45  ;;  %v6528_v23 = vld [vmem:[%s11336_s3 + $0x8] sm:$0xff]  ;;  %v10305_v45 = vpop.f32.mrf.mxu2  ;;  %v10307_v62 = vpop.f32.mrf.mxu3  ;;  %s6530_s3 = smov 48  }
 0x59b   :  { %v10185_v10 = vpop.f32.mrf.mxu0  ;;  %v10187_v0 = vpop.f32.mrf.mxu1  ;;  %11991 = vst [vmem:[#allocation13_spill] sm:$0xff] %v10305_v45 }
 0x59c   :  { %4338 = vmatpush.msrb.mxu1 %v6526_v46  ;;  %4292 = vmatpush.msrb.mxu0 %v6527_v33  ;;  %11992 = vst [vmem:[#allocation40_spill] sm:$0xff] %v10307_v62  ;;  %v11993_v46 = vld [vmem:[#allocation69_spill] sm:$0xff]  ;;  %v11994_v33 = vld [vmem:[#allocation59_spill] sm:$0xff] }
 0x59e   :  { %6068 = vmatmul.msk.f32.gmra.mxu0 %vm3474_vm3, %v9951_v9  ;;  %6079 = vmatmul.msk.f32.gmra.mxu1 %vm3474_vm3, %v9951_v9 }
 0x59f   :  { %6112 = vmatmul.msk.f32.gmra.mxu2 %vm3474_vm3, %v9949_v38  ;;  %6123 = vmatmul.msk.f32.gmra.mxu3 %vm3474_vm3, %v9949_v38 }
 0x5a0   :  { %4339 = vmatpush.msrb.mxu1 %v6528_v23 }
 0x5a3   :  { %v10225_v27 = vpop.f32.mrf.mxu0  ;;  %v10227_v13 = vpop.f32.mrf.mxu1 }
 0x5a6   :  { %6069 = vmatmul.msk.f32.gmra.mxu0 %vm3474_vm3, %v10229_v12  ;;  %6080 = vmatmul.msk.f32.gmra.mxu1 %vm3474_vm3, %v10229_v12 }
 0x5a7   :  { %6113 = vmatmul.msk.f32.gmra.mxu2 %vm3474_vm3, %v10238_v57  ;;  %6124 = vmatmul.msk.f32.gmra.mxu3 %vm3474_vm3, %v10238_v57 }
 0x5ab   :  { %v10263_v32 = vpop.f32.mrf.mxu0  ;;  %v10265_v5 = vpop.f32.mrf.mxu1 }
 0x5ac   :  { %11985 = vst [vmem:[#allocation36_spill] sm:$0xff] %v10263_v32 }
 0x5ad   :  { %11986 = vst [vmem:[#allocation8_spill] sm:$0xff] %v10265_v5 }
 0x5ae   :  { %6070 = vmatmul.msk.f32.gmra.mxu0 %vm3474_vm3, %v10271_v56  ;;  %6081 = vmatmul.msk.f32.gmra.mxu1 %vm3474_vm3, %v10271_v56 }
 0x5af   :  { %6114 = vmatmul.msk.f32.gmra.mxu2 %vm3474_vm3, %v10279_v47  ;;  %6125 = vmatmul.msk.f32.gmra.mxu3 %vm3474_vm3, %v10279_v47 }
 0x5b3   :  { %v10301_v2 = vpop.f32.mrf.mxu0  ;;  %v10303_v5 = vpop.f32.mrf.mxu1 }
 0x5b4   :  { %11989 = vst [vmem:[#allocation39_spill] sm:$0xff] %v10301_v2 }
 0x5b5   :  { %11990 = vst [vmem:[#allocation64_spill] sm:$0xff] %v10303_v5 }
 0x5b6   :  { %6149 = vmatmul.msk.f32.vlgmr.msra.gmra.mxu0 %vm3474_vm3, %v9194_v53  ;;  %6160 = vmatmul.msk.f32.vlgmr.msra.gmra.mxu1 %vm3474_vm3, %v9194_v53 }
 0x5b7   :  { %6171 = vmatmul.msk.f32.vlgmr.msra.gmra.mxu2 %vm3474_vm3, %v11973_v26  ;;  %6182 = vmatmul.msk.f32.vlgmr.msra.gmra.mxu3 %vm3474_vm3, %v11973_v26  ;;  %v11997_v26 = vld [vmem:[#allocation58_spill] sm:$0xff] }
 0x5b8   :  { %6258 = vmatpush.msk.msra.mxu2 %vm3505_vm1, %v9884_v44  ;;  %6269 = vmatpush.msk.msra.mxu3 %vm3505_vm1, %v9889_v59  ;;  %v11998_v44 = vld [vmem:[#allocation77_spill] sm:$0xff]  ;;  %v11999_v59 = vld [vmem:[#allocation2_spill] sm:$0xff] }
 0x5b9   :  { %6236 = vmatpush.msk.msra.mxu0 %vm3505_vm1, %v11993_v46  ;;  %6247 = vmatpush.msk.msra.mxu1 %vm3505_vm1, %v11994_v33  ;;  %v12000_v46 = vld [vmem:[#allocation3_spill] sm:$0xff] }
 0x5ba   :  { %4611 = vmatpush.msra.mxu2 %v9932_v6  ;;  %4658 = vmatpush.msra.mxu3 %v9937_v48  ;;  %v10345_v6 = vpop.f32.mrf.mxu2  ;;  %v10347_v48 = vpop.f32.mrf.mxu3 }
 0x5bb   :  { %v10327_v23 = vpop.f32.mrf.mxu0  ;;  %v10329_v62 = vpop.f32.mrf.mxu1  ;;  %4491 = vmatpush.msra.mxu0 %v11997_v26  ;;  %4538 = vmatpush.msra.mxu1 %v11998_v44  ;;  %12001 = vst [vmem:[#allocation55_spill] sm:$0xff] %v10345_v6  ;;  %v12008_v44 = vld [vmem:[#allocation24_spill] sm:$0xff] }
 0x5bc   :  { %11995 = vst [vmem:[#allocation65_spill] sm:$0xff] %v10327_v23  ;;  %4612 = vmatpush.msra.mxu2 %v9956_v61  ;;  %4659 = vmatpush.msra.mxu3 %v9961_v30  ;;  %v12003_v61 = vld [vmem:[#allocation21_spill] sm:$0xff]  ;;  %v12004_v30 = vld [vmem:[#allocation6_spill] sm:$0xff] }
 0x5bd   :  { %11996 = vst [vmem:[#allocation5_spill] sm:$0xff] %v10329_v62  ;;  %4492 = vmatpush.msra.mxu0 %v11999_v59  ;;  %4539 = vmatpush.msra.mxu1 %v12000_v46  ;;  %v12046_v62 = vld [vmem:[#allocation14_spill] sm:$0xff] }
 0x5be   :  { %6150 = vmatmul.msk.f32.gmra.mxu0 %vm3474_vm3, %v11975_v58  ;;  %6161 = vmatmul.msk.f32.gmra.mxu1 %vm3474_vm3, %v11975_v58  ;;  %12002 = vst [vmem:[#allocation62_spill] sm:$0xff] %v10347_v48 }
 0x5bf   :  { %6172 = vmatmul.msk.f32.gmra.mxu2 %vm3474_vm3, %v9162_v63  ;;  %6183 = vmatmul.msk.f32.gmra.mxu3 %vm3474_vm3, %v9162_v63  ;;  %v12007_v63 = vld [vmem:[#allocation52_spill] sm:$0xff] }
 0x5c0   :  { %4613 = vmatpush.msra.mxu2 %v9982_v39  ;;  %4660 = vmatpush.msra.mxu3 %v9987_v17  ;;  %v12009_v39 = vld [vmem:[#allocation10_spill] sm:$0xff] }
 0x5c1   :  { %4493 = vmatpush.msra.mxu0 %v12003_v61  ;;  %4540 = vmatpush.msra.mxu1 %v12004_v30  ;;  %v12010_v17 = vld [vmem:[#allocation54_spill] sm:$0xff]  ;;  %v12018_v30 = vld [vmem:[#allocation72_spill] sm:$0xff] }
 0x5c2   :  { %4614 = vmatpush.msra.mxu2 %v10010_v15  ;;  %4661 = vmatpush.msra.mxu3 %v10015_v28  ;;  %v10373_v15 = vpop.f32.mrf.mxu2  ;;  %v10375_v28 = vpop.f32.mrf.mxu3  ;;  %v12017_v61 = vld [vmem:[#allocation38_spill] sm:$0xff] }
 0x5c3   :  { %v10355_v33 = vpop.f32.mrf.mxu0  ;;  %v10357_v26 = vpop.f32.mrf.mxu1  ;;  %4494 = vmatpush.msra.mxu0 %v12007_v63  ;;  %4541 = vmatpush.msra.mxu1 %v12008_v44  ;;  %12011 = vst [vmem:[#allocation37_spill] sm:$0xff] %v10373_v15 }
 0x5c4   :  { %12005 = vst [vmem:[#allocation43_spill] sm:$0xff] %v10355_v33  ;;  %4615 = vmatpush.msra.mxu2 %v10032_v24  ;;  %4662 = vmatpush.msra.mxu3 %v10037_v3  ;;  %v12013_v24 = vld [vmem:[#allocation11_spill] sm:$0xff]  ;;  %v12014_v3 = vld [vmem:[#allocation76_spill] sm:$0xff] }
 0x5c5   :  { %12006 = vst [vmem:[#allocation4_spill] sm:$0xff] %v10357_v26  ;;  %4495 = vmatpush.msra.mxu0 %v12009_v39  ;;  %4542 = vmatpush.msra.mxu1 %v12010_v17 }
 0x5c6   :  { %6151 = vmatmul.msk.f32.gmra.mxu0 %vm3474_vm3, %v11979_v1  ;;  %6162 = vmatmul.msk.f32.gmra.mxu1 %vm3474_vm3, %v11979_v1  ;;  %12012 = vst [vmem:[#allocation12_spill] sm:$0xff] %v10375_v28  ;;  %v12041_v28 = vld [vmem:[#allocation63_spill] sm:$0xff] }
 0x5c7   :  { %6173 = vmatmul.msk.f32.gmra.mxu2 %vm3474_vm3, %v9194_v53  ;;  %6184 = vmatmul.msk.f32.gmra.mxu3 %vm3474_vm3, %v9194_v53 }
 0x5c8   :  { %4616 = vmatpush.msra.mxu2 %v10058_v41  ;;  %4663 = vmatpush.msra.mxu3 %v10063_v52  ;;  %v12019_v41 = vld [vmem:[#allocation27_spill] sm:$0xff]  ;;  %v12020_v52 = vld [vmem:[#allocation61_spill] sm:$0xff] }
 0x5c9   :  { %4496 = vmatpush.msra.mxu0 %v12013_v24  ;;  %4543 = vmatpush.msra.mxu1 %v12014_v3 }
 0x5ca   :  { %4617 = vmatpush.msra.mxu2 %v10074_v19  ;;  %4664 = vmatpush.msra.mxu3 %v10079_v22  ;;  %v10401_v19 = vpop.f32.mrf.mxu2  ;;  %v10403_v22 = vpop.f32.mrf.mxu3 }
 0x5cb   :  { %v10383_v59 = vpop.f32.mrf.mxu0  ;;  %v10385_v46 = vpop.f32.mrf.mxu1  ;;  %4497 = vmatpush.msra.mxu0 %v12017_v61  ;;  %4544 = vmatpush.msra.mxu1 %v12018_v30  ;;  %12021 = vst [vmem:[#allocation56_spill] sm:$0xff] %v10401_v19 }
 0x5cc   :  { %12015 = vst [vmem:[#allocation78_spill] sm:$0xff] %v10383_v59  ;;  %4618 = vmatpush.msra.mxu2 %v10098_v54  ;;  %4665 = vmatpush.msra.mxu3 %v10103_v35  ;;  %v12023_v54 = vld [vmem:[#allocation9_spill] sm:$0xff]  ;;  %v12024_v35 = vld [vmem:[#allocation32_spill] sm:$0xff]  ;;  %v1977_v61 = vpop.permute.xlu0 %1976  ;;  %v1979_v30 = vpop.permute.xlu1 %1978 }
 0x5cd   :  { %12016 = vst [vmem:[#allocation18_spill] sm:$0xff] %v10385_v46  ;;  %4498 = vmatpush.msra.mxu0 %v12019_v41  ;;  %4545 = vmatpush.msra.mxu1 %v12020_v52  ;;  %v1997_v41 = vsel %vm1984_vm2, %v1977_v61, %v1979_v30  ;;  %v1981_v61 = vpop.permute.xlu2 %1980 }
 0x5ce   :  { %6152 = vmatmul.msk.f32.gmra.mxu0 %vm3474_vm3, %v9836_v14  ;;  %6163 = vmatmul.msk.f32.gmra.mxu1 %vm3474_vm3, %v9836_v14  ;;  %12022 = vst [vmem:[#allocation68_spill] sm:$0xff] %v10403_v22 }
 0x5cf   :  { %6174 = vmatmul.msk.f32.gmra.mxu2 %vm3474_vm3, %v11975_v58  ;;  %6185 = vmatmul.msk.f32.gmra.mxu3 %vm3474_vm3, %v11975_v58 }
 0x5d0   :  { %4619 = vmatpush.msra.mxu2 %v10120_v37  ;;  %4666 = vmatpush.msra.mxu3 %v10125_v42 }
 0x5d1   :  { %4499 = vmatpush.msra.mxu0 %v12023_v54  ;;  %4546 = vmatpush.msra.mxu1 %v12024_v35 }
 0x5d2   :  { %4620 = vmatpush.msra.mxu2 %v10148_v11  ;;  %4667 = vmatpush.msra.mxu3 %v10153_v51  ;;  %v10425_v37 = vpop.f32.mrf.mxu2  ;;  %v10427_v42 = vpop.f32.mrf.mxu3 }
 0x5d3   :  { %v10411_v63 = vpop.f32.mrf.mxu0  ;;  %v10413_v44 = vpop.f32.mrf.mxu1  ;;  %4500 = vmatpush.msra.mxu0 %v9846_v25  ;;  %4547 = vmatpush.msra.mxu1 %v9851_v36  ;;  %12027 = vst [vmem:[#allocation20_spill] sm:$0xff] %v10425_v37 }
 0x5d4   :  { %12025 = vst [vmem:[#allocation44_spill] sm:$0xff] %v10411_v63  ;;  %v12032_v63 = vld [vmem:[#allocation25_spill] sm:$0xff] }
 0x5d5   :  { %12026 = vst [vmem:[#allocation45_spill] sm:$0xff] %v10413_v44 }
 0x5d6   :  { %6153 = vmatmul.msk.f32.gmra.mxu0 %vm3474_vm3, %v9893_v50  ;;  %6164 = vmatmul.msk.f32.gmra.mxu1 %vm3474_vm3, %v9893_v50  ;;  %12028 = vst [vmem:[#allocation50_spill] sm:$0xff] %v10427_v42 }
 0x5d7   :  { %6175 = vmatmul.msk.f32.gmra.mxu2 %vm3474_vm3, %v11979_v1  ;;  %6186 = vmatmul.msk.f32.gmra.mxu3 %vm3474_vm3, %v11979_v1 }
 0x5db   :  { %v3556_v11 = vpop.f32.mrf.mxu0  ;;  %v3603_v25 = vpop.f32.mrf.mxu1 }
 0x5de   :  { %6154 = vmatmul.msk.f32.gmra.mxu0 %vm3474_vm3, %v9951_v9  ;;  %6165 = vmatmul.msk.f32.gmra.mxu1 %vm3474_vm3, %v9951_v9 }
 0x5df   :  { %6176 = vmatmul.msk.f32.gmra.mxu2 %vm3474_vm3, %v9836_v14  ;;  %6187 = vmatmul.msk.f32.gmra.mxu3 %vm3474_vm3, %v9836_v14 }
 0x5e2   :  { %v3686_v36 = vpop.f32.mrf.mxu2  ;;  %v3733_v51 = vpop.f32.mrf.mxu3 }
 0x5e3   :  { %v10437_v39 = vadd.f32 %v3686_v36, %v3556_v11  ;;  %v10439_v17 = vadd.f32 %v3733_v51, %v3603_v25  ;;  %v10441_v24 = vpop.f32.mrf.mxu0  ;;  %v10443_v3 = vpop.f32.mrf.mxu1  ;;  %v12029_v25 = vld [vmem:[#allocation23_spill] sm:$0xff] }
 0x5e4   :  { %v2025_v36 = vmax.f32 %v12029_v25, %v1997_v41  ;;  %v1983_v51 = vpop.permute.xlu0 %1982 }
 0x5e5   :  { %v1998_v42 = vsel %vm1984_vm2, %v1981_v61, %v1983_v51 }
 0x5e6   :  { %6155 = vmatmul.msk.f32.gmra.mxu0 %vm3474_vm3, %v10229_v12  ;;  %6166 = vmatmul.msk.f32.gmra.mxu1 %vm3474_vm3, %v10229_v12  ;;  %v2043_v30 = vadd.f32 %v9915_v7, %v2025_v36  ;;  %v2026_v22 = vmax.f32 %v12032_v63, %v1998_v42 }
 0x5e7   :  { %6177 = vmatmul.msk.f32.gmra.mxu2 %vm3474_vm3, %v9893_v50  ;;  %6188 = vmatmul.msk.f32.gmra.mxu3 %vm3474_vm3, %v9893_v50 }
 0x5e8   :  { %v10482_v46 = vmax.f32 %v2043_v30, 0.0  ;;  %v2044_v36 = vadd.f32 %v9915_v7, %v2026_v22 }
 0x5ea   :  { %v10454_v52 = vpop.f32.mrf.mxu2  ;;  %v10456_v54 = vpop.f32.mrf.mxu3  ;;  %v10501_v30 = vmax.f32 %v2044_v36, 0.0 }
 0x5eb   :  { %v10458_v35 = vpop.f32.mrf.mxu0  ;;  %v10460_v11 = vpop.f32.mrf.mxu1 }
 0x5ee   :  { %6156 = vmatmul.msk.f32.gmra.mxu0 %vm3474_vm3, %v10271_v56  ;;  %6167 = vmatmul.msk.f32.gmra.mxu1 %vm3474_vm3, %v10271_v56 }
 0x5ef   :  { %6178 = vmatmul.msk.f32.gmra.mxu2 %vm3474_vm3, %v9951_v9  ;;  %6189 = vmatmul.msk.f32.gmra.mxu3 %vm3474_vm3, %v9951_v9 }
 0x5f2   :  { %v10473_v44 = vpop.f32.mrf.mxu2  ;;  %v10475_v41 = vpop.f32.mrf.mxu3 }
 0x5f3   :  { %v10477_v25 = vpop.f32.mrf.mxu0  ;;  %v10479_v37 = vpop.f32.mrf.mxu1 }
 0x5f4   :  { %12030 = vst [vmem:[#allocation70_spill] sm:$0xff] %v10477_v25 }
 0x5f5   :  { %12031 = vst [vmem:[#allocation53_spill] sm:$0xff] %v10479_v37  ;;  %v12078_v37 = vld [vmem:[#allocation42_spill] sm:$0xff] }
 0x5f6   :  { %6157 = vmatmul.msk.f32.gmra.mxu0 %vm3474_vm3, %v10482_v46  ;;  %6168 = vmatmul.msk.f32.gmra.mxu1 %vm3474_vm3, %v10482_v46 }
 0x5f7   :  { %6179 = vmatmul.msk.f32.gmra.mxu2 %vm3474_vm3, %v10229_v12  ;;  %6190 = vmatmul.msk.f32.gmra.mxu3 %vm3474_vm3, %v10229_v12 }
 0x5fa   :  { %v10493_v51 = vpop.f32.mrf.mxu2  ;;  %v10495_v61 = vpop.f32.mrf.mxu3 }
 0x5fb   :  { %12033 = vst [vmem:[#allocation30_spill] sm:$0xff] %v10493_v51  ;;  %v10497_v63 = vpop.f32.mrf.mxu0  ;;  %v10499_v42 = vpop.f32.mrf.mxu1 }
 0x5fc   :  { %12034 = vst [vmem:[#allocation73_spill] sm:$0xff] %v10495_v61 }
 0x5fd   :  { %12035 = vst [vmem:[#allocation16_spill] sm:$0xff] %v10497_v63 }
 0x5fe   :  { %12036 = vst [vmem:[#allocation67_spill] sm:$0xff] %v10499_v42  ;;  %6158 = vmatmul.msk.f32.gmra.mxu0 %vm3474_vm3, %v10501_v30  ;;  %6169 = vmatmul.msk.f32.gmra.mxu1 %vm3474_vm3, %v10501_v30 }
 0x5ff   :  { %6180 = vmatmul.msk.f32.gmra.mxu2 %vm3474_vm3, %v10271_v56  ;;  %6191 = vmatmul.msk.f32.gmra.mxu3 %vm3474_vm3, %v10271_v56 }
 0x602   :  { %v10511_v22 = vpop.f32.mrf.mxu2  ;;  %v10513_v19 = vpop.f32.mrf.mxu3 }
 0x603   :  { %12037 = vst [vmem:[#allocation48_spill] sm:$0xff] %v10511_v22  ;;  %v10515_v59 = vpop.f32.mrf.mxu0  ;;  %v10517_v36 = vpop.f32.mrf.mxu1 }
 0x604   :  { %12038 = vst [vmem:[#allocation29_spill] sm:$0xff] %v10513_v19 }
 0x605   :  { %12039 = vst [vmem:[#allocation17_spill] sm:$0xff] %v10515_v59 }
 0x606   :  { %12040 = vst [vmem:[#allocation74_spill] sm:$0xff] %v10517_v36  ;;  %6193 = vmatmul.msk.f32.vlgmr.msrb.gmra.mxu0 %vm3474_vm3, %v12041_v28  ;;  %6204 = vmatmul.msk.f32.vlgmr.msrb.gmra.mxu1 %vm3474_vm3, %v12041_v28 }
 0x607   :  { %6215 = vmatmul.msk.f32.vlgmr.msrb.gmra.mxu2 %vm3474_vm3, %v9677_v34  ;;  %6226 = vmatmul.msk.f32.vlgmr.msrb.gmra.mxu3 %vm3474_vm3, %v9677_v34 }
 0x60a   :  { %v10527_v26 = vpop.f32.mrf.mxu2  ;;  %v10529_v15 = vpop.f32.mrf.mxu3 }
 0x60b   :  { %12042 = vst [vmem:[#allocation75_spill] sm:$0xff] %v10527_v26  ;;  %v10531_v33 = vpop.f32.mrf.mxu0  ;;  %v10533_v48 = vpop.f32.mrf.mxu1 }
 0x60c   :  { %12043 = vst [vmem:[#allocation49_spill] sm:$0xff] %v10529_v15 }
 0x60d   :  { %12044 = vst [vmem:[#allocation71_spill] sm:$0xff] %v10531_v33 }
 0x60e   :  { %12045 = vst [vmem:[#allocation46_spill] sm:$0xff] %v10533_v48  ;;  %6194 = vmatmul.msk.f32.gmra.mxu0 %vm3474_vm3, %v12046_v62  ;;  %6205 = vmatmul.msk.f32.gmra.mxu1 %vm3474_vm3, %v12046_v62 }
 0x60f   :  { %6216 = vmatmul.msk.f32.gmra.mxu2 %vm3474_vm3, %v9724_v21  ;;  %6227 = vmatmul.msk.f32.gmra.mxu3 %vm3474_vm3, %v9724_v21 }
 0x612   :  { %v10543_v28 = vpop.f32.mrf.mxu2  ;;  %v10545_v6 = vpop.f32.mrf.mxu3 }
 0x613   :  { %12047 = vst [vmem:[#allocation41_spill] sm:$0xff] %v10543_v28  ;;  %v10547_v23 = vpop.f32.mrf.mxu0  ;;  %v10549_v33 = vpop.f32.mrf.mxu1 }
 0x614   :  { %12048 = vst [vmem:[#allocation33_spill] sm:$0xff] %v10545_v6 }
 0x615   :  { %12049 = vst [vmem:[#allocation79_spill] sm:$0xff] %v10547_v23 }
 0x616   :  { %12050 = vst [vmem:[#allocation57_spill] sm:$0xff] %v10549_v33  ;;  %6195 = vmatmul.msk.f32.gmra.mxu0 %vm3474_vm3, %v9677_v34  ;;  %6206 = vmatmul.msk.f32.gmra.mxu1 %vm3474_vm3, %v9677_v34 }
 0x617   :  { %6217 = vmatmul.msk.f32.gmra.mxu2 %vm3474_vm3, %v9763_v20  ;;  %6228 = vmatmul.msk.f32.gmra.mxu3 %vm3474_vm3, %v9763_v20 }
 0x61a   :  { %v10559_v62 = vpop.f32.mrf.mxu2  ;;  %v10561_v28 = vpop.f32.mrf.mxu3 }
 0x61b   :  { %12051 = vst [vmem:[#allocation34_spill] sm:$0xff] %v10559_v62  ;;  %v10563_v6 = vpop.f32.mrf.mxu0  ;;  %v10565_v23 = vpop.f32.mrf.mxu1 }
 0x61c   :  { %12052 = vst [vmem:[#allocation80_spill] sm:$0xff] %v10561_v28 }
 0x61d   :  { %12053 = vst [vmem:[#allocation47_spill] sm:$0xff] %v10563_v6 }
 0x61e   :  { %12054 = vst [vmem:[#allocation28_spill] sm:$0xff] %v10565_v23  ;;  %6196 = vmatmul.msk.f32.gmra.mxu0 %vm3474_vm3, %v9724_v21  ;;  %6207 = vmatmul.msk.f32.gmra.mxu1 %vm3474_vm3, %v9724_v21 }
 0x61f   :  { %6218 = vmatmul.msk.f32.gmra.mxu2 %vm3474_vm3, %v11976_v29  ;;  %6229 = vmatmul.msk.f32.gmra.mxu3 %vm3474_vm3, %v11976_v29 }
 0x622   :  { %v10575_v34 = vpop.f32.mrf.mxu2  ;;  %v10577_v62 = vpop.f32.mrf.mxu3 }
 0x623   :  { %12055 = vst [vmem:[#allocation15_spill] sm:$0xff] %v10575_v34  ;;  %v10579_v28 = vpop.f32.mrf.mxu0  ;;  %v10581_v6 = vpop.f32.mrf.mxu1 }
 0x624   :  { %12056 = vst [vmem:[#allocation26_spill] sm:$0xff] %v10577_v62 }
 0x625   :  { %12057 = vst [vmem:[#allocation19_spill] sm:$0xff] %v10579_v28 }
 0x626   :  { %12058 = vst [vmem:[#allocation66_spill] sm:$0xff] %v10581_v6  ;;  %6197 = vmatmul.msk.f32.gmra.mxu0 %vm3474_vm3, %v9763_v20  ;;  %6208 = vmatmul.msk.f32.gmra.mxu1 %vm3474_vm3, %v9763_v20 }
 0x627   :  { %6219 = vmatmul.msk.f32.gmra.mxu2 %vm3474_vm3, %v9834_v60  ;;  %6230 = vmatmul.msk.f32.gmra.mxu3 %vm3474_vm3, %v9834_v60 }
 0x62a   :  { %v10591_v21 = vpop.f32.mrf.mxu2  ;;  %v10593_v34 = vpop.f32.mrf.mxu3 }
 0x62b   :  { %12059 = vst [vmem:[#allocation22_spill] sm:$0xff] %v10591_v21  ;;  %v3815_v62 = vpop.f32.mrf.mxu0  ;;  %v3862_v28 = vpop.f32.mrf.mxu1 }
 0x62c   :  { %12060 = vst [vmem:[#allocation7_spill] sm:$0xff] %v10593_v34  ;;  %v3883_v6 = vadd.f32 %v3815_v62, %v10437_v39  ;;  %v3884_v21 = vadd.f32 %v3862_v28, %v10439_v17 }
 0x62e   :  { %6198 = vmatmul.msk.f32.gmra.mxu0 %vm3474_vm3, %v11976_v29  ;;  %6209 = vmatmul.msk.f32.gmra.mxu1 %vm3474_vm3, %v11976_v29 }
 0x62f   :  { %6220 = vmatmul.msk.f32.gmra.mxu2 %vm3474_vm3, %v9879_v8  ;;  %6231 = vmatmul.msk.f32.gmra.mxu3 %vm3474_vm3, %v9879_v8 }
 0x632   :  { %v3964_v23 = vpop.f32.mrf.mxu2  ;;  %v4011_v34 = vpop.f32.mrf.mxu3 }
 0x633   :  { %v10605_v33 = vadd.f32 %v3964_v23, %v3883_v6  ;;  %v10607_v48 = vadd.f32 %v4011_v34, %v3884_v21  ;;  %v10609_v15 = vpop.f32.mrf.mxu0  ;;  %v10611_v26 = vpop.f32.mrf.mxu1 }
 0x635   :  { %12061 = vst [vmem:[#allocation69_spill] sm:$0xff] %v10605_v33 }
 0x636   :  { %6199 = vmatmul.msk.f32.gmra.mxu0 %vm3474_vm3, %v9834_v60  ;;  %6210 = vmatmul.msk.f32.gmra.mxu1 %vm3474_vm3, %v9834_v60 }
 0x637   :  { %6221 = vmatmul.msk.f32.gmra.mxu2 %vm3474_vm3, %v9920_v31  ;;  %6232 = vmatmul.msk.f32.gmra.mxu3 %vm3474_vm3, %v9920_v31 }
 0x63a   :  { %v10621_v23 = vpop.f32.mrf.mxu2  ;;  %v10623_v6 = vpop.f32.mrf.mxu3 }
 0x63b   :  { %v10625_v39 = vpop.f32.mrf.mxu0  ;;  %v10627_v17 = vpop.f32.mrf.mxu1 }
 0x63e   :  { %6200 = vmatmul.msk.f32.gmra.mxu0 %vm3474_vm3, %v9879_v8  ;;  %6211 = vmatmul.msk.f32.gmra.mxu1 %vm3474_vm3, %v9879_v8 }
 0x63f   :  { %6222 = vmatmul.msk.f32.gmra.mxu2 %vm3474_vm3, %v9949_v38  ;;  %6233 = vmatmul.msk.f32.gmra.mxu3 %vm3474_vm3, %v9949_v38 }
 0x642   :  { %v10637_v28 = vpop.f32.mrf.mxu2  ;;  %v10639_v62 = vpop.f32.mrf.mxu3 }
 0x643   :  { %v10641_v34 = vpop.f32.mrf.mxu0  ;;  %v10643_v21 = vpop.f32.mrf.mxu1 }
 0x644   :  { %12062 = vst [vmem:[#allocation59_spill] sm:$0xff] %v10641_v34 }
 0x645   :  { %12063 = vst [vmem:[#allocation58_spill] sm:$0xff] %v10643_v21 }
 0x646   :  { %6201 = vmatmul.msk.f32.gmra.mxu0 %vm3474_vm3, %v9920_v31  ;;  %6212 = vmatmul.msk.f32.gmra.mxu1 %vm3474_vm3, %v9920_v31 }
 0x647   :  { %6223 = vmatmul.msk.f32.gmra.mxu2 %vm3474_vm3, %v10238_v57  ;;  %6234 = vmatmul.msk.f32.gmra.mxu3 %vm3474_vm3, %v10238_v57 }
 0x64a   :  { %v10653_v33 = vpop.f32.mrf.mxu2  ;;  %v10655_v36 = vpop.f32.mrf.mxu3 }
 0x64b   :  { %v10657_v59 = vpop.f32.mrf.mxu0  ;;  %v10659_v5 = vpop.f32.mrf.mxu1 }
 0x64c   :  { %12064 = vst [vmem:[#allocation77_spill] sm:$0xff] %v10657_v59 }
 0x64d   :  { %12065 = vst [vmem:[#allocation2_spill] sm:$0xff] %v10659_v5 }
 0x64e   :  { %6202 = vmatmul.msk.f32.gmra.mxu0 %vm3474_vm3, %v9949_v38  ;;  %6213 = vmatmul.msk.f32.gmra.mxu1 %vm3474_vm3, %v9949_v38 }
 0x64f   :  { %6224 = vmatmul.msk.f32.gmra.mxu2 %vm3474_vm3, %v10279_v47  ;;  %6235 = vmatmul.msk.f32.gmra.mxu3 %vm3474_vm3, %v10279_v47 }
 0x652   :  { %v10669_v45 = vpop.f32.mrf.mxu2  ;;  %v10671_v2 = vpop.f32.mrf.mxu3 }
 0x653   :  { %v10673_v19 = vpop.f32.mrf.mxu0  ;;  %v10675_v59 = vpop.f32.mrf.mxu1 }
 0x654   :  { %12066 = vst [vmem:[#allocation3_spill] sm:$0xff] %v10673_v19 }
 0x655   :  { %12067 = vst [vmem:[#allocation21_spill] sm:$0xff] %v10675_v59 }
 0x656   :  { %6237 = vmatmul.msk.f32.vlgmr.msra.gmra.mxu0 %vm3474_vm3, %v9194_v53  ;;  %6248 = vmatmul.msk.f32.vlgmr.msra.gmra.mxu1 %vm3474_vm3, %v9194_v53 }
 0x657   :  { %6259 = vmatmul.msk.f32.vlgmr.msra.gmra.mxu2 %vm3474_vm3, %v9763_v20  ;;  %6270 = vmatmul.msk.f32.vlgmr.msra.gmra.mxu3 %vm3474_vm3, %v9763_v20 }
 0x65a   :  { %v10685_v5 = vpop.f32.mrf.mxu2  ;;  %v10687_v22 = vpop.f32.mrf.mxu3 }
 0x65b   :  { %v10689_v42 = vpop.f32.mrf.mxu0  ;;  %v10691_v19 = vpop.f32.mrf.mxu1 }
 0x65c   :  { %12068 = vst [vmem:[#allocation6_spill] sm:$0xff] %v10689_v42 }
 0x65d   :  { %12069 = vst [vmem:[#allocation52_spill] sm:$0xff] %v10691_v19 }
 0x65e   :  { %6238 = vmatmul.msk.f32.gmra.mxu0 %vm3474_vm3, %v11975_v58  ;;  %6249 = vmatmul.msk.f32.gmra.mxu1 %vm3474_vm3, %v11975_v58 }
 0x65f   :  { %6260 = vmatmul.msk.f32.gmra.mxu2 %vm3474_vm3, %v11976_v29  ;;  %6271 = vmatmul.msk.f32.gmra.mxu3 %vm3474_vm3, %v11976_v29 }
 0x662   :  { %v10701_v53 = vpop.f32.mrf.mxu2  ;;  %v10703_v20 = vpop.f32.mrf.mxu3 }
 0x663   :  { %v10705_v59 = vpop.f32.mrf.mxu0  ;;  %v10707_v42 = vpop.f32.mrf.mxu1 }
 0x664   :  { %12070 = vst [vmem:[#allocation24_spill] sm:$0xff] %v10705_v59 }
 0x665   :  { %12071 = vst [vmem:[#allocation10_spill] sm:$0xff] %v10707_v42 }
 0x666   :  { %6239 = vmatmul.msk.f32.gmra.mxu0 %vm3474_vm3, %v11979_v1  ;;  %6250 = vmatmul.msk.f32.gmra.mxu1 %vm3474_vm3, %v11979_v1 }
 0x667   :  { %6261 = vmatmul.msk.f32.gmra.mxu2 %vm3474_vm3, %v9834_v60  ;;  %6272 = vmatmul.msk.f32.gmra.mxu3 %vm3474_vm3, %v9834_v60 }
 0x66a   :  { %v10717_v58 = vpop.f32.mrf.mxu2  ;;  %v10719_v29 = vpop.f32.mrf.mxu3 }
 0x66b   :  { %v10721_v19 = vpop.f32.mrf.mxu0  ;;  %v10723_v59 = vpop.f32.mrf.mxu1 }
 0x66c   :  { %12072 = vst [vmem:[#allocation54_spill] sm:$0xff] %v10721_v19 }
 0x66d   :  { %12073 = vst [vmem:[#allocation11_spill] sm:$0xff] %v10723_v59 }
 0x66e   :  { %6240 = vmatmul.msk.f32.gmra.mxu0 %vm3474_vm3, %v9836_v14  ;;  %6251 = vmatmul.msk.f32.gmra.mxu1 %vm3474_vm3, %v9836_v14 }
 0x66f   :  { %6262 = vmatmul.msk.f32.gmra.mxu2 %vm3474_vm3, %v9879_v8  ;;  %6273 = vmatmul.msk.f32.gmra.mxu3 %vm3474_vm3, %v9879_v8 }
 0x672   :  { %v10733_v60 = vpop.f32.mrf.mxu2  ;;  %v10735_v1 = vpop.f32.mrf.mxu3 }
 0x673   :  { %v10737_v42 = vpop.f32.mrf.mxu0  ;;  %v10739_v19 = vpop.f32.mrf.mxu1 }
 0x674   :  { %12074 = vst [vmem:[#allocation76_spill] sm:$0xff] %v10737_v42 }
 0x675   :  { %12075 = vst [vmem:[#allocation38_spill] sm:$0xff] %v10739_v19 }
 0x676   :  { %6241 = vmatmul.msk.f32.gmra.mxu0 %vm3474_vm3, %v9893_v50  ;;  %6252 = vmatmul.msk.f32.gmra.mxu1 %vm3474_vm3, %v9893_v50 }
 0x677   :  { %6263 = vmatmul.msk.f32.gmra.mxu2 %vm3474_vm3, %v9920_v31  ;;  %6274 = vmatmul.msk.f32.gmra.mxu3 %vm3474_vm3, %v9920_v31 }
 0x67a   :  { %v10749_v14 = vpop.f32.mrf.mxu2  ;;  %v10751_v8 = vpop.f32.mrf.mxu3 }
 0x67b   :  { %v10753_v59 = vpop.f32.mrf.mxu0  ;;  %v4160_v42 = vpop.f32.mrf.mxu1 }
 0x67c   :  { %12076 = vst [vmem:[#allocation72_spill] sm:$0xff] %v10753_v59  ;;  %v10756_v19 = vadd.f32 %v4160_v42, %v10607_v48  ;;  %v3352_v48 = vpop.permute.xlu1 %3351 }
 0x67e   :  { %12077 = vst [vmem:[#allocation27_spill] sm:$0xff] %v10756_v19  ;;  %6242 = vmatmul.msk.f32.gmra.mxu0 %vm3474_vm3, %v9951_v9  ;;  %6253 = vmatmul.msk.f32.gmra.mxu1 %vm3474_vm3, %v9951_v9 }
 0x67f   :  { %6264 = vmatmul.msk.f32.gmra.mxu2 %vm3474_vm3, %v9949_v38  ;;  %6275 = vmatmul.msk.f32.gmra.mxu3 %vm3474_vm3, %v9949_v38  ;;  %v3354_v38 = vpop.permute.xlu2 %3353 }
 0x680   :  { %v3371_v19 = vsel %vm1984_vm2, %v3352_v48, %v3354_v38 }
 0x681   :  { %v3399_v25 = vmax.f32 %v12078_v37, %v3371_v19 }
 0x682   :  { %v10766_v50 = vpop.f32.mrf.mxu2  ;;  %v10768_v31 = vpop.f32.mrf.mxu3 }
 0x683   :  { %v4294_v59 = vpop.f32.mrf.mxu0  ;;  %v4341_v63 = vpop.f32.mrf.mxu1 }
 0x684   :  { %v4295_v9 = vadd.f32 %v4294_v59, %v10621_v23  ;;  %v4342_v42 = vadd.f32 %v4341_v63, %v10623_v6  ;;  %v3413_v59 = vadd.f32 %v9915_v7, %v3399_v25 }
 0x686   :  { %6243 = vmatmul.msk.f32.gmra.mxu0 %vm3474_vm3, %v10229_v12  ;;  %6254 = vmatmul.msk.f32.gmra.mxu1 %vm3474_vm3, %v10229_v12 }
 0x687   :  { %6265 = vmatmul.msk.f32.gmra.mxu2 %vm3474_vm3, %v10238_v57  ;;  %6276 = vmatmul.msk.f32.gmra.mxu3 %vm3474_vm3, %v10238_v57  ;;  %v3358_v57 = vpop.permute.xlu1 %3357 }
 0x68a   :  { %v4388_v32 = vpop.f32.mrf.mxu2  ;;  %v4435_v21 = vpop.f32.mrf.mxu3 }
 0x68b   :  { %v10781_v34 = vadd.f32 %v4388_v32, %v4295_v9  ;;  %v10783_v61 = vadd.f32 %v4435_v21, %v4342_v42  ;;  %v4297_v12 = vpop.f32.mrf.mxu0  ;;  %v4344_v51 = vpop.f32.mrf.mxu1  ;;  %v3427_v9 = vmax.f32 %v3413_v59, 0.0  ;;  %v12079_v42 = vld [vmem:[#allocation60_spill] sm:$0xff] }
 0x68c   :  { %v3356_v32 = vpop.permute.xlu0 %3355  ;;  %v4298_v63 = vadd.f32 %v4297_v12, %v10637_v28  ;;  %v4345_v19 = vadd.f32 %v4344_v51, %v10639_v62 }
 0x68d   :  { %v3372_v37 = vsel %vm1984_vm2, %v3356_v32, %v3358_v57 }
 0x68e   :  { %6244 = vmatmul.msk.f32.gmra.mxu0 %vm3474_vm3, %v10271_v56  ;;  %6255 = vmatmul.msk.f32.gmra.mxu1 %vm3474_vm3, %v10271_v56 }
 0x68f   :  { %6266 = vmatmul.msk.f32.gmra.mxu2 %vm3474_vm3, %v10279_v47  ;;  %6277 = vmatmul.msk.f32.gmra.mxu3 %vm3474_vm3, %v10279_v47  ;;  %v3400_v47 = vmax.f32 %v12079_v42, %v3372_v37 }
 0x691   :  { %v3414_v25 = vadd.f32 %v9915_v7, %v3400_v47 }
 0x692   :  { %v4391_v23 = vpop.f32.mrf.mxu2  ;;  %v4438_v6 = vpop.f32.mrf.mxu3 }
 0x693   :  { %v10798_v21 = vadd.f32 %v4391_v23, %v4298_v63  ;;  %v10800_v56 = vadd.f32 %v4438_v6, %v4345_v19  ;;  %v4300_v48 = vpop.f32.mrf.mxu0  ;;  %v4347_v38 = vpop.f32.mrf.mxu1  ;;  %v3428_v19 = vmax.f32 %v3414_v25, 0.0 }
 0x694   :  { %v4301_v51 = vadd.f32 %v4300_v48, %v10653_v33  ;;  %v4348_v28 = vadd.f32 %v4347_v38, %v10655_v36 }
 0x696   :  { %6245 = vmatmul.msk.f32.gmra.mxu0 %vm3474_vm3, %v10482_v46  ;;  %6256 = vmatmul.msk.f32.gmra.mxu1 %vm3474_vm3, %v10482_v46 }
 0x697   :  { %6267 = vmatmul.msk.f32.gmra.mxu2 %vm3474_vm3, %v3427_v9  ;;  %6278 = vmatmul.msk.f32.gmra.mxu3 %vm3474_vm3, %v3427_v9 }
 0x69a   :  { %v4394_v62 = vpop.f32.mrf.mxu2  ;;  %v4441_v12 = vpop.f32.mrf.mxu3 }
 0x69b   :  { %v10812_v57 = vadd.f32 %v4394_v62, %v4301_v51  ;;  %v10814_v32 = vadd.f32 %v4441_v12, %v4348_v28  ;;  %v4303_v59 = vpop.f32.mrf.mxu0  ;;  %v4350_v63 = vpop.f32.mrf.mxu1 }
 0x69c   :  { %v4304_v7 = vadd.f32 %v4303_v59, %v10669_v45  ;;  %v4351_v33 = vadd.f32 %v4350_v63, %v10671_v2 }
 0x69e   :  { %6246 = vmatmul.msk.f32.gmra.mxu0 %vm3474_vm3, %v10501_v30  ;;  %6257 = vmatmul.msk.f32.gmra.mxu1 %vm3474_vm3, %v10501_v30 }
 0x69f   :  { %6268 = vmatmul.msk.f32.gmra.mxu2 %vm3474_vm3, %v3428_v19  ;;  %6279 = vmatmul.msk.f32.gmra.mxu3 %vm3474_vm3, %v3428_v19 }
 0x6a2   :  { %v4397_v46 = vpop.f32.mrf.mxu2  ;;  %v4444_v36 = vpop.f32.mrf.mxu3 }
 0x6a3   :  { %v10824_v37 = vadd.f32 %v4397_v46, %v4304_v7  ;;  %v10826_v23 = vadd.f32 %v4444_v36, %v4351_v33  ;;  %v4306_v6 = vpop.f32.mrf.mxu0  ;;  %v4353_v48 = vpop.f32.mrf.mxu1 }
 0x6a4   :  { %v4307_v38 = vadd.f32 %v4306_v6, %v10685_v5  ;;  %v4354_v30 = vadd.f32 %v4353_v48, %v10687_v22 }
 0x6aa   :  { %v4400_v9 = vpop.f32.mrf.mxu2  ;;  %v4447_v42 = vpop.f32.mrf.mxu3 }
 0x6ab   :  { %v10830_v47 = vadd.f32 %v4400_v9, %v4307_v38  ;;  %v10832_v25 = vadd.f32 %v4447_v42, %v4354_v30  ;;  %v4309_v45 = vpop.f32.mrf.mxu0  ;;  %v4356_v2 = vpop.f32.mrf.mxu1 }
 0x6ac   :  { %v4310_v51 = vadd.f32 %v4309_v45, %v10701_v53  ;;  %v4357_v28 = vadd.f32 %v4356_v2, %v10703_v20 }
 0x6b2   :  { %v4403_v62 = vpop.f32.mrf.mxu2  ;;  %v4450_v12 = vpop.f32.mrf.mxu3 }
 0x6b3   :  { %v10836_v59 = vadd.f32 %v4403_v62, %v4310_v51  ;;  %v10838_v63 = vadd.f32 %v4450_v12, %v4357_v28  ;;  %v4312_v5 = vpop.f32.mrf.mxu0  ;;  %v4359_v22 = vpop.f32.mrf.mxu1 }
 0x6b4   :  { %v4313_v19 = vadd.f32 %v4312_v5, %v10717_v58  ;;  %v4360_v7 = vadd.f32 %v4359_v22, %v10719_v29 }
 0x6ba   :  { %v4406_v33 = vpop.f32.mrf.mxu2  ;;  %v4453_v46 = vpop.f32.mrf.mxu3 }
 0x6bb   :  { %v10842_v36 = vadd.f32 %v4406_v33, %v4313_v19  ;;  %v10844_v6 = vadd.f32 %v4453_v46, %v4360_v7  ;;  %v4315_v53 = vpop.f32.mrf.mxu0  ;;  %v4362_v20 = vpop.f32.mrf.mxu1 }
 0x6bc   :  { %v4316_v48 = vadd.f32 %v4315_v53, %v10733_v60  ;;  %v4363_v38 = vadd.f32 %v4362_v20, %v10735_v1  ;;  %v3660_v20 = vadd.f32 %v10129_v55, %v10141_v49 }
 0x6c2   :  { %v4409_v30 = vpop.f32.mrf.mxu2  ;;  %v4456_v9 = vpop.f32.mrf.mxu3 }
 0x6c3   :  { %v10848_v42 = vadd.f32 %v4409_v30, %v4316_v48  ;;  %v10850_v45 = vadd.f32 %v4456_v9, %v4363_v38  ;;  %v4318_v58 = vpop.f32.mrf.mxu0  ;;  %v4365_v29 = vpop.f32.mrf.mxu1  ;;  %v3707_v48 = vadd.f32 %v10131_v18, %v10143_v16  ;;  %v3865_v38 = vadd.f32 %v10441_v24, %v3660_v20  ;;  %v12084_v20 = vld [vmem:[#allocation73_spill] sm:$0xff] }
 0x6c4   :  { %v4319_v2 = vadd.f32 %v4318_v58, %v10749_v14  ;;  %v4366_v51 = vadd.f32 %v4365_v29, %v10751_v8 }
 0x6ca   :  { %v4412_v28 = vpop.f32.mrf.mxu2  ;;  %v4459_v62 = vpop.f32.mrf.mxu3 }
 0x6cb   :  { %v10854_v12 = vadd.f32 %v4412_v28, %v4319_v2  ;;  %v10856_v5 = vadd.f32 %v4459_v62, %v4366_v51  ;;  %v4321_v60 = vpop.f32.mrf.mxu0  ;;  %v4368_v1 = vpop.f32.mrf.mxu1 }
 0x6cc   :  { %v4322_v22 = vadd.f32 %v4321_v60, %v10766_v50  ;;  %v4369_v19 = vadd.f32 %v4368_v1, %v10768_v31  ;;  %v3866_v50 = vadd.f32 %v10443_v3, %v3707_v48  ;;  %v4014_v31 = vadd.f32 %v10454_v52, %v3865_v38 }
 0x6cd   :  { %v3663_v3 = vadd.f32 %v10165_v43, %v10185_v10  ;;  %v3710_v52 = vadd.f32 %v10167_v4, %v10187_v0 }
 0x6ce   :  { %v4015_v30 = vadd.f32 %v10456_v54, %v3866_v50  ;;  %v4163_v51 = vadd.f32 %v10609_v15, %v4014_v31  ;;  %v12085_v50 = vld [vmem:[#allocation59_spill] sm:$0xff] }
 0x6cf   :  { %v3868_v28 = vadd.f32 %v10460_v11, %v3710_v52 }
 0x6d0   :  { %v4164_v55 = vadd.f32 %v10611_v26, %v4015_v30  ;;  %v12086_v30 = vld [vmem:[#allocation58_spill] sm:$0xff] }
 0x6d1   :  { %v4017_v43 = vadd.f32 %v10475_v41, %v3868_v28 }
 0x6d2   :  { %v4415_v7 = vpop.f32.mrf.mxu2  ;;  %v4462_v33 = vpop.f32.mrf.mxu3 }
 0x6d3   :  { %v10860_v46 = vadd.f32 %v4415_v7, %v4322_v22  ;;  %v10862_v53 = vadd.f32 %v4462_v33, %v4369_v19  ;;  %v4502_v14 = vpop.f32.mrf.mxu0  ;;  %v4549_v8 = vpop.f32.mrf.mxu1  ;;  %v4166_v11 = vadd.f32 %v10627_v17, %v4017_v43  ;;  %v3666_v19 = vadd.f32 %v10214_v40, %v10225_v27 }
 0x6d4   :  { %v4579_v9 = vadd.f32 %v4502_v14, %v10781_v34  ;;  %v4580_v58 = vadd.f32 %v4549_v8, %v10783_v61  ;;  %v3867_v61 = vadd.f32 %v10458_v35, %v3663_v3  ;;  %v12082_v14 = vld [vmem:[#allocation53_spill] sm:$0xff] }
 0x6d6   :  { %v4016_v26 = vadd.f32 %v10473_v44, %v3867_v61  ;;  %v12080_v44 = vld [vmem:[#allocation51_spill] sm:$0xff] }
 0x6d7   :  { %v3713_v41 = vadd.f32 %v12080_v44, %v10227_v13  ;;  %v12092_v61 = vld [vmem:[#allocation67_spill] sm:$0xff] }
 0x6d8   :  { %v4165_v35 = vadd.f32 %v10625_v39, %v4016_v26  ;;  %v12083_v39 = vld [vmem:[#allocation30_spill] sm:$0xff]  ;;  %v12093_v26 = vld [vmem:[#allocation48_spill] sm:$0xff] }
 0x6d9   :  { %v3870_v8 = vadd.f32 %v12082_v14, %v3713_v41 }
 0x6da   :  { %v4622_v29 = vpop.f32.mrf.mxu2  ;;  %v4669_v2 = vpop.f32.mrf.mxu3 }
 0x6db   :  { %v4699_v49 = vadd.f32 %v4622_v29, %v4579_v9  ;;  %v4700_v18 = vadd.f32 %v4669_v2, %v4580_v58  ;;  %v4505_v16 = vpop.f32.mrf.mxu0  ;;  %v4552_v24 = vpop.f32.mrf.mxu1  ;;  %v4019_v48 = vadd.f32 %v12084_v20, %v3870_v8  ;;  %v12099_v8 = vld [vmem:[#allocation64_spill] sm:$0xff] }
 0x6dc   :  { %v4581_v10 = vadd.f32 %v4505_v16, %v10798_v21  ;;  %v4582_v4 = vadd.f32 %v4552_v24, %v10800_v56  ;;  %v12081_v56 = vld [vmem:[#allocation70_spill] sm:$0xff]  ;;  %v12089_v16 = vld [vmem:[#allocation8_spill] sm:$0xff]  ;;  %v12090_v24 = vld [vmem:[#allocation35_spill] sm:$0xff] }
 0x6dd   :  { %v10880_v54 = vmax.f32 %v4163_v51, %v4699_v49  ;;  %v4720_v34 = vmax.f32 %v4164_v55, %v4700_v18  ;;  %v3869_v33 = vadd.f32 %v12081_v56, %v3666_v19  ;;  %v4168_v9 = vadd.f32 %v12086_v30, %v4019_v48  ;;  %v12087_v55 = vld [vmem:[#allocation36_spill] sm:$0xff]  ;;  %v12088_v49 = vld [vmem:[#allocation31_spill] sm:$0xff] }
 0x6de   :  { %v3669_v18 = vadd.f32 %v12088_v49, %v12087_v55  ;;  %v3716_v3 = vadd.f32 %v12090_v24, %v12089_v16  ;;  %v12097_v56 = vld [vmem:[#allocation39_spill] sm:$0xff]  ;;  %v12106_v55 = vld [vmem:[#allocation21_spill] sm:$0xff] }
 0x6df   :  { %4761 = vrot.lane.b32.xlu0 %v4720_v34, %s6530_s3  ;;  %4759 = vrot.lane.b32.xlu2 %v10880_v54, %s6530_s3  ;;  %v4018_v17 = vadd.f32 %v12083_v39, %v3869_v33  ;;  %v12098_v33 = vld [vmem:[#allocation13_spill] sm:$0xff]  ;;  %v12100_v39 = vld [vmem:[#allocation40_spill] sm:$0xff] }
 0x6e0   :  { %v3872_v28 = vadd.f32 %v12092_v61, %v3716_v3  ;;  %v3672_v14 = vadd.f32 %v12098_v33, %v12097_v56  ;;  %v12109_v61 = vld [vmem:[#allocation5_spill] sm:$0xff] }
 0x6e1   :  { %v4167_v31 = vadd.f32 %v12085_v50, %v4018_v17  ;;  %v3719_v17 = vadd.f32 %v12100_v39, %v12099_v8  ;;  %v12104_v50 = vld [vmem:[#allocation49_spill] sm:$0xff] }
 0x6e2   :  { %v4625_v0 = vpop.f32.mrf.mxu2  ;;  %v4672_v15 = vpop.f32.mrf.mxu3 }
 0x6e3   :  { %v4701_v62 = vadd.f32 %v4625_v0, %v4581_v10  ;;  %v4702_v60 = vadd.f32 %v4672_v15, %v4582_v4  ;;  %v4508_v1 = vpop.f32.mrf.mxu0  ;;  %v4555_v22 = vpop.f32.mrf.mxu1  ;;  %v12094_v10 = vld [vmem:[#allocation29_spill] sm:$0xff] }
 0x6e4   :  { %v4583_v40 = vadd.f32 %v4508_v1, %v10812_v57  ;;  %v4584_v27 = vadd.f32 %v4555_v22, %v10814_v32  ;;  %v12091_v32 = vld [vmem:[#allocation16_spill] sm:$0xff]  ;;  %v4021_v4 = vadd.f32 %v12094_v10, %v3872_v28  ;;  %v12096_v1 = vld [vmem:[#allocation2_spill] sm:$0xff] }
 0x6e5   :  { %v10897_v7 = vmax.f32 %v4165_v35, %v4701_v62  ;;  %v4722_v21 = vmax.f32 %v4166_v11, %v4702_v60  ;;  %v3871_v34 = vadd.f32 %v12091_v32, %v3669_v18  ;;  %v12095_v62 = vld [vmem:[#allocation77_spill] sm:$0xff]  ;;  %v12108_v32 = vld [vmem:[#allocation55_spill] sm:$0xff]  ;;  %v12110_v28 = vld [vmem:[#allocation62_spill] sm:$0xff] }
 0x6e6   :  { %v4170_v22 = vadd.f32 %v12096_v1, %v4021_v4  ;;  %v12112_v4 = vld [vmem:[#allocation46_spill] sm:$0xff] }
 0x6e7   :  { %4763 = vrot.lane.b32.xlu1 %v10897_v7, %s6530_s3  ;;  %4765 = vrot.lane.b32.xlu2 %v4722_v21, %s6530_s3  ;;  %v4020_v43 = vadd.f32 %v12093_v26, %v3871_v34  ;;  %v3722_v26 = vadd.f32 %v12110_v28, %v12109_v61 }
 0x6e9   :  { %v4169_v60 = vadd.f32 %v12095_v62, %v4020_v43 }
 0x6ea   :  { %v4628_v13 = vpop.f32.mrf.mxu2  ;;  %v4675_v38 = vpop.f32.mrf.mxu3 }
 0x6eb   :  { %v4703_v58 = vadd.f32 %v4628_v13, %v4583_v40  ;;  %v4704_v29 = vadd.f32 %v4675_v38, %v4584_v27  ;;  %v4511_v2 = vpop.f32.mrf.mxu0  ;;  %v4558_v51 = vpop.f32.mrf.mxu1  ;;  %v12102_v40 = vld [vmem:[#allocation74_spill] sm:$0xff]  ;;  %v12103_v13 = vld [vmem:[#allocation75_spill] sm:$0xff] }
 0x6ec   :  { %v4585_v0 = vadd.f32 %v4511_v2, %v10824_v37  ;;  %v4586_v15 = vadd.f32 %v4558_v51, %v10826_v23  ;;  %v12101_v23 = vld [vmem:[#allocation17_spill] sm:$0xff]  ;;  %v3874_v27 = vadd.f32 %v12102_v40, %v3719_v17  ;;  %v12105_v2 = vld [vmem:[#allocation3_spill] sm:$0xff]  ;;  %v12120_v40 = vld [vmem:[#allocation12_spill] sm:$0xff] }
 0x6ed   :  { %v10914_v52 = vmax.f32 %v4167_v31, %v4703_v58  ;;  %v4724_v57 = vmax.f32 %v4168_v9, %v4704_v29  ;;  %v3873_v48 = vadd.f32 %v12101_v23, %v3672_v14  ;;  %v12117_v17 = vld [vmem:[#allocation43_spill] sm:$0xff] }
 0x6ee   :  { %v4023_v31 = vadd.f32 %v12104_v50, %v3874_v27  ;;  %v12122_v50 = vld [vmem:[#allocation57_spill] sm:$0xff] }
 0x6ef   :  { %4767 = vrot.lane.b32.xlu0 %v10914_v52, %s6530_s3  ;;  %4769 = vrot.lane.b32.xlu1 %v4724_v57, %s6530_s3  ;;  %v4022_v38 = vadd.f32 %v12103_v13, %v3873_v48  ;;  %v12107_v57 = vld [vmem:[#allocation65_spill] sm:$0xff]  ;;  %v12119_v48 = vld [vmem:[#allocation4_spill] sm:$0xff] }
 0x6f0   :  { %v4172_v49 = vadd.f32 %v12106_v55, %v4023_v31  ;;  %v3675_v34 = vadd.f32 %v12108_v32, %v12107_v57  ;;  %v3725_v27 = vadd.f32 %v12120_v40, %v12119_v48  ;;  %v12126_v32 = vld [vmem:[#allocation10_spill] sm:$0xff] }
 0x6f1   :  { %v4171_v51 = vadd.f32 %v12105_v2, %v4022_v38 }
 0x6f2   :  { %v4631_v35 = vpop.f32.mrf.mxu2  ;;  %v4678_v11 = vpop.f32.mrf.mxu3  ;;  %v3878_v31 = vadd.f32 %v12122_v50, %v3725_v27  ;;  %v12139_v50 = vld [vmem:[#allocation45_spill] sm:$0xff] }
 0x6f3   :  { %v4705_v19 = vadd.f32 %v4631_v35, %v4585_v0  ;;  %v4706_v44 = vadd.f32 %v4678_v11, %v4586_v15  ;;  %v4514_v41 = vpop.f32.mrf.mxu0  ;;  %v4561_v21 = vpop.f32.mrf.mxu1  ;;  %v3876_v0 = vadd.f32 %v12112_v4, %v3722_v26  ;;  %v12113_v15 = vld [vmem:[#allocation41_spill] sm:$0xff] }
 0x6f4   :  { %v4587_v30 = vadd.f32 %v4514_v41, %v10830_v47  ;;  %v4588_v9 = vadd.f32 %v4561_v21, %v10832_v25  ;;  %v12111_v25 = vld [vmem:[#allocation71_spill] sm:$0xff]  ;;  %v12114_v11 = vld [vmem:[#allocation33_spill] sm:$0xff]  ;;  %v12116_v21 = vld [vmem:[#allocation52_spill] sm:$0xff] }
 0x6f5   :  { %v10931_v20 = vmax.f32 %v4169_v60, %v4705_v19  ;;  %v4726_v37 = vmax.f32 %v4170_v22, %v4706_v44  ;;  %v3875_v10 = vadd.f32 %v12111_v25, %v3675_v34  ;;  %v4025_v62 = vadd.f32 %v12114_v11, %v3876_v0  ;;  %v12115_v44 = vld [vmem:[#allocation6_spill] sm:$0xff]  ;;  %v12131_v11 = vld [vmem:[#allocation47_spill] sm:$0xff] }
 0x6f6   :  { %v12127_v25 = vld [vmem:[#allocation78_spill] sm:$0xff] }
 0x6f7   :  { %4771 = vrot.lane.b32.xlu1 %v10931_v20, %s6530_s3  ;;  %4773 = vrot.lane.b32.xlu2 %v4726_v37, %s6530_s3  ;;  %v4024_v35 = vadd.f32 %v12113_v15, %v3875_v10  ;;  %v4174_v56 = vadd.f32 %v12116_v21, %v4025_v62  ;;  %v12118_v37 = vld [vmem:[#allocation37_spill] sm:$0xff]  ;;  %v12128_v10 = vld [vmem:[#allocation56_spill] sm:$0xff]  ;;  %v12129_v0 = vld [vmem:[#allocation18_spill] sm:$0xff] }
 0x6f8   :  { %v3678_v23 = vadd.f32 %v12118_v37, %v12117_v17  ;;  %v3681_v4 = vadd.f32 %v12128_v10, %v12127_v25  ;;  %v12130_v15 = vld [vmem:[#allocation68_spill] sm:$0xff]  ;;  %v12136_v17 = vld [vmem:[#allocation11_spill] sm:$0xff] }
 0x6f9   :  { %v4173_v41 = vadd.f32 %v12115_v44, %v4024_v35  ;;  %v3728_v35 = vadd.f32 %v12130_v15, %v12129_v0  ;;  %v12134_v44 = vld [vmem:[#allocation26_spill] sm:$0xff] }
 0x6fa   :  { %v4634_v58 = vpop.f32.mrf.mxu2  ;;  %v4681_v29 = vpop.f32.mrf.mxu3  ;;  %v3879_v62 = vadd.f32 %v12131_v11, %v3681_v4  ;;  %v6302_v11 = vld [vmem:[%s11338_s5 + $0xe0] sm:$0xff] }
 0x6fb   :  { %v4707_v18 = vadd.f32 %v4634_v58, %v4587_v30  ;;  %v4708_v16 = vadd.f32 %v4681_v29, %v4588_v9  ;;  %v4517_v24 = vpop.f32.mrf.mxu0  ;;  %v4564_v3 = vpop.f32.mrf.mxu1  ;;  %v4863_v30 = vld [vmem:[%s11338_s5 + $0x48] sm:$0xff]  ;;  %v6289_v9 = vld [vmem:[%s11338_s5 + $0x98] sm:$0xff]  ;;  %v4862_v58 = vld [vmem:[%s11338_s5 + $0x40] sm:$0xff] }
 0x6fc   :  { %v4589_v60 = vadd.f32 %v4517_v24, %v10836_v59  ;;  %v4590_v1 = vadd.f32 %v4564_v3, %v10838_v63  ;;  %v12121_v63 = vld [vmem:[#allocation79_spill] sm:$0xff]  ;;  %4917 = vmatpush.msrb.mxu3 %v4863_v30  ;;  %4888 = vmatpush.msrb.mxu0 %v6289_v9  ;;  %v12123_v29 = vld [vmem:[#allocation34_spill] sm:$0xff]  ;;  %v12125_v3 = vld [vmem:[#allocation24_spill] sm:$0xff] }
 0x6fd   :  { %v10948_v43 = vmax.f32 %v4171_v51, %v4707_v18  ;;  %v4728_v47 = vmax.f32 %v4172_v49, %v4708_v16  ;;  %v3877_v38 = vadd.f32 %v12121_v63, %v3678_v23  ;;  %v12124_v51 = vld [vmem:[#allocation80_spill] sm:$0xff] }
 0x6fe   :  { %v4027_v55 = vadd.f32 %v12124_v51, %v3878_v31  ;;  %4918 = vmatpush.msrb.mxu3 %v4862_v58  ;;  %v12138_v63 = vld [vmem:[#allocation20_spill] sm:$0xff]  ;;  %v12140_v31 = vld [vmem:[#allocation50_spill] sm:$0xff] }
 0x6ff   :  { %4777 = vrot.lane.b32.xlu0 %v4728_v47, %s6530_s3  ;;  %4775 = vrot.lane.b32.xlu2 %v10948_v43, %s6530_s3  ;;  %v4026_v2 = vadd.f32 %v12123_v29, %v3877_v38  ;;  %v3731_v30 = vadd.f32 %v12140_v31, %v12139_v50  ;;  %v12142_v29 = vld [vmem:[#allocation66_spill] sm:$0xff]  ;;  %v6283_v50 = vld [vmem:[%s11338_s5 + $0x68] sm:$0xff] }
 0x700   :  { %v4176_v34 = vadd.f32 %v12126_v32, %v4027_v55  ;;  %v12143_v51 = vld [vmem:[#allocation22_spill] sm:$0xff]  ;;  %v4861_v32 = vld [vmem:[%s11338_s5 + $0x38] sm:$0xff] }
 0x701   :  { %v4175_v57 = vadd.f32 %v12125_v3, %v4026_v2  ;;  %v3882_v2 = vadd.f32 %v12142_v29, %v3731_v30  ;;  %v6303_v3 = vld [vmem:[%s11338_s5 + $0xe8] sm:$0xff]  ;;  %4919 = vmatpush.msrb.mxu3 %v4861_v32  ;;  %v6282_v31 = vld [vmem:[%s11338_s5 + $0x60] sm:$0xff]  ;;  %v6281_v30 = vld [vmem:[%s11338_s5 + $0x58] sm:$0xff] }
 0x702   :  { %v4637_v22 = vpop.f32.mrf.mxu2  ;;  %v4684_v19 = vpop.f32.mrf.mxu3  ;;  %4957 = vmatpush.msrb.mxu2 %v6303_v3  ;;  %v6297_v29 = vld [vmem:[%s11338_s5 + $0xb8] sm:$0xff]  ;;  %v6314_v32 = vld [vmem:[%s11338_s5 + $0x130] sm:$0xff] }
 0x703   :  { %v4709_v33 = vadd.f32 %v4637_v22, %v4589_v60  ;;  %v4710_v14 = vadd.f32 %v4684_v19, %v4590_v1  ;;  %v4520_v8 = vpop.f32.mrf.mxu0  ;;  %v4567_v39 = vpop.f32.mrf.mxu1  ;;  %v12132_v60 = vld [vmem:[#allocation28_spill] sm:$0xff]  ;;  %v12133_v22 = vld [vmem:[#allocation15_spill] sm:$0xff]  ;;  %v6315_v3 = vld [vmem:[%s11338_s5 + $0x138] sm:$0xff] }
 0x704   :  { %v4591_v49 = vadd.f32 %v4520_v8, %v10842_v36  ;;  %v4592_v18 = vadd.f32 %v4567_v39, %v10844_v6  ;;  %v3880_v1 = vadd.f32 %v12132_v60, %v3728_v35  ;;  %v4028_v19 = vadd.f32 %v12133_v22, %v3879_v62  ;;  %v12135_v8 = vld [vmem:[#allocation54_spill] sm:$0xff]  ;;  %v6287_v62 = vld [vmem:[%s11338_s5 + $0x88] sm:$0xff]  ;;  %v4860_v60 = vld [vmem:[%s11338_s5 + $0x30] sm:$0xff]  ;;  %4958 = vmatpush.msrb.mxu2 %v6302_v11 }
 0x705   :  { %v10965_v13 = vmax.f32 %v4173_v41, %v4709_v33  ;;  %v4730_v59 = vmax.f32 %v4174_v56, %v4710_v14  ;;  %4920 = vmatpush.msrb.mxu3 %v4860_v60 }
 0x706   :  { %v4029_v41 = vadd.f32 %v12134_v44, %v3880_v1  ;;  %v4177_v39 = vadd.f32 %v12135_v8, %v4028_v19  ;;  %v12147_v19 = vld [vmem:[#allocation69_spill] sm:$0xff]  ;;  %v12148_v44 = vld [vmem:[#allocation72_spill] sm:$0xff]  ;;  %v12149_v8 = vld [vmem:[#allocation27_spill] sm:$0xff] }
 0x707   :  { %4781 = vrot.lane.b32.xlu0 %v4730_v59, %s6530_s3  ;;  %4779 = vrot.lane.b32.xlu2 %v10965_v13, %s6530_s3  ;;  %v12137_v59 = vld [vmem:[#allocation44_spill] sm:$0xff] }
 0x708   :  { %v4178_v37 = vadd.f32 %v12136_v17, %v4029_v41  ;;  %v3684_v38 = vadd.f32 %v12138_v63, %v12137_v59  ;;  %v4181_v41 = vadd.f32 %v12148_v44, %v12147_v19  ;;  %v4858_v17 = vld [vmem:[%s11338_s5 + $0x20] sm:$0xff]  ;;  %v6285_v59 = vld [vmem:[%s11338_s5 + $0x78] sm:$0xff]  ;;  %v6299_v63 = vld [vmem:[%s11338_s5 + $0xc8] sm:$0xff] }
 0x709   :  { %v6326_v19 = vld [vmem:[%s11338_s5 + $0x180] sm:$0xff] }
 0x70a   :  { %v4640_v16 = vpop.f32.mrf.mxu2  ;;  %v4687_v24 = vpop.f32.mrf.mxu3 }
 0x70b   :  { %v4711_v61 = vadd.f32 %v4640_v16, %v4591_v49  ;;  %v4712_v28 = vadd.f32 %v4687_v24, %v4592_v18  ;;  %v4523_v26 = vpop.f32.mrf.mxu0  ;;  %v4570_v47 = vpop.f32.mrf.mxu1  ;;  %v12144_v49 = vld [vmem:[#allocation7_spill] sm:$0xff] }
 0x70c   :  { %v4593_v21 = vadd.f32 %v4523_v26, %v10848_v42  ;;  %v4594_v56 = vadd.f32 %v4570_v47, %v10850_v45  ;;  %v12141_v45 = vld [vmem:[#allocation19_spill] sm:$0xff]  ;;  %v4031_v18 = vadd.f32 %v12144_v49, %v3882_v2  ;;  %v12146_v26 = vld [vmem:[#allocation38_spill] sm:$0xff] }
 0x70d   :  { %v10991_v36 = vmax.f32 %v4175_v57, %v4711_v61  ;;  %v4732_v6 = vmax.f32 %v4176_v34, %v4712_v28  ;;  %v3881_v58 = vadd.f32 %v12141_v45, %v3684_v38  ;;  %v6288_v57 = vld [vmem:[%s11338_s5 + $0x90] sm:$0xff]  ;;  %v11111_v2 = vld [vmem:[%s11337_s4] ss:$0 sm:$0xff] }
 0x70e   :  { %4889 = vmatpush.msrb.mxu0 %v6288_v57  ;;  %v12145_v28 = vld [vmem:[#allocation76_spill] sm:$0xff] }
 0x70f   :  { %4783 = vrot.lane.b32.xlu0 %v10991_v36, %s6530_s3  ;;  %4785 = vrot.lane.b32.xlu1 %v4732_v6, %s6530_s3  ;;  %v4030_v55 = vadd.f32 %v12143_v51, %v3881_v58  ;;  %v6284_v38 = vld [vmem:[%s11338_s5 + $0x70] sm:$0xff] }
 0x710   :  { %4890 = vmatpush.msrb.mxu0 %v6287_v62  ;;  %v6280_v45 = vld [vmem:[%s11338_s5 + $0x50] sm:$0xff]  ;;  %v6308_v62 = vld [vmem:[%s11338_s5 + $0x100] sm:$0xff] }
 0x712   :  { %v4643_v33 = vpop.f32.mrf.mxu2  ;;  %v4690_v14 = vpop.f32.mrf.mxu3 }
 0x713   :  { %v4713_v23 = vadd.f32 %v4643_v33, %v4593_v21  ;;  %v4714_v48 = vadd.f32 %v4690_v14, %v4594_v56  ;;  %v4526_v40 = vpop.f32.mrf.mxu0  ;;  %v4573_v27 = vpop.f32.mrf.mxu1  ;;  %v6286_v33 = vld [vmem:[%s11338_s5 + $0x80] sm:$0xff] }
 0x714   :  { %v4595_v16 = vadd.f32 %v4526_v40, %v10854_v12  ;;  %v4596_v24 = vadd.f32 %v4573_v27, %v10856_v5  ;;  %v4179_v12 = vadd.f32 %v12145_v28, %v4030_v55  ;;  %v4180_v5 = vadd.f32 %v12146_v26, %v4031_v18  ;;  %4891 = vmatpush.msrb.mxu0 %v6286_v33  ;;  %v6300_v40 = vld [vmem:[%s11338_s5 + $0xd0] sm:$0xff]  ;;  %v4854_v27 = vld [vmem:[%s11338_s5] sm:$0xff] }
 0x715   :  { %v11008_v9 = vmax.f32 %v4177_v39, %v4713_v23  ;;  %v4734_v42 = vmax.f32 %v4178_v37, %v4714_v48  ;;  %v4857_v37 = vld [vmem:[%s11338_s5 + $0x18] sm:$0xff]  ;;  %v4856_v23 = vld [vmem:[%s11338_s5 + $0x10] sm:$0xff]  ;;  %v4855_v48 = vld [vmem:[%s11338_s5 + $0x8] sm:$0xff] }
 0x716   :  { %4892 = vmatpush.msrb.mxu0 %v6285_v59  ;;  %v6296_v18 = vld [vmem:[%s11338_s5 + $0xb0] sm:$0xff] }
 0x717   :  { %4787 = vrot.lane.b32.xlu1 %v11008_v9, %s6530_s3  ;;  %4789 = vrot.lane.b32.xlu2 %v4734_v42, %s6530_s3  ;;  %v6298_v42 = vld [vmem:[%s11338_s5 + $0xc0] sm:$0xff]  ;;  %v6324_v33 = vld [vmem:[%s11338_s5 + $0x170] sm:$0xff] }
 0x718   :  { %4893 = vmatpush.msrb.mxu0 %v6284_v38  ;;  %v6320_v59 = vld [vmem:[%s11338_s5 + $0x150] sm:$0xff]  ;;  %v6319_v38 = vld [vmem:[%s11338_s5 + $0x148] sm:$0xff] }
 0x71a   :  { %v4646_v34 = vpop.f32.mrf.mxu2  ;;  %v4693_v61 = vpop.f32.mrf.mxu3  ;;  %4894 = vmatpush.msrb.mxu0 %v6283_v50 }
 0x71b   :  { %v4715_v47 = vadd.f32 %v4646_v34, %v4595_v16  ;;  %v4716_v25 = vadd.f32 %v4693_v61, %v4596_v24  ;;  %v4529_v0 = vpop.f32.mrf.mxu0  ;;  %v4576_v15 = vpop.f32.mrf.mxu1  ;;  %v6295_v24 = vld [vmem:[%s11338_s5 + $0xa8] sm:$0xff] }
 0x71c   :  { %v4597_v35 = vadd.f32 %v4529_v0, %v10860_v46  ;;  %v4598_v6 = vadd.f32 %v4576_v15, %v10862_v53  ;;  %v4859_v46 = vld [vmem:[%s11338_s5 + $0x28] sm:$0xff]  ;;  %v6301_v53 = vld [vmem:[%s11338_s5 + $0xd8] sm:$0xff]  ;;  %4895 = vmatpush.msrb.mxu0 %v6282_v31  ;;  %v6310_v0 = vld [vmem:[%s11338_s5 + $0x110] sm:$0xff] }
 0x71d   :  { %v11030_v10 = vmax.f32 %v4179_v12, %v4715_v47  ;;  %v4736_v4 = vmax.f32 %v4180_v5, %v4716_v25  ;;  %4959 = vmatpush.msrb.mxu2 %v6301_v53  ;;  %4921 = vmatpush.msrb.mxu3 %v4859_v46  ;;  %v6313_v12 = vld [vmem:[%s11338_s5 + $0x128] sm:$0xff]  ;;  %v6312_v5 = vld [vmem:[%s11338_s5 + $0x120] sm:$0xff]  ;;  %v6311_v25 = vld [vmem:[%s11338_s5 + $0x118] sm:$0xff] }
 0x71e   :  { %4896 = vmatpush.msrb.mxu0 %v6281_v30  ;;  %v6327_v46 = vld [vmem:[%s11338_s5 + $0x188] sm:$0xff]  ;;  %v6318_v31 = vld [vmem:[%s11338_s5 + $0x140] sm:$0xff] }
 0x71f   :  { %4791 = vrot.lane.b32.xlu0 %v11030_v10, %s6530_s3  ;;  %4793 = vrot.lane.b32.xlu1 %v4736_v4, %s6530_s3 }
 0x720   :  { %4922 = vmatpush.msrb.mxu3 %v4858_v17  ;;  %4960 = vmatpush.msrb.mxu2 %v6300_v40  ;;  %v6321_v40 = vld [vmem:[%s11338_s5 + $0x158] sm:$0xff] }
 0x721   :  { %4897 = vmatpush.msrb.mxu0 %v6280_v45 }
 0x722   :  { %v4649_v1 = vpop.f32.mrf.mxu2  ;;  %v4696_v22 = vpop.f32.mrf.mxu3  ;;  %4923 = vmatpush.msrb.mxu3 %v4857_v37  ;;  %4961 = vmatpush.msrb.mxu2 %v6299_v63 }
 0x723   :  { %v4717_v21 = vadd.f32 %v4649_v1, %v4597_v35  ;;  %v4718_v56 = vadd.f32 %v4696_v22, %v4598_v6  ;;  %v6309_v35 = vld [vmem:[%s11338_s5 + $0x108] sm:$0xff]  ;;  %v6307_v22 = vld [vmem:[%s11338_s5 + $0xf8] sm:$0xff]  ;;  %5041 = vmatpush.msra.mxu0 %v6327_v46  ;;  %v5072_v46 = vld [vmem:[%s11339_s7 + $0x20] sm:$0xff] }
 0x724   :  { %4924 = vmatpush.msrb.mxu3 %v4856_v23  ;;  %4962 = vmatpush.msrb.mxu2 %v6298_v42  ;;  %v6322_v23 = vld [vmem:[%s11338_s5 + $0x160] sm:$0xff] }
 0x725   :  { %v11057_v14 = vmax.f32 %v4181_v41, %v4717_v21  ;;  %v4738_v39 = vmax.f32 %v12149_v8, %v4718_v56  ;;  %5042 = vmatpush.msra.mxu0 %v6326_v19  ;;  %v6325_v21 = vld [vmem:[%s11338_s5 + $0x178] sm:$0xff]  ;;  %v5069_v19 = vld [vmem:[%s11339_s7 + $0x8] sm:$0xff] }
 0x726   :  { %4925 = vmatpush.msrb.mxu3 %v4855_v48  ;;  %4963 = vmatpush.msrb.mxu2 %v6297_v29 }
 0x727   :  { %4797 = vrot.lane.b32.xlu0 %v4738_v39, %s6530_s3  ;;  %4795 = vrot.lane.b32.xlu2 %v11057_v14, %s6530_s3  ;;  %v6323_v39 = vld [vmem:[%s11338_s5 + $0x168] sm:$0xff] }
 0x728   :  { %4926 = vmatpush.msrb.mxu3 %v4854_v27  ;;  %4964 = vmatpush.msrb.mxu2 %v6296_v18 }
 0x729   :  { %5043 = vmatpush.msra.mxu0 %v6325_v21 }
 0x72a   :  { %4965 = vmatpush.msrb.mxu2 %v6295_v24  ;;  %4999 = vmatpush.msra.mxu3 %v6315_v3 }
 0x72b   :  { %5044 = vmatpush.msra.mxu0 %v6324_v33  ;;  %v5127_v33 = vld [vmem:[%s11342_s9 + $0x70] sm:$0xff] }
 0x72c   :  { %5000 = vmatpush.msra.mxu3 %v6314_v32 }
 0x72d   :  { %5045 = vmatpush.msra.mxu0 %v6323_v39 }
 0x72e   :  { %5001 = vmatpush.msra.mxu3 %v6313_v12 }
 0x72f   :  { %5046 = vmatpush.msra.mxu0 %v6322_v23  ;;  %v5123_v23 = vld [vmem:[%s11342_s9 + $0x50] sm:$0xff] }
 0x730   :  { %5002 = vmatpush.msra.mxu3 %v6312_v5 }
 0x731   :  { %5047 = vmatpush.msra.mxu0 %v6321_v40  ;;  %v5122_v40 = vld [vmem:[%s11342_s9 + $0x48] sm:$0xff] }
 0x732   :  { %5003 = vmatpush.msra.mxu3 %v6311_v25 }
 0x733   :  { %5048 = vmatpush.msra.mxu0 %v6320_v59 }
 0x734   :  { %5004 = vmatpush.msra.mxu3 %v6310_v0 }
 0x735   :  { %5049 = vmatpush.msra.mxu0 %v6319_v38 }
 0x736   :  { %5005 = vmatpush.msra.mxu3 %v6309_v35 }
 0x737   :  { %5050 = vmatpush.msra.mxu0 %v6318_v31 }
 0x738   :  { %5006 = vmatpush.msra.mxu3 %v6308_v62  ;;  %v5078_v62 = vld [vmem:[%s11339_s7 + $0x50] sm:$0xff] }
 0x739   :  { %v4760_v58 = vpop.permute.xlu2 %4759 }
 0x73a   :  { %5007 = vmatpush.msra.mxu3 %v6307_v22  ;;  %v5073_v22 = vld [vmem:[%s11339_s7 + $0x28] sm:$0xff] }
 0x741   :  { %v4766_v34 = vpop.permute.xlu2 %4765 }
 0x751   :  { %v4762_v51 = vpop.permute.xlu0 %4761  ;;  %v4774_v60 = vpop.permute.xlu2 %4773 }
 0x752   :  { %v4800_v55 = vsel %vm4799_vm4, %v4760_v58, %v4762_v51 }
 0x753   :  { %v4820_v49 = vmax.f32 %v10880_v54, %v4800_v55  ;;  %v6294_v54 = vld [vmem:[%s11338_s5 + $0xa0] sm:$0xff]  ;;  %v5083_v55 = vld [vmem:[%s11339_s7 + $0x78] sm:$0xff] }
 0x754   :  { %4966 = vmatpush.msrb.mxu2 %v6294_v54  ;;  %5088 = vmatpush.msrb.mxu1 %v5083_v55 }
 0x755   :  { %v4834_v16 = vadd.f32 %v11111_v2, %v4820_v49  ;;  %v5082_v49 = vld [vmem:[%s11339_s7 + $0x70] sm:$0xff] }
 0x756   :  { %5089 = vmatpush.msrb.mxu1 %v5082_v49  ;;  %v5117_v49 = vld [vmem:[%s11342_s9 + $0x20] sm:$0xff] }
 0x757   :  { %v4844_v57 = vmax.f32 %v4834_v16, 0.0 }
 0x759   :  { %v4764_v61 = vpop.permute.xlu1 %4763  ;;  %6292 = vmatmul.msk.f32.vlgmr.msrb.gmra.mxu3 %vm4875_vm5, %v4844_v57  ;;  %v4776_v17 = vpop.permute.xlu2 %4775 }
 0x75a   :  { %v4801_v28 = vsel %vm4799_vm4, %v4764_v61, %v4766_v34 }
 0x75b   :  { %v4821_v26 = vmax.f32 %v10897_v7, %v4801_v28 }
 0x75d   :  { %v4835_v47 = vadd.f32 %v11111_v2, %v4821_v26 }
 0x75f   :  { %v4845_v4 = vmax.f32 %v4835_v47, 0.0 }
 0x761   :  { %v4770_v15 = vpop.permute.xlu1 %4769  ;;  %6293 = vmatmul.msk.f32.gmra.mxu3 %vm4875_vm5, %v4845_v4  ;;  %v4768_v7 = vpop.permute.xlu0 %4767 }
 0x762   :  { %v4802_v6 = vsel %vm4799_vm4, %v4768_v7, %v4770_v15  ;;  %v4780_v30 = vpop.permute.xlu2 %4779 }
 0x763   :  { %v4822_v11 = vmax.f32 %v10914_v52, %v4802_v6  ;;  %v6306_v52 = vld [vmem:[%s11338_s5 + $0xf0] sm:$0xff] }
 0x764   :  { %5008 = vmatpush.msra.mxu3 %v6306_v52  ;;  %v5070_v52 = vld [vmem:[%s11339_s7 + $0x10] sm:$0xff] }
 0x765   :  { %v4836_v1 = vadd.f32 %v11111_v2, %v4822_v11  ;;  %v5079_v11 = vld [vmem:[%s11339_s7 + $0x58] sm:$0xff] }
 0x767   :  { %v4846_v53 = vmax.f32 %v4836_v1, 0.0  ;;  %v5074_v1 = vld [vmem:[%s11339_s7 + $0x30] sm:$0xff] }
 0x769   :  { %v4772_v44 = vpop.permute.xlu1 %4771  ;;  %6290 = vmatmul.msk.f32.vlgmr.msrb.gmra.mxu0 %vm4875_vm5, %v4846_v53  ;;  %v5071_v53 = vld [vmem:[%s11339_s7 + $0x18] sm:$0xff] }
 0x76a   :  { %v4803_v41 = vsel %vm4799_vm4, %v4772_v44, %v4774_v60  ;;  %v5075_v60 = vld [vmem:[%s11339_s7 + $0x38] sm:$0xff]  ;;  %v5068_v44 = vld [vmem:[%s11339_s7] sm:$0xff] }
 0x76b   :  { %v4823_v56 = vmax.f32 %v10931_v20, %v4803_v41 }
 0x76d   :  { %v4837_v8 = vadd.f32 %v11111_v2, %v4823_v56  ;;  %v5128_v56 = vld [vmem:[%s11342_s9 + $0x78] sm:$0xff] }
 0x76e   :  { %6446 = vmatpush.msra.mxu2 %v5128_v56 }
 0x76f   :  { %v4847_v37 = vmax.f32 %v4837_v8, 0.0  ;;  %v5126_v8 = vld [vmem:[%s11342_s9 + $0x68] sm:$0xff] }
 0x770   :  { %6447 = vmatpush.msra.mxu2 %v5127_v33 }
 0x771   :  { %v4778_v20 = vpop.permute.xlu0 %4777  ;;  %6291 = vmatmul.msk.f32.gmra.mxu0 %vm4875_vm5, %v4847_v37  ;;  %v4790_v54 = vpop.permute.xlu2 %4789  ;;  %v5124_v37 = vld [vmem:[%s11342_s9 + $0x58] sm:$0xff] }
 0x772   :  { %v4804_v48 = vsel %vm4799_vm4, %v4776_v17, %v4778_v20  ;;  %v5125_v17 = vld [vmem:[%s11342_s9 + $0x60] sm:$0xff]  ;;  %6448 = vmatpush.msra.mxu2 %v5126_v8 }
 0x773   :  { %v4824_v27 = vmax.f32 %v10948_v43, %v4804_v48 }
 0x774   :  { %6449 = vmatpush.msra.mxu2 %v5125_v17 }
 0x775   :  { %v4838_v63 = vadd.f32 %v11111_v2, %v4824_v27 }
 0x776   :  { %6450 = vmatpush.msra.mxu2 %v5124_v37 }
 0x777   :  { %v4848_v50 = vmax.f32 %v4838_v63, 0.0  ;;  %v5121_v63 = vld [vmem:[%s11342_s9 + $0x40] sm:$0xff] }
 0x778   :  { %6451 = vmatpush.msra.mxu2 %v5123_v23 }
 0x779   :  { %6304 = vmatmul.msk.f32.vlgmr.msrb.gmra.mxu2 %vm4875_vm5, %v4848_v50  ;;  %v4782_v43 = vpop.permute.xlu0 %4781  ;;  %v5120_v50 = vld [vmem:[%s11342_s9 + $0x38] sm:$0xff] }
 0x77a   :  { %v4805_v42 = vsel %vm4799_vm4, %v4780_v30, %v4782_v43  ;;  %6452 = vmatpush.msra.mxu2 %v5122_v40  ;;  %v6466_v30 = vld [vmem:[%s11340_s6] ss:$0 sm:$0xff]  ;;  %v5119_v43 = vld [vmem:[%s11342_s9 + $0x30] sm:$0xff] }
 0x77b   :  { %v4825_v45 = vmax.f32 %v10965_v13, %v4805_v42  ;;  %v5081_v13 = vld [vmem:[%s11339_s7 + $0x68] sm:$0xff] }
 0x77c   :  { %5090 = vmatpush.msrb.mxu1 %v5081_v13  ;;  %6453 = vmatpush.msra.mxu2 %v5121_v63 }
 0x77d   :  { %v4839_v58 = vadd.f32 %v11111_v2, %v4825_v45 }
 0x77e   :  { %6454 = vmatpush.msra.mxu2 %v5120_v50 }
 0x77f   :  { %v4849_v29 = vmax.f32 %v4839_v58, 0.0  ;;  %v5118_v58 = vld [vmem:[%s11342_s9 + $0x28] sm:$0xff] }
 0x780   :  { %6455 = vmatpush.msra.mxu2 %v5119_v43 }
 0x781   :  { %v4786_v51 = vpop.permute.xlu1 %4785  ;;  %6305 = vmatmul.msk.f32.gmra.mxu2 %vm4875_vm5, %v4849_v29  ;;  %v4784_v18 = vpop.permute.xlu0 %4783 }
 0x782   :  { %v4806_v16 = vsel %vm4799_vm4, %v4784_v18, %v4786_v51  ;;  %v4796_v0 = vpop.permute.xlu2 %4795  ;;  %6456 = vmatpush.msra.mxu2 %v5118_v58 }
 0x783   :  { %v4826_v24 = vmax.f32 %v10991_v36, %v4806_v16 }
 0x784   :  { %6457 = vmatpush.msra.mxu2 %v5117_v49 }
 0x785   :  { %v4840_v3 = vadd.f32 %v11111_v2, %v4826_v24  ;;  %v5116_v24 = vld [vmem:[%s11342_s9 + $0x18] sm:$0xff] }
 0x786   :  { %6458 = vmatpush.msra.mxu2 %v5116_v24 }
 0x787   :  { %v4850_v57 = vmax.f32 %v4840_v3, 0.0 }
 0x789   :  { %v4788_v32 = vpop.permute.xlu1 %4787  ;;  %6316 = vmatmul.msk.f32.vlgmr.msra.gmra.mxu3 %vm4875_vm5, %v4850_v57 }
 0x78a   :  { %v4807_v34 = vsel %vm4799_vm4, %v4788_v32, %v4790_v54 }
 0x78b   :  { %v4827_v61 = vmax.f32 %v11008_v9, %v4807_v34 }
 0x78d   :  { %v4841_v28 = vadd.f32 %v11111_v2, %v4827_v61  ;;  %v5115_v61 = vld [vmem:[%s11342_s9 + $0x10] sm:$0xff] }
 0x78e   :  { %6459 = vmatpush.msra.mxu2 %v5115_v61 }
 0x78f   :  { %v4851_v12 = vmax.f32 %v4841_v28, 0.0  ;;  %v5114_v28 = vld [vmem:[%s11342_s9 + $0x8] sm:$0xff] }
 0x790   :  { %6460 = vmatpush.msra.mxu2 %v5114_v28 }
 0x791   :  { %v4794_v26 = vpop.permute.xlu1 %4793  ;;  %v4792_v5 = vpop.permute.xlu0 %4791  ;;  %6317 = vmatmul.msk.f32.gmra.mxu3 %vm4875_vm5, %v4851_v12  ;;  %v5113_v12 = vld [vmem:[%s11342_s9] sm:$0xff] }
 0x792   :  { %v4808_v36 = vsel %vm4799_vm4, %v4792_v5, %v4794_v26  ;;  %6461 = vmatpush.msra.mxu2 %v5113_v12  ;;  %v6467_v26 = vld [vmem:[%s11341_s8] ss:$0 sm:$0xff] }
 0x793   :  { %v4828_v47 = vmax.f32 %v11030_v10, %v4808_v36  ;;  %v5080_v10 = vld [vmem:[%s11339_s7 + $0x60] sm:$0xff] }
 0x794   :  { %5091 = vmatpush.msrb.mxu1 %v5080_v10 }
 0x795   :  { %v4842_v25 = vadd.f32 %v11111_v2, %v4828_v47 }
 0x796   :  { %5092 = vmatpush.msrb.mxu1 %v5079_v11 }
 0x797   :  { %v4852_v4 = vmax.f32 %v4842_v25, 0.0 }
 0x798   :  { %5093 = vmatpush.msrb.mxu1 %v5078_v62 }
 0x799   :  { %6328 = vmatmul.msk.f32.vlgmr.msra.gmra.mxu0 %vm4875_vm5, %v4852_v4  ;;  %v4798_v15 = vpop.permute.xlu0 %4797 }
 0x79a   :  { %v4809_v9 = vsel %vm4799_vm4, %v4796_v0, %v4798_v15  ;;  %v6468_v15 = vld [vmem:[%s11343_s10] ss:$0 sm:$0xff] }
 0x79b   :  { %v4829_v7 = vmax.f32 %v11057_v14, %v4809_v9  ;;  %v5077_v14 = vld [vmem:[%s11339_s7 + $0x48] sm:$0xff] }
 0x79c   :  { %5094 = vmatpush.msrb.mxu1 %v5077_v14 }
 0x79d   :  { %v4843_v35 = vadd.f32 %v11111_v2, %v4829_v7  ;;  %v5076_v2 = vld [vmem:[%s11339_s7 + $0x40] sm:$0xff] }
 0x79e   :  { %5095 = vmatpush.msrb.mxu1 %v5076_v2 }
 0x79f   :  { %v4853_v6 = vmax.f32 %v4843_v35, 0.0 }
 0x7a0   :  { %5096 = vmatpush.msrb.mxu1 %v5075_v60 }
 0x7a1   :  { %6329 = vmatmul.msk.f32.gmra.mxu0 %vm4875_vm5, %v4853_v6 }
 0x7a2   :  { %5097 = vmatpush.msrb.mxu1 %v5074_v1 }
 0x7a4   :  { %5098 = vmatpush.msrb.mxu1 %v5073_v22 }
 0x7a6   :  { %5099 = vmatpush.msrb.mxu1 %v5072_v46 }
 0x7a8   :  { %5100 = vmatpush.msrb.mxu1 %v5071_v53 }
 0x7aa   :  { %5101 = vmatpush.msrb.mxu1 %v5070_v52 }
 0x7ac   :  { %5102 = vmatpush.msrb.mxu1 %v5069_v19 }
 0x7ae   :  { %5103 = vmatpush.msrb.mxu1 %v5068_v44 }
 0x7b0   :  { %5133 = vmatpush.msra.mxu1 %v5128_v56 }
 0x7b2   :  { %5134 = vmatpush.msra.mxu1 %v5127_v33 }
 0x7b4   :  { %5135 = vmatpush.msra.mxu1 %v5126_v8 }
 0x7b6   :  { %5136 = vmatpush.msra.mxu1 %v5125_v17 }
 0x7b8   :  { %5137 = vmatpush.msra.mxu1 %v5124_v37 }
 0x7ba   :  { %5138 = vmatpush.msra.mxu1 %v5123_v23 }
 0x7bc   :  { %5139 = vmatpush.msra.mxu1 %v5122_v40 }
 0x7be   :  { %5140 = vmatpush.msra.mxu1 %v5121_v63 }
 0x7c0   :  { %5141 = vmatpush.msra.mxu1 %v5120_v50 }
 0x7c2   :  { %5142 = vmatpush.msra.mxu1 %v5119_v43 }
 0x7c4   :  { %5143 = vmatpush.msra.mxu1 %v5118_v58 }
 0x7c6   :  { %5144 = vmatpush.msra.mxu1 %v5117_v49 }
 0x7c8   :  { %5145 = vmatpush.msra.mxu1 %v5116_v24 }
 0x7ca   :  { %5146 = vmatpush.msra.mxu1 %v5115_v61 }
 0x7cc   :  { %5147 = vmatpush.msra.mxu1 %v5114_v28 }
 0x7ce   :  { %5148 = vmatpush.msra.mxu1 %v5113_v12 }
 0x7dc   :  { %v4928_v41 = vpop.f32.mrf.mxu3 }
 0x7e4   :  { %v4931_v39 = vpop.f32.mrf.mxu3 }
 0x7e6   :  { %v4899_v21 = vpop.f32.mrf.mxu0 }
 0x7e7   :  { %v4929_v59 = vadd.f32 %v4928_v41, %v4899_v21 }
 0x7ee   :  { %v4902_v20 = vpop.f32.mrf.mxu0 }
 0x7ef   :  { %v4932_v51 = vadd.f32 %v4931_v39, %v4902_v20 }
 0x7fc   :  { %v4968_v48 = vpop.f32.mrf.mxu2 }
 0x7fd   :  { %v4974_v38 = vadd.f32 %v4968_v48, %v4929_v59 }
 0x804   :  { %v4971_v29 = vpop.f32.mrf.mxu2 }
 0x805   :  { %v4975_v16 = vadd.f32 %v4971_v29, %v4932_v51 }
 0x80c   :  { %v5010_v27 = vpop.f32.mrf.mxu3 }
 0x80d   :  { %v5016_v31 = vadd.f32 %v5010_v27, %v4974_v38 }
 0x814   :  { %v5013_v18 = vpop.f32.mrf.mxu3 }
 0x815   :  { %v5017_v3 = vadd.f32 %v5013_v18, %v4975_v16 }
 0x816   :  { %v5052_v42 = vpop.f32.mrf.mxu0 }
 0x817   :  { %v5058_v45 = vadd.f32 %v5052_v42, %v5016_v31 }
 0x819   :  { %v5064_v55 = vadd.f32 %v6466_v30, %v5058_v45 }
 0x81b   :  { %v5066_v13 = vmax.f32 %v5064_v55, 0.0 }
 0x81d   :  { %5104 = vmatmul.f32.vlgmr.msrb.gmra.mxu1 %v5066_v13 }
 0x81e   :  { %v5055_v57 = vpop.f32.mrf.mxu0 }
 0x81f   :  { %v5059_v54 = vadd.f32 %v5055_v57, %v5017_v3 }
 0x821   :  { %v5065_v32 = vadd.f32 %v6466_v30, %v5059_v54 }
 0x823   :  { %v5067_v34 = vmax.f32 %v5065_v32, 0.0 }
 0x825   :  { %5107 = vmatmul.f32.gmra.mxu1 %v5067_v34 }
 0x89a   :  { %v5105_v5 = vpop.f32.mrf.mxu1 }
 0x89b   :  { %v5106_v36 = vadd.f32 %v6467_v26, %v5105_v5 }
 0x89d   :  { %v5111_v47 = vmax.f32 %v5106_v36, 0.0 }
 0x89f   :  { %5149 = vmatmul.f32.vlgmr.msra.gmra.mxu1 %v5111_v47 }
 0x8a2   :  { %v5108_v25 = vpop.f32.mrf.mxu1 }
 0x8a3   :  { %v5109_v4 = vadd.f32 %v6467_v26, %v5108_v25 }
 0x8a5   :  { %v5112_v0 = vmax.f32 %v5109_v4, 0.0 }
 0x8a7   :  { %5152 = vmatmul.f32.vlgmr.msra.gmra.mxu2 %v5112_v0 }
 0x91c   :  { %v5150_v9 = vpop.f32.mrf.mxu1 }
 0x91d   :  { %v5151_v7 = vadd.f32 %v6468_v15, %v5150_v9 }
 0x91f   :  { %5156 = vmax.xlane.f32.xlu1 %v5151_v7 }
 0x92a   :  { %v5153_v35 = vpop.f32.mrf.mxu2 }
 0x92b   :  { %v5154_v6 = vadd.f32 %v6468_v15, %v5153_v35 }
 0x92d   :  { %5158 = vmax.xlane.f32.xlu2 %v5154_v6 }
 0x992   :  { %v5157_v10 = vpop.xlane.xlu1 %5156 }
 0x993   :  { %v5160_v11 = vsub.f32 %v5151_v7, %v5157_v10 }
 0x995   :  { %v5162_v62 = vmul.f32 1.442695, %v5160_v11 }
 0x997   :  { %6469 = vpow2.f32 %v5162_v62 }
 0x99d   :  { %v6470_v14 = vpop.eup %6469 }
 0x99e   :  { %5166 = vadd.xlane.f32.xlu0 %v6470_v14 }
 0x9a0   :  { %v5159_v2 = vpop.xlane.xlu2 %5158 }
 0x9a1   :  { %v5161_v60 = vsub.f32 %v5154_v6, %v5159_v2 }
 0x9a3   :  { %v5164_v1 = vmul.f32 1.442695, %v5161_v60 }
 0x9a5   :  { %6471 = vpow2.f32 %v5164_v1 }
 0x9ab   :  { %v6472_v22 = vpop.eup %6471 }
 0x9ac   :  { %5168 = vadd.xlane.f32.xlu2 %v6472_v22 }
 0xa11   :  { %v5167_v46 = vpop.xlane.xlu0 %5166 }
 0xa12   :  { %6473 = vrcp.f32 %v5167_v46 }
 0xa18   :  { %v6474_v53 = vpop.eup %6473 }
 0xa19   :  { %v5172_v52 = vmul.f32 %v6474_v53, %v6470_v14 }
 0xa1b   :  { %5174 = vst [vmem:[%s11344_s11] sm:$0xff] %v5172_v52 }
 0xa1f   :  { %v5169_v19 = vpop.xlane.xlu2 %5168 }
 0xa20   :  { %6475 = vrcp.f32 %v5169_v19 }
 0xa26   :  { %v6476_v44 = vpop.eup %6475 }
 0xa27   :  { %v5173_v41 = vmul.f32 %v6476_v44, %v6472_v22 }
 0xa29   :  { %5175 = vst [vmem:[%s11344_s11 + $0x8] sm:$0xff] %v5173_v41 }

</bundles_post_ra>
